<compile_context>
chip_gen: v7x
topology: tpu7x:2x2x1
jax: 0.10.0
libtpu: 0.0.40
codegen_flags: <defaults>
</compile_context>

<pallas_src>
import functools
import math

import jax
import jax.numpy as jnp
from jax.experimental import pallas as pl
from jax.experimental.pallas import tpu as pltpu


# ----------------------------------------------------------------------------
# Small helpers
# ----------------------------------------------------------------------------
def _round_up(x, m):
    return (x + m - 1) // m * m


def _pad2(a, rows, cols):
    r, c = a.shape
    if r == rows and c == cols:
        return a
    return jnp.pad(a, ((0, rows - r), (0, cols - c)))


# ----------------------------------------------------------------------------
# Tiled GEMM kernel: (M,K)@(K,N) + bias [+ residual], bf16 MXU / f32 accumulate
# ----------------------------------------------------------------------------
def _gemm_kernel(*refs, has_res):
    if has_res:
        x_ref, w_ref, b_ref, r_ref, o_ref, acc_ref = refs
    else:
        x_ref, w_ref, b_ref, o_ref, acc_ref = refs
        r_ref = None
    k = pl.program_id(2)

    @pl.when(k == 0)
    def _():
        acc_ref[...] = jnp.zeros_like(acc_ref)

    acc_ref[...] += jnp.dot(x_ref[...], w_ref[...],
                            preferred_element_type=jnp.float32)

    @pl.when(k == pl.num_programs(2) - 1)
    def _():
        out = acc_ref[...] + b_ref[...]
        if r_ref is not None:
            out = out + r_ref[...]
        o_ref[...] = out.astype(o_ref.dtype)


def gemm_bias(x, w, b, residual=None):
    """x:(M,K) @ w:(K,N) + b:(N,) [+ residual:(M,N)].  Returns f32 (M,N).

    Operands are cast to bf16 for the MXU; accumulation stays f32.  M/N/K are
    padded to lane-aligned multiples, the grid is tiled and double-buffered by
    BlockSpec pipelining, and the bias / residual adds are fused in the
    epilogue (init/finalize via pl.when on the K axis).
    """
    M, K = x.shape
    N = w.shape[1]
    tm = min(512, _round_up(M, 128))
    tn = min(256, _round_up(N, 128))
    tk = min(256, _round_up(K, 128))
    Mp, Kp, Np = _round_up(M, tm), _round_up(K, tk), _round_up(N, tn)

    xp = _pad2(x.astype(jnp.bfloat16), Mp, Kp)
    wp = _pad2(w.astype(jnp.bfloat16), Kp, Np)
    bp = _pad2(b.reshape(1, N).astype(jnp.float32), 1, Np)

    in_specs = [
        pl.BlockSpec((tm, tk), lambda i, j, k: (i, k)),
        pl.BlockSpec((tk, tn), lambda i, j, k: (k, j)),
        pl.BlockSpec((1, tn), lambda i, j, k: (0, j)),
    ]
    args = [xp, wp, bp]
    has_res = residual is not None
    if has_res:
        rp = _pad2(residual.astype(jnp.float32), Mp, Np)
        in_specs.append(pl.BlockSpec((tm, tn), lambda i, j, k: (i, j)))
        args.append(rp)

    flops = 2 * Mp * Np * Kp
    bytes_acc = 2 * (Mp * Kp + Kp * Np) + 4 * Mp * Np * (2 if has_res else 1)

    out = pl.pallas_call(
        functools.partial(_gemm_kernel, has_res=has_res),
        out_shape=jax.ShapeDtypeStruct((Mp, Np), jnp.float32),
        grid=(Mp // tm, Np // tn, Kp // tk),
        in_specs=in_specs,
        out_specs=pl.BlockSpec((tm, tn), lambda i, j, k: (i, j)),
        scratch_shapes=[pltpu.VMEM((tm, tn), jnp.float32)],
        compiler_params=pltpu.CompilerParams(
            dimension_semantics=("parallel", "parallel", "arbitrary"),
            vmem_limit_bytes=32 * 1024 * 1024),
        cost_estimate=pl.CostEstimate(flops=flops, transcendentals=0,
                                      bytes_accessed=bytes_acc),
    )(*args)
    if Mp != M or Np != N:
        out = out[:M, :N]
    return out


# ----------------------------------------------------------------------------
# GroupNorm (+ Swish, + optional fused pre-add of the time embedding)
# ----------------------------------------------------------------------------
def _gn_kernel(*refs, eps, do_swish, has_emb, inv_count):
    if has_emb:
        x_ref, g_ref, b_ref, m_ref, e_ref, o_ref = refs
    else:
        x_ref, g_ref, b_ref, m_ref, o_ref = refs
        e_ref = None

    x = x_ref[0].astype(jnp.float32)          # (HW, C)
    if e_ref is not None:
        x = x + e_ref[0]                      # (1, C) broadcast: h + time_emb
    mask = m_ref[...]                         # (C, G) group membership (0/1)

    # per-group mean / variance via small MXU dots (no full-size gamma/beta)
    mean_g = jnp.sum(jnp.dot(x, mask, preferred_element_type=jnp.float32),
                     axis=0, keepdims=True) * inv_count            # (1, G)
    mean_c = jnp.dot(mean_g, mask.T, preferred_element_type=jnp.float32)
    xc = x - mean_c
    var_g = jnp.sum(jnp.dot(xc * xc, mask, preferred_element_type=jnp.float32),
                    axis=0, keepdims=True) * inv_count             # (1, G)
    var_c = jnp.dot(var_g, mask.T, preferred_element_type=jnp.float32)

    y = xc * jax.lax.rsqrt(var_c + eps)
    y = y * g_ref[...] + b_ref[...]
    if do_swish:
        y = y * jax.nn.sigmoid(y)
    o_ref[0] = y.astype(o_ref.dtype)


def group_norm(x, gamma, beta, groups, *, eps=1e-5, do_swish=False, emb=None):
    """GroupNorm (+Swish) on NHWC input; optional per-batch (N,C) pre-add.

    Output is bf16 (it always feeds an MXU GEMM next).  Stats are f32.
    """
    N, H, W, C = x.shape
    G = groups
    Cg = C // G
    HW = H * W
    x3 = x.reshape(N, HW, C)
    g2 = gamma.reshape(1, C).astype(jnp.float32)
    b2 = beta.reshape(1, C).astype(jnp.float32)
    mask = (jnp.arange(C)[:, None] // Cg == jnp.arange(G)[None, :]).astype(jnp.float32)

    in_specs = [
        pl.BlockSpec((1, HW, C), lambda n: (n, 0, 0)),
        pl.BlockSpec((1, C), lambda n: (0, 0)),
        pl.BlockSpec((1, C), lambda n: (0, 0)),
        pl.BlockSpec((C, G), lambda n: (0, 0)),
    ]
    args = [x3, g2, b2, mask]
    has_emb = emb is not None
    if has_emb:
        in_specs.append(pl.BlockSpec((1, 1, C), lambda n: (n, 0, 0)))
        args.append(emb.reshape(N, 1, C).astype(jnp.float32))

    y = pl.pallas_call(
        functools.partial(_gn_kernel, eps=eps, do_swish=do_swish,
                          has_emb=has_emb, inv_count=1.0 / (HW * Cg)),
        out_shape=jax.ShapeDtypeStruct((N, HW, C), jnp.bfloat16),
        grid=(N,),
        in_specs=in_specs,
        out_specs=pl.BlockSpec((1, HW, C), lambda n: (n, 0, 0)),
        compiler_params=pltpu.CompilerParams(
            dimension_semantics=("parallel",),
            vmem_limit_bytes=32 * 1024 * 1024),
    )(*args)
    return y.reshape(N, H, W, C)


# ----------------------------------------------------------------------------
# Flash-style self-attention (online softmax, no LxL materialization)
# ----------------------------------------------------------------------------
_NEG = -1e30


def _flash_attn_kernel(q_ref, k_ref, v_ref, o_ref, m_sc, l_sc, acc_sc, *,
                       scale, kv_len, tk, masked):
    ki = pl.program_id(2)

    @pl.when(ki == 0)
    def _():
        m_sc[...] = jnp.full_like(m_sc, _NEG)
        l_sc[...] = jnp.zeros_like(l_sc)
        acc_sc[...] = jnp.zeros_like(acc_sc)

    q = q_ref[0]
    k = k_ref[0]
    s = jnp.dot(q, k.T, preferred_element_type=jnp.float32) * scale  # (tq, tk)
    if masked:
        col = ki * tk + jax.lax.broadcasted_iota(jnp.int32, s.shape, 1)
        s = jnp.where(col < kv_len, s, _NEG)

    m_prev = m_sc[...]
    m_new = jnp.maximum(m_prev, jnp.max(s, axis=-1, keepdims=True))
    alpha = jnp.exp(m_prev - m_new)
    p = jnp.exp(s - m_new)
    l_sc[...] = alpha * l_sc[...] + jnp.sum(p, axis=-1, keepdims=True)
    acc_sc[...] = alpha * acc_sc[...] + jnp.dot(
        p.astype(v_ref.dtype), v_ref[0], preferred_element_type=jnp.float32)
    m_sc[...] = m_new

    @pl.when(ki == pl.num_programs(2) - 1)
    def _():
        o_ref[0] = (acc_sc[...] *
                    pl.reciprocal(l_sc[...], approx=True)).astype(o_ref.dtype)


def attention(q, k, v, scale):
    """q,k,v: (BH, L, D) bf16 -> (BH, L, D) f32, flash-tiled over (q, kv)."""
    BH, L, D = q.shape
    if L % 128 == 0:
        tq = tk = min(L, 256)
        Lp = L
    elif L % 8 == 0 and L <= 256:
        tq = tk = L
        Lp = L
    else:
        tq = tk = 128
        Lp = _round_up(L, 128)
    if Lp != L:
        pad = ((0, 0), (0, Lp - L), (0, 0))
        q, k, v = (jnp.pad(a, pad) for a in (q, k, v))

    q_spec = pl.BlockSpec((1, tq, D), lambda b, qi, ki: (b, qi, 0))
    kv_spec = pl.BlockSpec((1, tk, D), lambda b, qi, ki: (b, ki, 0))
    o_spec = pl.BlockSpec((1, tq, D), lambda b, qi, ki: (b, qi, 0))

    out = pl.pallas_call(
        functools.partial(_flash_attn_kernel, scale=scale, kv_len=L, tk=tk,
                          masked=(Lp != L)),
        out_shape=jax.ShapeDtypeStruct((BH, Lp, D), jnp.float32),
        grid=(BH, Lp // tq, Lp // tk),
        in_specs=[q_spec, kv_spec, kv_spec],
        out_specs=o_spec,
        scratch_shapes=[pltpu.VMEM((tq, 1), jnp.float32),
                        pltpu.VMEM((tq, 1), jnp.float32),
                        pltpu.VMEM((tq, D), jnp.float32)],
        compiler_params=pltpu.CompilerParams(
            dimension_semantics=("parallel", "parallel", "arbitrary"),
            vmem_limit_bytes=32 * 1024 * 1024),
    )(q, k, v)
    return out[:, :L, :] if Lp != L else out


# ----------------------------------------------------------------------------
# Conv wrappers (NHWC; GEMM + fused bias/residual in Pallas)
# ----------------------------------------------------------------------------
def conv1x1(x, w, b, residual=None):
    """x: (N,H,W,C), w: (C, Cout), b: (Cout,).  Optional fused residual add."""
    N, H, W, C = x.shape
    Cout = w.shape[1]
    r2 = residual.reshape(N * H * W, Cout) if residual is not None else None
    y = gemm_bias(x.reshape(N * H * W, C), w, b, residual=r2)
    return y.reshape(N, H, W, Cout)


def conv3x3(x, w, b, stride=1, residual=None):
    """x: (N,H,W,C), w: (3,3,Cin,Cout), b: (Cout,).  PyTorch Conv2d(k=3,p=1)."""
    # TODO(synk): build the 3x3 patches in-kernel via a halo DMA to avoid the
    # 9x im2col HBM expansion; currently patches are built in JAX (NHWC) and
    # fed to the tiled bf16 GEMM.
    N, H, W, C = x.shape
    Cout = w.shape[-1]
    xp = jnp.pad(x, ((0, 0), (1, 1), (1, 1), (0, 0)))
    Ho = (H + 2 - 3) // stride + 1
    Wo = (W + 2 - 3) // stride + 1
    taps = []
    for dy in range(3):
        for dx in range(3):
            taps.append(xp[:, dy:dy + stride * (Ho - 1) + 1:stride,
                              dx:dx + stride * (Wo - 1) + 1:stride, :])
    patches = jnp.concatenate(taps, axis=-1).reshape(N * Ho * Wo, 9 * C)
    r2 = residual.reshape(N * Ho * Wo, Cout) if residual is not None else None
    y = gemm_bias(patches, w.reshape(9 * C, Cout), b, residual=r2)
    return y.reshape(N, Ho, Wo, Cout)


def resize_nearest(x, size):
    """F.interpolate(mode='nearest') on NHWC."""
    N, H, W, C = x.shape
    Ho, Wo = size
    if (H, W) == (Ho, Wo):
        return x
    iy = (jnp.arange(Ho) * H) // Ho
    ix = (jnp.arange(Wo) * W) // Wo
    return x[:, iy][:, :, ix]


def swish(x):
    return x * jax.nn.sigmoid(x)


# ----------------------------------------------------------------------------
# Deterministic parameter init (weights stored channel-last / (in, out))
# ----------------------------------------------------------------------------
class KeyGen:
    def __init__(self, seed=0):
        self.key = jax.random.PRNGKey(seed)

    def __call__(self):
        self.key, sub = jax.random.split(self.key)
        return sub


def init_linear(kg, din, dout):
    return {"w": 0.05 * jax.random.normal(kg(), (din, dout), jnp.float32),
            "b": jnp.zeros((dout,), jnp.float32)}


def init_gn(c):
    return {"g": jnp.ones((c,), jnp.float32), "b": jnp.zeros((c,), jnp.float32)}


def init_conv3(kg, cin, cout):
    return {"w": 0.05 * jax.random.normal(kg(), (3, 3, cin, cout), jnp.float32),
            "b": jnp.zeros((cout,), jnp.float32)}


def init_conv1(kg, cin, cout, zero=False):
    if zero:  # zero_conv1x1: constant 0 weight and bias
        return {"w": jnp.zeros((cin, cout), jnp.float32),
                "b": jnp.zeros((cout,), jnp.float32)}
    return {"w": 0.05 * jax.random.normal(kg(), (cin, cout), jnp.float32),
            "b": jnp.zeros((cout,), jnp.float32)}


def init_resblock(kg, dim, dim_out, emb_dim):
    p = {
        "noise_func": init_linear(kg, emb_dim, dim_out),
        "gn1": init_gn(dim), "conv1": init_conv3(kg, dim, dim_out),
        "gn2": init_gn(dim_out), "conv2": init_conv3(kg, dim_out, dim_out),
    }
    if dim != dim_out:
        p["res_conv"] = init_conv1(kg, dim, dim_out)
    return p


def init_attn(kg, dim):
    return {"gn": init_gn(dim),
            "qkv": {"w": 0.05 * jax.random.normal(kg(), (dim, 3 * dim), jnp.float32)},
            "out": init_conv1(kg, dim, dim)}


def init_resattn(kg, dim, dim_out, emb_dim, with_attn):
    p = {"res": init_resblock(kg, dim, dim_out, emb_dim), "with_attn": with_attn}
    if with_attn:
        p["attn"] = init_attn(kg, dim_out)
    return p


def init_unet(kg, cfg):
    ic, inner = cfg["in_channel"], cfg["inner_channel"]
    mults, rb = cfg["channel_mults"], cfg["res_blocks"]
    emb = inner
    unet = {"noise_mlp": {"l1": init_linear(kg, inner, inner * 4),
                          "l2": init_linear(kg, inner * 4, inner)}}
    downs = [{"type": "conv", "p": init_conv3(kg, ic, inner)}]
    pre = inner
    feat_channels = [pre]
    num_mults = len(mults)
    for ind in range(num_mults):
        is_last = ind == num_mults - 1
        cm = inner * mults[ind]
        for _ in range(rb):
            downs.append({"type": "resattn",
                          "p": init_resattn(kg, pre, cm, emb, with_attn=False)})
            feat_channels.append(cm)
            pre = cm
        if not is_last:
            downs.append({"type": "down", "p": init_conv3(kg, pre, pre)})
            feat_channels.append(pre)
    unet["downs"] = downs
    unet["mid"] = [
        {"type": "resattn", "p": init_resattn(kg, pre, pre, emb, with_attn=True)},
        {"type": "resattn", "p": init_resattn(kg, pre, pre, emb, with_attn=False)},
    ]
    ups = []
    for ind in reversed(range(num_mults)):
        is_last = ind < 1
        cm = inner * mults[ind]
        for _ in range(rb + 1):
            ups.append({"type": "resattn",
                        "p": init_resattn(kg, pre + feat_channels.pop(), cm, emb, False)})
            pre = cm
        if not is_last:
            ups.append({"type": "up", "p": init_conv3(kg, pre, pre)})
    unet["ups"] = ups
    # TODO(synk): v2 final_conv1(x, skip)/final_conv2 structure not given in the
    # reference; implemented as 3x3 conv on concat(x, skip) followed by 3x3 conv.
    unet["final_conv1"] = init_conv3(kg, pre + ic, cfg["out_channel"])
    unet["final_conv2"] = init_conv3(kg, cfg["out_channel"], cfg["out_channel"])
    return unet


def init_controlnet(kg, unet, cfg):
    ic, inner = cfg["in_channel"], cfg["inner_channel"]
    mults, rb = cfg["channel_mults"], cfg["res_blocks"]
    cn = {"unet": unet,
          # deepcopy(unet.downs/mid) -> identical values; reuse the same params
          "trainable_downs": unet["downs"],
          "trainable_mid": unet["mid"],
          "zero_stem": init_conv1(kg, ic, ic, zero=True)}
    zero_downs = [init_conv1(kg, inner, inner, zero=True)]
    pre = inner
    num_mults = len(mults)
    for ind in range(num_mults):
        is_last = ind == num_mults - 1
        cm = inner * mults[ind]
        for _ in range(rb):
            zero_downs.append(init_conv1(kg, cm, cm, zero=True))
            pre = cm
        if not is_last:
            zero_downs.append(init_conv1(kg, pre, pre, zero=True))
    assert len(zero_downs) == len(unet["downs"])
    cn["zero_downs"] = zero_downs
    cn["zero_mid"] = init_conv1(kg, pre, pre, zero=True)
    return cn


# ----------------------------------------------------------------------------
# Layer forward functions (all heavy math routed through Pallas kernels)
# ----------------------------------------------------------------------------
def noise_mlp_fn(p, time, dim):
    # SR3 PositionalEncoding + Linear -> Swish -> Linear; time: (B,)
    count = dim // 2
    step = jnp.arange(count, dtype=jnp.float32) / count
    enc = time[:, None] * jnp.exp(-math.log(1e4) * step[None, :])
    enc = jnp.concatenate([jnp.sin(enc), jnp.cos(enc)], axis=-1)   # (B, dim)
    h = swish(gemm_bias(enc, p["l1"]["w"], p["l1"]["b"]))
    return gemm_bias(h, p["l2"]["w"], p["l2"]["b"])


def resblock_fn(p, x, t, groups):
    # block 1: GN+Swish (fused) -> 3x3 conv
    h = group_norm(x, p["gn1"]["g"], p["gn1"]["b"], groups, do_swish=True)
    h = conv3x3(h, p["conv1"]["w"], p["conv1"]["b"])
    # time embedding: (B, dim_out); its add is fused into the second GroupNorm
    emb = gemm_bias(t, p["noise_func"]["w"], p["noise_func"]["b"])
    h = group_norm(h, p["gn2"]["g"], p["gn2"]["b"], groups, do_swish=True, emb=emb)
    # block 2: 3x3 conv with the residual add fused into the GEMM epilogue
    if "res_conv" in p:
        res = conv1x1(x, p["res_conv"]["w"], p["res_conv"]["b"])
    else:
        res = x
    return conv3x3(h, p["conv2"]["w"], p["conv2"]["b"], residual=res)


def attn_fn(p, x, groups):
    N, H, W, C = x.shape
    h = group_norm(x, p["gn"]["g"], p["gn"]["b"], groups, do_swish=False)
    # TODO(synk): fuse the qkv 1x1 conv into the flash-attention kernel itself.
    qkv = conv1x1(h, p["qkv"]["w"], jnp.zeros((3 * C,), jnp.float32))
    qkv = qkv.reshape(N, H * W, 3 * C).astype(jnp.bfloat16)
    q, k, v = qkv[..., :C], qkv[..., C:2 * C], qkv[..., 2 * C:]
    o = attention(q, k, v, 1.0 / math.sqrt(C)).reshape(N, H, W, C)
    # output projection with the residual (o + x) fused into the GEMM epilogue
    return conv1x1(o, p["out"]["w"], p["out"]["b"], residual=x)


def resattn_fn(p, x, t, groups):
    x = resblock_fn(p["res"], x, t, groups)
    if p["with_attn"]:
        x = attn_fn(p["attn"], x, groups)
    return x


def apply_layer(layer, x, t, groups):
    kind = layer["type"]
    if kind == "resattn":
        return resattn_fn(layer["p"], x, t, groups)
    if kind == "conv":
        return conv3x3(x, layer["p"]["w"], layer["p"]["b"])
    if kind == "down":
        return conv3x3(x, layer["p"]["w"], layer["p"]["b"], stride=2)
    if kind == "up":
        xu = jnp.repeat(jnp.repeat(x, 2, axis=1), 2, axis=2)   # nearest x2 NHWC
        return conv3x3(xu, layer["p"]["w"], layer["p"]["b"])
    raise ValueError(kind)


# ----------------------------------------------------------------------------
# ControlNet forward (mirrors the PyTorch forward; NCHW I/O, NHWC compute)
# ----------------------------------------------------------------------------
def controlnet_forward(cn, x_nchw, cond_nchw, time, cfg):
    groups = cfg["norm_groups"]
    unet = cn["unet"]
    x = jnp.transpose(x_nchw, (0, 2, 3, 1))       # NHWC compute layout
    cond = jnp.transpose(cond_nchw, (0, 2, 3, 1))

    t = noise_mlp_fn(unet["noise_mlp"], time, cfg["inner_channel"])

    feats = [x]
    cond = conv1x1(cond, cn["zero_stem"]["w"], cn["zero_stem"]["b"], residual=x)
    control_feats = [cond]

    for idx in range(len(cn["trainable_downs"])):
        locked = unet["downs"][idx]
        train = cn["trainable_downs"][idx]
        zero = cn["zero_downs"][idx]
        x = apply_layer(locked, x, t, groups)
        cond = apply_layer(train, cond, t, groups)
        zero_cond = conv1x1(cond, zero["w"], zero["b"])
        feats.append(x)
        control_feats.append(zero_cond)

    for idx in range(len(cn["trainable_mid"])):
        locked = unet["mid"][idx]
        x = apply_layer(locked, x, t, groups)
        cond = apply_layer(locked, cond, t, groups)   # reference uses locked layer here

    # x += zero_mid(cond): residual add fused into the zero-conv GEMM
    x = conv1x1(cond, cn["zero_mid"]["w"], cn["zero_mid"]["b"], residual=x)

    for layer in unet["ups"]:
        if layer["type"] == "resattn":
            skip = feats.pop() + control_feats.pop()
            x = resize_nearest(x, skip.shape[1:3])
            x = resattn_fn(layer["p"], jnp.concatenate([x, skip], axis=-1), t, groups)
        else:
            x = apply_layer(layer, x, t, groups)

    # version == 'v2'
    skip = feats.pop() + control_feats.pop()
    noise = conv3x3(jnp.concatenate([x, skip], axis=-1),
                    unet["final_conv1"]["w"], unet["final_conv1"]["b"])
    noise = conv3x3(noise, unet["final_conv2"]["w"], unet["final_conv2"]["b"])
    return jnp.transpose(noise, (0, 3, 1, 2))     # back to NCHW at the boundary


# ----------------------------------------------------------------------------
# Main
# ----------------------------------------------------------------------------
if __name__ == "__main__":
    cfg = dict(
        in_channel=6,
        inner_channel=8,
        channel_mults=(1, 2),
        res_blocks=1,
        image_size=8,
        out_channel=3,
        norm_groups=4,
    )

    kg = KeyGen(seed=0)
    unet = init_unet(kg, cfg)
    cn = init_controlnet(kg, unet, cfg)

    key = jax.random.PRNGKey(0)
    kx, kc, kt = jax.random.split(key, 3)
    B = 2
    x = jax.random.normal(kx, (B, cfg["in_channel"], cfg["image_size"], cfg["image_size"]),
                          jnp.float32)
    cond = jax.random.normal(kc, (B, cfg["in_channel"], cfg["image_size"], cfg["image_size"]),
                             jnp.float32)
    time = jax.random.uniform(kt, (B,), jnp.float32)

    forward = jax.jit(lambda xx, cc, tt: controlnet_forward(cn, xx, cc, tt, cfg))
    noise = forward(x, cond, time)
    noise = jax.block_until_ready(noise)
    assert noise.shape == (B, cfg["out_channel"], cfg["image_size"], cfg["image_size"])
    assert bool(jnp.all(jnp.isfinite(noise)))
    print("KERNEL_OK")
</pallas_src>

<mosaic_0001>
module attributes {stable_mosaic.version = 11 : i64} {
  func.func @_gemm_kernel(%arg0: i32, %arg1: i32, %arg2: i32, %arg3: memref<128x128xbf16, #tpu.memory_space<vmem>>, %arg4: memref<128x128xbf16, #tpu.memory_space<vmem>>, %arg5: memref<1x128xf32, #tpu.memory_space<vmem>>, %arg6: memref<128x128xf32, #tpu.memory_space<vmem>>, %arg7: memref<128x128xf32, #tpu.memory_space<vmem>>) attributes {dimension_semantics = [#tpu.dimension_semantics<parallel>, #tpu.dimension_semantics<parallel>, #tpu.dimension_semantics<arbitrary>], iteration_bounds = array<i64: 1, 1, 1>, scalar_prefetch = 0 : i64, scratch_operands = 1 : i64, tpu.core_type = #tpu.core_type<tc>, window_params = [{transform_indices = @transform_0, window_bounds = array<i64: 128, 128>}, {transform_indices = @transform_1, window_bounds = array<i64: 128, 128>}, {transform_indices = @transform_2, window_bounds = array<i64: 1, 128>}, {transform_indices = @transform_3, window_bounds = array<i64: 128, 128>}]} {
    %c0_i32 = arith.constant 0 : i32
    %0 = arith.cmpi eq, %arg2, %c0_i32 : i32
    %1 = arith.extui %0 : i1 to i32
    %c0_i32_0 = arith.constant 0 : i32
    %2 = arith.cmpi ne, %1, %c0_i32_0 : i32
    scf.if %2 {
      %cst_10 = arith.constant 0.000000e+00 : f32
      %12 = vector.broadcast %cst_10 : f32 to vector<128x128xf32>
      %c0_11 = arith.constant 0 : index
      %c0_12 = arith.constant 0 : index
      %13 = vector.load %arg7[%c0_11, %c0_12] : memref<128x128xf32, #tpu.memory_space<vmem>>, vector<128x128xf32>
      tpu.vector_store %arg7[%c0_11, %c0_12], %12 {strides = array<i32>} : memref<128x128xf32, #tpu.memory_space<vmem>>, vector<128x128xf32>,
    } else {
    }
    %c0 = arith.constant 0 : index
    %c0_1 = arith.constant 0 : index
    %3 = vector.load %arg7[%c0, %c0_1] : memref<128x128xf32, #tpu.memory_space<vmem>>, vector<128x128xf32>
    %c0_2 = arith.constant 0 : index
    %c0_3 = arith.constant 0 : index
    %4 = vector.load %arg3[%c0_2, %c0_3] : memref<128x128xbf16, #tpu.memory_space<vmem>>, vector<128x128xbf16>
    %c0_4 = arith.constant 0 : index
    %c0_5 = arith.constant 0 : index
    %5 = vector.load %arg4[%c0_4, %c0_5] : memref<128x128xbf16, #tpu.memory_space<vmem>>, vector<128x128xbf16>
    %cst = arith.constant dense<0.000000e+00> : vector<128x128xf32>
    %6 = tpu.matmul %4, %5, %cst {dimension_numbers = #tpu.dot_dimension_numbers<[1], [0], [0], [1], [0, 0, 1, 1], [], []>} : vector<128x128xbf16>, vector<128x128xbf16>, vector<128x128xf32> -> vector<128x128xf32>
    %7 = arith.addf %3, %6 : vector<128x128xf32>
    %c0_6 = arith.constant 0 : index
    %c0_7 = arith.constant 0 : index
    %8 = vector.load %arg7[%c0_6, %c0_7] : memref<128x128xf32, #tpu.memory_space<vmem>>, vector<128x128xf32>
    tpu.vector_store %arg7[%c0_6, %c0_7], %7 {strides = array<i32>} : memref<128x128xf32, #tpu.memory_space<vmem>>, vector<128x128xf32>,
    %c0_i32_8 = arith.constant 0 : i32
    %9 = arith.cmpi eq, %arg2, %c0_i32_8 : i32
    %10 = arith.extui %9 : i1 to i32
    %c0_i32_9 = arith.constant 0 : i32
    %11 = arith.cmpi ne, %10, %c0_i32_9 : i32
    scf.if %11 {
      %c0_10 = arith.constant 0 : index
      %c0_11 = arith.constant 0 : index
      %12 = vector.load %arg7[%c0_10, %c0_11] : memref<128x128xf32, #tpu.memory_space<vmem>>, vector<128x128xf32>
      %c0_12 = arith.constant 0 : index
      %c0_13 = arith.constant 0 : index
      %13 = vector.load %arg5[%c0_12, %c0_13] : memref<1x128xf32, #tpu.memory_space<vmem>>, vector<1x128xf32>
      %14 = vector.broadcast %13 : vector<1x128xf32> to vector<128x128xf32>
      %15 = arith.addf %12, %14 : vector<128x128xf32>
      %c0_14 = arith.constant 0 : index
      %c0_15 = arith.constant 0 : index
      %16 = vector.load %arg6[%c0_14, %c0_15] : memref<128x128xf32, #tpu.memory_space<vmem>>, vector<128x128xf32>
      tpu.vector_store %arg6[%c0_14, %c0_15], %15 {strides = array<i32>} : memref<128x128xf32, #tpu.memory_space<vmem>>, vector<128x128xf32>,
    } else {
    }
    return
  }
  func.func @transform_0(%arg0: i32, %arg1: i32, %arg2: i32) -> (i32, i32) {
    %c0_i32 = arith.constant 0 : i32
    return %arg0, %arg2 : i32, i32
  }
  func.func @transform_1(%arg0: i32, %arg1: i32, %arg2: i32) -> (i32, i32) {
    %c0_i32 = arith.constant 0 : i32
    return %arg2, %arg1 : i32, i32
  }
  func.func @transform_2(%arg0: i32, %arg1: i32, %arg2: i32) -> (i32, i32) {
    %c0_i32 = arith.constant 0 : i32
    %c0_i32_0 = arith.constant 0 : i32
    return %c0_i32, %arg1 : i32, i32
  }
  func.func @transform_3(%arg0: i32, %arg1: i32, %arg2: i32) -> (i32, i32) {
    %c0_i32 = arith.constant 0 : i32
    return %arg0, %arg1 : i32, i32
  }
}

module attributes {stable_mosaic.version = 11 : i64} {
  func.func @_gemm_kernel(%arg0: i32, %arg1: i32, %arg2: i32, %arg3: memref<128x128xbf16, #tpu.memory_space<vmem>>, %arg4: memref<128x128xbf16, #tpu.memory_space<vmem>>, %arg5: memref<1x128xf32, #tpu.memory_space<vmem>>, %arg6: memref<128x128xf32, #tpu.memory_space<vmem>>, %arg7: memref<128x128xf32, #tpu.memory_space<vmem>>, %arg8: memref<128x128xf32, #tpu.memory_space<vmem>>) attributes {dimension_semantics = [#tpu.dimension_semantics<parallel>, #tpu.dimension_semantics<parallel>, #tpu.dimension_semantics<arbitrary>], iteration_bounds = array<i64: 1, 1, 1>, scalar_prefetch = 0 : i64, scratch_operands = 1 : i64, tpu.core_type = #tpu.core_type<tc>, window_params = [{transform_indices = @transform_0, window_bounds = array<i64: 128, 128>}, {transform_indices = @transform_1, window_bounds = array<i64: 128, 128>}, {transform_indices = @transform_2, window_bounds = array<i64: 1, 128>}, {transform_indices = @transform_3, window_bounds = array<i64: 128, 128>}, {transform_indices = @transform_4, window_bounds = array<i64: 128, 128>}]} {
    %c0_i32 = arith.constant 0 : i32
    %0 = arith.cmpi eq, %arg2, %c0_i32 : i32
    %1 = arith.extui %0 : i1 to i32
    %c0_i32_0 = arith.constant 0 : i32
    %2 = arith.cmpi ne, %1, %c0_i32_0 : i32
    scf.if %2 {
      %cst_10 = arith.constant 0.000000e+00 : f32
      %12 = vector.broadcast %cst_10 : f32 to vector<128x128xf32>
      %c0_11 = arith.constant 0 : index
      %c0_12 = arith.constant 0 : index
      %13 = vector.load %arg8[%c0_11, %c0_12] : memref<128x128xf32, #tpu.memory_space<vmem>>, vector<128x128xf32>
      tpu.vector_store %arg8[%c0_11, %c0_12], %12 {strides = array<i32>} : memref<128x128xf32, #tpu.memory_space<vmem>>, vector<128x128xf32>,
    } else {
    }
    %c0 = arith.constant 0 : index
    %c0_1 = arith.constant 0 : index
    %3 = vector.load %arg8[%c0, %c0_1] : memref<128x128xf32, #tpu.memory_space<vmem>>, vector<128x128xf32>
    %c0_2 = arith.constant 0 : index
    %c0_3 = arith.constant 0 : index
    %4 = vector.load %arg3[%c0_2, %c0_3] : memref<128x128xbf16, #tpu.memory_space<vmem>>, vector<128x128xbf16>
    %c0_4 = arith.constant 0 : index
    %c0_5 = arith.constant 0 : index
    %5 = vector.load %arg4[%c0_4, %c0_5] : memref<128x128xbf16, #tpu.memory_space<vmem>>, vector<128x128xbf16>
    %cst = arith.constant dense<0.000000e+00> : vector<128x128xf32>
    %6 = tpu.matmul %4, %5, %cst {dimension_numbers = #tpu.dot_dimension_numbers<[1], [0], [0], [1], [0, 0, 1, 1], [], []>} : vector<128x128xbf16>, vector<128x128xbf16>, vector<128x128xf32> -> vector<128x128xf32>
    %7 = arith.addf %3, %6 : vector<128x128xf32>
    %c0_6 = arith.constant 0 : index
    %c0_7 = arith.constant 0 : index
    %8 = vector.load %arg8[%c0_6, %c0_7] : memref<128x128xf32, #tpu.memory_space<vmem>>, vector<128x128xf32>
    tpu.vector_store %arg8[%c0_6, %c0_7], %7 {strides = array<i32>} : memref<128x128xf32, #tpu.memory_space<vmem>>, vector<128x128xf32>,
    %c0_i32_8 = arith.constant 0 : i32
    %9 = arith.cmpi eq, %arg2, %c0_i32_8 : i32
    %10 = arith.extui %9 : i1 to i32
    %c0_i32_9 = arith.constant 0 : i32
    %11 = arith.cmpi ne, %10, %c0_i32_9 : i32
    scf.if %11 {
      %c0_10 = arith.constant 0 : index
      %c0_11 = arith.constant 0 : index
      %12 = vector.load %arg8[%c0_10, %c0_11] : memref<128x128xf32, #tpu.memory_space<vmem>>, vector<128x128xf32>
      %c0_12 = arith.constant 0 : index
      %c0_13 = arith.constant 0 : index
      %13 = vector.load %arg5[%c0_12, %c0_13] : memref<1x128xf32, #tpu.memory_space<vmem>>, vector<1x128xf32>
      %14 = vector.broadcast %13 : vector<1x128xf32> to vector<128x128xf32>
      %15 = arith.addf %12, %14 : vector<128x128xf32>
      %c0_14 = arith.constant 0 : index
      %c0_15 = arith.constant 0 : index
      %16 = vector.load %arg6[%c0_14, %c0_15] : memref<128x128xf32, #tpu.memory_space<vmem>>, vector<128x128xf32>
      %17 = arith.addf %15, %16 : vector<128x128xf32>
      %c0_16 = arith.constant 0 : index
      %c0_17 = arith.constant 0 : index
      %18 = vector.load %arg7[%c0_16, %c0_17] : memref<128x128xf32, #tpu.memory_space<vmem>>, vector<128x128xf32>
      tpu.vector_store %arg7[%c0_16, %c0_17], %17 {strides = array<i32>} : memref<128x128xf32, #tpu.memory_space<vmem>>, vector<128x128xf32>,
    } else {
    }
    return
  }
  func.func @transform_0(%arg0: i32, %arg1: i32, %arg2: i32) -> (i32, i32) {
    %c0_i32 = arith.constant 0 : i32
    return %arg0, %arg2 : i32, i32
  }
  func.func @transform_1(%arg0: i32, %arg1: i32, %arg2: i32) -> (i32, i32) {
    %c0_i32 = arith.constant 0 : i32
    return %arg2, %arg1 : i32, i32
  }
  func.func @transform_2(%arg0: i32, %arg1: i32, %arg2: i32) -> (i32, i32) {
    %c0_i32 = arith.constant 0 : i32
    %c0_i32_0 = arith.constant 0 : i32
    return %c0_i32, %arg1 : i32, i32
  }
  func.func @transform_3(%arg0: i32, %arg1: i32, %arg2: i32) -> (i32, i32) {
    %c0_i32 = arith.constant 0 : i32
    return %arg0, %arg1 : i32, i32
  }
  func.func @transform_4(%arg0: i32, %arg1: i32, %arg2: i32) -> (i32, i32) {
    %c0_i32 = arith.constant 0 : i32
    return %arg0, %arg1 : i32, i32
  }
}

module attributes {stable_mosaic.version = 11 : i64} {
  func.func @_gn_kernel(%arg0: i32, %arg1: memref<1x64x8xf32, #tpu.memory_space<vmem>>, %arg2: memref<1x8xf32, #tpu.memory_space<vmem>>, %arg3: memref<1x8xf32, #tpu.memory_space<vmem>>, %arg4: memref<8x4xf32, #tpu.memory_space<vmem>>, %arg5: memref<1x64x8xbf16, #tpu.memory_space<vmem>>) attributes {dimension_semantics = [#tpu.dimension_semantics<parallel>], iteration_bounds = array<i64: 2>, scalar_prefetch = 0 : i64, scratch_operands = 0 : i64, tpu.core_type = #tpu.core_type<tc>, window_params = [{transform_indices = @transform_0, window_bounds = array<i64: 1, 64, 8>}, {pipeline_mode = #tpu.pipeline_mode<synchronous>, transform_indices = @transform_1, window_bounds = array<i64: 1, 8>}, {pipeline_mode = #tpu.pipeline_mode<synchronous>, transform_indices = @transform_2, window_bounds = array<i64: 1, 8>}, {pipeline_mode = #tpu.pipeline_mode<synchronous>, transform_indices = @transform_3, window_bounds = array<i64: 8, 4>}, {transform_indices = @transform_4, window_bounds = array<i64: 1, 64, 8>}]} {
    %c0 = arith.constant 0 : index
    %c0_0 = arith.constant 0 : index
    %c0_1 = arith.constant 0 : index
    %0 = vector.load %arg1[%c0, %c0_0, %c0_1] : memref<1x64x8xf32, #tpu.memory_space<vmem>>, vector<1x64x8xf32>
    %1 = vector.shape_cast %0 : vector<1x64x8xf32> to vector<64x8xf32>
    %c0_2 = arith.constant 0 : index
    %c0_3 = arith.constant 0 : index
    %2 = vector.load %arg4[%c0_2, %c0_3] : memref<8x4xf32, #tpu.memory_space<vmem>>, vector<8x4xf32>
    %cst = arith.constant dense<0.000000e+00> : vector<64x4xf32>
    %3 = tpu.matmul %1, %2, %cst {dimension_numbers = #tpu.dot_dimension_numbers<[1], [0], [0], [1], [0, 0, 1, 1], [], []>} : vector<64x8xf32>, vector<8x4xf32>, vector<64x4xf32> -> vector<64x4xf32>
    %cst_4 = arith.constant dense<0.000000e+00> : vector<4xf32>
    %4 = vector.multi_reduction <add>, %3, %cst_4 [0] : vector<64x4xf32> to vector<4xf32>
    %5 = vector.shape_cast %4 : vector<4xf32> to vector<1x4xf32>
    %cst_5 = arith.constant 7.812500e-03 : f32
    %6 = vector.broadcast %cst_5 : f32 to vector<1x4xf32>
    %7 = arith.mulf %5, %6 : vector<1x4xf32>
    %8 = tpu.transpose %2, [1, 0] : vector<8x4xf32> -> vector<4x8xf32>
    %cst_6 = arith.constant dense<0.000000e+00> : vector<1x8xf32>
    %9 = tpu.matmul %7, %8, %cst_6 {dimension_numbers = #tpu.dot_dimension_numbers<[1], [0], [0], [1], [0, 0, 1, 1], [], []>} : vector<1x4xf32>, vector<4x8xf32>, vector<1x8xf32> -> vector<1x8xf32>
    %10 = vector.broadcast %9 : vector<1x8xf32> to vector<64x8xf32>
    %11 = arith.subf %1, %10 : vector<64x8xf32>
    %12 = arith.mulf %11, %11 : vector<64x8xf32>
    %cst_7 = arith.constant dense<0.000000e+00> : vector<64x4xf32>
    %13 = tpu.matmul %12, %2, %cst_7 {dimension_numbers = #tpu.dot_dimension_numbers<[1], [0], [0], [1], [0, 0, 1, 1], [], []>} : vector<64x8xf32>, vector<8x4xf32>, vector<64x4xf32> -> vector<64x4xf32>
    %cst_8 = arith.constant dense<0.000000e+00> : vector<4xf32>
    %14 = vector.multi_reduction <add>, %13, %cst_8 [0] : vector<64x4xf32> to vector<4xf32>
    %15 = vector.shape_cast %14 : vector<4xf32> to vector<1x4xf32>
    %cst_9 = arith.constant 7.812500e-03 : f32
    %16 = vector.broadcast %cst_9 : f32 to vector<1x4xf32>
    %17 = arith.mulf %15, %16 : vector<1x4xf32>
    %18 = tpu.transpose %2, [1, 0] : vector<8x4xf32> -> vector<4x8xf32>
    %cst_10 = arith.constant dense<0.000000e+00> : vector<1x8xf32>
    %19 = tpu.matmul %17, %18, %cst_10 {dimension_numbers = #tpu.dot_dimension_numbers<[1], [0], [0], [1], [0, 0, 1, 1], [], []>} : vector<1x4xf32>, vector<4x8xf32>, vector<1x8xf32> -> vector<1x8xf32>
    %cst_11 = arith.constant 9.99999974E-6 : f32
    %20 = vector.broadcast %cst_11 : f32 to vector<1x8xf32>
    %21 = arith.addf %19, %20 : vector<1x8xf32>
    %22 = math.rsqrt %21 : vector<1x8xf32>
    %23 = vector.broadcast %22 : vector<1x8xf32> to vector<64x8xf32>
    %24 = arith.mulf %11, %23 : vector<64x8xf32>
    %c0_12 = arith.constant 0 : index
    %c0_13 = arith.constant 0 : index
    %25 = vector.load %arg2[%c0_12, %c0_13] : memref<1x8xf32, #tpu.memory_space<vmem>>, vector<1x8xf32>
    %26 = vector.broadcast %25 : vector<1x8xf32> to vector<64x8xf32>
    %27 = arith.mulf %24, %26 : vector<64x8xf32>
    %c0_14 = arith.constant 0 : index
    %c0_15 = arith.constant 0 : index
    %28 = vector.load %arg3[%c0_14, %c0_15] : memref<1x8xf32, #tpu.memory_space<vmem>>, vector<1x8xf32>
    %29 = vector.broadcast %28 : vector<1x8xf32> to vector<64x8xf32>
    %30 = arith.addf %27, %29 : vector<64x8xf32>
    %31 = arith.negf %30 : vector<64x8xf32>
    %32 = math.exp %31 : vector<64x8xf32>
    %cst_16 = arith.constant 1.000000e+00 : f32
    %33 = vector.broadcast %cst_16 : f32 to vector<64x8xf32>
    %34 = arith.addf %33, %32 : vector<64x8xf32>
    %35 = arith.divf %33, %34 : vector<64x8xf32>
    %36 = arith.mulf %30, %35 : vector<64x8xf32>
    %37 = arith.truncf %36 : vector<64x8xf32> to vector<64x8xbf16>
    %c0_17 = arith.constant 0 : index
    %c0_18 = arith.constant 0 : index
    %c0_19 = arith.constant 0 : index
    %38 = vector.load %arg5[%c0_17, %c0_18, %c0_19] : memref<1x64x8xbf16, #tpu.memory_space<vmem>>, vector<1x64x8xbf16>
    %39 = vector.shape_cast %38 : vector<1x64x8xbf16> to vector<64x8xbf16>
    %40 = vector.shape_cast %37 : vector<64x8xbf16> to vector<1x64x8xbf16>
    tpu.vector_store %arg5[%c0_17, %c0_18, %c0_19], %40 {strides = array<i32>} : memref<1x64x8xbf16, #tpu.memory_space<vmem>>, vector<1x64x8xbf16>,
    return
  }
  func.func @transform_0(%arg0: i32) -> (i32, i32, i32) {
    %c0_i32 = arith.constant 0 : i32
    %c0_i32_0 = arith.constant 0 : i32
    %c0_i32_1 = arith.constant 0 : i32
    return %arg0, %c0_i32, %c0_i32_0 : i32, i32, i32
  }
  func.func @transform_1(%arg0: i32) -> (i32, i32) {
    %c0_i32 = arith.constant 0 : i32
    %c0_i32_0 = arith.constant 0 : i32
    %c0_i32_1 = arith.constant 0 : i32
    return %c0_i32, %c0_i32_0 : i32, i32
  }
  func.func @transform_2(%arg0: i32) -> (i32, i32) {
    %c0_i32 = arith.constant 0 : i32
    %c0_i32_0 = arith.constant 0 : i32
    %c0_i32_1 = arith.constant 0 : i32
    return %c0_i32, %c0_i32_0 : i32, i32
  }
  func.func @transform_3(%arg0: i32) -> (i32, i32) {
    %c0_i32 = arith.constant 0 : i32
    %c0_i32_0 = arith.constant 0 : i32
    %c0_i32_1 = arith.constant 0 : i32
    return %c0_i32, %c0_i32_0 : i32, i32
  }
  func.func @transform_4(%arg0: i32) -> (i32, i32, i32) {
    %c0_i32 = arith.constant 0 : i32
    %c0_i32_0 = arith.constant 0 : i32
    %c0_i32_1 = arith.constant 0 : i32
    return %arg0, %c0_i32, %c0_i32_0 : i32, i32, i32
  }
}

module attributes {stable_mosaic.version = 11 : i64} {
  func.func @_gn_kernel(%arg0: i32, %arg1: memref<1x64x8xf32, #tpu.memory_space<vmem>>, %arg2: memref<1x8xf32, #tpu.memory_space<vmem>>, %arg3: memref<1x8xf32, #tpu.memory_space<vmem>>, %arg4: memref<8x4xf32, #tpu.memory_space<vmem>>, %arg5: memref<1x1x8xf32, #tpu.memory_space<vmem>>, %arg6: memref<1x64x8xbf16, #tpu.memory_space<vmem>>) attributes {dimension_semantics = [#tpu.dimension_semantics<parallel>], iteration_bounds = array<i64: 2>, scalar_prefetch = 0 : i64, scratch_operands = 0 : i64, tpu.core_type = #tpu.core_type<tc>, window_params = [{transform_indices = @transform_0, window_bounds = array<i64: 1, 64, 8>}, {pipeline_mode = #tpu.pipeline_mode<synchronous>, transform_indices = @transform_1, window_bounds = array<i64: 1, 8>}, {pipeline_mode = #tpu.pipeline_mode<synchronous>, transform_indices = @transform_2, window_bounds = array<i64: 1, 8>}, {pipeline_mode = #tpu.pipeline_mode<synchronous>, transform_indices = @transform_3, window_bounds = array<i64: 8, 4>}, {transform_indices = @transform_4, window_bounds = array<i64: 1, 1, 8>}, {transform_indices = @transform_5, window_bounds = array<i64: 1, 64, 8>}]} {
    %c0 = arith.constant 0 : index
    %c0_0 = arith.constant 0 : index
    %c0_1 = arith.constant 0 : index
    %0 = vector.load %arg1[%c0, %c0_0, %c0_1] : memref<1x64x8xf32, #tpu.memory_space<vmem>>, vector<1x64x8xf32>
    %1 = vector.shape_cast %0 : vector<1x64x8xf32> to vector<64x8xf32>
    %c0_2 = arith.constant 0 : index
    %c0_3 = arith.constant 0 : index
    %c0_4 = arith.constant 0 : index
    %2 = vector.load %arg5[%c0_2, %c0_3, %c0_4] : memref<1x1x8xf32, #tpu.memory_space<vmem>>, vector<1x1x8xf32>
    %3 = vector.shape_cast %2 : vector<1x1x8xf32> to vector<1x8xf32>
    %4 = vector.broadcast %3 : vector<1x8xf32> to vector<64x8xf32>
    %5 = arith.addf %1, %4 : vector<64x8xf32>
    %c0_5 = arith.constant 0 : index
    %c0_6 = arith.constant 0 : index
    %6 = vector.load %arg4[%c0_5, %c0_6] : memref<8x4xf32, #tpu.memory_space<vmem>>, vector<8x4xf32>
    %cst = arith.constant dense<0.000000e+00> : vector<64x4xf32>
    %7 = tpu.matmul %5, %6, %cst {dimension_numbers = #tpu.dot_dimension_numbers<[1], [0], [0], [1], [0, 0, 1, 1], [], []>} : vector<64x8xf32>, vector<8x4xf32>, vector<64x4xf32> -> vector<64x4xf32>
    %cst_7 = arith.constant dense<0.000000e+00> : vector<4xf32>
    %8 = vector.multi_reduction <add>, %7, %cst_7 [0] : vector<64x4xf32> to vector<4xf32>
    %9 = vector.shape_cast %8 : vector<4xf32> to vector<1x4xf32>
    %cst_8 = arith.constant 7.812500e-03 : f32
    %10 = vector.broadcast %cst_8 : f32 to vector<1x4xf32>
    %11 = arith.mulf %9, %10 : vector<1x4xf32>
    %12 = tpu.transpose %6, [1, 0] : vector<8x4xf32> -> vector<4x8xf32>
    %cst_9 = arith.constant dense<0.000000e+00> : vector<1x8xf32>
    %13 = tpu.matmul %11, %12, %cst_9 {dimension_numbers = #tpu.dot_dimension_numbers<[1], [0], [0], [1], [0, 0, 1, 1], [], []>} : vector<1x4xf32>, vector<4x8xf32>, vector<1x8xf32> -> vector<1x8xf32>
    %14 = vector.broadcast %13 : vector<1x8xf32> to vector<64x8xf32>
    %15 = arith.subf %5, %14 : vector<64x8xf32>
    %16 = arith.mulf %15, %15 : vector<64x8xf32>
    %cst_10 = arith.constant dense<0.000000e+00> : vector<64x4xf32>
    %17 = tpu.matmul %16, %6, %cst_10 {dimension_numbers = #tpu.dot_dimension_numbers<[1], [0], [0], [1], [0, 0, 1, 1], [], []>} : vector<64x8xf32>, vector<8x4xf32>, vector<64x4xf32> -> vector<64x4xf32>
    %cst_11 = arith.constant dense<0.000000e+00> : vector<4xf32>
    %18 = vector.multi_reduction <add>, %17, %cst_11 [0] : vector<64x4xf32> to vector<4xf32>
    %19 = vector.shape_cast %18 : vector<4xf32> to vector<1x4xf32>
    %cst_12 = arith.constant 7.812500e-03 : f32
    %20 = vector.broadcast %cst_12 : f32 to vector<1x4xf32>
    %21 = arith.mulf %19, %20 : vector<1x4xf32>
    %22 = tpu.transpose %6, [1, 0] : vector<8x4xf32> -> vector<4x8xf32>
    %cst_13 = arith.constant dense<0.000000e+00> : vector<1x8xf32>
    %23 = tpu.matmul %21, %22, %cst_13 {dimension_numbers = #tpu.dot_dimension_numbers<[1], [0], [0], [1], [0, 0, 1, 1], [], []>} : vector<1x4xf32>, vector<4x8xf32>, vector<1x8xf32> -> vector<1x8xf32>
    %cst_14 = arith.constant 9.99999974E-6 : f32
    %24 = vector.broadcast %cst_14 : f32 to vector<1x8xf32>
    %25 = arith.addf %23, %24 : vector<1x8xf32>
    %26 = math.rsqrt %25 : vector<1x8xf32>
    %27 = vector.broadcast %26 : vector<1x8xf32> to vector<64x8xf32>
    %28 = arith.mulf %15, %27 : vector<64x8xf32>
    %c0_15 = arith.constant 0 : index
    %c0_16 = arith.constant 0 : index
    %29 = vector.load %arg2[%c0_15, %c0_16] : memref<1x8xf32, #tpu.memory_space<vmem>>, vector<1x8xf32>
    %30 = vector.broadcast %29 : vector<1x8xf32> to vector<64x8xf32>
    %31 = arith.mulf %28, %30 : vector<64x8xf32>
    %c0_17 = arith.constant 0 : index
    %c0_18 = arith.constant 0 : index
    %32 = vector.load %arg3[%c0_17, %c0_18] : memref<1x8xf32, #tpu.memory_space<vmem>>, vector<1x8xf32>
    %33 = vector.broadcast %32 : vector<1x8xf32> to vector<64x8xf32>
    %34 = arith.addf %31, %33 : vector<64x8xf32>
    %35 = arith.negf %34 : vector<64x8xf32>
    %36 = math.exp %35 : vector<64x8xf32>
    %cst_19 = arith.constant 1.000000e+00 : f32
    %37 = vector.broadcast %cst_19 : f32 to vector<64x8xf32>
    %38 = arith.addf %37, %36 : vector<64x8xf32>
    %39 = arith.divf %37, %38 : vector<64x8xf32>
    %40 = arith.mulf %34, %39 : vector<64x8xf32>
    %41 = arith.truncf %40 : vector<64x8xf32> to vector<64x8xbf16>
    %c0_20 = arith.constant 0 : index
    %c0_21 = arith.constant 0 : index
    %c0_22 = arith.constant 0 : index
    %42 = vector.load %arg6[%c0_20, %c0_21, %c0_22] : memref<1x64x8xbf16, #tpu.memory_space<vmem>>, vector<1x64x8xbf16>
    %43 = vector.shape_cast %42 : vector<1x64x8xbf16> to vector<64x8xbf16>
    %44 = vector.shape_cast %41 : vector<64x8xbf16> to vector<1x64x8xbf16>
    tpu.vector_store %arg6[%c0_20, %c0_21, %c0_22], %44 {strides = array<i32>} : memref<1x64x8xbf16, #tpu.memory_space<vmem>>, vector<1x64x8xbf16>,
    return
  }
  func.func @transform_0(%arg0: i32) -> (i32, i32, i32) {
    %c0_i32 = arith.constant 0 : i32
    %c0_i32_0 = arith.constant 0 : i32
    %c0_i32_1 = arith.constant 0 : i32
    return %arg0, %c0_i32, %c0_i32_0 : i32, i32, i32
  }
  func.func @transform_1(%arg0: i32) -> (i32, i32) {
    %c0_i32 = arith.constant 0 : i32
    %c0_i32_0 = arith.constant 0 : i32
    %c0_i32_1 = arith.constant 0 : i32
    return %c0_i32, %c0_i32_0 : i32, i32
  }
  func.func @transform_2(%arg0: i32) -> (i32, i32) {
    %c0_i32 = arith.constant 0 : i32
    %c0_i32_0 = arith.constant 0 : i32
    %c0_i32_1 = arith.constant 0 : i32
    return %c0_i32, %c0_i32_0 : i32, i32
  }
  func.func @transform_3(%arg0: i32) -> (i32, i32) {
    %c0_i32 = arith.constant 0 : i32
    %c0_i32_0 = arith.constant 0 : i32
    %c0_i32_1 = arith.constant 0 : i32
    return %c0_i32, %c0_i32_0 : i32, i32
  }
  func.func @transform_4(%arg0: i32) -> (i32, i32, i32) {
    %c0_i32 = arith.constant 0 : i32
    %c0_i32_0 = arith.constant 0 : i32
    %c0_i32_1 = arith.constant 0 : i32
    return %arg0, %c0_i32, %c0_i32_0 : i32, i32, i32
  }
  func.func @transform_5(%arg0: i32) -> (i32, i32, i32) {
    %c0_i32 = arith.constant 0 : i32
    %c0_i32_0 = arith.constant 0 : i32
    %c0_i32_1 = arith.constant 0 : i32
    return %arg0, %c0_i32, %c0_i32_0 : i32, i32, i32
  }
}

module attributes {stable_mosaic.version = 11 : i64} {
  func.func @_gn_kernel(%arg0: i32, %arg1: memref<1x16x8xf32, #tpu.memory_space<vmem>>, %arg2: memref<1x8xf32, #tpu.memory_space<vmem>>, %arg3: memref<1x8xf32, #tpu.memory_space<vmem>>, %arg4: memref<8x4xf32, #tpu.memory_space<vmem>>, %arg5: memref<1x16x8xbf16, #tpu.memory_space<vmem>>) attributes {dimension_semantics = [#tpu.dimension_semantics<parallel>], iteration_bounds = array<i64: 2>, scalar_prefetch = 0 : i64, scratch_operands = 0 : i64, tpu.core_type = #tpu.core_type<tc>, window_params = [{transform_indices = @transform_0, window_bounds = array<i64: 1, 16, 8>}, {pipeline_mode = #tpu.pipeline_mode<synchronous>, transform_indices = @transform_1, window_bounds = array<i64: 1, 8>}, {pipeline_mode = #tpu.pipeline_mode<synchronous>, transform_indices = @transform_2, window_bounds = array<i64: 1, 8>}, {pipeline_mode = #tpu.pipeline_mode<synchronous>, transform_indices = @transform_3, window_bounds = array<i64: 8, 4>}, {transform_indices = @transform_4, window_bounds = array<i64: 1, 16, 8>}]} {
    %c0 = arith.constant 0 : index
    %c0_0 = arith.constant 0 : index
    %c0_1 = arith.constant 0 : index
    %0 = vector.load %arg1[%c0, %c0_0, %c0_1] : memref<1x16x8xf32, #tpu.memory_space<vmem>>, vector<1x16x8xf32>
    %1 = vector.shape_cast %0 : vector<1x16x8xf32> to vector<16x8xf32>
    %c0_2 = arith.constant 0 : index
    %c0_3 = arith.constant 0 : index
    %2 = vector.load %arg4[%c0_2, %c0_3] : memref<8x4xf32, #tpu.memory_space<vmem>>, vector<8x4xf32>
    %cst = arith.constant dense<0.000000e+00> : vector<16x4xf32>
    %3 = tpu.matmul %1, %2, %cst {dimension_numbers = #tpu.dot_dimension_numbers<[1], [0], [0], [1], [0, 0, 1, 1], [], []>} : vector<16x8xf32>, vector<8x4xf32>, vector<16x4xf32> -> vector<16x4xf32>
    %cst_4 = arith.constant dense<0.000000e+00> : vector<4xf32>
    %4 = vector.multi_reduction <add>, %3, %cst_4 [0] : vector<16x4xf32> to vector<4xf32>
    %5 = vector.shape_cast %4 : vector<4xf32> to vector<1x4xf32>
    %cst_5 = arith.constant 3.125000e-02 : f32
    %6 = vector.broadcast %cst_5 : f32 to vector<1x4xf32>
    %7 = arith.mulf %5, %6 : vector<1x4xf32>
    %8 = tpu.transpose %2, [1, 0] : vector<8x4xf32> -> vector<4x8xf32>
    %cst_6 = arith.constant dense<0.000000e+00> : vector<1x8xf32>
    %9 = tpu.matmul %7, %8, %cst_6 {dimension_numbers = #tpu.dot_dimension_numbers<[1], [0], [0], [1], [0, 0, 1, 1], [], []>} : vector<1x4xf32>, vector<4x8xf32>, vector<1x8xf32> -> vector<1x8xf32>
    %10 = vector.broadcast %9 : vector<1x8xf32> to vector<16x8xf32>
    %11 = arith.subf %1, %10 : vector<16x8xf32>
    %12 = arith.mulf %11, %11 : vector<16x8xf32>
    %cst_7 = arith.constant dense<0.000000e+00> : vector<16x4xf32>
    %13 = tpu.matmul %12, %2, %cst_7 {dimension_numbers = #tpu.dot_dimension_numbers<[1], [0], [0], [1], [0, 0, 1, 1], [], []>} : vector<16x8xf32>, vector<8x4xf32>, vector<16x4xf32> -> vector<16x4xf32>
    %cst_8 = arith.constant dense<0.000000e+00> : vector<4xf32>
    %14 = vector.multi_reduction <add>, %13, %cst_8 [0] : vector<16x4xf32> to vector<4xf32>
    %15 = vector.shape_cast %14 : vector<4xf32> to vector<1x4xf32>
    %cst_9 = arith.constant 3.125000e-02 : f32
    %16 = vector.broadcast %cst_9 : f32 to vector<1x4xf32>
    %17 = arith.mulf %15, %16 : vector<1x4xf32>
    %18 = tpu.transpose %2, [1, 0] : vector<8x4xf32> -> vector<4x8xf32>
    %cst_10 = arith.constant dense<0.000000e+00> : vector<1x8xf32>
    %19 = tpu.matmul %17, %18, %cst_10 {dimension_numbers = #tpu.dot_dimension_numbers<[1], [0], [0], [1], [0, 0, 1, 1], [], []>} : vector<1x4xf32>, vector<4x8xf32>, vector<1x8xf32> -> vector<1x8xf32>
    %cst_11 = arith.constant 9.99999974E-6 : f32
    %20 = vector.broadcast %cst_11 : f32 to vector<1x8xf32>
    %21 = arith.addf %19, %20 : vector<1x8xf32>
    %22 = math.rsqrt %21 : vector<1x8xf32>
    %23 = vector.broadcast %22 : vector<1x8xf32> to vector<16x8xf32>
    %24 = arith.mulf %11, %23 : vector<16x8xf32>
    %c0_12 = arith.constant 0 : index
    %c0_13 = arith.constant 0 : index
    %25 = vector.load %arg2[%c0_12, %c0_13] : memref<1x8xf32, #tpu.memory_space<vmem>>, vector<1x8xf32>
    %26 = vector.broadcast %25 : vector<1x8xf32> to vector<16x8xf32>
    %27 = arith.mulf %24, %26 : vector<16x8xf32>
    %c0_14 = arith.constant 0 : index
    %c0_15 = arith.constant 0 : index
    %28 = vector.load %arg3[%c0_14, %c0_15] : memref<1x8xf32, #tpu.memory_space<vmem>>, vector<1x8xf32>
    %29 = vector.broadcast %28 : vector<1x8xf32> to vector<16x8xf32>
    %30 = arith.addf %27, %29 : vector<16x8xf32>
    %31 = arith.negf %30 : vector<16x8xf32>
    %32 = math.exp %31 : vector<16x8xf32>
    %cst_16 = arith.constant 1.000000e+00 : f32
    %33 = vector.broadcast %cst_16 : f32 to vector<16x8xf32>
    %34 = arith.addf %33, %32 : vector<16x8xf32>
    %35 = arith.divf %33, %34 : vector<16x8xf32>
    %36 = arith.mulf %30, %35 : vector<16x8xf32>
    %37 = arith.truncf %36 : vector<16x8xf32> to vector<16x8xbf16>
    %c0_17 = arith.constant 0 : index
    %c0_18 = arith.constant 0 : index
    %c0_19 = arith.constant 0 : index
    %38 = vector.load %arg5[%c0_17, %c0_18, %c0_19] : memref<1x16x8xbf16, #tpu.memory_space<vmem>>, vector<1x16x8xbf16>
    %39 = vector.shape_cast %38 : vector<1x16x8xbf16> to vector<16x8xbf16>
    %40 = vector.shape_cast %37 : vector<16x8xbf16> to vector<1x16x8xbf16>
    tpu.vector_store %arg5[%c0_17, %c0_18, %c0_19], %40 {strides = array<i32>} : memref<1x16x8xbf16, #tpu.memory_space<vmem>>, vector<1x16x8xbf16>,
    return
  }
  func.func @transform_0(%arg0: i32) -> (i32, i32, i32) {
    %c0_i32 = arith.constant 0 : i32
    %c0_i32_0 = arith.constant 0 : i32
    %c0_i32_1 = arith.constant 0 : i32
    return %arg0, %c0_i32, %c0_i32_0 : i32, i32, i32
  }
  func.func @transform_1(%arg0: i32) -> (i32, i32) {
    %c0_i32 = arith.constant 0 : i32
    %c0_i32_0 = arith.constant 0 : i32
    %c0_i32_1 = arith.constant 0 : i32
    return %c0_i32, %c0_i32_0 : i32, i32
  }
  func.func @transform_2(%arg0: i32) -> (i32, i32) {
    %c0_i32 = arith.constant 0 : i32
    %c0_i32_0 = arith.constant 0 : i32
    %c0_i32_1 = arith.constant 0 : i32
    return %c0_i32, %c0_i32_0 : i32, i32
  }
  func.func @transform_3(%arg0: i32) -> (i32, i32) {
    %c0_i32 = arith.constant 0 : i32
    %c0_i32_0 = arith.constant 0 : i32
    %c0_i32_1 = arith.constant 0 : i32
    return %c0_i32, %c0_i32_0 : i32, i32
  }
  func.func @transform_4(%arg0: i32) -> (i32, i32, i32) {
    %c0_i32 = arith.constant 0 : i32
    %c0_i32_0 = arith.constant 0 : i32
    %c0_i32_1 = arith.constant 0 : i32
    return %arg0, %c0_i32, %c0_i32_0 : i32, i32, i32
  }
}

module attributes {stable_mosaic.version = 11 : i64} {
  func.func @_gn_kernel(%arg0: i32, %arg1: memref<1x16x16xf32, #tpu.memory_space<vmem>>, %arg2: memref<1x16xf32, #tpu.memory_space<vmem>>, %arg3: memref<1x16xf32, #tpu.memory_space<vmem>>, %arg4: memref<16x4xf32, #tpu.memory_space<vmem>>, %arg5: memref<1x1x16xf32, #tpu.memory_space<vmem>>, %arg6: memref<1x16x16xbf16, #tpu.memory_space<vmem>>) attributes {dimension_semantics = [#tpu.dimension_semantics<parallel>], iteration_bounds = array<i64: 2>, scalar_prefetch = 0 : i64, scratch_operands = 0 : i64, tpu.core_type = #tpu.core_type<tc>, window_params = [{transform_indices = @transform_0, window_bounds = array<i64: 1, 16, 16>}, {pipeline_mode = #tpu.pipeline_mode<synchronous>, transform_indices = @transform_1, window_bounds = array<i64: 1, 16>}, {pipeline_mode = #tpu.pipeline_mode<synchronous>, transform_indices = @transform_2, window_bounds = array<i64: 1, 16>}, {pipeline_mode = #tpu.pipeline_mode<synchronous>, transform_indices = @transform_3, window_bounds = array<i64: 16, 4>}, {transform_indices = @transform_4, window_bounds = array<i64: 1, 1, 16>}, {transform_indices = @transform_5, window_bounds = array<i64: 1, 16, 16>}]} {
    %c0 = arith.constant 0 : index
    %c0_0 = arith.constant 0 : index
    %c0_1 = arith.constant 0 : index
    %0 = vector.load %arg1[%c0, %c0_0, %c0_1] : memref<1x16x16xf32, #tpu.memory_space<vmem>>, vector<1x16x16xf32>
    %1 = vector.shape_cast %0 : vector<1x16x16xf32> to vector<16x16xf32>
    %c0_2 = arith.constant 0 : index
    %c0_3 = arith.constant 0 : index
    %c0_4 = arith.constant 0 : index
    %2 = vector.load %arg5[%c0_2, %c0_3, %c0_4] : memref<1x1x16xf32, #tpu.memory_space<vmem>>, vector<1x1x16xf32>
    %3 = vector.shape_cast %2 : vector<1x1x16xf32> to vector<1x16xf32>
    %4 = vector.broadcast %3 : vector<1x16xf32> to vector<16x16xf32>
    %5 = arith.addf %1, %4 : vector<16x16xf32>
    %c0_5 = arith.constant 0 : index
    %c0_6 = arith.constant 0 : index
    %6 = vector.load %arg4[%c0_5, %c0_6] : memref<16x4xf32, #tpu.memory_space<vmem>>, vector<16x4xf32>
    %cst = arith.constant dense<0.000000e+00> : vector<16x4xf32>
    %7 = tpu.matmul %5, %6, %cst {dimension_numbers = #tpu.dot_dimension_numbers<[1], [0], [0], [1], [0, 0, 1, 1], [], []>} : vector<16x16xf32>, vector<16x4xf32>, vector<16x4xf32> -> vector<16x4xf32>
    %cst_7 = arith.constant dense<0.000000e+00> : vector<4xf32>
    %8 = vector.multi_reduction <add>, %7, %cst_7 [0] : vector<16x4xf32> to vector<4xf32>
    %9 = vector.shape_cast %8 : vector<4xf32> to vector<1x4xf32>
    %cst_8 = arith.constant 1.562500e-02 : f32
    %10 = vector.broadcast %cst_8 : f32 to vector<1x4xf32>
    %11 = arith.mulf %9, %10 : vector<1x4xf32>
    %12 = tpu.transpose %6, [1, 0] : vector<16x4xf32> -> vector<4x16xf32>
    %cst_9 = arith.constant dense<0.000000e+00> : vector<1x16xf32>
    %13 = tpu.matmul %11, %12, %cst_9 {dimension_numbers = #tpu.dot_dimension_numbers<[1], [0], [0], [1], [0, 0, 1, 1], [], []>} : vector<1x4xf32>, vector<4x16xf32>, vector<1x16xf32> -> vector<1x16xf32>
    %14 = vector.broadcast %13 : vector<1x16xf32> to vector<16x16xf32>
    %15 = arith.subf %5, %14 : vector<16x16xf32>
    %16 = arith.mulf %15, %15 : vector<16x16xf32>
    %cst_10 = arith.constant dense<0.000000e+00> : vector<16x4xf32>
    %17 = tpu.matmul %16, %6, %cst_10 {dimension_numbers = #tpu.dot_dimension_numbers<[1], [0], [0], [1], [0, 0, 1, 1], [], []>} : vector<16x16xf32>, vector<16x4xf32>, vector<16x4xf32> -> vector<16x4xf32>
    %cst_11 = arith.constant dense<0.000000e+00> : vector<4xf32>
    %18 = vector.multi_reduction <add>, %17, %cst_11 [0] : vector<16x4xf32> to vector<4xf32>
    %19 = vector.shape_cast %18 : vector<4xf32> to vector<1x4xf32>
    %cst_12 = arith.constant 1.562500e-02 : f32
    %20 = vector.broadcast %cst_12 : f32 to vector<1x4xf32>
    %21 = arith.mulf %19, %20 : vector<1x4xf32>
    %22 = tpu.transpose %6, [1, 0] : vector<16x4xf32> -> vector<4x16xf32>
    %cst_13 = arith.constant dense<0.000000e+00> : vector<1x16xf32>
    %23 = tpu.matmul %21, %22, %cst_13 {dimension_numbers = #tpu.dot_dimension_numbers<[1], [0], [0], [1], [0, 0, 1, 1], [], []>} : vector<1x4xf32>, vector<4x16xf32>, vector<1x16xf32> -> vector<1x16xf32>
    %cst_14 = arith.constant 9.99999974E-6 : f32
    %24 = vector.broadcast %cst_14 : f32 to vector<1x16xf32>
    %25 = arith.addf %23, %24 : vector<1x16xf32>
    %26 = math.rsqrt %25 : vector<1x16xf32>
    %27 = vector.broadcast %26 : vector<1x16xf32> to vector<16x16xf32>
    %28 = arith.mulf %15, %27 : vector<16x16xf32>
    %c0_15 = arith.constant 0 : index
    %c0_16 = arith.constant 0 : index
    %29 = vector.load %arg2[%c0_15, %c0_16] : memref<1x16xf32, #tpu.memory_space<vmem>>, vector<1x16xf32>
    %30 = vector.broadcast %29 : vector<1x16xf32> to vector<16x16xf32>
    %31 = arith.mulf %28, %30 : vector<16x16xf32>
    %c0_17 = arith.constant 0 : index
    %c0_18 = arith.constant 0 : index
    %32 = vector.load %arg3[%c0_17, %c0_18] : memref<1x16xf32, #tpu.memory_space<vmem>>, vector<1x16xf32>
    %33 = vector.broadcast %32 : vector<1x16xf32> to vector<16x16xf32>
    %34 = arith.addf %31, %33 : vector<16x16xf32>
    %35 = arith.negf %34 : vector<16x16xf32>
    %36 = math.exp %35 : vector<16x16xf32>
    %cst_19 = arith.constant 1.000000e+00 : f32
    %37 = vector.broadcast %cst_19 : f32 to vector<16x16xf32>
    %38 = arith.addf %37, %36 : vector<16x16xf32>
    %39 = arith.divf %37, %38 : vector<16x16xf32>
    %40 = arith.mulf %34, %39 : vector<16x16xf32>
    %41 = arith.truncf %40 : vector<16x16xf32> to vector<16x16xbf16>
    %c0_20 = arith.constant 0 : index
    %c0_21 = arith.constant 0 : index
    %c0_22 = arith.constant 0 : index
    %42 = vector.load %arg6[%c0_20, %c0_21, %c0_22] : memref<1x16x16xbf16, #tpu.memory_space<vmem>>, vector<1x16x16xbf16>
    %43 = vector.shape_cast %42 : vector<1x16x16xbf16> to vector<16x16xbf16>
    %44 = vector.shape_cast %41 : vector<16x16xbf16> to vector<1x16x16xbf16>
    tpu.vector_store %arg6[%c0_20, %c0_21, %c0_22], %44 {strides = array<i32>} : memref<1x16x16xbf16, #tpu.memory_space<vmem>>, vector<1x16x16xbf16>,
    return
  }
  func.func @transform_0(%arg0: i32) -> (i32, i32, i32) {
    %c0_i32 = arith.constant 0 : i32
    %c0_i32_0 = arith.constant 0 : i32
    %c0_i32_1 = arith.constant 0 : i32
    return %arg0, %c0_i32, %c0_i32_0 : i32, i32, i32
  }
  func.func @transform_1(%arg0: i32) -> (i32, i32) {
    %c0_i32 = arith.constant 0 : i32
    %c0_i32_0 = arith.constant 0 : i32
    %c0_i32_1 = arith.constant 0 : i32
    return %c0_i32, %c0_i32_0 : i32, i32
  }
  func.func @transform_2(%arg0: i32) -> (i32, i32) {
    %c0_i32 = arith.constant 0 : i32
    %c0_i32_0 = arith.constant 0 : i32
    %c0_i32_1 = arith.constant 0 : i32
    return %c0_i32, %c0_i32_0 : i32, i32
  }
  func.func @transform_3(%arg0: i32) -> (i32, i32) {
    %c0_i32 = arith.constant 0 : i32
    %c0_i32_0 = arith.constant 0 : i32
    %c0_i32_1 = arith.constant 0 : i32
    return %c0_i32, %c0_i32_0 : i32, i32
  }
  func.func @transform_4(%arg0: i32) -> (i32, i32, i32) {
    %c0_i32 = arith.constant 0 : i32
    %c0_i32_0 = arith.constant 0 : i32
    %c0_i32_1 = arith.constant 0 : i32
    return %arg0, %c0_i32, %c0_i32_0 : i32, i32, i32
  }
  func.func @transform_5(%arg0: i32) -> (i32, i32, i32) {
    %c0_i32 = arith.constant 0 : i32
    %c0_i32_0 = arith.constant 0 : i32
    %c0_i32_1 = arith.constant 0 : i32
    return %arg0, %c0_i32, %c0_i32_0 : i32, i32, i32
  }
}

module attributes {stable_mosaic.version = 11 : i64} {
  func.func @_gemm_kernel(%arg0: i32, %arg1: i32, %arg2: i32, %arg3: memref<128x256xbf16, #tpu.memory_space<vmem>>, %arg4: memref<256x128xbf16, #tpu.memory_space<vmem>>, %arg5: memref<1x128xf32, #tpu.memory_space<vmem>>, %arg6: memref<128x128xf32, #tpu.memory_space<vmem>>, %arg7: memref<128x128xf32, #tpu.memory_space<vmem>>, %arg8: memref<128x128xf32, #tpu.memory_space<vmem>>) attributes {dimension_semantics = [#tpu.dimension_semantics<parallel>, #tpu.dimension_semantics<parallel>, #tpu.dimension_semantics<arbitrary>], iteration_bounds = array<i64: 1, 1, 1>, scalar_prefetch = 0 : i64, scratch_operands = 1 : i64, tpu.core_type = #tpu.core_type<tc>, window_params = [{transform_indices = @transform_0, window_bounds = array<i64: 128, 256>}, {transform_indices = @transform_1, window_bounds = array<i64: 256, 128>}, {transform_indices = @transform_2, window_bounds = array<i64: 1, 128>}, {transform_indices = @transform_3, window_bounds = array<i64: 128, 128>}, {transform_indices = @transform_4, window_bounds = array<i64: 128, 128>}]} {
    %c0_i32 = arith.constant 0 : i32
    %0 = arith.cmpi eq, %arg2, %c0_i32 : i32
    %1 = arith.extui %0 : i1 to i32
    %c0_i32_0 = arith.constant 0 : i32
    %2 = arith.cmpi ne, %1, %c0_i32_0 : i32
    scf.if %2 {
      %cst_10 = arith.constant 0.000000e+00 : f32
      %12 = vector.broadcast %cst_10 : f32 to vector<128x128xf32>
      %c0_11 = arith.constant 0 : index
      %c0_12 = arith.constant 0 : index
      %13 = vector.load %arg8[%c0_11, %c0_12] : memref<128x128xf32, #tpu.memory_space<vmem>>, vector<128x128xf32>
      tpu.vector_store %arg8[%c0_11, %c0_12], %12 {strides = array<i32>} : memref<128x128xf32, #tpu.memory_space<vmem>>, vector<128x128xf32>,
    } else {
    }
    %c0 = arith.constant 0 : index
    %c0_1 = arith.constant 0 : index
    %3 = vector.load %arg8[%c0, %c0_1] : memref<128x128xf32, #tpu.memory_space<vmem>>, vector<128x128xf32>
    %c0_2 = arith.constant 0 : index
    %c0_3 = arith.constant 0 : index
    %4 = vector.load %arg3[%c0_2, %c0_3] : memref<128x256xbf16, #tpu.memory_space<vmem>>, vector<128x256xbf16>
    %c0_4 = arith.constant 0 : index
    %c0_5 = arith.constant 0 : index
    %5 = vector.load %arg4[%c0_4, %c0_5] : memref<256x128xbf16, #tpu.memory_space<vmem>>, vector<256x128xbf16>
    %cst = arith.constant dense<0.000000e+00> : vector<128x128xf32>
    %6 = tpu.matmul %4, %5, %cst {dimension_numbers = #tpu.dot_dimension_numbers<[1], [0], [0], [1], [0, 0, 1, 1], [], []>} : vector<128x256xbf16>, vector<256x128xbf16>, vector<128x128xf32> -> vector<128x128xf32>
    %7 = arith.addf %3, %6 : vector<128x128xf32>
    %c0_6 = arith.constant 0 : index
    %c0_7 = arith.constant 0 : index
    %8 = vector.load %arg8[%c0_6, %c0_7] : memref<128x128xf32, #tpu.memory_space<vmem>>, vector<128x128xf32>
    tpu.vector_store %arg8[%c0_6, %c0_7], %7 {strides = array<i32>} : memref<128x128xf32, #tpu.memory_space<vmem>>, vector<128x128xf32>,
    %c0_i32_8 = arith.constant 0 : i32
    %9 = arith.cmpi eq, %arg2, %c0_i32_8 : i32
    %10 = arith.extui %9 : i1 to i32
    %c0_i32_9 = arith.constant 0 : i32
    %11 = arith.cmpi ne, %10, %c0_i32_9 : i32
    scf.if %11 {
      %c0_10 = arith.constant 0 : index
      %c0_11 = arith.constant 0 : index
      %12 = vector.load %arg8[%c0_10, %c0_11] : memref<128x128xf32, #tpu.memory_space<vmem>>, vector<128x128xf32>
      %c0_12 = arith.constant 0 : index
      %c0_13 = arith.constant 0 : index
      %13 = vector.load %arg5[%c0_12, %c0_13] : memref<1x128xf32, #tpu.memory_space<vmem>>, vector<1x128xf32>
      %14 = vector.broadcast %13 : vector<1x128xf32> to vector<128x128xf32>
      %15 = arith.addf %12, %14 : vector<128x128xf32>
      %c0_14 = arith.constant 0 : index
      %c0_15 = arith.constant 0 : index
      %16 = vector.load %arg6[%c0_14, %c0_15] : memref<128x128xf32, #tpu.memory_space<vmem>>, vector<128x128xf32>
      %17 = arith.addf %15, %16 : vector<128x128xf32>
      %c0_16 = arith.constant 0 : index
      %c0_17 = arith.constant 0 : index
      %18 = vector.load %arg7[%c0_16, %c0_17] : memref<128x128xf32, #tpu.memory_space<vmem>>, vector<128x128xf32>
      tpu.vector_store %arg7[%c0_16, %c0_17], %17 {strides = array<i32>} : memref<128x128xf32, #tpu.memory_space<vmem>>, vector<128x128xf32>,
    } else {
    }
    return
  }
  func.func @transform_0(%arg0: i32, %arg1: i32, %arg2: i32) -> (i32, i32) {
    %c0_i32 = arith.constant 0 : i32
    return %arg0, %arg2 : i32, i32
  }
  func.func @transform_1(%arg0: i32, %arg1: i32, %arg2: i32) -> (i32, i32) {
    %c0_i32 = arith.constant 0 : i32
    return %arg2, %arg1 : i32, i32
  }
  func.func @transform_2(%arg0: i32, %arg1: i32, %arg2: i32) -> (i32, i32) {
    %c0_i32 = arith.constant 0 : i32
    %c0_i32_0 = arith.constant 0 : i32
    return %c0_i32, %arg1 : i32, i32
  }
  func.func @transform_3(%arg0: i32, %arg1: i32, %arg2: i32) -> (i32, i32) {
    %c0_i32 = arith.constant 0 : i32
    return %arg0, %arg1 : i32, i32
  }
  func.func @transform_4(%arg0: i32, %arg1: i32, %arg2: i32) -> (i32, i32) {
    %c0_i32 = arith.constant 0 : i32
    return %arg0, %arg1 : i32, i32
  }
}

module attributes {stable_mosaic.version = 11 : i64} {
  func.func @_gn_kernel(%arg0: i32, %arg1: memref<1x16x16xf32, #tpu.memory_space<vmem>>, %arg2: memref<1x16xf32, #tpu.memory_space<vmem>>, %arg3: memref<1x16xf32, #tpu.memory_space<vmem>>, %arg4: memref<16x4xf32, #tpu.memory_space<vmem>>, %arg5: memref<1x16x16xbf16, #tpu.memory_space<vmem>>) attributes {dimension_semantics = [#tpu.dimension_semantics<parallel>], iteration_bounds = array<i64: 2>, scalar_prefetch = 0 : i64, scratch_operands = 0 : i64, tpu.core_type = #tpu.core_type<tc>, window_params = [{transform_indices = @transform_0, window_bounds = array<i64: 1, 16, 16>}, {pipeline_mode = #tpu.pipeline_mode<synchronous>, transform_indices = @transform_1, window_bounds = array<i64: 1, 16>}, {pipeline_mode = #tpu.pipeline_mode<synchronous>, transform_indices = @transform_2, window_bounds = array<i64: 1, 16>}, {pipeline_mode = #tpu.pipeline_mode<synchronous>, transform_indices = @transform_3, window_bounds = array<i64: 16, 4>}, {transform_indices = @transform_4, window_bounds = array<i64: 1, 16, 16>}]} {
    %c0 = arith.constant 0 : index
    %c0_0 = arith.constant 0 : index
    %c0_1 = arith.constant 0 : index
    %0 = vector.load %arg1[%c0, %c0_0, %c0_1] : memref<1x16x16xf32, #tpu.memory_space<vmem>>, vector<1x16x16xf32>
    %1 = vector.shape_cast %0 : vector<1x16x16xf32> to vector<16x16xf32>
    %c0_2 = arith.constant 0 : index
    %c0_3 = arith.constant 0 : index
    %2 = vector.load %arg4[%c0_2, %c0_3] : memref<16x4xf32, #tpu.memory_space<vmem>>, vector<16x4xf32>
    %cst = arith.constant dense<0.000000e+00> : vector<16x4xf32>
    %3 = tpu.matmul %1, %2, %cst {dimension_numbers = #tpu.dot_dimension_numbers<[1], [0], [0], [1], [0, 0, 1, 1], [], []>} : vector<16x16xf32>, vector<16x4xf32>, vector<16x4xf32> -> vector<16x4xf32>
    %cst_4 = arith.constant dense<0.000000e+00> : vector<4xf32>
    %4 = vector.multi_reduction <add>, %3, %cst_4 [0] : vector<16x4xf32> to vector<4xf32>
    %5 = vector.shape_cast %4 : vector<4xf32> to vector<1x4xf32>
    %cst_5 = arith.constant 1.562500e-02 : f32
    %6 = vector.broadcast %cst_5 : f32 to vector<1x4xf32>
    %7 = arith.mulf %5, %6 : vector<1x4xf32>
    %8 = tpu.transpose %2, [1, 0] : vector<16x4xf32> -> vector<4x16xf32>
    %cst_6 = arith.constant dense<0.000000e+00> : vector<1x16xf32>
    %9 = tpu.matmul %7, %8, %cst_6 {dimension_numbers = #tpu.dot_dimension_numbers<[1], [0], [0], [1], [0, 0, 1, 1], [], []>} : vector<1x4xf32>, vector<4x16xf32>, vector<1x16xf32> -> vector<1x16xf32>
    %10 = vector.broadcast %9 : vector<1x16xf32> to vector<16x16xf32>
    %11 = arith.subf %1, %10 : vector<16x16xf32>
    %12 = arith.mulf %11, %11 : vector<16x16xf32>
    %cst_7 = arith.constant dense<0.000000e+00> : vector<16x4xf32>
    %13 = tpu.matmul %12, %2, %cst_7 {dimension_numbers = #tpu.dot_dimension_numbers<[1], [0], [0], [1], [0, 0, 1, 1], [], []>} : vector<16x16xf32>, vector<16x4xf32>, vector<16x4xf32> -> vector<16x4xf32>
    %cst_8 = arith.constant dense<0.000000e+00> : vector<4xf32>
    %14 = vector.multi_reduction <add>, %13, %cst_8 [0] : vector<16x4xf32> to vector<4xf32>
    %15 = vector.shape_cast %14 : vector<4xf32> to vector<1x4xf32>
    %cst_9 = arith.constant 1.562500e-02 : f32
    %16 = vector.broadcast %cst_9 : f32 to vector<1x4xf32>
    %17 = arith.mulf %15, %16 : vector<1x4xf32>
    %18 = tpu.transpose %2, [1, 0] : vector<16x4xf32> -> vector<4x16xf32>
    %cst_10 = arith.constant dense<0.000000e+00> : vector<1x16xf32>
    %19 = tpu.matmul %17, %18, %cst_10 {dimension_numbers = #tpu.dot_dimension_numbers<[1], [0], [0], [1], [0, 0, 1, 1], [], []>} : vector<1x4xf32>, vector<4x16xf32>, vector<1x16xf32> -> vector<1x16xf32>
    %cst_11 = arith.constant 9.99999974E-6 : f32
    %20 = vector.broadcast %cst_11 : f32 to vector<1x16xf32>
    %21 = arith.addf %19, %20 : vector<1x16xf32>
    %22 = math.rsqrt %21 : vector<1x16xf32>
    %23 = vector.broadcast %22 : vector<1x16xf32> to vector<16x16xf32>
    %24 = arith.mulf %11, %23 : vector<16x16xf32>
    %c0_12 = arith.constant 0 : index
    %c0_13 = arith.constant 0 : index
    %25 = vector.load %arg2[%c0_12, %c0_13] : memref<1x16xf32, #tpu.memory_space<vmem>>, vector<1x16xf32>
    %26 = vector.broadcast %25 : vector<1x16xf32> to vector<16x16xf32>
    %27 = arith.mulf %24, %26 : vector<16x16xf32>
    %c0_14 = arith.constant 0 : index
    %c0_15 = arith.constant 0 : index
    %28 = vector.load %arg3[%c0_14, %c0_15] : memref<1x16xf32, #tpu.memory_space<vmem>>, vector<1x16xf32>
    %29 = vector.broadcast %28 : vector<1x16xf32> to vector<16x16xf32>
    %30 = arith.addf %27, %29 : vector<16x16xf32>
    %31 = arith.truncf %30 : vector<16x16xf32> to vector<16x16xbf16>
    %c0_16 = arith.constant 0 : index
    %c0_17 = arith.constant 0 : index
    %c0_18 = arith.constant 0 : index
    %32 = vector.load %arg5[%c0_16, %c0_17, %c0_18] : memref<1x16x16xbf16, #tpu.memory_space<vmem>>, vector<1x16x16xbf16>
    %33 = vector.shape_cast %32 : vector<1x16x16xbf16> to vector<16x16xbf16>
    %34 = vector.shape_cast %31 : vector<16x16xbf16> to vector<1x16x16xbf16>
    tpu.vector_store %arg5[%c0_16, %c0_17, %c0_18], %34 {strides = array<i32>} : memref<1x16x16xbf16, #tpu.memory_space<vmem>>, vector<1x16x16xbf16>,
    return
  }
  func.func @transform_0(%arg0: i32) -> (i32, i32, i32) {
    %c0_i32 = arith.constant 0 : i32
    %c0_i32_0 = arith.constant 0 : i32
    %c0_i32_1 = arith.constant 0 : i32
    return %arg0, %c0_i32, %c0_i32_0 : i32, i32, i32
  }
  func.func @transform_1(%arg0: i32) -> (i32, i32) {
    %c0_i32 = arith.constant 0 : i32
    %c0_i32_0 = arith.constant 0 : i32
    %c0_i32_1 = arith.constant 0 : i32
    return %c0_i32, %c0_i32_0 : i32, i32
  }
  func.func @transform_2(%arg0: i32) -> (i32, i32) {
    %c0_i32 = arith.constant 0 : i32
    %c0_i32_0 = arith.constant 0 : i32
    %c0_i32_1 = arith.constant 0 : i32
    return %c0_i32, %c0_i32_0 : i32, i32
  }
  func.func @transform_3(%arg0: i32) -> (i32, i32) {
    %c0_i32 = arith.constant 0 : i32
    %c0_i32_0 = arith.constant 0 : i32
    %c0_i32_1 = arith.constant 0 : i32
    return %c0_i32, %c0_i32_0 : i32, i32
  }
  func.func @transform_4(%arg0: i32) -> (i32, i32, i32) {
    %c0_i32 = arith.constant 0 : i32
    %c0_i32_0 = arith.constant 0 : i32
    %c0_i32_1 = arith.constant 0 : i32
    return %arg0, %c0_i32, %c0_i32_0 : i32, i32, i32
  }
}

module attributes {stable_mosaic.version = 11 : i64} {
  func.func @_gn_kernel(%arg0: i32, %arg1: memref<1x16x16xf32, #tpu.memory_space<vmem>>, %arg2: memref<1x16xf32, #tpu.memory_space<vmem>>, %arg3: memref<1x16xf32, #tpu.memory_space<vmem>>, %arg4: memref<16x4xf32, #tpu.memory_space<vmem>>, %arg5: memref<1x16x16xbf16, #tpu.memory_space<vmem>>) attributes {dimension_semantics = [#tpu.dimension_semantics<parallel>], iteration_bounds = array<i64: 2>, scalar_prefetch = 0 : i64, scratch_operands = 0 : i64, tpu.core_type = #tpu.core_type<tc>, window_params = [{transform_indices = @transform_0, window_bounds = array<i64: 1, 16, 16>}, {pipeline_mode = #tpu.pipeline_mode<synchronous>, transform_indices = @transform_1, window_bounds = array<i64: 1, 16>}, {pipeline_mode = #tpu.pipeline_mode<synchronous>, transform_indices = @transform_2, window_bounds = array<i64: 1, 16>}, {pipeline_mode = #tpu.pipeline_mode<synchronous>, transform_indices = @transform_3, window_bounds = array<i64: 16, 4>}, {transform_indices = @transform_4, window_bounds = array<i64: 1, 16, 16>}]} {
    %c0 = arith.constant 0 : index
    %c0_0 = arith.constant 0 : index
    %c0_1 = arith.constant 0 : index
    %0 = vector.load %arg1[%c0, %c0_0, %c0_1] : memref<1x16x16xf32, #tpu.memory_space<vmem>>, vector<1x16x16xf32>
    %1 = vector.shape_cast %0 : vector<1x16x16xf32> to vector<16x16xf32>
    %c0_2 = arith.constant 0 : index
    %c0_3 = arith.constant 0 : index
    %2 = vector.load %arg4[%c0_2, %c0_3] : memref<16x4xf32, #tpu.memory_space<vmem>>, vector<16x4xf32>
    %cst = arith.constant dense<0.000000e+00> : vector<16x4xf32>
    %3 = tpu.matmul %1, %2, %cst {dimension_numbers = #tpu.dot_dimension_numbers<[1], [0], [0], [1], [0, 0, 1, 1], [], []>} : vector<16x16xf32>, vector<16x4xf32>, vector<16x4xf32> -> vector<16x4xf32>
    %cst_4 = arith.constant dense<0.000000e+00> : vector<4xf32>
    %4 = vector.multi_reduction <add>, %3, %cst_4 [0] : vector<16x4xf32> to vector<4xf32>
    %5 = vector.shape_cast %4 : vector<4xf32> to vector<1x4xf32>
    %cst_5 = arith.constant 1.562500e-02 : f32
    %6 = vector.broadcast %cst_5 : f32 to vector<1x4xf32>
    %7 = arith.mulf %5, %6 : vector<1x4xf32>
    %8 = tpu.transpose %2, [1, 0] : vector<16x4xf32> -> vector<4x16xf32>
    %cst_6 = arith.constant dense<0.000000e+00> : vector<1x16xf32>
    %9 = tpu.matmul %7, %8, %cst_6 {dimension_numbers = #tpu.dot_dimension_numbers<[1], [0], [0], [1], [0, 0, 1, 1], [], []>} : vector<1x4xf32>, vector<4x16xf32>, vector<1x16xf32> -> vector<1x16xf32>
    %10 = vector.broadcast %9 : vector<1x16xf32> to vector<16x16xf32>
    %11 = arith.subf %1, %10 : vector<16x16xf32>
    %12 = arith.mulf %11, %11 : vector<16x16xf32>
    %cst_7 = arith.constant dense<0.000000e+00> : vector<16x4xf32>
    %13 = tpu.matmul %12, %2, %cst_7 {dimension_numbers = #tpu.dot_dimension_numbers<[1], [0], [0], [1], [0, 0, 1, 1], [], []>} : vector<16x16xf32>, vector<16x4xf32>, vector<16x4xf32> -> vector<16x4xf32>
    %cst_8 = arith.constant dense<0.000000e+00> : vector<4xf32>
    %14 = vector.multi_reduction <add>, %13, %cst_8 [0] : vector<16x4xf32> to vector<4xf32>
    %15 = vector.shape_cast %14 : vector<4xf32> to vector<1x4xf32>
    %cst_9 = arith.constant 1.562500e-02 : f32
    %16 = vector.broadcast %cst_9 : f32 to vector<1x4xf32>
    %17 = arith.mulf %15, %16 : vector<1x4xf32>
    %18 = tpu.transpose %2, [1, 0] : vector<16x4xf32> -> vector<4x16xf32>
    %cst_10 = arith.constant dense<0.000000e+00> : vector<1x16xf32>
    %19 = tpu.matmul %17, %18, %cst_10 {dimension_numbers = #tpu.dot_dimension_numbers<[1], [0], [0], [1], [0, 0, 1, 1], [], []>} : vector<1x4xf32>, vector<4x16xf32>, vector<1x16xf32> -> vector<1x16xf32>
    %cst_11 = arith.constant 9.99999974E-6 : f32
    %20 = vector.broadcast %cst_11 : f32 to vector<1x16xf32>
    %21 = arith.addf %19, %20 : vector<1x16xf32>
    %22 = math.rsqrt %21 : vector<1x16xf32>
    %23 = vector.broadcast %22 : vector<1x16xf32> to vector<16x16xf32>
    %24 = arith.mulf %11, %23 : vector<16x16xf32>
    %c0_12 = arith.constant 0 : index
    %c0_13 = arith.constant 0 : index
    %25 = vector.load %arg2[%c0_12, %c0_13] : memref<1x16xf32, #tpu.memory_space<vmem>>, vector<1x16xf32>
    %26 = vector.broadcast %25 : vector<1x16xf32> to vector<16x16xf32>
    %27 = arith.mulf %24, %26 : vector<16x16xf32>
    %c0_14 = arith.constant 0 : index
    %c0_15 = arith.constant 0 : index
    %28 = vector.load %arg3[%c0_14, %c0_15] : memref<1x16xf32, #tpu.memory_space<vmem>>, vector<1x16xf32>
    %29 = vector.broadcast %28 : vector<1x16xf32> to vector<16x16xf32>
    %30 = arith.addf %27, %29 : vector<16x16xf32>
    %31 = arith.negf %30 : vector<16x16xf32>
    %32 = math.exp %31 : vector<16x16xf32>
    %cst_16 = arith.constant 1.000000e+00 : f32
    %33 = vector.broadcast %cst_16 : f32 to vector<16x16xf32>
    %34 = arith.addf %33, %32 : vector<16x16xf32>
    %35 = arith.divf %33, %34 : vector<16x16xf32>
    %36 = arith.mulf %30, %35 : vector<16x16xf32>
    %37 = arith.truncf %36 : vector<16x16xf32> to vector<16x16xbf16>
    %c0_17 = arith.constant 0 : index
    %c0_18 = arith.constant 0 : index
    %c0_19 = arith.constant 0 : index
    %38 = vector.load %arg5[%c0_17, %c0_18, %c0_19] : memref<1x16x16xbf16, #tpu.memory_space<vmem>>, vector<1x16x16xbf16>
    %39 = vector.shape_cast %38 : vector<1x16x16xbf16> to vector<16x16xbf16>
    %40 = vector.shape_cast %37 : vector<16x16xbf16> to vector<1x16x16xbf16>
    tpu.vector_store %arg5[%c0_17, %c0_18, %c0_19], %40 {strides = array<i32>} : memref<1x16x16xbf16, #tpu.memory_space<vmem>>, vector<1x16x16xbf16>,
    return
  }
  func.func @transform_0(%arg0: i32) -> (i32, i32, i32) {
    %c0_i32 = arith.constant 0 : i32
    %c0_i32_0 = arith.constant 0 : i32
    %c0_i32_1 = arith.constant 0 : i32
    return %arg0, %c0_i32, %c0_i32_0 : i32, i32, i32
  }
  func.func @transform_1(%arg0: i32) -> (i32, i32) {
    %c0_i32 = arith.constant 0 : i32
    %c0_i32_0 = arith.constant 0 : i32
    %c0_i32_1 = arith.constant 0 : i32
    return %c0_i32, %c0_i32_0 : i32, i32
  }
  func.func @transform_2(%arg0: i32) -> (i32, i32) {
    %c0_i32 = arith.constant 0 : i32
    %c0_i32_0 = arith.constant 0 : i32
    %c0_i32_1 = arith.constant 0 : i32
    return %c0_i32, %c0_i32_0 : i32, i32
  }
  func.func @transform_3(%arg0: i32) -> (i32, i32) {
    %c0_i32 = arith.constant 0 : i32
    %c0_i32_0 = arith.constant 0 : i32
    %c0_i32_1 = arith.constant 0 : i32
    return %c0_i32, %c0_i32_0 : i32, i32
  }
  func.func @transform_4(%arg0: i32) -> (i32, i32, i32) {
    %c0_i32 = arith.constant 0 : i32
    %c0_i32_0 = arith.constant 0 : i32
    %c0_i32_1 = arith.constant 0 : i32
    return %arg0, %c0_i32, %c0_i32_0 : i32, i32, i32
  }
}

module attributes {stable_mosaic.version = 11 : i64} {
  func.func @_gemm_kernel(%arg0: i32, %arg1: i32, %arg2: i32, %arg3: memref<128x256xbf16, #tpu.memory_space<vmem>>, %arg4: memref<256x128xbf16, #tpu.memory_space<vmem>>, %arg5: memref<1x128xf32, #tpu.memory_space<vmem>>, %arg6: memref<128x128xf32, #tpu.memory_space<vmem>>, %arg7: memref<128x128xf32, #tpu.memory_space<vmem>>) attributes {dimension_semantics = [#tpu.dimension_semantics<parallel>, #tpu.dimension_semantics<parallel>, #tpu.dimension_semantics<arbitrary>], iteration_bounds = array<i64: 1, 1, 1>, scalar_prefetch = 0 : i64, scratch_operands = 1 : i64, tpu.core_type = #tpu.core_type<tc>, window_params = [{transform_indices = @transform_0, window_bounds = array<i64: 128, 256>}, {transform_indices = @transform_1, window_bounds = array<i64: 256, 128>}, {transform_indices = @transform_2, window_bounds = array<i64: 1, 128>}, {transform_indices = @transform_3, window_bounds = array<i64: 128, 128>}]} {
    %c0_i32 = arith.constant 0 : i32
    %0 = arith.cmpi eq, %arg2, %c0_i32 : i32
    %1 = arith.extui %0 : i1 to i32
    %c0_i32_0 = arith.constant 0 : i32
    %2 = arith.cmpi ne, %1, %c0_i32_0 : i32
    scf.if %2 {
      %cst_10 = arith.constant 0.000000e+00 : f32
      %12 = vector.broadcast %cst_10 : f32 to vector<128x128xf32>
      %c0_11 = arith.constant 0 : index
      %c0_12 = arith.constant 0 : index
      %13 = vector.load %arg7[%c0_11, %c0_12] : memref<128x128xf32, #tpu.memory_space<vmem>>, vector<128x128xf32>
      tpu.vector_store %arg7[%c0_11, %c0_12], %12 {strides = array<i32>} : memref<128x128xf32, #tpu.memory_space<vmem>>, vector<128x128xf32>,
    } else {
    }
    %c0 = arith.constant 0 : index
    %c0_1 = arith.constant 0 : index
    %3 = vector.load %arg7[%c0, %c0_1] : memref<128x128xf32, #tpu.memory_space<vmem>>, vector<128x128xf32>
    %c0_2 = arith.constant 0 : index
    %c0_3 = arith.constant 0 : index
    %4 = vector.load %arg3[%c0_2, %c0_3] : memref<128x256xbf16, #tpu.memory_space<vmem>>, vector<128x256xbf16>
    %c0_4 = arith.constant 0 : index
    %c0_5 = arith.constant 0 : index
    %5 = vector.load %arg4[%c0_4, %c0_5] : memref<256x128xbf16, #tpu.memory_space<vmem>>, vector<256x128xbf16>
    %cst = arith.constant dense<0.000000e+00> : vector<128x128xf32>
    %6 = tpu.matmul %4, %5, %cst {dimension_numbers = #tpu.dot_dimension_numbers<[1], [0], [0], [1], [0, 0, 1, 1], [], []>} : vector<128x256xbf16>, vector<256x128xbf16>, vector<128x128xf32> -> vector<128x128xf32>
    %7 = arith.addf %3, %6 : vector<128x128xf32>
    %c0_6 = arith.constant 0 : index
    %c0_7 = arith.constant 0 : index
    %8 = vector.load %arg7[%c0_6, %c0_7] : memref<128x128xf32, #tpu.memory_space<vmem>>, vector<128x128xf32>
    tpu.vector_store %arg7[%c0_6, %c0_7], %7 {strides = array<i32>} : memref<128x128xf32, #tpu.memory_space<vmem>>, vector<128x128xf32>,
    %c0_i32_8 = arith.constant 0 : i32
    %9 = arith.cmpi eq, %arg2, %c0_i32_8 : i32
    %10 = arith.extui %9 : i1 to i32
    %c0_i32_9 = arith.constant 0 : i32
    %11 = arith.cmpi ne, %10, %c0_i32_9 : i32
    scf.if %11 {
      %c0_10 = arith.constant 0 : index
      %c0_11 = arith.constant 0 : index
      %12 = vector.load %arg7[%c0_10, %c0_11] : memref<128x128xf32, #tpu.memory_space<vmem>>, vector<128x128xf32>
      %c0_12 = arith.constant 0 : index
      %c0_13 = arith.constant 0 : index
      %13 = vector.load %arg5[%c0_12, %c0_13] : memref<1x128xf32, #tpu.memory_space<vmem>>, vector<1x128xf32>
      %14 = vector.broadcast %13 : vector<1x128xf32> to vector<128x128xf32>
      %15 = arith.addf %12, %14 : vector<128x128xf32>
      %c0_14 = arith.constant 0 : index
      %c0_15 = arith.constant 0 : index
      %16 = vector.load %arg6[%c0_14, %c0_15] : memref<128x128xf32, #tpu.memory_space<vmem>>, vector<128x128xf32>
      tpu.vector_store %arg6[%c0_14, %c0_15], %15 {strides = array<i32>} : memref<128x128xf32, #tpu.memory_space<vmem>>, vector<128x128xf32>,
    } else {
    }
    return
  }
  func.func @transform_0(%arg0: i32, %arg1: i32, %arg2: i32) -> (i32, i32) {
    %c0_i32 = arith.constant 0 : i32
    return %arg0, %arg2 : i32, i32
  }
  func.func @transform_1(%arg0: i32, %arg1: i32, %arg2: i32) -> (i32, i32) {
    %c0_i32 = arith.constant 0 : i32
    return %arg2, %arg1 : i32, i32
  }
  func.func @transform_2(%arg0: i32, %arg1: i32, %arg2: i32) -> (i32, i32) {
    %c0_i32 = arith.constant 0 : i32
    %c0_i32_0 = arith.constant 0 : i32
    return %c0_i32, %arg1 : i32, i32
  }
  func.func @transform_3(%arg0: i32, %arg1: i32, %arg2: i32) -> (i32, i32) {
    %c0_i32 = arith.constant 0 : i32
    return %arg0, %arg1 : i32, i32
  }
}

module attributes {stable_mosaic.version = 11 : i64} {
  func.func @_flash_attn_kernel(%arg0: i32, %arg1: i32, %arg2: i32, %arg3: memref<1x16x16xbf16, #tpu.memory_space<vmem>>, %arg4: memref<1x16x16xbf16, #tpu.memory_space<vmem>>, %arg5: memref<1x16x16xbf16, #tpu.memory_space<vmem>>, %arg6: memref<1x16x16xf32, #tpu.memory_space<vmem>>, %arg7: memref<16x1xf32, #tpu.memory_space<vmem>>, %arg8: memref<16x1xf32, #tpu.memory_space<vmem>>, %arg9: memref<16x16xf32, #tpu.memory_space<vmem>>) attributes {dimension_semantics = [#tpu.dimension_semantics<parallel>, #tpu.dimension_semantics<parallel>, #tpu.dimension_semantics<arbitrary>], iteration_bounds = array<i64: 2, 1, 1>, scalar_prefetch = 0 : i64, scratch_operands = 3 : i64, tpu.core_type = #tpu.core_type<tc>, window_params = [{transform_indices = @transform_0, window_bounds = array<i64: 1, 16, 16>}, {transform_indices = @transform_1, window_bounds = array<i64: 1, 16, 16>}, {transform_indices = @transform_2, window_bounds = array<i64: 1, 16, 16>}, {transform_indices = @transform_3, window_bounds = array<i64: 1, 16, 16>}]} {
    %c0_i32 = arith.constant 0 : i32
    %0 = arith.cmpi eq, %arg2, %c0_i32 : i32
    %1 = arith.extui %0 : i1 to i32
    %c0_i32_0 = arith.constant 0 : i32
    %2 = arith.cmpi ne, %1, %c0_i32_0 : i32
    scf.if %2 {
      %cst_27 = arith.constant -1.000000e+30 : f32
      %39 = vector.broadcast %cst_27 : f32 to vector<16x1xf32>
      %c0_28 = arith.constant 0 : index
      %c0_29 = arith.constant 0 : index
      %40 = vector.load %arg7[%c0_28, %c0_29] : memref<16x1xf32, #tpu.memory_space<vmem>>, vector<16x1xf32>
      tpu.vector_store %arg7[%c0_28, %c0_29], %39 {strides = array<i32>} : memref<16x1xf32, #tpu.memory_space<vmem>>, vector<16x1xf32>,
      %cst_30 = arith.constant 0.000000e+00 : f32
      %41 = vector.broadcast %cst_30 : f32 to vector<16x1xf32>
      %c0_31 = arith.constant 0 : index
      %c0_32 = arith.constant 0 : index
      %42 = vector.load %arg8[%c0_31, %c0_32] : memref<16x1xf32, #tpu.memory_space<vmem>>, vector<16x1xf32>
      tpu.vector_store %arg8[%c0_31, %c0_32], %41 {strides = array<i32>} : memref<16x1xf32, #tpu.memory_space<vmem>>, vector<16x1xf32>,
      %cst_33 = arith.constant 0.000000e+00 : f32
      %43 = vector.broadcast %cst_33 : f32 to vector<16x16xf32>
      %c0_34 = arith.constant 0 : index
      %c0_35 = arith.constant 0 : index
      %44 = vector.load %arg9[%c0_34, %c0_35] : memref<16x16xf32, #tpu.memory_space<vmem>>, vector<16x16xf32>
      tpu.vector_store %arg9[%c0_34, %c0_35], %43 {strides = array<i32>} : memref<16x16xf32, #tpu.memory_space<vmem>>, vector<16x16xf32>,
    } else {
    }
    %c0 = arith.constant 0 : index
    %c0_1 = arith.constant 0 : index
    %c0_2 = arith.constant 0 : index
    %3 = vector.load %arg3[%c0, %c0_1, %c0_2] : memref<1x16x16xbf16, #tpu.memory_space<vmem>>, vector<1x16x16xbf16>
    %4 = vector.shape_cast %3 : vector<1x16x16xbf16> to vector<16x16xbf16>
    %c0_3 = arith.constant 0 : index
    %c0_4 = arith.constant 0 : index
    %c0_5 = arith.constant 0 : index
    %5 = vector.load %arg4[%c0_3, %c0_4, %c0_5] : memref<1x16x16xbf16, #tpu.memory_space<vmem>>, vector<1x16x16xbf16>
    %6 = vector.shape_cast %5 : vector<1x16x16xbf16> to vector<16x16xbf16>
    %7 = tpu.transpose %6, [1, 0] : vector<16x16xbf16> -> vector<16x16xbf16>
    %cst = arith.constant dense<0.000000e+00> : vector<16x16xf32>
    %8 = tpu.matmul %4, %7, %cst {dimension_numbers = #tpu.dot_dimension_numbers<[1], [0], [0], [1], [0, 0, 1, 1], [], []>} : vector<16x16xbf16>, vector<16x16xbf16>, vector<16x16xf32> -> vector<16x16xf32>
    %cst_6 = arith.constant 2.500000e-01 : f32
    %9 = vector.broadcast %cst_6 : f32 to vector<16x16xf32>
    %10 = arith.mulf %8, %9 : vector<16x16xf32>
    %c0_7 = arith.constant 0 : index
    %c0_8 = arith.constant 0 : index
    %11 = vector.load %arg7[%c0_7, %c0_8] : memref<16x1xf32, #tpu.memory_space<vmem>>, vector<16x1xf32>
    %cst_9 = arith.constant dense<0xFF800000> : vector<16xf32>
    %12 = vector.multi_reduction <maximumf>, %10, %cst_9 [1] : vector<16x16xf32> to vector<16xf32>
    %13 = vector.shape_cast %12 : vector<16xf32> to vector<16x1xf32>
    %14 = arith.maximumf %11, %13 : vector<16x1xf32>
    %15 = arith.subf %11, %14 : vector<16x1xf32>
    %16 = math.exp %15 : vector<16x1xf32>
    %17 = vector.broadcast %14 : vector<16x1xf32> to vector<16x16xf32>
    %18 = arith.subf %10, %17 : vector<16x16xf32>
    %19 = math.exp %18 : vector<16x16xf32>
    %c0_10 = arith.constant 0 : index
    %c0_11 = arith.constant 0 : index
    %20 = vector.load %arg8[%c0_10, %c0_11] : memref<16x1xf32, #tpu.memory_space<vmem>>, vector<16x1xf32>
    %21 = arith.mulf %16, %20 : vector<16x1xf32>
    %cst_12 = arith.constant dense<0.000000e+00> : vector<16xf32>
    %22 = vector.multi_reduction <add>, %19, %cst_12 [1] : vector<16x16xf32> to vector<16xf32>
    %23 = vector.shape_cast %22 : vector<16xf32> to vector<16x1xf32>
    %24 = arith.addf %21, %23 : vector<16x1xf32>
    %c0_13 = arith.constant 0 : index
    %c0_14 = arith.constant 0 : index
    %25 = vector.load %arg8[%c0_13, %c0_14] : memref<16x1xf32, #tpu.memory_space<vmem>>, vector<16x1xf32>
    tpu.vector_store %arg8[%c0_13, %c0_14], %24 {strides = array<i32>} : memref<16x1xf32, #tpu.memory_space<vmem>>, vector<16x1xf32>,
    %c0_15 = arith.constant 0 : index
    %c0_16 = arith.constant 0 : index
    %26 = vector.load %arg9[%c0_15, %c0_16] : memref<16x16xf32, #tpu.memory_space<vmem>>, vector<16x16xf32>
    %27 = vector.broadcast %16 : vector<16x1xf32> to vector<16x16xf32>
    %28 = arith.mulf %27, %26 : vector<16x16xf32>
    %29 = arith.truncf %19 : vector<16x16xf32> to vector<16x16xbf16>
    %c0_17 = arith.constant 0 : index
    %c0_18 = arith.constant 0 : index
    %c0_19 = arith.constant 0 : index
    %30 = vector.load %arg5[%c0_17, %c0_18, %c0_19] : memref<1x16x16xbf16, #tpu.memory_space<vmem>>, vector<1x16x16xbf16>
    %31 = vector.shape_cast %30 : vector<1x16x16xbf16> to vector<16x16xbf16>
    %cst_20 = arith.constant dense<0.000000e+00> : vector<16x16xf32>
    %32 = tpu.matmul %29, %31, %cst_20 {dimension_numbers = #tpu.dot_dimension_numbers<[1], [0], [0], [1], [0, 0, 1, 1], [], []>} : vector<16x16xbf16>, vector<16x16xbf16>, vector<16x16xf32> -> vector<16x16xf32>
    %33 = arith.addf %28, %32 : vector<16x16xf32>
    %c0_21 = arith.constant 0 : index
    %c0_22 = arith.constant 0 : index
    %34 = vector.load %arg9[%c0_21, %c0_22] : memref<16x16xf32, #tpu.memory_space<vmem>>, vector<16x16xf32>
    tpu.vector_store %arg9[%c0_21, %c0_22], %33 {strides = array<i32>} : memref<16x16xf32, #tpu.memory_space<vmem>>, vector<16x16xf32>,
    %c0_23 = arith.constant 0 : index
    %c0_24 = arith.constant 0 : index
    %35 = vector.load %arg7[%c0_23, %c0_24] : memref<16x1xf32, #tpu.memory_space<vmem>>, vector<16x1xf32>
    tpu.vector_store %arg7[%c0_23, %c0_24], %14 {strides = array<i32>} : memref<16x1xf32, #tpu.memory_space<vmem>>, vector<16x1xf32>,
    %c0_i32_25 = arith.constant 0 : i32
    %36 = arith.cmpi eq, %arg2, %c0_i32_25 : i32
    %37 = arith.extui %36 : i1 to i32
    %c0_i32_26 = arith.constant 0 : i32
    %38 = arith.cmpi ne, %37, %c0_i32_26 : i32
    scf.if %38 {
      %c0_27 = arith.constant 0 : index
      %c0_28 = arith.constant 0 : index
      %39 = vector.load %arg9[%c0_27, %c0_28] : memref<16x16xf32, #tpu.memory_space<vmem>>, vector<16x16xf32>
      %c0_29 = arith.constant 0 : index
      %c0_30 = arith.constant 0 : index
      %40 = vector.load %arg8[%c0_29, %c0_30] : memref<16x1xf32, #tpu.memory_space<vmem>>, vector<16x1xf32>
      %41 = tpu.reciprocal %40 {approx = true} : vector<16x1xf32> -> vector<16x1xf32>
      %42 = vector.broadcast %41 : vector<16x1xf32> to vector<16x16xf32>
      %43 = arith.mulf %39, %42 : vector<16x16xf32>
      %c0_31 = arith.constant 0 : index
      %c0_32 = arith.constant 0 : index
      %c0_33 = arith.constant 0 : index
      %44 = vector.load %arg6[%c0_31, %c0_32, %c0_33] : memref<1x16x16xf32, #tpu.memory_space<vmem>>, vector<1x16x16xf32>
      %45 = vector.shape_cast %44 : vector<1x16x16xf32> to vector<16x16xf32>
      %46 = vector.shape_cast %43 : vector<16x16xf32> to vector<1x16x16xf32>
      tpu.vector_store %arg6[%c0_31, %c0_32, %c0_33], %46 {strides = array<i32>} : memref<1x16x16xf32, #tpu.memory_space<vmem>>, vector<1x16x16xf32>,
    } else {
    }
    return
  }
  func.func @transform_0(%arg0: i32, %arg1: i32, %arg2: i32) -> (i32, i32, i32) {
    %c0_i32 = arith.constant 0 : i32
    %c0_i32_0 = arith.constant 0 : i32
    return %arg0, %arg1, %c0_i32 : i32, i32, i32
  }
  func.func @transform_1(%arg0: i32, %arg1: i32, %arg2: i32) -> (i32, i32, i32) {
    %c0_i32 = arith.constant 0 : i32
    %c0_i32_0 = arith.constant 0 : i32
    return %arg0, %arg2, %c0_i32 : i32, i32, i32
  }
  func.func @transform_2(%arg0: i32, %arg1: i32, %arg2: i32) -> (i32, i32, i32) {
    %c0_i32 = arith.constant 0 : i32
    %c0_i32_0 = arith.constant 0 : i32
    return %arg0, %arg2, %c0_i32 : i32, i32, i32
  }
  func.func @transform_3(%arg0: i32, %arg1: i32, %arg2: i32) -> (i32, i32, i32) {
    %c0_i32 = arith.constant 0 : i32
    %c0_i32_0 = arith.constant 0 : i32
    return %arg0, %arg1, %c0_i32 : i32, i32, i32
  }
}

module attributes {stable_mosaic.version = 11 : i64} {
  func.func @_gn_kernel(%arg0: i32, %arg1: memref<1x16x32xf32, #tpu.memory_space<vmem>>, %arg2: memref<1x32xf32, #tpu.memory_space<vmem>>, %arg3: memref<1x32xf32, #tpu.memory_space<vmem>>, %arg4: memref<32x4xf32, #tpu.memory_space<vmem>>, %arg5: memref<1x16x32xbf16, #tpu.memory_space<vmem>>) attributes {dimension_semantics = [#tpu.dimension_semantics<parallel>], iteration_bounds = array<i64: 2>, scalar_prefetch = 0 : i64, scratch_operands = 0 : i64, tpu.core_type = #tpu.core_type<tc>, window_params = [{transform_indices = @transform_0, window_bounds = array<i64: 1, 16, 32>}, {pipeline_mode = #tpu.pipeline_mode<synchronous>, transform_indices = @transform_1, window_bounds = array<i64: 1, 32>}, {pipeline_mode = #tpu.pipeline_mode<synchronous>, transform_indices = @transform_2, window_bounds = array<i64: 1, 32>}, {pipeline_mode = #tpu.pipeline_mode<synchronous>, transform_indices = @transform_3, window_bounds = array<i64: 32, 4>}, {transform_indices = @transform_4, window_bounds = array<i64: 1, 16, 32>}]} {
    %c0 = arith.constant 0 : index
    %c0_0 = arith.constant 0 : index
    %c0_1 = arith.constant 0 : index
    %0 = vector.load %arg1[%c0, %c0_0, %c0_1] : memref<1x16x32xf32, #tpu.memory_space<vmem>>, vector<1x16x32xf32>
    %1 = vector.shape_cast %0 : vector<1x16x32xf32> to vector<16x32xf32>
    %c0_2 = arith.constant 0 : index
    %c0_3 = arith.constant 0 : index
    %2 = vector.load %arg4[%c0_2, %c0_3] : memref<32x4xf32, #tpu.memory_space<vmem>>, vector<32x4xf32>
    %cst = arith.constant dense<0.000000e+00> : vector<16x4xf32>
    %3 = tpu.matmul %1, %2, %cst {dimension_numbers = #tpu.dot_dimension_numbers<[1], [0], [0], [1], [0, 0, 1, 1], [], []>} : vector<16x32xf32>, vector<32x4xf32>, vector<16x4xf32> -> vector<16x4xf32>
    %cst_4 = arith.constant dense<0.000000e+00> : vector<4xf32>
    %4 = vector.multi_reduction <add>, %3, %cst_4 [0] : vector<16x4xf32> to vector<4xf32>
    %5 = vector.shape_cast %4 : vector<4xf32> to vector<1x4xf32>
    %cst_5 = arith.constant 7.812500e-03 : f32
    %6 = vector.broadcast %cst_5 : f32 to vector<1x4xf32>
    %7 = arith.mulf %5, %6 : vector<1x4xf32>
    %8 = tpu.transpose %2, [1, 0] : vector<32x4xf32> -> vector<4x32xf32>
    %cst_6 = arith.constant dense<0.000000e+00> : vector<1x32xf32>
    %9 = tpu.matmul %7, %8, %cst_6 {dimension_numbers = #tpu.dot_dimension_numbers<[1], [0], [0], [1], [0, 0, 1, 1], [], []>} : vector<1x4xf32>, vector<4x32xf32>, vector<1x32xf32> -> vector<1x32xf32>
    %10 = vector.broadcast %9 : vector<1x32xf32> to vector<16x32xf32>
    %11 = arith.subf %1, %10 : vector<16x32xf32>
    %12 = arith.mulf %11, %11 : vector<16x32xf32>
    %cst_7 = arith.constant dense<0.000000e+00> : vector<16x4xf32>
    %13 = tpu.matmul %12, %2, %cst_7 {dimension_numbers = #tpu.dot_dimension_numbers<[1], [0], [0], [1], [0, 0, 1, 1], [], []>} : vector<16x32xf32>, vector<32x4xf32>, vector<16x4xf32> -> vector<16x4xf32>
    %cst_8 = arith.constant dense<0.000000e+00> : vector<4xf32>
    %14 = vector.multi_reduction <add>, %13, %cst_8 [0] : vector<16x4xf32> to vector<4xf32>
    %15 = vector.shape_cast %14 : vector<4xf32> to vector<1x4xf32>
    %cst_9 = arith.constant 7.812500e-03 : f32
    %16 = vector.broadcast %cst_9 : f32 to vector<1x4xf32>
    %17 = arith.mulf %15, %16 : vector<1x4xf32>
    %18 = tpu.transpose %2, [1, 0] : vector<32x4xf32> -> vector<4x32xf32>
    %cst_10 = arith.constant dense<0.000000e+00> : vector<1x32xf32>
    %19 = tpu.matmul %17, %18, %cst_10 {dimension_numbers = #tpu.dot_dimension_numbers<[1], [0], [0], [1], [0, 0, 1, 1], [], []>} : vector<1x4xf32>, vector<4x32xf32>, vector<1x32xf32> -> vector<1x32xf32>
    %cst_11 = arith.constant 9.99999974E-6 : f32
    %20 = vector.broadcast %cst_11 : f32 to vector<1x32xf32>
    %21 = arith.addf %19, %20 : vector<1x32xf32>
    %22 = math.rsqrt %21 : vector<1x32xf32>
    %23 = vector.broadcast %22 : vector<1x32xf32> to vector<16x32xf32>
    %24 = arith.mulf %11, %23 : vector<16x32xf32>
    %c0_12 = arith.constant 0 : index
    %c0_13 = arith.constant 0 : index
    %25 = vector.load %arg2[%c0_12, %c0_13] : memref<1x32xf32, #tpu.memory_space<vmem>>, vector<1x32xf32>
    %26 = vector.broadcast %25 : vector<1x32xf32> to vector<16x32xf32>
    %27 = arith.mulf %24, %26 : vector<16x32xf32>
    %c0_14 = arith.constant 0 : index
    %c0_15 = arith.constant 0 : index
    %28 = vector.load %arg3[%c0_14, %c0_15] : memref<1x32xf32, #tpu.memory_space<vmem>>, vector<1x32xf32>
    %29 = vector.broadcast %28 : vector<1x32xf32> to vector<16x32xf32>
    %30 = arith.addf %27, %29 : vector<16x32xf32>
    %31 = arith.negf %30 : vector<16x32xf32>
    %32 = math.exp %31 : vector<16x32xf32>
    %cst_16 = arith.constant 1.000000e+00 : f32
    %33 = vector.broadcast %cst_16 : f32 to vector<16x32xf32>
    %34 = arith.addf %33, %32 : vector<16x32xf32>
    %35 = arith.divf %33, %34 : vector<16x32xf32>
    %36 = arith.mulf %30, %35 : vector<16x32xf32>
    %37 = arith.truncf %36 : vector<16x32xf32> to vector<16x32xbf16>
    %c0_17 = arith.constant 0 : index
    %c0_18 = arith.constant 0 : index
    %c0_19 = arith.constant 0 : index
    %38 = vector.load %arg5[%c0_17, %c0_18, %c0_19] : memref<1x16x32xbf16, #tpu.memory_space<vmem>>, vector<1x16x32xbf16>
    %39 = vector.shape_cast %38 : vector<1x16x32xbf16> to vector<16x32xbf16>
    %40 = vector.shape_cast %37 : vector<16x32xbf16> to vector<1x16x32xbf16>
    tpu.vector_store %arg5[%c0_17, %c0_18, %c0_19], %40 {strides = array<i32>} : memref<1x16x32xbf16, #tpu.memory_space<vmem>>, vector<1x16x32xbf16>,
    return
  }
  func.func @transform_0(%arg0: i32) -> (i32, i32, i32) {
    %c0_i32 = arith.constant 0 : i32
    %c0_i32_0 = arith.constant 0 : i32
    %c0_i32_1 = arith.constant 0 : i32
    return %arg0, %c0_i32, %c0_i32_0 : i32, i32, i32
  }
  func.func @transform_1(%arg0: i32) -> (i32, i32) {
    %c0_i32 = arith.constant 0 : i32
    %c0_i32_0 = arith.constant 0 : i32
    %c0_i32_1 = arith.constant 0 : i32
    return %c0_i32, %c0_i32_0 : i32, i32
  }
  func.func @transform_2(%arg0: i32) -> (i32, i32) {
    %c0_i32 = arith.constant 0 : i32
    %c0_i32_0 = arith.constant 0 : i32
    %c0_i32_1 = arith.constant 0 : i32
    return %c0_i32, %c0_i32_0 : i32, i32
  }
  func.func @transform_3(%arg0: i32) -> (i32, i32) {
    %c0_i32 = arith.constant 0 : i32
    %c0_i32_0 = arith.constant 0 : i32
    %c0_i32_1 = arith.constant 0 : i32
    return %c0_i32, %c0_i32_0 : i32, i32
  }
  func.func @transform_4(%arg0: i32) -> (i32, i32, i32) {
    %c0_i32 = arith.constant 0 : i32
    %c0_i32_0 = arith.constant 0 : i32
    %c0_i32_1 = arith.constant 0 : i32
    return %arg0, %c0_i32, %c0_i32_0 : i32, i32, i32
  }
}

module attributes {stable_mosaic.version = 11 : i64} {
  func.func @_gemm_kernel(%arg0: i32, %arg1: i32, %arg2: i32, %arg3: memref<128x256xbf16, #tpu.memory_space<vmem>>, %arg4: memref<256x128xbf16, #tpu.memory_space<vmem>>, %arg5: memref<1x128xf32, #tpu.memory_space<vmem>>, %arg6: memref<128x128xf32, #tpu.memory_space<vmem>>, %arg7: memref<128x128xf32, #tpu.memory_space<vmem>>) attributes {dimension_semantics = [#tpu.dimension_semantics<parallel>, #tpu.dimension_semantics<parallel>, #tpu.dimension_semantics<arbitrary>], iteration_bounds = array<i64: 1, 1, 2>, scalar_prefetch = 0 : i64, scratch_operands = 1 : i64, tpu.core_type = #tpu.core_type<tc>, window_params = [{transform_indices = @transform_0, window_bounds = array<i64: 128, 256>}, {transform_indices = @transform_1, window_bounds = array<i64: 256, 128>}, {transform_indices = @transform_2, window_bounds = array<i64: 1, 128>}, {transform_indices = @transform_3, window_bounds = array<i64: 128, 128>}]} {
    %c0_i32 = arith.constant 0 : i32
    %0 = arith.cmpi eq, %arg2, %c0_i32 : i32
    %1 = arith.extui %0 : i1 to i32
    %c0_i32_0 = arith.constant 0 : i32
    %2 = arith.cmpi ne, %1, %c0_i32_0 : i32
    scf.if %2 {
      %cst_9 = arith.constant 0.000000e+00 : f32
      %12 = vector.broadcast %cst_9 : f32 to vector<128x128xf32>
      %c0_10 = arith.constant 0 : index
      %c0_11 = arith.constant 0 : index
      %13 = vector.load %arg7[%c0_10, %c0_11] : memref<128x128xf32, #tpu.memory_space<vmem>>, vector<128x128xf32>
      tpu.vector_store %arg7[%c0_10, %c0_11], %12 {strides = array<i32>} : memref<128x128xf32, #tpu.memory_space<vmem>>, vector<128x128xf32>,
    } else {
    }
    %c0 = arith.constant 0 : index
    %c0_1 = arith.constant 0 : index
    %3 = vector.load %arg7[%c0, %c0_1] : memref<128x128xf32, #tpu.memory_space<vmem>>, vector<128x128xf32>
    %c0_2 = arith.constant 0 : index
    %c0_3 = arith.constant 0 : index
    %4 = vector.load %arg3[%c0_2, %c0_3] : memref<128x256xbf16, #tpu.memory_space<vmem>>, vector<128x256xbf16>
    %c0_4 = arith.constant 0 : index
    %c0_5 = arith.constant 0 : index
    %5 = vector.load %arg4[%c0_4, %c0_5] : memref<256x128xbf16, #tpu.memory_space<vmem>>, vector<256x128xbf16>
    %cst = arith.constant dense<0.000000e+00> : vector<128x128xf32>
    %6 = tpu.matmul %4, %5, %cst {dimension_numbers = #tpu.dot_dimension_numbers<[1], [0], [0], [1], [0, 0, 1, 1], [], []>} : vector<128x256xbf16>, vector<256x128xbf16>, vector<128x128xf32> -> vector<128x128xf32>
    %7 = arith.addf %3, %6 : vector<128x128xf32>
    %c0_6 = arith.constant 0 : index
    %c0_7 = arith.constant 0 : index
    %8 = vector.load %arg7[%c0_6, %c0_7] : memref<128x128xf32, #tpu.memory_space<vmem>>, vector<128x128xf32>
    tpu.vector_store %arg7[%c0_6, %c0_7], %7 {strides = array<i32>} : memref<128x128xf32, #tpu.memory_space<vmem>>, vector<128x128xf32>,
    %c1_i32 = arith.constant 1 : i32
    %9 = arith.cmpi eq, %arg2, %c1_i32 : i32
    %10 = arith.extui %9 : i1 to i32
    %c0_i32_8 = arith.constant 0 : i32
    %11 = arith.cmpi ne, %10, %c0_i32_8 : i32
    scf.if %11 {
      %c0_9 = arith.constant 0 : index
      %c0_10 = arith.constant 0 : index
      %12 = vector.load %arg7[%c0_9, %c0_10] : memref<128x128xf32, #tpu.memory_space<vmem>>, vector<128x128xf32>
      %c0_11 = arith.constant 0 : index
      %c0_12 = arith.constant 0 : index
      %13 = vector.load %arg5[%c0_11, %c0_12] : memref<1x128xf32, #tpu.memory_space<vmem>>, vector<1x128xf32>
      %14 = vector.broadcast %13 : vector<1x128xf32> to vector<128x128xf32>
      %15 = arith.addf %12, %14 : vector<128x128xf32>
      %c0_13 = arith.constant 0 : index
      %c0_14 = arith.constant 0 : index
      %16 = vector.load %arg6[%c0_13, %c0_14] : memref<128x128xf32, #tpu.memory_space<vmem>>, vector<128x128xf32>
      tpu.vector_store %arg6[%c0_13, %c0_14], %15 {strides = array<i32>} : memref<128x128xf32, #tpu.memory_space<vmem>>, vector<128x128xf32>,
    } else {
    }
    return
  }
  func.func @transform_0(%arg0: i32, %arg1: i32, %arg2: i32) -> (i32, i32) {
    %c0_i32 = arith.constant 0 : i32
    return %arg0, %arg2 : i32, i32
  }
  func.func @transform_1(%arg0: i32, %arg1: i32, %arg2: i32) -> (i32, i32) {
    %c0_i32 = arith.constant 0 : i32
    return %arg2, %arg1 : i32, i32
  }
  func.func @transform_2(%arg0: i32, %arg1: i32, %arg2: i32) -> (i32, i32) {
    %c0_i32 = arith.constant 0 : i32
    %c0_i32_0 = arith.constant 0 : i32
    return %c0_i32, %arg1 : i32, i32
  }
  func.func @transform_3(%arg0: i32, %arg1: i32, %arg2: i32) -> (i32, i32) {
    %c0_i32 = arith.constant 0 : i32
    return %arg0, %arg1 : i32, i32
  }
}

module attributes {stable_mosaic.version = 11 : i64} {
  func.func @_gn_kernel(%arg0: i32, %arg1: memref<1x16x24xf32, #tpu.memory_space<vmem>>, %arg2: memref<1x24xf32, #tpu.memory_space<vmem>>, %arg3: memref<1x24xf32, #tpu.memory_space<vmem>>, %arg4: memref<24x4xf32, #tpu.memory_space<vmem>>, %arg5: memref<1x16x24xbf16, #tpu.memory_space<vmem>>) attributes {dimension_semantics = [#tpu.dimension_semantics<parallel>], iteration_bounds = array<i64: 2>, scalar_prefetch = 0 : i64, scratch_operands = 0 : i64, tpu.core_type = #tpu.core_type<tc>, window_params = [{transform_indices = @transform_0, window_bounds = array<i64: 1, 16, 24>}, {pipeline_mode = #tpu.pipeline_mode<synchronous>, transform_indices = @transform_1, window_bounds = array<i64: 1, 24>}, {pipeline_mode = #tpu.pipeline_mode<synchronous>, transform_indices = @transform_2, window_bounds = array<i64: 1, 24>}, {pipeline_mode = #tpu.pipeline_mode<synchronous>, transform_indices = @transform_3, window_bounds = array<i64: 24, 4>}, {transform_indices = @transform_4, window_bounds = array<i64: 1, 16, 24>}]} {
    %c0 = arith.constant 0 : index
    %c0_0 = arith.constant 0 : index
    %c0_1 = arith.constant 0 : index
    %0 = vector.load %arg1[%c0, %c0_0, %c0_1] : memref<1x16x24xf32, #tpu.memory_space<vmem>>, vector<1x16x24xf32>
    %1 = vector.shape_cast %0 : vector<1x16x24xf32> to vector<16x24xf32>
    %c0_2 = arith.constant 0 : index
    %c0_3 = arith.constant 0 : index
    %2 = vector.load %arg4[%c0_2, %c0_3] : memref<24x4xf32, #tpu.memory_space<vmem>>, vector<24x4xf32>
    %cst = arith.constant dense<0.000000e+00> : vector<16x4xf32>
    %3 = tpu.matmul %1, %2, %cst {dimension_numbers = #tpu.dot_dimension_numbers<[1], [0], [0], [1], [0, 0, 1, 1], [], []>} : vector<16x24xf32>, vector<24x4xf32>, vector<16x4xf32> -> vector<16x4xf32>
    %cst_4 = arith.constant dense<0.000000e+00> : vector<4xf32>
    %4 = vector.multi_reduction <add>, %3, %cst_4 [0] : vector<16x4xf32> to vector<4xf32>
    %5 = vector.shape_cast %4 : vector<4xf32> to vector<1x4xf32>
    %cst_5 = arith.constant 0.010416667 : f32
    %6 = vector.broadcast %cst_5 : f32 to vector<1x4xf32>
    %7 = arith.mulf %5, %6 : vector<1x4xf32>
    %8 = tpu.transpose %2, [1, 0] : vector<24x4xf32> -> vector<4x24xf32>
    %cst_6 = arith.constant dense<0.000000e+00> : vector<1x24xf32>
    %9 = tpu.matmul %7, %8, %cst_6 {dimension_numbers = #tpu.dot_dimension_numbers<[1], [0], [0], [1], [0, 0, 1, 1], [], []>} : vector<1x4xf32>, vector<4x24xf32>, vector<1x24xf32> -> vector<1x24xf32>
    %10 = vector.broadcast %9 : vector<1x24xf32> to vector<16x24xf32>
    %11 = arith.subf %1, %10 : vector<16x24xf32>
    %12 = arith.mulf %11, %11 : vector<16x24xf32>
    %cst_7 = arith.constant dense<0.000000e+00> : vector<16x4xf32>
    %13 = tpu.matmul %12, %2, %cst_7 {dimension_numbers = #tpu.dot_dimension_numbers<[1], [0], [0], [1], [0, 0, 1, 1], [], []>} : vector<16x24xf32>, vector<24x4xf32>, vector<16x4xf32> -> vector<16x4xf32>
    %cst_8 = arith.constant dense<0.000000e+00> : vector<4xf32>
    %14 = vector.multi_reduction <add>, %13, %cst_8 [0] : vector<16x4xf32> to vector<4xf32>
    %15 = vector.shape_cast %14 : vector<4xf32> to vector<1x4xf32>
    %cst_9 = arith.constant 0.010416667 : f32
    %16 = vector.broadcast %cst_9 : f32 to vector<1x4xf32>
    %17 = arith.mulf %15, %16 : vector<1x4xf32>
    %18 = tpu.transpose %2, [1, 0] : vector<24x4xf32> -> vector<4x24xf32>
    %cst_10 = arith.constant dense<0.000000e+00> : vector<1x24xf32>
    %19 = tpu.matmul %17, %18, %cst_10 {dimension_numbers = #tpu.dot_dimension_numbers<[1], [0], [0], [1], [0, 0, 1, 1], [], []>} : vector<1x4xf32>, vector<4x24xf32>, vector<1x24xf32> -> vector<1x24xf32>
    %cst_11 = arith.constant 9.99999974E-6 : f32
    %20 = vector.broadcast %cst_11 : f32 to vector<1x24xf32>
    %21 = arith.addf %19, %20 : vector<1x24xf32>
    %22 = math.rsqrt %21 : vector<1x24xf32>
    %23 = vector.broadcast %22 : vector<1x24xf32> to vector<16x24xf32>
    %24 = arith.mulf %11, %23 : vector<16x24xf32>
    %c0_12 = arith.constant 0 : index
    %c0_13 = arith.constant 0 : index
    %25 = vector.load %arg2[%c0_12, %c0_13] : memref<1x24xf32, #tpu.memory_space<vmem>>, vector<1x24xf32>
    %26 = vector.broadcast %25 : vector<1x24xf32> to vector<16x24xf32>
    %27 = arith.mulf %24, %26 : vector<16x24xf32>
    %c0_14 = arith.constant 0 : index
    %c0_15 = arith.constant 0 : index
    %28 = vector.load %arg3[%c0_14, %c0_15] : memref<1x24xf32, #tpu.memory_space<vmem>>, vector<1x24xf32>
    %29 = vector.broadcast %28 : vector<1x24xf32> to vector<16x24xf32>
    %30 = arith.addf %27, %29 : vector<16x24xf32>
    %31 = arith.negf %30 : vector<16x24xf32>
    %32 = math.exp %31 : vector<16x24xf32>
    %cst_16 = arith.constant 1.000000e+00 : f32
    %33 = vector.broadcast %cst_16 : f32 to vector<16x24xf32>
    %34 = arith.addf %33, %32 : vector<16x24xf32>
    %35 = arith.divf %33, %34 : vector<16x24xf32>
    %36 = arith.mulf %30, %35 : vector<16x24xf32>
    %37 = arith.truncf %36 : vector<16x24xf32> to vector<16x24xbf16>
    %c0_17 = arith.constant 0 : index
    %c0_18 = arith.constant 0 : index
    %c0_19 = arith.constant 0 : index
    %38 = vector.load %arg5[%c0_17, %c0_18, %c0_19] : memref<1x16x24xbf16, #tpu.memory_space<vmem>>, vector<1x16x24xbf16>
    %39 = vector.shape_cast %38 : vector<1x16x24xbf16> to vector<16x24xbf16>
    %40 = vector.shape_cast %37 : vector<16x24xbf16> to vector<1x16x24xbf16>
    tpu.vector_store %arg5[%c0_17, %c0_18, %c0_19], %40 {strides = array<i32>} : memref<1x16x24xbf16, #tpu.memory_space<vmem>>, vector<1x16x24xbf16>,
    return
  }
  func.func @transform_0(%arg0: i32) -> (i32, i32, i32) {
    %c0_i32 = arith.constant 0 : i32
    %c0_i32_0 = arith.constant 0 : i32
    %c0_i32_1 = arith.constant 0 : i32
    return %arg0, %c0_i32, %c0_i32_0 : i32, i32, i32
  }
  func.func @transform_1(%arg0: i32) -> (i32, i32) {
    %c0_i32 = arith.constant 0 : i32
    %c0_i32_0 = arith.constant 0 : i32
    %c0_i32_1 = arith.constant 0 : i32
    return %c0_i32, %c0_i32_0 : i32, i32
  }
  func.func @transform_2(%arg0: i32) -> (i32, i32) {
    %c0_i32 = arith.constant 0 : i32
    %c0_i32_0 = arith.constant 0 : i32
    %c0_i32_1 = arith.constant 0 : i32
    return %c0_i32, %c0_i32_0 : i32, i32
  }
  func.func @transform_3(%arg0: i32) -> (i32, i32) {
    %c0_i32 = arith.constant 0 : i32
    %c0_i32_0 = arith.constant 0 : i32
    %c0_i32_1 = arith.constant 0 : i32
    return %c0_i32, %c0_i32_0 : i32, i32
  }
  func.func @transform_4(%arg0: i32) -> (i32, i32, i32) {
    %c0_i32 = arith.constant 0 : i32
    %c0_i32_0 = arith.constant 0 : i32
    %c0_i32_1 = arith.constant 0 : i32
    return %arg0, %c0_i32, %c0_i32_0 : i32, i32, i32
  }
}

module attributes {stable_mosaic.version = 11 : i64} {
  func.func @_gn_kernel(%arg0: i32, %arg1: memref<1x64x24xf32, #tpu.memory_space<vmem>>, %arg2: memref<1x24xf32, #tpu.memory_space<vmem>>, %arg3: memref<1x24xf32, #tpu.memory_space<vmem>>, %arg4: memref<24x4xf32, #tpu.memory_space<vmem>>, %arg5: memref<1x64x24xbf16, #tpu.memory_space<vmem>>) attributes {dimension_semantics = [#tpu.dimension_semantics<parallel>], iteration_bounds = array<i64: 2>, scalar_prefetch = 0 : i64, scratch_operands = 0 : i64, tpu.core_type = #tpu.core_type<tc>, window_params = [{transform_indices = @transform_0, window_bounds = array<i64: 1, 64, 24>}, {pipeline_mode = #tpu.pipeline_mode<synchronous>, transform_indices = @transform_1, window_bounds = array<i64: 1, 24>}, {pipeline_mode = #tpu.pipeline_mode<synchronous>, transform_indices = @transform_2, window_bounds = array<i64: 1, 24>}, {pipeline_mode = #tpu.pipeline_mode<synchronous>, transform_indices = @transform_3, window_bounds = array<i64: 24, 4>}, {transform_indices = @transform_4, window_bounds = array<i64: 1, 64, 24>}]} {
    %c0 = arith.constant 0 : index
    %c0_0 = arith.constant 0 : index
    %c0_1 = arith.constant 0 : index
    %0 = vector.load %arg1[%c0, %c0_0, %c0_1] : memref<1x64x24xf32, #tpu.memory_space<vmem>>, vector<1x64x24xf32>
    %1 = vector.shape_cast %0 : vector<1x64x24xf32> to vector<64x24xf32>
    %c0_2 = arith.constant 0 : index
    %c0_3 = arith.constant 0 : index
    %2 = vector.load %arg4[%c0_2, %c0_3] : memref<24x4xf32, #tpu.memory_space<vmem>>, vector<24x4xf32>
    %cst = arith.constant dense<0.000000e+00> : vector<64x4xf32>
    %3 = tpu.matmul %1, %2, %cst {dimension_numbers = #tpu.dot_dimension_numbers<[1], [0], [0], [1], [0, 0, 1, 1], [], []>} : vector<64x24xf32>, vector<24x4xf32>, vector<64x4xf32> -> vector<64x4xf32>
    %cst_4 = arith.constant dense<0.000000e+00> : vector<4xf32>
    %4 = vector.multi_reduction <add>, %3, %cst_4 [0] : vector<64x4xf32> to vector<4xf32>
    %5 = vector.shape_cast %4 : vector<4xf32> to vector<1x4xf32>
    %cst_5 = arith.constant 0.00260416674 : f32
    %6 = vector.broadcast %cst_5 : f32 to vector<1x4xf32>
    %7 = arith.mulf %5, %6 : vector<1x4xf32>
    %8 = tpu.transpose %2, [1, 0] : vector<24x4xf32> -> vector<4x24xf32>
    %cst_6 = arith.constant dense<0.000000e+00> : vector<1x24xf32>
    %9 = tpu.matmul %7, %8, %cst_6 {dimension_numbers = #tpu.dot_dimension_numbers<[1], [0], [0], [1], [0, 0, 1, 1], [], []>} : vector<1x4xf32>, vector<4x24xf32>, vector<1x24xf32> -> vector<1x24xf32>
    %10 = vector.broadcast %9 : vector<1x24xf32> to vector<64x24xf32>
    %11 = arith.subf %1, %10 : vector<64x24xf32>
    %12 = arith.mulf %11, %11 : vector<64x24xf32>
    %cst_7 = arith.constant dense<0.000000e+00> : vector<64x4xf32>
    %13 = tpu.matmul %12, %2, %cst_7 {dimension_numbers = #tpu.dot_dimension_numbers<[1], [0], [0], [1], [0, 0, 1, 1], [], []>} : vector<64x24xf32>, vector<24x4xf32>, vector<64x4xf32> -> vector<64x4xf32>
    %cst_8 = arith.constant dense<0.000000e+00> : vector<4xf32>
    %14 = vector.multi_reduction <add>, %13, %cst_8 [0] : vector<64x4xf32> to vector<4xf32>
    %15 = vector.shape_cast %14 : vector<4xf32> to vector<1x4xf32>
    %cst_9 = arith.constant 0.00260416674 : f32
    %16 = vector.broadcast %cst_9 : f32 to vector<1x4xf32>
    %17 = arith.mulf %15, %16 : vector<1x4xf32>
    %18 = tpu.transpose %2, [1, 0] : vector<24x4xf32> -> vector<4x24xf32>
    %cst_10 = arith.constant dense<0.000000e+00> : vector<1x24xf32>
    %19 = tpu.matmul %17, %18, %cst_10 {dimension_numbers = #tpu.dot_dimension_numbers<[1], [0], [0], [1], [0, 0, 1, 1], [], []>} : vector<1x4xf32>, vector<4x24xf32>, vector<1x24xf32> -> vector<1x24xf32>
    %cst_11 = arith.constant 9.99999974E-6 : f32
    %20 = vector.broadcast %cst_11 : f32 to vector<1x24xf32>
    %21 = arith.addf %19, %20 : vector<1x24xf32>
    %22 = math.rsqrt %21 : vector<1x24xf32>
    %23 = vector.broadcast %22 : vector<1x24xf32> to vector<64x24xf32>
    %24 = arith.mulf %11, %23 : vector<64x24xf32>
    %c0_12 = arith.constant 0 : index
    %c0_13 = arith.constant 0 : index
    %25 = vector.load %arg2[%c0_12, %c0_13] : memref<1x24xf32, #tpu.memory_space<vmem>>, vector<1x24xf32>
    %26 = vector.broadcast %25 : vector<1x24xf32> to vector<64x24xf32>
    %27 = arith.mulf %24, %26 : vector<64x24xf32>
    %c0_14 = arith.constant 0 : index
    %c0_15 = arith.constant 0 : index
    %28 = vector.load %arg3[%c0_14, %c0_15] : memref<1x24xf32, #tpu.memory_space<vmem>>, vector<1x24xf32>
    %29 = vector.broadcast %28 : vector<1x24xf32> to vector<64x24xf32>
    %30 = arith.addf %27, %29 : vector<64x24xf32>
    %31 = arith.negf %30 : vector<64x24xf32>
    %32 = math.exp %31 : vector<64x24xf32>
    %cst_16 = arith.constant 1.000000e+00 : f32
    %33 = vector.broadcast %cst_16 : f32 to vector<64x24xf32>
    %34 = arith.addf %33, %32 : vector<64x24xf32>
    %35 = arith.divf %33, %34 : vector<64x24xf32>
    %36 = arith.mulf %30, %35 : vector<64x24xf32>
    %37 = arith.truncf %36 : vector<64x24xf32> to vector<64x24xbf16>
    %c0_17 = arith.constant 0 : index
    %c0_18 = arith.constant 0 : index
    %c0_19 = arith.constant 0 : index
    %38 = vector.load %arg5[%c0_17, %c0_18, %c0_19] : memref<1x64x24xbf16, #tpu.memory_space<vmem>>, vector<1x64x24xbf16>
    %39 = vector.shape_cast %38 : vector<1x64x24xbf16> to vector<64x24xbf16>
    %40 = vector.shape_cast %37 : vector<64x24xbf16> to vector<1x64x24xbf16>
    tpu.vector_store %arg5[%c0_17, %c0_18, %c0_19], %40 {strides = array<i32>} : memref<1x64x24xbf16, #tpu.memory_space<vmem>>, vector<1x64x24xbf16>,
    return
  }
  func.func @transform_0(%arg0: i32) -> (i32, i32, i32) {
    %c0_i32 = arith.constant 0 : i32
    %c0_i32_0 = arith.constant 0 : i32
    %c0_i32_1 = arith.constant 0 : i32
    return %arg0, %c0_i32, %c0_i32_0 : i32, i32, i32
  }
  func.func @transform_1(%arg0: i32) -> (i32, i32) {
    %c0_i32 = arith.constant 0 : i32
    %c0_i32_0 = arith.constant 0 : i32
    %c0_i32_1 = arith.constant 0 : i32
    return %c0_i32, %c0_i32_0 : i32, i32
  }
  func.func @transform_2(%arg0: i32) -> (i32, i32) {
    %c0_i32 = arith.constant 0 : i32
    %c0_i32_0 = arith.constant 0 : i32
    %c0_i32_1 = arith.constant 0 : i32
    return %c0_i32, %c0_i32_0 : i32, i32
  }
  func.func @transform_3(%arg0: i32) -> (i32, i32) {
    %c0_i32 = arith.constant 0 : i32
    %c0_i32_0 = arith.constant 0 : i32
    %c0_i32_1 = arith.constant 0 : i32
    return %c0_i32, %c0_i32_0 : i32, i32
  }
  func.func @transform_4(%arg0: i32) -> (i32, i32, i32) {
    %c0_i32 = arith.constant 0 : i32
    %c0_i32_0 = arith.constant 0 : i32
    %c0_i32_1 = arith.constant 0 : i32
    return %arg0, %c0_i32, %c0_i32_0 : i32, i32, i32
  }
}

module attributes {stable_mosaic.version = 11 : i64} {
  func.func @_gn_kernel(%arg0: i32, %arg1: memref<1x64x16xf32, #tpu.memory_space<vmem>>, %arg2: memref<1x16xf32, #tpu.memory_space<vmem>>, %arg3: memref<1x16xf32, #tpu.memory_space<vmem>>, %arg4: memref<16x4xf32, #tpu.memory_space<vmem>>, %arg5: memref<1x64x16xbf16, #tpu.memory_space<vmem>>) attributes {dimension_semantics = [#tpu.dimension_semantics<parallel>], iteration_bounds = array<i64: 2>, scalar_prefetch = 0 : i64, scratch_operands = 0 : i64, tpu.core_type = #tpu.core_type<tc>, window_params = [{transform_indices = @transform_0, window_bounds = array<i64: 1, 64, 16>}, {pipeline_mode = #tpu.pipeline_mode<synchronous>, transform_indices = @transform_1, window_bounds = array<i64: 1, 16>}, {pipeline_mode = #tpu.pipeline_mode<synchronous>, transform_indices = @transform_2, window_bounds = array<i64: 1, 16>}, {pipeline_mode = #tpu.pipeline_mode<synchronous>, transform_indices = @transform_3, window_bounds = array<i64: 16, 4>}, {transform_indices = @transform_4, window_bounds = array<i64: 1, 64, 16>}]} {
    %c0 = arith.constant 0 : index
    %c0_0 = arith.constant 0 : index
    %c0_1 = arith.constant 0 : index
    %0 = vector.load %arg1[%c0, %c0_0, %c0_1] : memref<1x64x16xf32, #tpu.memory_space<vmem>>, vector<1x64x16xf32>
    %1 = vector.shape_cast %0 : vector<1x64x16xf32> to vector<64x16xf32>
    %c0_2 = arith.constant 0 : index
    %c0_3 = arith.constant 0 : index
    %2 = vector.load %arg4[%c0_2, %c0_3] : memref<16x4xf32, #tpu.memory_space<vmem>>, vector<16x4xf32>
    %cst = arith.constant dense<0.000000e+00> : vector<64x4xf32>
    %3 = tpu.matmul %1, %2, %cst {dimension_numbers = #tpu.dot_dimension_numbers<[1], [0], [0], [1], [0, 0, 1, 1], [], []>} : vector<64x16xf32>, vector<16x4xf32>, vector<64x4xf32> -> vector<64x4xf32>
    %cst_4 = arith.constant dense<0.000000e+00> : vector<4xf32>
    %4 = vector.multi_reduction <add>, %3, %cst_4 [0] : vector<64x4xf32> to vector<4xf32>
    %5 = vector.shape_cast %4 : vector<4xf32> to vector<1x4xf32>
    %cst_5 = arith.constant 3.906250e-03 : f32
    %6 = vector.broadcast %cst_5 : f32 to vector<1x4xf32>
    %7 = arith.mulf %5, %6 : vector<1x4xf32>
    %8 = tpu.transpose %2, [1, 0] : vector<16x4xf32> -> vector<4x16xf32>
    %cst_6 = arith.constant dense<0.000000e+00> : vector<1x16xf32>
    %9 = tpu.matmul %7, %8, %cst_6 {dimension_numbers = #tpu.dot_dimension_numbers<[1], [0], [0], [1], [0, 0, 1, 1], [], []>} : vector<1x4xf32>, vector<4x16xf32>, vector<1x16xf32> -> vector<1x16xf32>
    %10 = vector.broadcast %9 : vector<1x16xf32> to vector<64x16xf32>
    %11 = arith.subf %1, %10 : vector<64x16xf32>
    %12 = arith.mulf %11, %11 : vector<64x16xf32>
    %cst_7 = arith.constant dense<0.000000e+00> : vector<64x4xf32>
    %13 = tpu.matmul %12, %2, %cst_7 {dimension_numbers = #tpu.dot_dimension_numbers<[1], [0], [0], [1], [0, 0, 1, 1], [], []>} : vector<64x16xf32>, vector<16x4xf32>, vector<64x4xf32> -> vector<64x4xf32>
    %cst_8 = arith.constant dense<0.000000e+00> : vector<4xf32>
    %14 = vector.multi_reduction <add>, %13, %cst_8 [0] : vector<64x4xf32> to vector<4xf32>
    %15 = vector.shape_cast %14 : vector<4xf32> to vector<1x4xf32>
    %cst_9 = arith.constant 3.906250e-03 : f32
    %16 = vector.broadcast %cst_9 : f32 to vector<1x4xf32>
    %17 = arith.mulf %15, %16 : vector<1x4xf32>
    %18 = tpu.transpose %2, [1, 0] : vector<16x4xf32> -> vector<4x16xf32>
    %cst_10 = arith.constant dense<0.000000e+00> : vector<1x16xf32>
    %19 = tpu.matmul %17, %18, %cst_10 {dimension_numbers = #tpu.dot_dimension_numbers<[1], [0], [0], [1], [0, 0, 1, 1], [], []>} : vector<1x4xf32>, vector<4x16xf32>, vector<1x16xf32> -> vector<1x16xf32>
    %cst_11 = arith.constant 9.99999974E-6 : f32
    %20 = vector.broadcast %cst_11 : f32 to vector<1x16xf32>
    %21 = arith.addf %19, %20 : vector<1x16xf32>
    %22 = math.rsqrt %21 : vector<1x16xf32>
    %23 = vector.broadcast %22 : vector<1x16xf32> to vector<64x16xf32>
    %24 = arith.mulf %11, %23 : vector<64x16xf32>
    %c0_12 = arith.constant 0 : index
    %c0_13 = arith.constant 0 : index
    %25 = vector.load %arg2[%c0_12, %c0_13] : memref<1x16xf32, #tpu.memory_space<vmem>>, vector<1x16xf32>
    %26 = vector.broadcast %25 : vector<1x16xf32> to vector<64x16xf32>
    %27 = arith.mulf %24, %26 : vector<64x16xf32>
    %c0_14 = arith.constant 0 : index
    %c0_15 = arith.constant 0 : index
    %28 = vector.load %arg3[%c0_14, %c0_15] : memref<1x16xf32, #tpu.memory_space<vmem>>, vector<1x16xf32>
    %29 = vector.broadcast %28 : vector<1x16xf32> to vector<64x16xf32>
    %30 = arith.addf %27, %29 : vector<64x16xf32>
    %31 = arith.negf %30 : vector<64x16xf32>
    %32 = math.exp %31 : vector<64x16xf32>
    %cst_16 = arith.constant 1.000000e+00 : f32
    %33 = vector.broadcast %cst_16 : f32 to vector<64x16xf32>
    %34 = arith.addf %33, %32 : vector<64x16xf32>
    %35 = arith.divf %33, %34 : vector<64x16xf32>
    %36 = arith.mulf %30, %35 : vector<64x16xf32>
    %37 = arith.truncf %36 : vector<64x16xf32> to vector<64x16xbf16>
    %c0_17 = arith.constant 0 : index
    %c0_18 = arith.constant 0 : index
    %c0_19 = arith.constant 0 : index
    %38 = vector.load %arg5[%c0_17, %c0_18, %c0_19] : memref<1x64x16xbf16, #tpu.memory_space<vmem>>, vector<1x64x16xbf16>
    %39 = vector.shape_cast %38 : vector<1x64x16xbf16> to vector<64x16xbf16>
    %40 = vector.shape_cast %37 : vector<64x16xbf16> to vector<1x64x16xbf16>
    tpu.vector_store %arg5[%c0_17, %c0_18, %c0_19], %40 {strides = array<i32>} : memref<1x64x16xbf16, #tpu.memory_space<vmem>>, vector<1x64x16xbf16>,
    return
  }
  func.func @transform_0(%arg0: i32) -> (i32, i32, i32) {
    %c0_i32 = arith.constant 0 : i32
    %c0_i32_0 = arith.constant 0 : i32
    %c0_i32_1 = arith.constant 0 : i32
    return %arg0, %c0_i32, %c0_i32_0 : i32, i32, i32
  }
  func.func @transform_1(%arg0: i32) -> (i32, i32) {
    %c0_i32 = arith.constant 0 : i32
    %c0_i32_0 = arith.constant 0 : i32
    %c0_i32_1 = arith.constant 0 : i32
    return %c0_i32, %c0_i32_0 : i32, i32
  }
  func.func @transform_2(%arg0: i32) -> (i32, i32) {
    %c0_i32 = arith.constant 0 : i32
    %c0_i32_0 = arith.constant 0 : i32
    %c0_i32_1 = arith.constant 0 : i32
    return %c0_i32, %c0_i32_0 : i32, i32
  }
  func.func @transform_3(%arg0: i32) -> (i32, i32) {
    %c0_i32 = arith.constant 0 : i32
    %c0_i32_0 = arith.constant 0 : i32
    %c0_i32_1 = arith.constant 0 : i32
    return %c0_i32, %c0_i32_0 : i32, i32
  }
  func.func @transform_4(%arg0: i32) -> (i32, i32, i32) {
    %c0_i32 = arith.constant 0 : i32
    %c0_i32_0 = arith.constant 0 : i32
    %c0_i32_1 = arith.constant 0 : i32
    return %arg0, %c0_i32, %c0_i32_0 : i32, i32, i32
  }
}

</mosaic_0001>

<bundles_post_ra>
// kernel: _lambda_.91
= control target key start
LH: loop header
LB: loop body
LE: loop exit
PB: predicated region body
PF: predicated region fallthrough
CT: control target
= control target key end

     0   :  { %s692_s1 = inlined_call_operand.vmem [shape: bf16[128,128], index: 1, kind: input, shape index: {}]   ;;  %s693_s0 = inlined_call_operand.vmem [shape: bf16[128,128], index: 0, kind: input, shape index: {}]   ;;  %s694_s2 = inlined_call_operand.vmem [shape: f32[1,128], index: 2, kind: input, shape index: {}]   ;;  %s695_s3 = inlined_call_operand.vmem [shape: f32[128,128], index: 3, kind: input, shape index: {}]   ;;  %s696_s4 = inlined_call_operand.vmem [shape: f32[128,128], index: 4, kind: output, shape index: {}]  }
   0x1   :  { %v486_v0 = vld [vmem:[%s692_s1] sm:$0xff]   ;;  %v487_v1 = vld [vmem:[%s692_s1 + $0x8] sm:$0xff]   ;;  %v488_v2 = vld [vmem:[%s692_s1 + $0x10] sm:$0xff]  }
   0x2   :  { %438 = vmatprep.subr.bf16.mxu0 %v486_v0  ;;  %470 = vmatprep.subr.bf16.mxu1 %v486_v0  ;;  %v489_v3 = vld [vmem:[%s692_s1 + $0x18] sm:$0xff]   ;;  %v494_v4 = vld [vmem:[%s693_s0] sm:$0xff]   ;;  %v491_v7 = vld [vmem:[%s692_s1 + $0x28] sm:$0xff]  }
   0x3   :  { %439 = vmatpush3.bf16.msra.mxu0 %v486_v0  ;;  %478 = vmatpush3.bf16.msra.mxu1 %v486_v0  ;;  %v495_v5 = vld [vmem:[%s693_s0 + $0x20] sm:$0xff]   ;;  %v492_v8 = vld [vmem:[%s692_s1 + $0x30] sm:$0xff]   ;;  %v493_v9 = vld [vmem:[%s692_s1 + $0x38] sm:$0xff]  }
   0x4   :  { %440 = vmatprep.subr.bf16.mxu0 %v487_v1  ;;  %471 = vmatprep.subr.bf16.mxu1 %v487_v1  ;;  %v490_v6 = vld [vmem:[%s692_s1 + $0x20] sm:$0xff]   ;;  %v496_v10 = vld [vmem:[%s693_s0 + $0x8] sm:$0xff]   ;;  %v498_v12 = vld [vmem:[%s693_s0 + $0x10] sm:$0xff]  }
   0x5   :  { %454 = vmatprep.mubr.bf16.mxu0 %v494_v4  ;;  %462 = vmatprep.mubr.bf16.mxu1 %v495_v5  ;;  %v497_v11 = vld [vmem:[%s693_s0 + $0x28] sm:$0xff]   ;;  %v499_v13 = vld [vmem:[%s693_s0 + $0x30] sm:$0xff]   ;;  %v500_v14 = vld [vmem:[%s693_s0 + $0x18] sm:$0xff]  }
   0x6   :  { %v501_v15 = vld [vmem:[%s693_s0 + $0x38] sm:$0xff]   ;;  %v578_v16 = vld [vmem:[%s694_s2] ss:$0 sm:$0xff]  ;;  %v355_v18 = vld [vmem:[%s695_s3 + $0x10] sm:$0xff] }
   0x7   :  { %441 = vmatpush3.bf16.msra.mxu0 %v487_v1  ;;  %479 = vmatpush3.bf16.msra.mxu1 %v487_v1  ;;  %v363_v20 = vld [vmem:[%s695_s3 + $0x50] sm:$0xff]  ;;  %v353_v24 = vld [vmem:[%s695_s3] sm:$0xff]  ;;  %v356_v30 = vld [vmem:[%s695_s3 + $0x18] sm:$0xff] }
   0x8   :  { %442 = vmatprep.subr.bf16.mxu0 %v488_v2  ;;  %472 = vmatprep.subr.bf16.mxu1 %v488_v2  ;;  %v361_v26 = vld [vmem:[%s695_s3 + $0x40] sm:$0xff]  ;;  %v364_v32 = vld [vmem:[%s695_s3 + $0x58] sm:$0xff]  ;;  %v354_v38 = vld [vmem:[%s695_s3 + $0x8] sm:$0xff] }
   0x9   :  { %v362_v40 = vld [vmem:[%s695_s3 + $0x48] sm:$0xff]  ;;  %v359_v50 = vld [vmem:[%s695_s3 + $0x30] sm:$0xff]  ;;  %v357_v56 = vld [vmem:[%s695_s3 + $0x20] sm:$0xff] }
   0xa   :  { %v367_v52 = vld [vmem:[%s695_s3 + $0x70] sm:$0xff]  ;;  %v365_v58 = vld [vmem:[%s695_s3 + $0x60] sm:$0xff]  ;;  %v360_v62 = vld [vmem:[%s695_s3 + $0x38] sm:$0xff] }
   0xb   :  { %443 = vmatpush3.bf16.msra.mxu0 %v488_v2  ;;  %480 = vmatpush3.bf16.msra.mxu1 %v488_v2  ;;  %v368_v0 = vld [vmem:[%s695_s3 + $0x78] sm:$0xff] }
   0xc   :  { %444 = vmatprep.subr.bf16.mxu0 %v489_v3  ;;  %473 = vmatprep.subr.bf16.mxu1 %v489_v3 }
   0xf   :  { %445 = vmatpush3.bf16.msra.mxu0 %v489_v3  ;;  %481 = vmatpush3.bf16.msra.mxu1 %v489_v3 }
  0x10   :  { %446 = vmatprep.subr.bf16.mxu0 %v490_v6  ;;  %474 = vmatprep.subr.bf16.mxu1 %v490_v6 }
  0x13   :  { %447 = vmatpush3.bf16.msra.mxu0 %v490_v6  ;;  %482 = vmatpush3.bf16.msra.mxu1 %v490_v6  ;;  %v358_v6 = vld [vmem:[%s695_s3 + $0x28] sm:$0xff] }
  0x14   :  { %448 = vmatprep.subr.bf16.mxu0 %v491_v7  ;;  %475 = vmatprep.subr.bf16.mxu1 %v491_v7 }
  0x17   :  { %449 = vmatpush3.bf16.msra.mxu0 %v491_v7  ;;  %483 = vmatpush3.bf16.msra.mxu1 %v491_v7 }
  0x18   :  { %450 = vmatprep.subr.bf16.mxu0 %v492_v8  ;;  %476 = vmatprep.subr.bf16.mxu1 %v492_v8 }
  0x1b   :  { %451 = vmatpush3.bf16.msra.mxu0 %v492_v8  ;;  %484 = vmatpush3.bf16.msra.mxu1 %v492_v8  ;;  %v366_v8 = vld [vmem:[%s695_s3 + $0x68] sm:$0xff] }
  0x1c   :  { %452 = vmatprep.subr.bf16.mxu0 %v493_v9  ;;  %477 = vmatprep.subr.bf16.mxu1 %v493_v9 }
  0x1f   :  { %453 = vmatpush3.bf16.msra.mxu0 %v493_v9  ;;  %485 = vmatpush3.bf16.msra.mxu1 %v493_v9 }
  0x22   :  { %455 = vmatmul.mubr.bf16.vlgmr.msra.gmra.mrb[0].mxu0 %v496_v10  ;;  %463 = vmatmul.mubr.bf16.vlgmr.msra.gmra.mrb[0].mxu1 %v497_v11 }
  0x23   :  { %458 = vmatprep.mubr.bf16.mxu0 %v498_v12  ;;  %466 = vmatprep.mubr.bf16.mxu1 %v499_v13 }
  0x2a   :  { %459 = vmatmul.mubr.bf16.gmra.mrb[4].mxu0 %v500_v14  ;;  %467 = vmatmul.mubr.bf16.gmra.mrb[4].mxu1 %v501_v15 }
  0xf5   :  { %v456_v17 = vpop.f32.mrb[0].mxu0  ;;  %v464_v19 = vpop.f32.mrb[0].mxu1 }
  0xf6   :  { %v339_v21 = vadd.f32 %v456_v17, %v578_v16  ;;  %v347_v22 = vadd.f32 %v464_v19, %v578_v16  ;;  %v216_v23 = vpop.f32.mrb[1].mxu0  ;;  %v248_v25 = vpop.f32.mrb[1].mxu1 }
  0xf7   :  { %v337_v27 = vadd.f32 %v578_v16, %v216_v23  ;;  %v345_v28 = vadd.f32 %v578_v16, %v248_v25  ;;  %v457_v29 = vpop.f32.mrb[2].mxu0  ;;  %v465_v31 = vpop.f32.mrb[2].mxu1 }
  0xf8   :  { %v371_v33 = vadd.f32 %v355_v18, %v339_v21  ;;  %v379_v34 = vadd.f32 %v363_v20, %v347_v22  ;;  %v340_v35 = vadd.f32 %v457_v29, %v578_v16  ;;  %v348_v36 = vadd.f32 %v465_v31, %v578_v16  ;;  %v219_v37 = vpop.f32.mrb[3].mxu0  ;;  %v251_v39 = vpop.f32.mrb[3].mxu1 }
  0xf9   :  { %v369_v41 = vadd.f32 %v353_v24, %v337_v27  ;;  %v377_v42 = vadd.f32 %v361_v26, %v345_v28  ;;  %v338_v43 = vadd.f32 %v578_v16, %v219_v37  ;;  %v346_v44 = vadd.f32 %v578_v16, %v251_v39 }
  0xfa   :  { %387 = vst [vmem:[%s696_s4 + $0x10] sm:$0xff] %v371_v33  ;;  %395 = vst [vmem:[%s696_s4 + $0x50] sm:$0xff] %v379_v34  ;;  %v372_v45 = vadd.f32 %v356_v30, %v340_v35  ;;  %v380_v46 = vadd.f32 %v364_v32, %v348_v36 }
  0xfb   :  { %385 = vst [vmem:[%s696_s4] sm:$0xff] %v369_v41  ;;  %393 = vst [vmem:[%s696_s4 + $0x40] sm:$0xff] %v377_v42  ;;  %v370_v47 = vadd.f32 %v354_v38, %v338_v43  ;;  %v378_v48 = vadd.f32 %v362_v40, %v346_v44 }
  0xfc   :  { %388 = vst [vmem:[%s696_s4 + $0x18] sm:$0xff] %v372_v45  ;;  %396 = vst [vmem:[%s696_s4 + $0x58] sm:$0xff] %v380_v46 }
  0xfd   :  { %386 = vst [vmem:[%s696_s4 + $0x8] sm:$0xff] %v370_v47  ;;  %394 = vst [vmem:[%s696_s4 + $0x48] sm:$0xff] %v378_v48  ;;  %v460_v49 = vpop.f32.mrb[4].mxu0  ;;  %v468_v51 = vpop.f32.mrb[4].mxu1 }
  0xfe   :  { %v343_v53 = vadd.f32 %v460_v49, %v578_v16  ;;  %v351_v54 = vadd.f32 %v468_v51, %v578_v16  ;;  %v232_v55 = vpop.f32.mrb[5].mxu0  ;;  %v264_v57 = vpop.f32.mrb[5].mxu1 }
  0xff   :  { %v341_v59 = vadd.f32 %v578_v16, %v232_v55  ;;  %v349_v60 = vadd.f32 %v578_v16, %v264_v57  ;;  %v461_v61 = vpop.f32.mrb[6].mxu0  ;;  %v469_v63 = vpop.f32.mrb[6].mxu1 }
 0x100   :  { %v375_v1 = vadd.f32 %v359_v50, %v343_v53  ;;  %v383_v2 = vadd.f32 %v367_v52, %v351_v54  ;;  %v344_v3 = vadd.f32 %v461_v61, %v578_v16  ;;  %v352_v4 = vadd.f32 %v469_v63, %v578_v16  ;;  %v235_v5 = vpop.f32.mrb[7].mxu0  ;;  %v267_v7 = vpop.f32.mrb[7].mxu1 }
 0x101   :  { %v373_v9 = vadd.f32 %v357_v56, %v341_v59  ;;  %v381_v10 = vadd.f32 %v365_v58, %v349_v60  ;;  %v342_v11 = vadd.f32 %v578_v16, %v235_v5  ;;  %v350_v12 = vadd.f32 %v578_v16, %v267_v7 }
 0x102   :  { %391 = vst [vmem:[%s696_s4 + $0x30] sm:$0xff] %v375_v1  ;;  %399 = vst [vmem:[%s696_s4 + $0x70] sm:$0xff] %v383_v2  ;;  %v376_v13 = vadd.f32 %v360_v62, %v344_v3  ;;  %v384_v14 = vadd.f32 %v368_v0, %v352_v4 }
 0x103   :  { %389 = vst [vmem:[%s696_s4 + $0x20] sm:$0xff] %v373_v9  ;;  %397 = vst [vmem:[%s696_s4 + $0x60] sm:$0xff] %v381_v10  ;;  %v374_v15 = vadd.f32 %v358_v6, %v342_v11  ;;  %v382_v16 = vadd.f32 %v366_v8, %v350_v12 }
 0x104   :  { %392 = vst [vmem:[%s696_s4 + $0x38] sm:$0xff] %v376_v13  ;;  %400 = vst [vmem:[%s696_s4 + $0x78] sm:$0xff] %v384_v14 }
 0x105   :  { %390 = vst [vmem:[%s696_s4 + $0x28] sm:$0xff] %v374_v15  ;;  %398 = vst [vmem:[%s696_s4 + $0x68] sm:$0xff] %v382_v16 }

// kernel: _lambda_.93
= control target key start
LH: loop header
LB: loop body
LE: loop exit
PB: predicated region body
PF: predicated region fallthrough
CT: control target
= control target key end

     0   :  { %s586_s1 = inlined_call_operand.vmem [shape: bf16[128,128], index: 1, kind: input, shape index: {}]   ;;  %s587_s0 = inlined_call_operand.vmem [shape: bf16[128,128], index: 0, kind: input, shape index: {}]   ;;  %s588_s2 = inlined_call_operand.vmem [shape: f32[1,128], index: 2, kind: input, shape index: {}]   ;;  %s589_s3 = inlined_call_operand.vmem [shape: f32[128,128], index: 3, kind: output, shape index: {}]  }
   0x1   :  { %v451_v0 = vld [vmem:[%s586_s1] sm:$0xff]   ;;  %v452_v1 = vld [vmem:[%s586_s1 + $0x8] sm:$0xff]   ;;  %v453_v2 = vld [vmem:[%s586_s1 + $0x10] sm:$0xff]  }
   0x2   :  { %403 = vmatprep.subr.bf16.mxu0 %v451_v0  ;;  %435 = vmatprep.subr.bf16.mxu1 %v451_v0  ;;  %v454_v3 = vld [vmem:[%s586_s1 + $0x18] sm:$0xff]   ;;  %v459_v4 = vld [vmem:[%s587_s0] sm:$0xff]   ;;  %v456_v7 = vld [vmem:[%s586_s1 + $0x28] sm:$0xff]  }
   0x3   :  { %404 = vmatpush3.bf16.msra.mxu0 %v451_v0  ;;  %443 = vmatpush3.bf16.msra.mxu1 %v451_v0  ;;  %v460_v5 = vld [vmem:[%s587_s0 + $0x20] sm:$0xff]   ;;  %v457_v8 = vld [vmem:[%s586_s1 + $0x30] sm:$0xff]   ;;  %v458_v9 = vld [vmem:[%s586_s1 + $0x38] sm:$0xff]  }
   0x4   :  { %405 = vmatprep.subr.bf16.mxu0 %v452_v1  ;;  %436 = vmatprep.subr.bf16.mxu1 %v452_v1  ;;  %v455_v6 = vld [vmem:[%s586_s1 + $0x20] sm:$0xff]   ;;  %v461_v10 = vld [vmem:[%s587_s0 + $0x8] sm:$0xff]   ;;  %v463_v12 = vld [vmem:[%s587_s0 + $0x10] sm:$0xff]  }
   0x5   :  { %419 = vmatprep.mubr.bf16.mxu0 %v459_v4  ;;  %427 = vmatprep.mubr.bf16.mxu1 %v460_v5  ;;  %v462_v11 = vld [vmem:[%s587_s0 + $0x28] sm:$0xff]   ;;  %v464_v13 = vld [vmem:[%s587_s0 + $0x30] sm:$0xff]   ;;  %v465_v14 = vld [vmem:[%s587_s0 + $0x18] sm:$0xff]  }
   0x6   :  { %v466_v15 = vld [vmem:[%s587_s0 + $0x38] sm:$0xff]   ;;  %v386_v16 = vld [vmem:[%s588_s2] ss:$0 sm:$0xff] }
   0x7   :  { %406 = vmatpush3.bf16.msra.mxu0 %v452_v1  ;;  %444 = vmatpush3.bf16.msra.mxu1 %v452_v1 }
   0x8   :  { %407 = vmatprep.subr.bf16.mxu0 %v453_v2  ;;  %437 = vmatprep.subr.bf16.mxu1 %v453_v2 }
   0xb   :  { %408 = vmatpush3.bf16.msra.mxu0 %v453_v2  ;;  %445 = vmatpush3.bf16.msra.mxu1 %v453_v2 }
   0xc   :  { %409 = vmatprep.subr.bf16.mxu0 %v454_v3  ;;  %438 = vmatprep.subr.bf16.mxu1 %v454_v3 }
   0xf   :  { %410 = vmatpush3.bf16.msra.mxu0 %v454_v3  ;;  %446 = vmatpush3.bf16.msra.mxu1 %v454_v3 }
  0x10   :  { %411 = vmatprep.subr.bf16.mxu0 %v455_v6  ;;  %439 = vmatprep.subr.bf16.mxu1 %v455_v6 }
  0x13   :  { %412 = vmatpush3.bf16.msra.mxu0 %v455_v6  ;;  %447 = vmatpush3.bf16.msra.mxu1 %v455_v6 }
  0x14   :  { %413 = vmatprep.subr.bf16.mxu0 %v456_v7  ;;  %440 = vmatprep.subr.bf16.mxu1 %v456_v7 }
  0x17   :  { %414 = vmatpush3.bf16.msra.mxu0 %v456_v7  ;;  %448 = vmatpush3.bf16.msra.mxu1 %v456_v7 }
  0x18   :  { %415 = vmatprep.subr.bf16.mxu0 %v457_v8  ;;  %441 = vmatprep.subr.bf16.mxu1 %v457_v8 }
  0x1b   :  { %416 = vmatpush3.bf16.msra.mxu0 %v457_v8  ;;  %449 = vmatpush3.bf16.msra.mxu1 %v457_v8 }
  0x1c   :  { %417 = vmatprep.subr.bf16.mxu0 %v458_v9  ;;  %442 = vmatprep.subr.bf16.mxu1 %v458_v9 }
  0x1f   :  { %418 = vmatpush3.bf16.msra.mxu0 %v458_v9  ;;  %450 = vmatpush3.bf16.msra.mxu1 %v458_v9 }
  0x22   :  { %420 = vmatmul.mubr.bf16.vlgmr.msra.gmra.mrb[0].mxu0 %v461_v10  ;;  %428 = vmatmul.mubr.bf16.vlgmr.msra.gmra.mrb[0].mxu1 %v462_v11 }
  0x23   :  { %423 = vmatprep.mubr.bf16.mxu0 %v463_v12  ;;  %431 = vmatprep.mubr.bf16.mxu1 %v464_v13 }
  0x2a   :  { %424 = vmatmul.mubr.bf16.gmra.mrb[4].mxu0 %v465_v14  ;;  %432 = vmatmul.mubr.bf16.gmra.mrb[4].mxu1 %v466_v15 }
  0xf5   :  { %v421_v17 = vpop.f32.mrb[0].mxu0  ;;  %v429_v18 = vpop.f32.mrb[0].mxu1 }
  0xf6   :  { %v336_v19 = vadd.f32 %v421_v17, %v386_v16  ;;  %v344_v20 = vadd.f32 %v429_v18, %v386_v16  ;;  %v213_v21 = vpop.f32.mrb[1].mxu0  ;;  %v245_v22 = vpop.f32.mrb[1].mxu1 }
  0xf7   :  { %v334_v23 = vadd.f32 %v386_v16, %v213_v21  ;;  %v342_v24 = vadd.f32 %v386_v16, %v245_v22  ;;  %v422_v25 = vpop.f32.mrb[2].mxu0  ;;  %v430_v26 = vpop.f32.mrb[2].mxu1 }
  0xf8   :  { %352 = vst [vmem:[%s589_s3 + $0x10] sm:$0xff] %v336_v19  ;;  %360 = vst [vmem:[%s589_s3 + $0x50] sm:$0xff] %v344_v20  ;;  %v337_v27 = vadd.f32 %v422_v25, %v386_v16  ;;  %v345_v28 = vadd.f32 %v430_v26, %v386_v16  ;;  %v216_v29 = vpop.f32.mrb[3].mxu0  ;;  %v248_v30 = vpop.f32.mrb[3].mxu1 }
  0xf9   :  { %350 = vst [vmem:[%s589_s3] sm:$0xff] %v334_v23  ;;  %358 = vst [vmem:[%s589_s3 + $0x40] sm:$0xff] %v342_v24  ;;  %v335_v31 = vadd.f32 %v386_v16, %v216_v29  ;;  %v343_v32 = vadd.f32 %v386_v16, %v248_v30 }
  0xfa   :  { %353 = vst [vmem:[%s589_s3 + $0x18] sm:$0xff] %v337_v27  ;;  %361 = vst [vmem:[%s589_s3 + $0x58] sm:$0xff] %v345_v28 }
  0xfb   :  { %351 = vst [vmem:[%s589_s3 + $0x8] sm:$0xff] %v335_v31  ;;  %359 = vst [vmem:[%s589_s3 + $0x48] sm:$0xff] %v343_v32 }
  0xfd   :  { %v425_v33 = vpop.f32.mrb[4].mxu0  ;;  %v433_v34 = vpop.f32.mrb[4].mxu1 }
  0xfe   :  { %v340_v35 = vadd.f32 %v425_v33, %v386_v16  ;;  %v348_v36 = vadd.f32 %v433_v34, %v386_v16  ;;  %v229_v37 = vpop.f32.mrb[5].mxu0  ;;  %v261_v38 = vpop.f32.mrb[5].mxu1 }
  0xff   :  { %v338_v39 = vadd.f32 %v386_v16, %v229_v37  ;;  %v346_v40 = vadd.f32 %v386_v16, %v261_v38  ;;  %v426_v41 = vpop.f32.mrb[6].mxu0  ;;  %v434_v42 = vpop.f32.mrb[6].mxu1 }
 0x100   :  { %356 = vst [vmem:[%s589_s3 + $0x30] sm:$0xff] %v340_v35  ;;  %364 = vst [vmem:[%s589_s3 + $0x70] sm:$0xff] %v348_v36  ;;  %v341_v43 = vadd.f32 %v426_v41, %v386_v16  ;;  %v349_v44 = vadd.f32 %v434_v42, %v386_v16  ;;  %v232_v45 = vpop.f32.mrb[7].mxu0  ;;  %v264_v46 = vpop.f32.mrb[7].mxu1 }
 0x101   :  { %354 = vst [vmem:[%s589_s3 + $0x20] sm:$0xff] %v338_v39  ;;  %362 = vst [vmem:[%s589_s3 + $0x60] sm:$0xff] %v346_v40  ;;  %v339_v47 = vadd.f32 %v386_v16, %v232_v45  ;;  %v347_v48 = vadd.f32 %v386_v16, %v264_v46 }
 0x102   :  { %357 = vst [vmem:[%s589_s3 + $0x38] sm:$0xff] %v341_v43  ;;  %365 = vst [vmem:[%s589_s3 + $0x78] sm:$0xff] %v349_v44 }
 0x103   :  { %355 = vst [vmem:[%s589_s3 + $0x28] sm:$0xff] %v339_v47  ;;  %363 = vst [vmem:[%s589_s3 + $0x68] sm:$0xff] %v347_v48 }

// kernel: _lambda_.99
= control target key start
LH: loop header
LB: loop body
LE: loop exit
PB: predicated region body
PF: predicated region fallthrough
CT: control target
= control target key end

     0   :  { %s1073_s15 = smov 0   ;;  %s1202_s0 = inlined_call_operand.vmem [shape: f32[2,64,8], index: 0, kind: input, shape index: {}]   ;;  %s1203_s1 = inlined_call_operand.vmem [shape: f32[1,8], index: 1, kind: input, shape index: {}]   ;;  %s1204_s2 = inlined_call_operand.vmem [shape: f32[1,8], index: 2, kind: input, shape index: {}]   ;;  %s1205_s3 = inlined_call_operand.vmem [shape: f32[8,4], index: 3, kind: input, shape index: {}]   ;;  %s1206_s4 = inlined_call_operand.vmem [shape: bf16[2,64,8], index: 4, kind: output, shape index: {}]  }
   0x1 LB: > { %s875_s16 = sadd.s32 4294967295, %s1044_s15   ;;  %p879_p0 = scmp.ge.s32.totalorder %s1044_s15, 1  ;;  %s1044_s15 = sphi %s1073_s15, %s14_s15  }
   0x2   : > { %p162_p1 = scmp.lt.s32.totalorder %s1044_s15, 3 }
   0x4   : > { %p163_p2 = pnand %p879_p0, %p162_p1 }
   0x5   : > { %v1084_v0 = vld [vmem:[%s1205_s3] sm:$0xff] (!%p163_p2)  ;;  %p188_p3 = scmp.lt.s32.totalorder (!%p163_p2), %s875_s16, 1  ;;  %vm207_vm0 = vcmask (!%p163_p2), 64512   ;;  %vm337_vm1 = vcmask (!%p163_p2), 31744   ;;  %v1046_v9 = vmov (!%p163_p2), 0.0   ;;  %vm1047_vm2 = vmmov (!%p163_p2), 0  }
   0x6   : > { %166 = sbr.rel (%p163_p2) target bundleno = 996 (0x3e4), region = 36  ;;  %956 = vmatprep.subr.mxu0 (!%p163_p2), %v1084_v0  ;;  %970 = vmatprep.subr.mxu1 (!%p163_p2), %v1046_v9  ;;  %v436_v40 = vlaneseq (!%p163_p2)  ;;  %vm811_vm3 = vcmask (!%p163_p2), 60416  }
   0x7   : > { %957 = vmatpush3.msra.mxu0 (!%p163_p2), %v1084_v0  ;;  %972 = vmatprep.mubr.msk.f32.mxu1 (!%p163_p2), %vm1047_vm2, %v1046_v9 }
   0x8   : > { %971 = vmatpush3.xpose.msk.msra.mxu1 (!%p163_p2), %vm337_vm1, %v1084_v0  ;;  %989 = vmatprep.subr.mxu0 (!%p163_p2), %v1046_v9  ;;  %v1141_v41 = vshrl.u32 (!%p163_p2), %v436_v40, 7 }
   0x9   : > { %975 = vmatprep.subr.mxu1 (!%p163_p2), %v1084_v0 }
   0xa   : > { %v438_v42 = vsub.s32 (!%p163_p2), 0, %v1141_v41 }
   0xd   : > { %s1208_s16 = smov (!%p188_p3, %s875_s16), 1 }
   0xe   : > { %s924_s19 = sshll.u32 %s1208_s16, 6  ;;  %s925_s27 = sshll.u32 %s1208_s16, 5 }
   0xf   : > { %s192_s22 = scalar_lea.vmem %s1202_s0, %s924_s19  ;;  %s197_s30 = scalar_lea.vmem %s1206_s4, %s925_s27 }
  0x10   : > { %v1094_v1 = vld [vmem:[%s192_s22] sm:$0xff]  ;;  %v1096_v2 = vld [vmem:[%s192_s22 + $0x8] sm:$0xff]  ;;  %v1098_v3 = vld [vmem:[%s192_s22 + $0x10] sm:$0xff] }
  0x11   : > { %958 = vmatprep.mubr.msk.f32.mxu0 %vm207_vm0, %v1094_v1  ;;  %v1106_v4 = vld [vmem:[%s192_s22 + $0x18] sm:$0xff]  ;;  %v1108_v5 = vld [vmem:[%s192_s22 + $0x20] sm:$0xff]  ;;  %v1114_v6 = vld [vmem:[%s192_s22 + $0x28] sm:$0xff] }
  0x12   : > { %959 = vmatmul.mubr.msk.f32.vlgmr.msra.gmra.mrb[0].mxu0 %vm207_vm0, %v1096_v2  ;;  %v1116_v7 = vld [vmem:[%s192_s22 + $0x30] sm:$0xff]  ;;  %v1122_v8 = vld [vmem:[%s192_s22 + $0x38] sm:$0xff] }
  0x13   : > { %961 = vmatprep.mubr.msk.f32.mxu0 %vm207_vm0, %v1098_v3  ;;  %990 = vmatpush3.xpose.msk.msra.mxu0 %vm337_vm1, %v1084_v0 }
  0x16   : > { %962 = vmatmul.mubr.msk.f32.gmra.mrb[2].mxu0 %vm207_vm0, %v1106_v4 }
  0x17   : > { %964 = vmatprep.mubr.msk.f32.mxu0 %vm207_vm0, %v1108_v5 }
  0x1a   : > { %965 = vmatmul.mubr.msk.f32.gmra.mrb[4].mxu0 %vm207_vm0, %v1114_v6 }
  0x1b   : > { %967 = vmatprep.mubr.msk.f32.mxu0 %vm207_vm0, %v1116_v7 }
  0x1e   : > { %968 = vmatmul.mubr.msk.f32.gmra.mrb[6].mxu0 %vm207_vm0, %v1122_v8 }
  0x1f   : > { %991 = vmatprep.mubr.msk.f32.mxu0 %vm1047_vm2, %v1046_v9 }
  0xe5   : > { %v960_v10 = vpop.f32.mrb[0].mxu0 }
  0xe6   : > { %v339_v11 = vsel %vm337_vm1, %v960_v10, 0.0  ;;  %v298_v12 = vpop.f32.mrb[1].mxu0 }
  0xe7   : > { %v338_v13 = vsel %vm337_vm1, %v298_v12, 0.0 }
  0xe8   : > { %v340_v14 = vadd.f32 %v339_v11, %v338_v13 }
  0xe9   : > { %v963_v15 = vpop.f32.mrb[2].mxu0 }
  0xea   : > { %v308_v16 = vpop.f32.mrb[3].mxu0  ;;  %v343_v19 = vsel %vm337_vm1, %v963_v15, 0.0 }
  0xeb   : > { %v341_v17 = vsel %vm337_vm1, %v308_v16, 0.0 }
  0xec   : > { %v342_v18 = vadd.f32 %v341_v17, %v340_v14 }
  0xed   : > { %v966_v20 = vpop.f32.mrb[4].mxu0 }
  0xee   : > { %v318_v21 = vpop.f32.mrb[5].mxu0  ;;  %v344_v22 = vadd.f32 %v343_v19, %v342_v18  ;;  %v347_v25 = vsel %vm337_vm1, %v966_v20, 0.0 }
  0xef   : > { %v345_v23 = vsel %vm337_vm1, %v318_v21, 0.0 }
  0xf0   : > { %v346_v24 = vadd.f32 %v345_v23, %v344_v22 }
  0xf1   : > { %v969_v26 = vpop.f32.mrb[6].mxu0 }
  0xf2   : > { %v328_v27 = vpop.f32.mrb[7].mxu0  ;;  %v348_v28 = vadd.f32 %v347_v25, %v346_v24  ;;  %v351_v31 = vsel %vm337_vm1, %v969_v26, 0.0 }
  0xf3   : > { %v349_v29 = vsel %vm337_vm1, %v328_v27, 0.0 }
  0xf4   : > { %v350_v30 = vadd.f32 %v349_v29, %v348_v28 }
  0xf6   : > { %v352_v32 = vadd.f32 %v351_v31, %v350_v30 }
  0xf8   : > { %v353_v33 = vrot.slane %v352_v32, 4 }
  0xfa   : > { %v354_v34 = vadd.f32 %v353_v33, %v352_v32  ;;  %v904_v33 = vld [vmem:[%s1203_s1] ss:$0 sm:$0xff] }
  0xfc   : > { %v355_v35 = vrot.slane %v354_v34, 2 }
  0xfe   : > { %v356_v36 = vadd.f32 %v355_v35, %v354_v34 }
 0x100   : > { %v357_v37 = vrot.slane %v356_v36, 1 }
 0x102   : > { %v358_v38 = vadd.f32 %v357_v37, %v356_v36 }
 0x104   : > { %v359_v39 = vmul.f32 0.0078125, %v358_v38 }
 0x106   : > { %973 = vmatmul.mubr.msk.f32.vlgmr.msra.gmra.mrb[0].mxu1 %vm337_vm1, %v359_v39 }
 0x107   : > { %976 = vmatpush3.msra.mxu1 %v1084_v0 }
 0x1d9   : > { %v432_v43 = vpop.f32.mrb[0].mxu1 }
 0x1da   : > { %v439_v44 = vrot.slane %v432_v43, %v438_v42  ;;  %v974_v45 = vpop.f32.mrb[1].mxu1 }
 0x1dc   : > { %v440_v46 = vsub.f32 %v1094_v1, %v439_v44  ;;  %v441_v47 = vsub.f32 %v1096_v2, %v439_v44  ;;  %v442_v48 = vsub.f32 %v1098_v3, %v439_v44  ;;  %v443_v51 = vsub.f32 %v1106_v4, %v439_v44 }
 0x1dd   : > { %v444_v53 = vsub.f32 %v1108_v5, %v439_v44  ;;  %v445_v55 = vsub.f32 %v1114_v6, %v439_v44  ;;  %v446_v57 = vsub.f32 %v1116_v7, %v439_v44  ;;  %v447_v59 = vsub.f32 %v1122_v8, %v439_v44  ;;  %v905_v44 = vld [vmem:[%s1204_s2] ss:$0 sm:$0xff] }
 0x1de   : > { %v448_v49 = vmul.f32 %v440_v46, %v440_v46  ;;  %v449_v50 = vmul.f32 %v441_v47, %v441_v47  ;;  %v450_v52 = vmul.f32 %v442_v48, %v442_v48  ;;  %v451_v54 = vmul.f32 %v443_v51, %v443_v51 }
 0x1df   : > { %v452_v56 = vmul.f32 %v444_v53, %v444_v53  ;;  %v453_v58 = vmul.f32 %v445_v55, %v445_v55  ;;  %v454_v60 = vmul.f32 %v446_v57, %v446_v57  ;;  %v455_v61 = vmul.f32 %v447_v59, %v447_v59 }
 0x1e0   : > { %977 = vmatprep.mubr.msk.f32.mxu1 %vm207_vm0, %v448_v49 }
 0x1e1   : > { %978 = vmatmul.mubr.msk.f32.vlgmr.msra.gmra.mrb[2].mxu1 %vm207_vm0, %v449_v50 }
 0x1e2   : > { %980 = vmatprep.mubr.msk.f32.mxu1 %vm207_vm0, %v450_v52 }
 0x1e5   : > { %981 = vmatmul.mubr.msk.f32.gmra.mrb[4].mxu1 %vm207_vm0, %v451_v54 }
 0x1e6   : > { %983 = vmatprep.mubr.msk.f32.mxu1 %vm207_vm0, %v452_v56 }
 0x1e9   : > { %984 = vmatmul.mubr.msk.f32.gmra.mrb[6].mxu1 %vm207_vm0, %v453_v58 }
 0x1ea   : > { %986 = vmatprep.mubr.msk.f32.mxu1 %vm207_vm0, %v454_v60 }
 0x1ed   : > { %987 = vmatmul.mubr.msk.f32.gmra.mrb[8].mxu1 %vm207_vm0, %v455_v61 }
 0x2b4   : > { %v979_v62 = vpop.f32.mrb[2].mxu1 }
 0x2b5   : > { %v586_v63 = vsel %vm337_vm1, %v979_v62, 0.0  ;;  %v546_v0 = vpop.f32.mrb[3].mxu1 }
 0x2b6   : > { %v585_v1 = vsel %vm337_vm1, %v546_v0, 0.0 }
 0x2b7   : > { %v587_v2 = vadd.f32 %v586_v63, %v585_v1 }
 0x2b8   : > { %v982_v3 = vpop.f32.mrb[4].mxu1 }
 0x2b9   : > { %v556_v4 = vpop.f32.mrb[5].mxu1  ;;  %v590_v7 = vsel %vm337_vm1, %v982_v3, 0.0 }
 0x2ba   : > { %v588_v5 = vsel %vm337_vm1, %v556_v4, 0.0 }
 0x2bb   : > { %v589_v6 = vadd.f32 %v588_v5, %v587_v2 }
 0x2bc   : > { %v985_v8 = vpop.f32.mrb[6].mxu1 }
 0x2bd   : > { %v566_v9 = vpop.f32.mrb[7].mxu1  ;;  %v591_v10 = vadd.f32 %v590_v7, %v589_v6  ;;  %v594_v13 = vsel %vm337_vm1, %v985_v8, 0.0 }
 0x2be   : > { %v592_v11 = vsel %vm337_vm1, %v566_v9, 0.0 }
 0x2bf   : > { %v593_v12 = vadd.f32 %v592_v11, %v591_v10 }
 0x2c0   : > { %v988_v14 = vpop.f32.mrb[8].mxu1 }
 0x2c1   : > { %v576_v15 = vpop.f32.mrb[9].mxu1  ;;  %v595_v16 = vadd.f32 %v594_v13, %v593_v12  ;;  %v598_v19 = vsel %vm337_vm1, %v988_v14, 0.0 }
 0x2c2   : > { %v596_v17 = vsel %vm337_vm1, %v576_v15, 0.0 }
 0x2c3   : > { %v597_v18 = vadd.f32 %v596_v17, %v595_v16 }
 0x2c5   : > { %v599_v20 = vadd.f32 %v598_v19, %v597_v18 }
 0x2c7   : > { %v600_v21 = vrot.slane %v599_v20, 4 }
 0x2c9   : > { %v601_v22 = vadd.f32 %v600_v21, %v599_v20 }
 0x2cb   : > { %v602_v23 = vrot.slane %v601_v22, 2 }
 0x2cd   : > { %v603_v24 = vadd.f32 %v602_v23, %v601_v22 }
 0x2cf   : > { %v604_v25 = vrot.slane %v603_v24, 1 }
 0x2d1   : > { %v605_v26 = vadd.f32 %v604_v25, %v603_v24 }
 0x2d3   : > { %v606_v27 = vmul.f32 0.0078125, %v605_v26 }
 0x2d5   : > { %992 = vmatmul.mubr.msk.f32.vlgmr.msra.gmra.mrb[8].mxu0 %vm337_vm1, %v606_v27 }
 0x3a8   : > { %v676_v28 = vpop.f32.mrb[8].mxu0 }
 0x3a9   : > { %v677_v29 = vadd.f32 1e-05, %v676_v28  ;;  %v993_v30 = vpop.f32.mrb[9].mxu0 }
 0x3ab   : > { %1004 = vrsqrt.f32 %v677_v29 }
 0x3b5   : > { %v1005_v31 = vpop.eup %1004 }
 0x3b6   : > { %v684_v32 = vrot.slane %v1005_v31, %v438_v42 }
 0x3b8   : > { %v685_v34 = vmul.f32 %v684_v32, %v440_v46  ;;  %v686_v35 = vmul.f32 %v684_v32, %v441_v47  ;;  %v687_v36 = vmul.f32 %v684_v32, %v442_v48  ;;  %v688_v37 = vmul.f32 %v684_v32, %v443_v51 }
 0x3b9   : > { %v689_v38 = vmul.f32 %v684_v32, %v444_v53  ;;  %v690_v39 = vmul.f32 %v684_v32, %v445_v55  ;;  %v691_v40 = vmul.f32 %v684_v32, %v446_v57  ;;  %v692_v43 = vmul.f32 %v684_v32, %v447_v59 }
 0x3ba   : > { %v700_v45 = vmul.f32 %v904_v33, %v685_v34  ;;  %v701_v49 = vmul.f32 %v904_v33, %v686_v35  ;;  %v702_v41 = vmul.f32 %v904_v33, %v687_v36  ;;  %v703_v42 = vmul.f32 %v904_v33, %v688_v37 }
 0x3bb   : > { %v704_v50 = vmul.f32 %v904_v33, %v689_v38  ;;  %v705_v52 = vmul.f32 %v904_v33, %v690_v39  ;;  %v706_v54 = vmul.f32 %v904_v33, %v691_v40  ;;  %v707_v56 = vmul.f32 %v904_v33, %v692_v43 }
 0x3bc   : > { %v715_v46 = vadd.f32 %v905_v44, %v700_v45  ;;  %v716_v47 = vadd.f32 %v905_v44, %v701_v49  ;;  %v717_v48 = vadd.f32 %v905_v44, %v702_v41  ;;  %v718_v51 = vadd.f32 %v905_v44, %v703_v42 }
 0x3bd   : > { %v719_v53 = vadd.f32 %v905_v44, %v704_v50  ;;  %v720_v55 = vadd.f32 %v905_v44, %v705_v52  ;;  %v1179_v57 = vadd.f32 %v905_v44, %v706_v54  ;;  %v1181_v61 = vadd.f32 %v905_v44, %v707_v56 }
 0x3be   : > { %v906_v58 = vmul.f32 -1.442695, %v715_v46  ;;  %v907_v59 = vmul.f32 -1.442695, %v716_v47  ;;  %v908_v60 = vmul.f32 -1.442695, %v717_v48 }
 0x3bf   : > { %v909_v62 = vmul.f32 -1.442695, %v718_v51  ;;  %v910_v63 = vmul.f32 -1.442695, %v719_v53  ;;  %v911_v0 = vmul.f32 -1.442695, %v720_v55 }
 0x3c0   : > { %1006 = vpow2.f32 %v906_v58  ;;  %v912_v1 = vmul.f32 -1.442695, %v1179_v57  ;;  %v913_v2 = vmul.f32 -1.442695, %v1181_v61 }
 0x3c1   : > { %1008 = vpow2.f32 %v907_v59 }
 0x3c2   : > { %1010 = vpow2.f32 %v908_v60 }
 0x3c3   : > { %1012 = vpow2.f32 %v909_v62 }
 0x3c4   : > { %1014 = vpow2.f32 %v910_v63 }
 0x3c5   : > { %1016 = vpow2.f32 %v911_v0 }
 0x3c6   : > { %1018 = vpow2.f32 %v912_v1 }
 0x3c7   : > { %1020 = vpow2.f32 %v913_v2 }
 0x3ca   : > { %v1007_v3 = vpop.eup %1006 }
 0x3cb   : > { %v1009_v4 = vpop.eup %1008  ;;  %v747_v5 = vadd.f32 1.0, %v1007_v3 }
 0x3cc   : > { %v1011_v6 = vpop.eup %1010  ;;  %v748_v7 = vadd.f32 1.0, %v1009_v4 }
 0x3cd   : > { %v1013_v8 = vpop.eup %1012  ;;  %v749_v9 = vadd.f32 1.0, %v1011_v6  ;;  %1022 = vrcp.f32 %v747_v5 }
 0x3ce   : > { %v1015_v10 = vpop.eup %1014  ;;  %v750_v11 = vadd.f32 1.0, %v1013_v8  ;;  %1024 = vrcp.f32 %v748_v7 }
 0x3cf   : > { %v1017_v12 = vpop.eup %1016  ;;  %v751_v13 = vadd.f32 1.0, %v1015_v10  ;;  %1026 = vrcp.f32 %v749_v9 }
 0x3d0   : > { %v1019_v14 = vpop.eup %1018  ;;  %v752_v15 = vadd.f32 1.0, %v1017_v12  ;;  %1028 = vrcp.f32 %v750_v11 }
 0x3d1   : > { %v1021_v16 = vpop.eup %1020  ;;  %v753_v17 = vadd.f32 1.0, %v1019_v14  ;;  %1030 = vrcp.f32 %v751_v13 }
 0x3d2   : > { %v754_v18 = vadd.f32 1.0, %v1021_v16  ;;  %1032 = vrcp.f32 %v752_v15 }
 0x3d3   : > { %1034 = vrcp.f32 %v753_v17 }
 0x3d4   : > { %1036 = vrcp.f32 %v754_v18 }
 0x3d7   : > { %v1023_v19 = vpop.eup %1022 }
 0x3d8   : > { %v1025_v20 = vpop.eup %1024  ;;  %v771_v21 = vmul.f32 %v1023_v19, %v715_v46 }
 0x3d9   : > { %v1027_v22 = vpop.eup %1026  ;;  %v772_v23 = vmul.f32 %v1025_v20, %v716_v47 }
 0x3da   : > { %v1029_v24 = vpop.eup %1028  ;;  %v773_v25 = vmul.f32 %v1027_v22, %v717_v48  ;;  %v926_v26 = vpack.c.bf16 %v771_v21, %v771_v21 }
 0x3db   : > { %v1031_v27 = vpop.eup %1030  ;;  %v774_v28 = vmul.f32 %v1029_v24, %v718_v51  ;;  %v927_v29 = vpack.c.bf16 %v772_v23, %v772_v23 }
 0x3dc   : > { %v1033_v30 = vpop.eup %1032  ;;  %v775_v31 = vmul.f32 %v1031_v27, %v719_v53  ;;  %v928_v32 = vpack.c.bf16 %v773_v25, %v773_v25  ;;  %812 = vst.msk [vmem:[%s197_s30] sm:$0xf] %vm811_vm3, %v926_v26 }
 0x3dd   : > { %v1035_v33 = vpop.eup %1034  ;;  %v776_v34 = vmul.f32 %v1033_v30, %v720_v55  ;;  %v929_v35 = vpack.c.bf16 %v774_v28, %v774_v28  ;;  %813 = vst.msk [vmem:[%s197_s30 + $0x4] sm:$0xf] %vm811_vm3, %v927_v29 }
 0x3de   : > { %v1037_v36 = vpop.eup %1036  ;;  %v777_v37 = vmul.f32 %v1035_v33, %v1179_v57  ;;  %v930_v38 = vpack.c.bf16 %v775_v31, %v775_v31  ;;  %814 = vst.msk [vmem:[%s197_s30 + $0x8] sm:$0xf] %vm811_vm3, %v928_v32 }
 0x3df   : > { %v778_v39 = vmul.f32 %v1037_v36, %v1181_v61  ;;  %v931_v40 = vpack.c.bf16 %v776_v34, %v776_v34  ;;  %815 = vst.msk [vmem:[%s197_s30 + $0xc] sm:$0xf] %vm811_vm3, %v929_v35 }
 0x3e0   : > { %v932_v43 = vpack.c.bf16 %v777_v37, %v777_v37  ;;  %816 = vst.msk [vmem:[%s197_s30 + $0x10] sm:$0xf] %vm811_vm3, %v930_v38 }
 0x3e1   : > { %v933_v44 = vpack.c.bf16 %v778_v39, %v778_v39  ;;  %817 = vst.msk [vmem:[%s197_s30 + $0x14] sm:$0xf] %vm811_vm3, %v931_v40 }
 0x3e2   : > { %818 = vst.msk [vmem:[%s197_s30 + $0x18] sm:$0xf] %vm811_vm3, %v932_v43 }
 0x3e3   : > { %819 = vst.msk [vmem:[%s197_s30 + $0x1c] sm:$0xf] %vm811_vm3, %v933_v44 }
 0x3e4 PF: > { %s14_s15 = sadd.s32 1, %s1044_s15  }
 0x3e5   : > { %p11_p4 = scmp.ge.s32.totalorder %s14_s15, 4  }
 0x3e7   :  { %13 = sbr.rel (!%p11_p4) target bundleno = 1 (0x1), region = 66 }

// kernel: _lambda_.102
= control target key start
LH: loop header
LB: loop body
LE: loop exit
PB: predicated region body
PF: predicated region fallthrough
CT: control target
= control target key end

     0   :  { %s1144_s18 = smov 0   ;;  %s1277_s0 = inlined_call_operand.vmem [shape: f32[2,64,8], index: 0, kind: input, shape index: {}]   ;;  %s1278_s1 = inlined_call_operand.vmem [shape: f32[1,8], index: 1, kind: input, shape index: {}]   ;;  %s1279_s2 = inlined_call_operand.vmem [shape: f32[1,8], index: 2, kind: input, shape index: {}]   ;;  %s1280_s3 = inlined_call_operand.vmem [shape: f32[8,4], index: 3, kind: input, shape index: {}]   ;;  %s1281_s4 = inlined_call_operand.vmem [shape: f32[2,1,8], index: 4, kind: input, shape index: {}]   ;;  %s1282_s5 = inlined_call_operand.vmem [shape: bf16[2,64,8], index: 5, kind: output, shape index: {}]  }
   0x1 LB: > { %s940_s19 = sadd.s32 4294967295, %s1110_s18   ;;  %p944_p0 = scmp.ge.s32.totalorder %s1110_s18, 1  ;;  %s1110_s18 = sphi %s1144_s18, %s15_s18  }
   0x2   : > { %p195_p1 = scmp.lt.s32.totalorder %s1110_s18, 3 }
   0x4   : > { %p196_p2 = pnand %p944_p0, %p195_p1 }
   0x5   : > { %v1155_v0 = vld [vmem:[%s1280_s3] sm:$0xff] (!%p196_p2)  ;;  %p226_p3 = scmp.lt.s32.totalorder (!%p196_p2), %s940_s19, 1  ;;  %vm263_vm0 = vcmask (!%p196_p2), 64512   ;;  %vm393_vm1 = vcmask (!%p196_p2), 31744   ;;  %v1112_v18 = vmov (!%p196_p2), 0.0   ;;  %vm1113_vm2 = vmmov (!%p196_p2), 0  }
   0x6   : > { %199 = sbr.rel (%p196_p2) target bundleno = 998 (0x3e6), region = 40  ;;  %1022 = vmatprep.subr.mxu0 (!%p196_p2), %v1155_v0  ;;  %1036 = vmatprep.subr.mxu1 (!%p196_p2), %v1112_v18  ;;  %v492_v49 = vlaneseq (!%p196_p2)  ;;  %vm867_vm3 = vcmask (!%p196_p2), 60416  }
   0x7   : > { %1023 = vmatpush3.msra.mxu0 (!%p196_p2), %v1155_v0  ;;  %1038 = vmatprep.mubr.msk.f32.mxu1 (!%p196_p2), %vm1113_vm2, %v1112_v18 }
   0x8   : > { %1037 = vmatpush3.xpose.msk.msra.mxu1 (!%p196_p2), %vm393_vm1, %v1155_v0  ;;  %1055 = vmatprep.subr.mxu0 (!%p196_p2), %v1112_v18  ;;  %v1216_v50 = vshrl.u32 (!%p196_p2), %v492_v49, 7 }
   0x9   : > { %1041 = vmatprep.subr.mxu1 (!%p196_p2), %v1155_v0 }
   0xa   : > { %v494_v51 = vsub.s32 (!%p196_p2), 0, %v1216_v50 }
   0xd   : > { %s1284_s19 = smov (!%p226_p3, %s940_s19), 1 }
   0xe   : > { %s990_s22 = sshll.u32 %s1284_s19, 6  ;;  %s233_s25 = scalar_lea.vmem %s1281_s4, %s1284_s19 }
   0xf   : > { %s230_s28 = scalar_lea.vmem %s1277_s0, %s990_s22  ;;  %v949_v1 = vld [vmem:[%s233_s25] ss:$0 sm:$0xff]  ;;  %s991_s8 = sshll.u32 %s1284_s19, 5 }
  0x10   : > { %v239_v2 = vld [vmem:[%s230_s28] sm:$0xff]  ;;  %v240_v3 = vld [vmem:[%s230_s28 + $0x8] sm:$0xff]  ;;  %v241_v4 = vld [vmem:[%s230_s28 + $0x10] sm:$0xff]  ;;  %s238_s11 = scalar_lea.vmem %s1282_s5, %s991_s8 }
  0x11   : > { %v1169_v5 = vadd.f32 %v949_v1, %v239_v2  ;;  %v1171_v6 = vadd.f32 %v949_v1, %v240_v3  ;;  %v1173_v7 = vadd.f32 %v949_v1, %v241_v4  ;;  %v242_v8 = vld [vmem:[%s230_s28 + $0x18] sm:$0xff]  ;;  %v243_v9 = vld [vmem:[%s230_s28 + $0x20] sm:$0xff]  ;;  %v244_v12 = vld [vmem:[%s230_s28 + $0x28] sm:$0xff] }
  0x12   : > { %v1179_v10 = vadd.f32 %v949_v1, %v242_v8  ;;  %v1183_v11 = vadd.f32 %v949_v1, %v243_v9  ;;  %v245_v13 = vld [vmem:[%s230_s28 + $0x30] sm:$0xff]  ;;  %v1187_v14 = vadd.f32 %v949_v1, %v244_v12  ;;  %v246_v16 = vld [vmem:[%s230_s28 + $0x38] sm:$0xff] }
  0x13   : > { %1024 = vmatprep.mubr.msk.f32.mxu0 %vm263_vm0, %v1169_v5  ;;  %v1191_v15 = vadd.f32 %v949_v1, %v245_v13  ;;  %v1195_v17 = vadd.f32 %v949_v1, %v246_v16 }
  0x14   : > { %1025 = vmatmul.mubr.msk.f32.vlgmr.msra.gmra.mrb[0].mxu0 %vm263_vm0, %v1171_v6 }
  0x15   : > { %1027 = vmatprep.mubr.msk.f32.mxu0 %vm263_vm0, %v1173_v7  ;;  %1056 = vmatpush3.xpose.msk.msra.mxu0 %vm393_vm1, %v1155_v0 }
  0x18   : > { %1028 = vmatmul.mubr.msk.f32.gmra.mrb[2].mxu0 %vm263_vm0, %v1179_v10 }
  0x19   : > { %1030 = vmatprep.mubr.msk.f32.mxu0 %vm263_vm0, %v1183_v11 }
  0x1c   : > { %1031 = vmatmul.mubr.msk.f32.gmra.mrb[4].mxu0 %vm263_vm0, %v1187_v14 }
  0x1d   : > { %1033 = vmatprep.mubr.msk.f32.mxu0 %vm263_vm0, %v1191_v15 }
  0x20   : > { %1034 = vmatmul.mubr.msk.f32.gmra.mrb[6].mxu0 %vm263_vm0, %v1195_v17 }
  0x21   : > { %1057 = vmatprep.mubr.msk.f32.mxu0 %vm1113_vm2, %v1112_v18 }
  0xe7   : > { %v1026_v19 = vpop.f32.mrb[0].mxu0 }
  0xe8   : > { %v395_v20 = vsel %vm393_vm1, %v1026_v19, 0.0  ;;  %v354_v21 = vpop.f32.mrb[1].mxu0 }
  0xe9   : > { %v394_v22 = vsel %vm393_vm1, %v354_v21, 0.0 }
  0xea   : > { %v396_v23 = vadd.f32 %v395_v20, %v394_v22 }
  0xeb   : > { %v1029_v24 = vpop.f32.mrb[2].mxu0 }
  0xec   : > { %v364_v25 = vpop.f32.mrb[3].mxu0  ;;  %v399_v28 = vsel %vm393_vm1, %v1029_v24, 0.0 }
  0xed   : > { %v397_v26 = vsel %vm393_vm1, %v364_v25, 0.0 }
  0xee   : > { %v398_v27 = vadd.f32 %v397_v26, %v396_v23 }
  0xef   : > { %v1032_v29 = vpop.f32.mrb[4].mxu0 }
  0xf0   : > { %v374_v30 = vpop.f32.mrb[5].mxu0  ;;  %v400_v31 = vadd.f32 %v399_v28, %v398_v27  ;;  %v403_v34 = vsel %vm393_vm1, %v1032_v29, 0.0 }
  0xf1   : > { %v401_v32 = vsel %vm393_vm1, %v374_v30, 0.0 }
  0xf2   : > { %v402_v33 = vadd.f32 %v401_v32, %v400_v31 }
  0xf3   : > { %v1035_v35 = vpop.f32.mrb[6].mxu0 }
  0xf4   : > { %v384_v36 = vpop.f32.mrb[7].mxu0  ;;  %v404_v37 = vadd.f32 %v403_v34, %v402_v33  ;;  %v407_v40 = vsel %vm393_vm1, %v1035_v35, 0.0 }
  0xf5   : > { %v405_v38 = vsel %vm393_vm1, %v384_v36, 0.0 }
  0xf6   : > { %v406_v39 = vadd.f32 %v405_v38, %v404_v37 }
  0xf8   : > { %v408_v41 = vadd.f32 %v407_v40, %v406_v39 }
  0xfa   : > { %v409_v42 = vrot.slane %v408_v41, 4 }
  0xfc   : > { %v410_v43 = vadd.f32 %v409_v42, %v408_v41  ;;  %v970_v42 = vld [vmem:[%s1278_s1] ss:$0 sm:$0xff] }
  0xfe   : > { %v411_v44 = vrot.slane %v410_v43, 2 }
 0x100   : > { %v412_v45 = vadd.f32 %v411_v44, %v410_v43 }
 0x102   : > { %v413_v46 = vrot.slane %v412_v45, 1 }
 0x104   : > { %v414_v47 = vadd.f32 %v413_v46, %v412_v45 }
 0x106   : > { %v415_v48 = vmul.f32 0.0078125, %v414_v47 }
 0x108   : > { %1039 = vmatmul.mubr.msk.f32.vlgmr.msra.gmra.mrb[0].mxu1 %vm393_vm1, %v415_v48 }
 0x109   : > { %1042 = vmatpush3.msra.mxu1 %v1155_v0 }
 0x1db   : > { %v488_v52 = vpop.f32.mrb[0].mxu1 }
 0x1dc   : > { %v495_v53 = vrot.slane %v488_v52, %v494_v51  ;;  %v1040_v54 = vpop.f32.mrb[1].mxu1 }
 0x1de   : > { %v496_v55 = vsub.f32 %v1169_v5, %v495_v53  ;;  %v497_v56 = vsub.f32 %v1171_v6, %v495_v53  ;;  %v498_v57 = vsub.f32 %v1173_v7, %v495_v53  ;;  %v499_v60 = vsub.f32 %v1179_v10, %v495_v53 }
 0x1df   : > { %v500_v62 = vsub.f32 %v1183_v11, %v495_v53  ;;  %v501_v0 = vsub.f32 %v1187_v14, %v495_v53  ;;  %v502_v2 = vsub.f32 %v1191_v15, %v495_v53  ;;  %v503_v4 = vsub.f32 %v1195_v17, %v495_v53  ;;  %v971_v53 = vld [vmem:[%s1279_s2] ss:$0 sm:$0xff] }
 0x1e0   : > { %v504_v58 = vmul.f32 %v496_v55, %v496_v55  ;;  %v505_v59 = vmul.f32 %v497_v56, %v497_v56  ;;  %v506_v61 = vmul.f32 %v498_v57, %v498_v57  ;;  %v507_v63 = vmul.f32 %v499_v60, %v499_v60 }
 0x1e1   : > { %v508_v1 = vmul.f32 %v500_v62, %v500_v62  ;;  %v509_v3 = vmul.f32 %v501_v0, %v501_v0  ;;  %v510_v5 = vmul.f32 %v502_v2, %v502_v2  ;;  %v511_v6 = vmul.f32 %v503_v4, %v503_v4 }
 0x1e2   : > { %1043 = vmatprep.mubr.msk.f32.mxu1 %vm263_vm0, %v504_v58 }
 0x1e3   : > { %1044 = vmatmul.mubr.msk.f32.vlgmr.msra.gmra.mrb[2].mxu1 %vm263_vm0, %v505_v59 }
 0x1e4   : > { %1046 = vmatprep.mubr.msk.f32.mxu1 %vm263_vm0, %v506_v61 }
 0x1e7   : > { %1047 = vmatmul.mubr.msk.f32.gmra.mrb[4].mxu1 %vm263_vm0, %v507_v63 }
 0x1e8   : > { %1049 = vmatprep.mubr.msk.f32.mxu1 %vm263_vm0, %v508_v1 }
 0x1eb   : > { %1050 = vmatmul.mubr.msk.f32.gmra.mrb[6].mxu1 %vm263_vm0, %v509_v3 }
 0x1ec   : > { %1052 = vmatprep.mubr.msk.f32.mxu1 %vm263_vm0, %v510_v5 }
 0x1ef   : > { %1053 = vmatmul.mubr.msk.f32.gmra.mrb[8].mxu1 %vm263_vm0, %v511_v6 }
 0x2b6   : > { %v1045_v7 = vpop.f32.mrb[2].mxu1 }
 0x2b7   : > { %v642_v8 = vsel %vm393_vm1, %v1045_v7, 0.0  ;;  %v602_v9 = vpop.f32.mrb[3].mxu1 }
 0x2b8   : > { %v641_v10 = vsel %vm393_vm1, %v602_v9, 0.0 }
 0x2b9   : > { %v643_v11 = vadd.f32 %v642_v8, %v641_v10 }
 0x2ba   : > { %v1048_v12 = vpop.f32.mrb[4].mxu1 }
 0x2bb   : > { %v612_v13 = vpop.f32.mrb[5].mxu1  ;;  %v646_v16 = vsel %vm393_vm1, %v1048_v12, 0.0 }
 0x2bc   : > { %v644_v14 = vsel %vm393_vm1, %v612_v13, 0.0 }
 0x2bd   : > { %v645_v15 = vadd.f32 %v644_v14, %v643_v11 }
 0x2be   : > { %v1051_v17 = vpop.f32.mrb[6].mxu1 }
 0x2bf   : > { %v622_v18 = vpop.f32.mrb[7].mxu1  ;;  %v647_v19 = vadd.f32 %v646_v16, %v645_v15  ;;  %v650_v22 = vsel %vm393_vm1, %v1051_v17, 0.0 }
 0x2c0   : > { %v648_v20 = vsel %vm393_vm1, %v622_v18, 0.0 }
 0x2c1   : > { %v649_v21 = vadd.f32 %v648_v20, %v647_v19 }
 0x2c2   : > { %v1054_v23 = vpop.f32.mrb[8].mxu1 }
 0x2c3   : > { %v632_v24 = vpop.f32.mrb[9].mxu1  ;;  %v651_v25 = vadd.f32 %v650_v22, %v649_v21  ;;  %v654_v28 = vsel %vm393_vm1, %v1054_v23, 0.0 }
 0x2c4   : > { %v652_v26 = vsel %vm393_vm1, %v632_v24, 0.0 }
 0x2c5   : > { %v653_v27 = vadd.f32 %v652_v26, %v651_v25 }
 0x2c7   : > { %v655_v29 = vadd.f32 %v654_v28, %v653_v27 }
 0x2c9   : > { %v656_v30 = vrot.slane %v655_v29, 4 }
 0x2cb   : > { %v657_v31 = vadd.f32 %v656_v30, %v655_v29 }
 0x2cd   : > { %v658_v32 = vrot.slane %v657_v31, 2 }
 0x2cf   : > { %v659_v33 = vadd.f32 %v658_v32, %v657_v31 }
 0x2d1   : > { %v660_v34 = vrot.slane %v659_v33, 1 }
 0x2d3   : > { %v661_v35 = vadd.f32 %v660_v34, %v659_v33 }
 0x2d5   : > { %v662_v36 = vmul.f32 0.0078125, %v661_v35 }
 0x2d7   : > { %1058 = vmatmul.mubr.msk.f32.vlgmr.msra.gmra.mrb[8].mxu0 %vm393_vm1, %v662_v36 }
 0x3aa   : > { %v732_v37 = vpop.f32.mrb[8].mxu0 }
 0x3ab   : > { %v733_v38 = vadd.f32 1e-05, %v732_v37  ;;  %v1059_v39 = vpop.f32.mrb[9].mxu0 }
 0x3ad   : > { %1070 = vrsqrt.f32 %v733_v38 }
 0x3b7   : > { %v1071_v40 = vpop.eup %1070 }
 0x3b8   : > { %v740_v41 = vrot.slane %v1071_v40, %v494_v51 }
 0x3ba   : > { %v741_v43 = vmul.f32 %v740_v41, %v496_v55  ;;  %v742_v44 = vmul.f32 %v740_v41, %v497_v56  ;;  %v743_v45 = vmul.f32 %v740_v41, %v498_v57  ;;  %v744_v46 = vmul.f32 %v740_v41, %v499_v60 }
 0x3bb   : > { %v745_v47 = vmul.f32 %v740_v41, %v500_v62  ;;  %v746_v48 = vmul.f32 %v740_v41, %v501_v0  ;;  %v747_v49 = vmul.f32 %v740_v41, %v502_v2  ;;  %v748_v52 = vmul.f32 %v740_v41, %v503_v4 }
 0x3bc   : > { %v756_v54 = vmul.f32 %v970_v42, %v741_v43  ;;  %v757_v58 = vmul.f32 %v970_v42, %v742_v44  ;;  %v758_v50 = vmul.f32 %v970_v42, %v743_v45  ;;  %v759_v51 = vmul.f32 %v970_v42, %v744_v46 }
 0x3bd   : > { %v760_v59 = vmul.f32 %v970_v42, %v745_v47  ;;  %v761_v61 = vmul.f32 %v970_v42, %v746_v48  ;;  %v762_v63 = vmul.f32 %v970_v42, %v747_v49  ;;  %v763_v1 = vmul.f32 %v970_v42, %v748_v52 }
 0x3be   : > { %v771_v55 = vadd.f32 %v971_v53, %v756_v54  ;;  %v772_v56 = vadd.f32 %v971_v53, %v757_v58  ;;  %v773_v57 = vadd.f32 %v971_v53, %v758_v50  ;;  %v774_v60 = vadd.f32 %v971_v53, %v759_v51 }
 0x3bf   : > { %v775_v62 = vadd.f32 %v971_v53, %v760_v59  ;;  %v776_v0 = vadd.f32 %v971_v53, %v761_v61  ;;  %v1254_v2 = vadd.f32 %v971_v53, %v762_v63  ;;  %v1256_v6 = vadd.f32 %v971_v53, %v763_v1 }
 0x3c0   : > { %v972_v3 = vmul.f32 -1.442695, %v771_v55  ;;  %v973_v4 = vmul.f32 -1.442695, %v772_v56  ;;  %v974_v5 = vmul.f32 -1.442695, %v773_v57 }
 0x3c1   : > { %v975_v7 = vmul.f32 -1.442695, %v774_v60  ;;  %v976_v8 = vmul.f32 -1.442695, %v775_v62  ;;  %v977_v9 = vmul.f32 -1.442695, %v776_v0 }
 0x3c2   : > { %1072 = vpow2.f32 %v972_v3  ;;  %v978_v10 = vmul.f32 -1.442695, %v1254_v2  ;;  %v979_v11 = vmul.f32 -1.442695, %v1256_v6 }
 0x3c3   : > { %1074 = vpow2.f32 %v973_v4 }
 0x3c4   : > { %1076 = vpow2.f32 %v974_v5 }
 0x3c5   : > { %1078 = vpow2.f32 %v975_v7 }
 0x3c6   : > { %1080 = vpow2.f32 %v976_v8 }
 0x3c7   : > { %1082 = vpow2.f32 %v977_v9 }
 0x3c8   : > { %1084 = vpow2.f32 %v978_v10 }
 0x3c9   : > { %1086 = vpow2.f32 %v979_v11 }
 0x3cc   : > { %v1073_v12 = vpop.eup %1072 }
 0x3cd   : > { %v1075_v13 = vpop.eup %1074  ;;  %v803_v14 = vadd.f32 1.0, %v1073_v12 }
 0x3ce   : > { %v1077_v15 = vpop.eup %1076  ;;  %v804_v16 = vadd.f32 1.0, %v1075_v13 }
 0x3cf   : > { %v1079_v17 = vpop.eup %1078  ;;  %v805_v18 = vadd.f32 1.0, %v1077_v15  ;;  %1088 = vrcp.f32 %v803_v14 }
 0x3d0   : > { %v1081_v19 = vpop.eup %1080  ;;  %v806_v20 = vadd.f32 1.0, %v1079_v17  ;;  %1090 = vrcp.f32 %v804_v16 }
 0x3d1   : > { %v1083_v21 = vpop.eup %1082  ;;  %v807_v22 = vadd.f32 1.0, %v1081_v19  ;;  %1092 = vrcp.f32 %v805_v18 }
 0x3d2   : > { %v1085_v23 = vpop.eup %1084  ;;  %v808_v24 = vadd.f32 1.0, %v1083_v21  ;;  %1094 = vrcp.f32 %v806_v20 }
 0x3d3   : > { %v1087_v25 = vpop.eup %1086  ;;  %v809_v26 = vadd.f32 1.0, %v1085_v23  ;;  %1096 = vrcp.f32 %v807_v22 }
 0x3d4   : > { %v810_v27 = vadd.f32 1.0, %v1087_v25  ;;  %1098 = vrcp.f32 %v808_v24 }
 0x3d5   : > { %1100 = vrcp.f32 %v809_v26 }
 0x3d6   : > { %1102 = vrcp.f32 %v810_v27 }
 0x3d9   : > { %v1089_v28 = vpop.eup %1088 }
 0x3da   : > { %v1091_v29 = vpop.eup %1090  ;;  %v827_v30 = vmul.f32 %v1089_v28, %v771_v55 }
 0x3db   : > { %v1093_v31 = vpop.eup %1092  ;;  %v828_v32 = vmul.f32 %v1091_v29, %v772_v56 }
 0x3dc   : > { %v1095_v33 = vpop.eup %1094  ;;  %v829_v34 = vmul.f32 %v1093_v31, %v773_v57  ;;  %v992_v35 = vpack.c.bf16 %v827_v30, %v827_v30 }
 0x3dd   : > { %v1097_v36 = vpop.eup %1096  ;;  %v830_v37 = vmul.f32 %v1095_v33, %v774_v60  ;;  %v993_v38 = vpack.c.bf16 %v828_v32, %v828_v32 }
 0x3de   : > { %v1099_v39 = vpop.eup %1098  ;;  %v831_v40 = vmul.f32 %v1097_v36, %v775_v62  ;;  %v994_v41 = vpack.c.bf16 %v829_v34, %v829_v34  ;;  %868 = vst.msk [vmem:[%s238_s11] sm:$0xf] %vm867_vm3, %v992_v35 }
 0x3df   : > { %v1101_v42 = vpop.eup %1100  ;;  %v832_v43 = vmul.f32 %v1099_v39, %v776_v0  ;;  %v995_v44 = vpack.c.bf16 %v830_v37, %v830_v37  ;;  %869 = vst.msk [vmem:[%s238_s11 + $0x4] sm:$0xf] %vm867_vm3, %v993_v38 }
 0x3e0   : > { %v1103_v45 = vpop.eup %1102  ;;  %v833_v46 = vmul.f32 %v1101_v42, %v1254_v2  ;;  %v996_v47 = vpack.c.bf16 %v831_v40, %v831_v40  ;;  %870 = vst.msk [vmem:[%s238_s11 + $0x8] sm:$0xf] %vm867_vm3, %v994_v41 }
 0x3e1   : > { %v834_v48 = vmul.f32 %v1103_v45, %v1256_v6  ;;  %v997_v49 = vpack.c.bf16 %v832_v43, %v832_v43  ;;  %871 = vst.msk [vmem:[%s238_s11 + $0xc] sm:$0xf] %vm867_vm3, %v995_v44 }
 0x3e2   : > { %v998_v52 = vpack.c.bf16 %v833_v46, %v833_v46  ;;  %872 = vst.msk [vmem:[%s238_s11 + $0x10] sm:$0xf] %vm867_vm3, %v996_v47 }
 0x3e3   : > { %v999_v53 = vpack.c.bf16 %v834_v48, %v834_v48  ;;  %873 = vst.msk [vmem:[%s238_s11 + $0x14] sm:$0xf] %vm867_vm3, %v997_v49 }
 0x3e4   : > { %874 = vst.msk [vmem:[%s238_s11 + $0x18] sm:$0xf] %vm867_vm3, %v998_v52 }
 0x3e5   : > { %875 = vst.msk [vmem:[%s238_s11 + $0x1c] sm:$0xf] %vm867_vm3, %v999_v53 }
 0x3e6 PF: > { %s15_s18 = sadd.s32 1, %s1110_s18  }
 0x3e7   : > { %p12_p4 = scmp.ge.s32.totalorder %s15_s18, 4  }
 0x3e9   :  { %14 = sbr.rel (!%p12_p4) target bundleno = 1 (0x1), region = 73 }

// kernel: _lambda_.113
= control target key start
LH: loop header
LB: loop body
LE: loop exit
PB: predicated region body
PF: predicated region fallthrough
CT: control target
= control target key end

     0   :  { %s761_s15 = smov 0   ;;  %s805_s0 = inlined_call_operand.vmem [shape: f32[2,16,8], index: 0, kind: input, shape index: {}]   ;;  %s806_s1 = inlined_call_operand.vmem [shape: f32[1,8], index: 1, kind: input, shape index: {}]   ;;  %s807_s2 = inlined_call_operand.vmem [shape: f32[1,8], index: 2, kind: input, shape index: {}]   ;;  %s808_s3 = inlined_call_operand.vmem [shape: f32[8,4], index: 3, kind: input, shape index: {}]   ;;  %s809_s4 = inlined_call_operand.vmem [shape: bf16[2,16,8], index: 4, kind: output, shape index: {}]  }
   0x1 LB: > { %s647_s16 = sadd.s32 4294967295, %s732_s15   ;;  %p651_p0 = scmp.ge.s32.totalorder %s732_s15, 1  ;;  %s732_s15 = sphi %s761_s15, %s14_s15  }
   0x2   : > { %p162_p1 = scmp.lt.s32.totalorder %s732_s15, 3 }
   0x4   : > { %p163_p2 = pnand %p651_p0, %p162_p1 }
   0x5   : > { %v200_v0 = vld [vmem:[%s808_s3] sm:$0xff] (!%p163_p2)  ;;  %p188_p3 = scmp.lt.s32.totalorder (!%p163_p2), %s647_s16, 1  ;;  %vm201_vm0 = vcmask (!%p163_p2), 64512   ;;  %vm283_vm1 = vcmask (!%p163_p2), 31744   ;;  %v734_v3 = vmov (!%p163_p2), 0.0   ;;  %vm735_vm2 = vmmov (!%p163_p2), 0  }
   0x6   : > { %166 = sbr.rel (%p163_p2) target bundleno = 962 (0x3c2), region = 36  ;;  %686 = vmatprep.subr.mxu0 (!%p163_p2), %v200_v0  ;;  %691 = vmatprep.subr.mxu1 (!%p163_p2), %v734_v3  ;;  %v370_v16 = vlaneseq (!%p163_p2)  ;;  %v664_v43 = vld [vmem:[%s806_s1] ss:$0 sm:$0xff] (!%p163_p2)  ;;  %vm589_vm3 = vcmask (!%p163_p2), 60416  }
   0x7   : > { %687 = vmatpush3.msra.mxu0 (!%p163_p2), %v200_v0  ;;  %692 = vmatpush3.xpose.msk.msra.mxu1 (!%p163_p2), %vm283_vm1, %v200_v0  ;;  %v665_v46 = vld [vmem:[%s807_s2] ss:$0 sm:$0xff] (!%p163_p2) }
   0x8   : > { %696 = vmatprep.subr.mxu0 (!%p163_p2), %v200_v0  ;;  %693 = vmatprep.mubr.msk.f32.mxu1 (!%p163_p2), %vm735_vm2, %v734_v3  ;;  %v371_v17 = vshrl.u32 (!%p163_p2), %v370_v16, 7 }
   0x9   : > { %701 = vmatprep.subr.mxu1 (!%p163_p2), %v734_v3 }
   0xa   : > { %v372_v18 = vsub.s32 (!%p163_p2), 0, %v371_v17 }
   0xd   : > { %s811_s16 = smov (!%p188_p3, %s647_s16), 1 }
   0xe   : > { %s672_s19 = sshll.u32 %s811_s16, 4  ;;  %s673_s27 = sshll.u32 %s811_s16, 3 }
   0xf   : > { %s192_s22 = scalar_lea.vmem %s805_s0, %s672_s19  ;;  %s197_s30 = scalar_lea.vmem %s809_s4, %s673_s27 }
  0x10   : > { %v198_v1 = vld [vmem:[%s192_s22] sm:$0xff]  ;;  %v199_v2 = vld [vmem:[%s192_s22 + $0x8] sm:$0xff] }
  0x11   : > { %688 = vmatprep.mubr.msk.f32.mxu0 %vm201_vm0, %v198_v1 }
  0x12   : > { %689 = vmatmul.mubr.msk.f32.vlgmr.msra.gmra.mrb[0].mxu0 %vm201_vm0, %v199_v2 }
  0x13   : > { %697 = vmatpush3.msra.mxu0 %v200_v0 }
  0xe5   : > { %v690_v4 = vpop.f32.mrb[0].mxu0 }
  0xe6   : > { %v285_v5 = vsel %vm283_vm1, %v690_v4, 0.0  ;;  %v274_v6 = vpop.f32.mrb[1].mxu0 }
  0xe7   : > { %v284_v7 = vsel %vm283_vm1, %v274_v6, 0.0 }
  0xe8   : > { %v286_v8 = vadd.f32 %v285_v5, %v284_v7 }
  0xea   : > { %v287_v9 = vrot.slane %v286_v8, 4 }
  0xec   : > { %v288_v10 = vadd.f32 %v287_v9, %v286_v8 }
  0xee   : > { %v289_v11 = vrot.slane %v288_v10, 2 }
  0xf0   : > { %v290_v12 = vadd.f32 %v289_v11, %v288_v10 }
  0xf2   : > { %v291_v13 = vrot.slane %v290_v12, 1 }
  0xf4   : > { %v292_v14 = vadd.f32 %v291_v13, %v290_v12 }
  0xf6   : > { %v293_v15 = vmul.f32 0.03125, %v292_v14 }
  0xf8   : > { %694 = vmatmul.mubr.msk.f32.vlgmr.msra.gmra.mrb[0].mxu1 %vm283_vm1, %v293_v15 }
  0xf9   : > { %702 = vmatpush3.xpose.msk.msra.mxu1 %vm283_vm1, %v200_v0  ;;  %703 = vmatprep.mubr.msk.f32.mxu1 %vm735_vm2, %v734_v3 }
 0x1cb   : > { %v366_v19 = vpop.f32.mrb[0].mxu1 }
 0x1cc   : > { %v373_v20 = vrot.slane %v366_v19, %v372_v18  ;;  %v695_v21 = vpop.f32.mrb[1].mxu1 }
 0x1ce   : > { %v374_v22 = vsub.f32 %v198_v1, %v373_v20  ;;  %v375_v23 = vsub.f32 %v199_v2, %v373_v20 }
 0x1d0   : > { %v376_v24 = vmul.f32 %v374_v22, %v374_v22  ;;  %v377_v25 = vmul.f32 %v375_v23, %v375_v23 }
 0x1d2   : > { %698 = vmatprep.mubr.msk.f32.mxu0 %vm201_vm0, %v376_v24 }
 0x1d3   : > { %699 = vmatmul.mubr.msk.f32.vlgmr.msra.gmra.mrb[2].mxu0 %vm201_vm0, %v377_v25 }
 0x2a6   : > { %v700_v26 = vpop.f32.mrb[2].mxu0 }
 0x2a7   : > { %v460_v27 = vsel %vm283_vm1, %v700_v26, 0.0  ;;  %v450_v28 = vpop.f32.mrb[3].mxu0 }
 0x2a8   : > { %v459_v29 = vsel %vm283_vm1, %v450_v28, 0.0 }
 0x2a9   : > { %v461_v30 = vadd.f32 %v460_v27, %v459_v29 }
 0x2ab   : > { %v462_v31 = vrot.slane %v461_v30, 4 }
 0x2ad   : > { %v463_v32 = vadd.f32 %v462_v31, %v461_v30 }
 0x2af   : > { %v464_v33 = vrot.slane %v463_v32, 2 }
 0x2b1   : > { %v465_v34 = vadd.f32 %v464_v33, %v463_v32 }
 0x2b3   : > { %v466_v35 = vrot.slane %v465_v34, 1 }
 0x2b5   : > { %v467_v36 = vadd.f32 %v466_v35, %v465_v34 }
 0x2b7   : > { %v468_v37 = vmul.f32 0.03125, %v467_v36 }
 0x2b9   : > { %704 = vmatmul.mubr.msk.f32.vlgmr.msra.gmra.mrb[2].mxu1 %vm283_vm1, %v468_v37 }
 0x38c   : > { %v538_v38 = vpop.f32.mrb[2].mxu1 }
 0x38d   : > { %v539_v39 = vadd.f32 1e-05, %v538_v38  ;;  %v705_v40 = vpop.f32.mrb[3].mxu1 }
 0x38f   : > { %716 = vrsqrt.f32 %v539_v39 }
 0x399   : > { %v717_v41 = vpop.eup %716 }
 0x39a   : > { %v546_v42 = vrot.slane %v717_v41, %v372_v18 }
 0x39c   : > { %v547_v44 = vmul.f32 %v546_v42, %v374_v22  ;;  %v548_v45 = vmul.f32 %v546_v42, %v375_v23 }
 0x39e   : > { %v556_v47 = vmul.f32 %v664_v43, %v547_v44  ;;  %v557_v48 = vmul.f32 %v664_v43, %v548_v45 }
 0x3a0   : > { %v565_v49 = vadd.f32 %v665_v46, %v556_v47  ;;  %v566_v50 = vadd.f32 %v665_v46, %v557_v48 }
 0x3a2   : > { %v666_v51 = vmul.f32 -1.442695, %v565_v49  ;;  %v667_v52 = vmul.f32 -1.442695, %v566_v50 }
 0x3a4   : > { %718 = vpow2.f32 %v666_v51 }
 0x3a5   : > { %720 = vpow2.f32 %v667_v52 }
 0x3ae   : > { %v719_v53 = vpop.eup %718 }
 0x3af   : > { %v721_v54 = vpop.eup %720  ;;  %v573_v55 = vadd.f32 1.0, %v719_v53 }
 0x3b0   : > { %v574_v56 = vadd.f32 1.0, %v721_v54 }
 0x3b1   : > { %722 = vrcp.f32 %v573_v55 }
 0x3b2   : > { %724 = vrcp.f32 %v574_v56 }
 0x3bb   : > { %v723_v57 = vpop.eup %722 }
 0x3bc   : > { %v725_v58 = vpop.eup %724  ;;  %v579_v59 = vmul.f32 %v723_v57, %v565_v49 }
 0x3bd   : > { %v580_v60 = vmul.f32 %v725_v58, %v566_v50 }
 0x3be   : > { %v674_v61 = vpack.c.bf16 %v579_v59, %v579_v59 }
 0x3bf   : > { %v675_v62 = vpack.c.bf16 %v580_v60, %v580_v60 }
 0x3c0   : > { %590 = vst.msk [vmem:[%s197_s30] sm:$0xf] %vm589_vm3, %v674_v61 }
 0x3c1   : > { %591 = vst.msk [vmem:[%s197_s30 + $0x4] sm:$0xf] %vm589_vm3, %v675_v62 }
 0x3c2 PF: > { %s14_s15 = sadd.s32 1, %s732_s15  }
 0x3c3   : > { %p11_p4 = scmp.ge.s32.totalorder %s14_s15, 4  }
 0x3c5   :  { %13 = sbr.rel (!%p11_p4) target bundleno = 1 (0x1), region = 66 }

// kernel: _lambda_.116
= control target key start
LH: loop header
LB: loop body
LE: loop exit
PB: predicated region body
PF: predicated region fallthrough
CT: control target
= control target key end

     0   :  { %s862_s18 = smov 0   ;;  %s921_s0 = inlined_call_operand.vmem [shape: f32[2,16,16], index: 0, kind: input, shape index: {}]   ;;  %s922_s1 = inlined_call_operand.vmem [shape: f32[1,16], index: 1, kind: input, shape index: {}]   ;;  %s923_s2 = inlined_call_operand.vmem [shape: f32[1,16], index: 2, kind: input, shape index: {}]   ;;  %s924_s3 = inlined_call_operand.vmem [shape: f32[16,4], index: 3, kind: input, shape index: {}]   ;;  %s925_s4 = inlined_call_operand.vmem [shape: f32[2,1,16], index: 4, kind: input, shape index: {}]   ;;  %s926_s5 = inlined_call_operand.vmem [shape: bf16[2,16,16], index: 5, kind: output, shape index: {}]  }
   0x1 LB: > { %s710_s19 = sadd.s32 4294967295, %s827_s18   ;;  %p714_p0 = scmp.ge.s32.totalorder %s827_s18, 1  ;;  %s827_s18 = sphi %s862_s18, %s15_s18  }
   0x2   : > { %p195_p1 = scmp.lt.s32.totalorder %s827_s18, 3 }
   0x4   : > { %p196_p2 = pnand %p714_p0, %p195_p1 }
   0x5   : > { %v250_v0 = vld [vmem:[%s924_s3] sm:$0xff] (!%p196_p2)  ;;  %v251_v1 = vld [vmem:[%s924_s3 + $0x8] sm:$0xff] (!%p196_p2)  ;;  %p226_p3 = scmp.lt.s32.totalorder (!%p196_p2), %s710_s19, 1  ;;  %vm252_vm0 = vcmask (!%p196_p2), 130048   ;;  %vm334_vm1 = vcmask (!%p196_p2), 31744   ;;  %v829_v8 = vmov (!%p196_p2), 0.0|0.0   ;;  %v424_v23 = vlaneseq (!%p196_p2) }
   0x6   : > { %199 = sbr.rel (%p196_p2) target bundleno = 964 (0x3c4), region = 40  ;;  %v784_v2 = vpack.c.bf16 (!%p196_p2), %v251_v1, %v250_v0  ;;  %vm890_vm2 = vmpackc.low (!%p196_p2), %vm334_vm1, %vm334_vm1  ;;  %vm830_vm3 = vmmov (!%p196_p2), 0   ;;  %v831_v10 = vmov (!%p196_p2), 0.0   ;;  %v730_v50 = vld [vmem:[%s922_s1] ss:$0 sm:$0xff] (!%p196_p2)  ;;  %vm643_vm4 = vcmask (!%p196_p2), 125952  }
   0x7   : > { %v425_v24 = vshrl.u32 (!%p196_p2), %v424_v23, 7  ;;  %v731_v53 = vld [vmem:[%s923_s2] ss:$0 sm:$0xff] (!%p196_p2) }
   0x8   : > { %785 = vmatprep.subr.bf16.mxu1 (!%p196_p2), %v784_v2  ;;  %793 = vmatprep.subr.bf16.mxu0 (!%p196_p2), %v784_v2 }
   0x9   : > { %787 = vmatpush3.bf16.msra.mxu1 (!%p196_p2), %v784_v2  ;;  %795 = vmatpush3.bf16.msra.mxu0 (!%p196_p2), %v784_v2  ;;  %v426_v25 = vsub.s32 (!%p196_p2), 0, %v425_v24 }
   0xa   : > { %788 = vmatprep.subr.bf16.mxu1 (!%p196_p2), %v829_v8  ;;  %796 = vmatprep.subr.bf16.mxu0 (!%p196_p2), %v829_v8 }
   0xd   : > { %s930_s19 = smov (!%p226_p3, %s710_s19), 1 }
   0xe   : > { %s738_s24 = sshll.u32 %s930_s19, 4  ;;  %s233_s27 = scalar_lea.vmem %s925_s4, %s930_s19 }
   0xf   : > { %s230_s30 = scalar_lea.vmem %s921_s0, %s738_s24  ;;  %v719_v3 = vld [vmem:[%s233_s27] ss:$0 sm:$0xff]  ;;  %s739_s10 = sshll.u32 %s930_s19, 3 }
  0x10   : > { %v239_v4 = vld [vmem:[%s230_s30] sm:$0xff]  ;;  %v240_v5 = vld [vmem:[%s230_s30 + $0x8] sm:$0xff]  ;;  %s238_s13 = scalar_lea.vmem %s926_s5, %s739_s10 }
  0x11   : > { %v248_v6 = vadd.f32 %v719_v3, %v239_v4  ;;  %v249_v7 = vadd.f32 %v719_v3, %v240_v5 }
  0x13   : > { %760 = vmatprep.mubr.msk.f32.mxu1 %vm252_vm0, %v248_v6 }
  0x14   : > { %761 = vmatmul.mubr.msk.f32.vlgmr.msra.gmra.mrb[0].mxu1 %vm252_vm0, %v249_v7 }
  0x15   : > { %791 = vmatpush3.bf16.xpose.msk.msra.mxu1 %vm890_vm2, %v784_v2  ;;  %767 = vmatprep.mubr.msk.f32.mxu1 %vm830_vm3, %v831_v10 }
  0xe7   : > { %v762_v11 = vpop.f32.mrb[0].mxu1 }
  0xe8   : > { %v336_v12 = vsel %vm334_vm1, %v762_v11, 0.0  ;;  %v325_v13 = vpop.f32.mrb[1].mxu1 }
  0xe9   : > { %v335_v14 = vsel %vm334_vm1, %v325_v13, 0.0 }
  0xea   : > { %v337_v15 = vadd.f32 %v336_v12, %v335_v14 }
  0xec   : > { %v338_v16 = vrot.slane %v337_v15, 4 }
  0xee   : > { %v339_v17 = vadd.f32 %v338_v16, %v337_v15 }
  0xf0   : > { %v340_v18 = vrot.slane %v339_v17, 2 }
  0xf2   : > { %v341_v19 = vadd.f32 %v340_v18, %v339_v17 }
  0xf4   : > { %v342_v20 = vrot.slane %v341_v19, 1 }
  0xf6   : > { %v343_v21 = vadd.f32 %v342_v20, %v341_v19 }
  0xf8   : > { %v344_v22 = vmul.f32 0.015625, %v343_v21 }
  0xfa   : > { %768 = vmatmul.mubr.msk.f32.vlgmr.msra.gmra.mrb[2].mxu1 %vm334_vm1, %v344_v22 }
 0x1cd   : > { %v420_v26 = vpop.f32.mrb[2].mxu1 }
 0x1ce   : > { %v427_v27 = vrot.slane %v420_v26, %v426_v25  ;;  %v769_v28 = vpop.f32.mrb[3].mxu1 }
 0x1d0   : > { %v428_v29 = vsub.f32 %v248_v6, %v427_v27  ;;  %v429_v30 = vsub.f32 %v249_v7, %v427_v27 }
 0x1d2   : > { %v431_v31 = vmul.f32 %v429_v30, %v429_v30  ;;  %v430_v32 = vmul.f32 %v428_v29, %v428_v29 }
 0x1d4   : > { %774 = vmatprep.mubr.msk.f32.mxu0 %vm252_vm0, %v430_v32 }
 0x1d5   : > { %775 = vmatmul.mubr.msk.f32.vlgmr.msra.gmra.mrb[0].mxu0 %vm252_vm0, %v431_v31 }
 0x1d6   : > { %799 = vmatpush3.bf16.xpose.msk.msra.mxu0 %vm890_vm2, %v784_v2  ;;  %781 = vmatprep.mubr.msk.f32.mxu0 %vm830_vm3, %v831_v10 }
 0x2a8   : > { %v776_v33 = vpop.f32.mrb[0].mxu0 }
 0x2a9   : > { %v514_v34 = vsel %vm334_vm1, %v776_v33, 0.0  ;;  %v504_v35 = vpop.f32.mrb[1].mxu0 }
 0x2aa   : > { %v513_v36 = vsel %vm334_vm1, %v504_v35, 0.0 }
 0x2ab   : > { %v515_v37 = vadd.f32 %v514_v34, %v513_v36 }
 0x2ad   : > { %v516_v38 = vrot.slane %v515_v37, 4 }
 0x2af   : > { %v517_v39 = vadd.f32 %v516_v38, %v515_v37 }
 0x2b1   : > { %v518_v40 = vrot.slane %v517_v39, 2 }
 0x2b3   : > { %v519_v41 = vadd.f32 %v518_v40, %v517_v39 }
 0x2b5   : > { %v520_v42 = vrot.slane %v519_v41, 1 }
 0x2b7   : > { %v521_v43 = vadd.f32 %v520_v42, %v519_v41 }
 0x2b9   : > { %v522_v44 = vmul.f32 0.015625, %v521_v43 }
 0x2bb   : > { %782 = vmatmul.mubr.msk.f32.vlgmr.msra.gmra.mrb[2].mxu0 %vm334_vm1, %v522_v44 }
 0x38e   : > { %v592_v45 = vpop.f32.mrb[2].mxu0 }
 0x38f   : > { %v593_v46 = vadd.f32 1e-05, %v592_v45  ;;  %v783_v47 = vpop.f32.mrb[3].mxu0 }
 0x391   : > { %811 = vrsqrt.f32 %v593_v46 }
 0x39b   : > { %v812_v48 = vpop.eup %811 }
 0x39c   : > { %v600_v49 = vrot.slane %v812_v48, %v426_v25 }
 0x39e   : > { %v601_v51 = vmul.f32 %v600_v49, %v428_v29  ;;  %v602_v52 = vmul.f32 %v600_v49, %v429_v30 }
 0x3a0   : > { %v610_v54 = vmul.f32 %v730_v50, %v601_v51  ;;  %v611_v55 = vmul.f32 %v730_v50, %v602_v52 }
 0x3a2   : > { %v619_v56 = vadd.f32 %v731_v53, %v610_v54  ;;  %v620_v57 = vadd.f32 %v731_v53, %v611_v55 }
 0x3a4   : > { %v732_v58 = vmul.f32 -1.442695, %v619_v56  ;;  %v733_v59 = vmul.f32 -1.442695, %v620_v57 }
 0x3a6   : > { %813 = vpow2.f32 %v732_v58 }
 0x3a7   : > { %815 = vpow2.f32 %v733_v59 }
 0x3b0   : > { %v814_v60 = vpop.eup %813 }
 0x3b1   : > { %v816_v61 = vpop.eup %815  ;;  %v627_v62 = vadd.f32 1.0, %v814_v60 }
 0x3b2   : > { %v628_v63 = vadd.f32 1.0, %v816_v61 }
 0x3b3   : > { %817 = vrcp.f32 %v627_v62 }
 0x3b4   : > { %819 = vrcp.f32 %v628_v63 }
 0x3bd   : > { %v818_v0 = vpop.eup %817 }
 0x3be   : > { %v820_v1 = vpop.eup %819  ;;  %v633_v2 = vmul.f32 %v818_v0, %v619_v56 }
 0x3bf   : > { %v634_v3 = vmul.f32 %v820_v1, %v620_v57 }
 0x3c0   : > { %v740_v4 = vpack.c.bf16 %v633_v2, %v633_v2 }
 0x3c1   : > { %v741_v5 = vpack.c.bf16 %v634_v3, %v634_v3 }
 0x3c2   : > { %644 = vst.msk [vmem:[%s238_s13] sm:$0xf] %vm643_vm4, %v740_v4 }
 0x3c3   : > { %645 = vst.msk [vmem:[%s238_s13 + $0x4] sm:$0xf] %vm643_vm4, %v741_v5 }
 0x3c4 PF: > { %s15_s18 = sadd.s32 1, %s827_s18  }
 0x3c5   : > { %p12_p4 = scmp.ge.s32.totalorder %s15_s18, 4  }
 0x3c7   :  { %14 = sbr.rel (!%p12_p4) target bundleno = 1 (0x1), region = 73 }

// kernel: _lambda_.133
= control target key start
LH: loop header
LB: loop body
LE: loop exit
PB: predicated region body
PF: predicated region fallthrough
CT: control target
= control target key end

     0   :  { %s773_s15 = smov 0   ;;  %s828_s0 = inlined_call_operand.vmem [shape: f32[2,16,16], index: 0, kind: input, shape index: {}]   ;;  %s829_s1 = inlined_call_operand.vmem [shape: f32[1,16], index: 1, kind: input, shape index: {}]   ;;  %s830_s2 = inlined_call_operand.vmem [shape: f32[1,16], index: 2, kind: input, shape index: {}]   ;;  %s831_s3 = inlined_call_operand.vmem [shape: f32[16,4], index: 3, kind: input, shape index: {}]   ;;  %s832_s4 = inlined_call_operand.vmem [shape: bf16[2,16,16], index: 4, kind: output, shape index: {}]  }
   0x1 LB: > { %s637_s16 = sadd.s32 4294967295, %s743_s15   ;;  %p641_p0 = scmp.ge.s32.totalorder %s743_s15, 1  ;;  %s743_s15 = sphi %s773_s15, %s14_s15  }
   0x2   : > { %p162_p1 = scmp.lt.s32.totalorder %s743_s15, 3 }
   0x4   : > { %p163_p2 = pnand %p641_p0, %p162_p1 }
   0x5   : > { %v200_v0 = vld [vmem:[%s831_s3] sm:$0xff] (!%p163_p2)  ;;  %v201_v1 = vld [vmem:[%s831_s3 + $0x8] sm:$0xff] (!%p163_p2)  ;;  %p188_p3 = scmp.lt.s32.totalorder (!%p163_p2), %s637_s16, 1  ;;  %vm202_vm0 = vcmask (!%p163_p2), 130048   ;;  %vm284_vm1 = vcmask (!%p163_p2), 31744   ;;  %v745_v5 = vmov (!%p163_p2), 0.0|0.0   ;;  %v374_v20 = vlaneseq (!%p163_p2) }
   0x6   : > { %166 = sbr.rel (%p163_p2) target bundleno = 933 (0x3a5), region = 36  ;;  %v708_v2 = vpack.c.bf16 (!%p163_p2), %v201_v1, %v200_v0  ;;  %vm797_vm2 = vmpackc.low (!%p163_p2), %vm284_vm1, %vm284_vm1  ;;  %vm746_vm3 = vmmov (!%p163_p2), 0   ;;  %v747_v7 = vmov (!%p163_p2), 0.0   ;;  %v656_v47 = vld [vmem:[%s829_s1] ss:$0 sm:$0xff] (!%p163_p2)  ;;  %vm579_vm4 = vcmask (!%p163_p2), 125952  }
   0x7   : > { %v375_v21 = vshrl.u32 (!%p163_p2), %v374_v20, 7  ;;  %v657_v50 = vld [vmem:[%s830_s2] ss:$0 sm:$0xff] (!%p163_p2) }
   0x8   : > { %709 = vmatprep.subr.bf16.mxu1 (!%p163_p2), %v708_v2  ;;  %717 = vmatprep.subr.bf16.mxu0 (!%p163_p2), %v708_v2 }
   0x9   : > { %711 = vmatpush3.bf16.msra.mxu1 (!%p163_p2), %v708_v2  ;;  %719 = vmatpush3.bf16.msra.mxu0 (!%p163_p2), %v708_v2  ;;  %v376_v22 = vsub.s32 (!%p163_p2), 0, %v375_v21 }
   0xa   : > { %712 = vmatprep.subr.bf16.mxu1 (!%p163_p2), %v745_v5  ;;  %720 = vmatprep.subr.bf16.mxu0 (!%p163_p2), %v745_v5 }
   0xd   : > { %s836_s16 = smov (!%p188_p3, %s637_s16), 1 }
   0xe   : > { %s662_s21 = sshll.u32 %s836_s16, 4  ;;  %s663_s29 = sshll.u32 %s836_s16, 3 }
   0xf   : > { %s192_s24 = scalar_lea.vmem %s828_s0, %s662_s21  ;;  %s197_s6 = scalar_lea.vmem %s832_s4, %s663_s29 }
  0x10   : > { %v198_v3 = vld [vmem:[%s192_s24] sm:$0xff]  ;;  %v199_v4 = vld [vmem:[%s192_s24 + $0x8] sm:$0xff] }
  0x11   : > { %684 = vmatprep.mubr.msk.f32.mxu1 %vm202_vm0, %v198_v3 }
  0x12   : > { %685 = vmatmul.mubr.msk.f32.vlgmr.msra.gmra.mrb[0].mxu1 %vm202_vm0, %v199_v4 }
  0x13   : > { %715 = vmatpush3.bf16.xpose.msk.msra.mxu1 %vm797_vm2, %v708_v2  ;;  %691 = vmatprep.mubr.msk.f32.mxu1 %vm746_vm3, %v747_v7 }
  0xe5   : > { %v686_v8 = vpop.f32.mrb[0].mxu1 }
  0xe6   : > { %v286_v9 = vsel %vm284_vm1, %v686_v8, 0.0  ;;  %v275_v10 = vpop.f32.mrb[1].mxu1 }
  0xe7   : > { %v285_v11 = vsel %vm284_vm1, %v275_v10, 0.0 }
  0xe8   : > { %v287_v12 = vadd.f32 %v286_v9, %v285_v11 }
  0xea   : > { %v288_v13 = vrot.slane %v287_v12, 4 }
  0xec   : > { %v289_v14 = vadd.f32 %v288_v13, %v287_v12 }
  0xee   : > { %v290_v15 = vrot.slane %v289_v14, 2 }
  0xf0   : > { %v291_v16 = vadd.f32 %v290_v15, %v289_v14 }
  0xf2   : > { %v292_v17 = vrot.slane %v291_v16, 1 }
  0xf4   : > { %v293_v18 = vadd.f32 %v292_v17, %v291_v16 }
  0xf6   : > { %v294_v19 = vmul.f32 0.015625, %v293_v18 }
  0xf8   : > { %692 = vmatmul.mubr.msk.f32.vlgmr.msra.gmra.mrb[2].mxu1 %vm284_vm1, %v294_v19 }
 0x1cb   : > { %v370_v23 = vpop.f32.mrb[2].mxu1 }
 0x1cc   : > { %v377_v24 = vrot.slane %v370_v23, %v376_v22  ;;  %v693_v25 = vpop.f32.mrb[3].mxu1 }
 0x1ce   : > { %v378_v26 = vsub.f32 %v198_v3, %v377_v24  ;;  %v379_v27 = vsub.f32 %v199_v4, %v377_v24 }
 0x1d0   : > { %v381_v28 = vmul.f32 %v379_v27, %v379_v27  ;;  %v380_v29 = vmul.f32 %v378_v26, %v378_v26 }
 0x1d2   : > { %698 = vmatprep.mubr.msk.f32.mxu0 %vm202_vm0, %v380_v29 }
 0x1d3   : > { %699 = vmatmul.mubr.msk.f32.vlgmr.msra.gmra.mrb[0].mxu0 %vm202_vm0, %v381_v28 }
 0x1d4   : > { %723 = vmatpush3.bf16.xpose.msk.msra.mxu0 %vm797_vm2, %v708_v2  ;;  %705 = vmatprep.mubr.msk.f32.mxu0 %vm746_vm3, %v747_v7 }
 0x2a6   : > { %v700_v30 = vpop.f32.mrb[0].mxu0 }
 0x2a7   : > { %v464_v31 = vsel %vm284_vm1, %v700_v30, 0.0  ;;  %v454_v32 = vpop.f32.mrb[1].mxu0 }
 0x2a8   : > { %v463_v33 = vsel %vm284_vm1, %v454_v32, 0.0 }
 0x2a9   : > { %v465_v34 = vadd.f32 %v464_v31, %v463_v33 }
 0x2ab   : > { %v466_v35 = vrot.slane %v465_v34, 4 }
 0x2ad   : > { %v467_v36 = vadd.f32 %v466_v35, %v465_v34 }
 0x2af   : > { %v468_v37 = vrot.slane %v467_v36, 2 }
 0x2b1   : > { %v469_v38 = vadd.f32 %v468_v37, %v467_v36 }
 0x2b3   : > { %v470_v39 = vrot.slane %v469_v38, 1 }
 0x2b5   : > { %v471_v40 = vadd.f32 %v470_v39, %v469_v38 }
 0x2b7   : > { %v472_v41 = vmul.f32 0.015625, %v471_v40 }
 0x2b9   : > { %706 = vmatmul.mubr.msk.f32.vlgmr.msra.gmra.mrb[2].mxu0 %vm284_vm1, %v472_v41 }
 0x38c   : > { %v542_v42 = vpop.f32.mrb[2].mxu0 }
 0x38d   : > { %v543_v43 = vadd.f32 1e-05, %v542_v42  ;;  %v707_v44 = vpop.f32.mrb[3].mxu0 }
 0x38f   : > { %735 = vrsqrt.f32 %v543_v43 }
 0x399   : > { %v736_v45 = vpop.eup %735 }
 0x39a   : > { %v550_v46 = vrot.slane %v736_v45, %v376_v22 }
 0x39c   : > { %v551_v48 = vmul.f32 %v550_v46, %v378_v26  ;;  %v552_v49 = vmul.f32 %v550_v46, %v379_v27 }
 0x39e   : > { %v560_v51 = vmul.f32 %v656_v47, %v551_v48  ;;  %v561_v52 = vmul.f32 %v656_v47, %v552_v49 }
 0x3a0   : > { %v569_v53 = vadd.f32 %v657_v50, %v560_v51  ;;  %v570_v54 = vadd.f32 %v657_v50, %v561_v52 }
 0x3a2   : > { %v664_v55 = vpack.c.bf16 %v569_v53, %v569_v53  ;;  %v665_v56 = vpack.c.bf16 %v570_v54, %v570_v54 }
 0x3a4   : > { %580 = vst.msk [vmem:[%s197_s6] sm:$0xf] %vm579_vm4, %v664_v55  ;;  %581 = vst.msk [vmem:[%s197_s6 + $0x4] sm:$0xf] %vm579_vm4, %v665_v56 }
 0x3a5 PF: > { %s14_s15 = sadd.s32 1, %s743_s15  }
 0x3a6   : > { %p11_p4 = scmp.ge.s32.totalorder %s14_s15, 4  }
 0x3a8   :  { %13 = sbr.rel (!%p11_p4) target bundleno = 1 (0x1), region = 66 }

// kernel: _lambda_.128
= control target key start
LH: loop header
LB: loop body
LE: loop exit
PB: predicated region body
PF: predicated region fallthrough
CT: control target
= control target key end

     0   :  { %s797_s15 = smov 0   ;;  %s852_s0 = inlined_call_operand.vmem [shape: f32[2,16,16], index: 0, kind: input, shape index: {}]   ;;  %s853_s1 = inlined_call_operand.vmem [shape: f32[1,16], index: 1, kind: input, shape index: {}]   ;;  %s854_s2 = inlined_call_operand.vmem [shape: f32[1,16], index: 2, kind: input, shape index: {}]   ;;  %s855_s3 = inlined_call_operand.vmem [shape: f32[16,4], index: 3, kind: input, shape index: {}]   ;;  %s856_s4 = inlined_call_operand.vmem [shape: bf16[2,16,16], index: 4, kind: output, shape index: {}]  }
   0x1 LB: > { %s651_s16 = sadd.s32 4294967295, %s767_s15   ;;  %p655_p0 = scmp.ge.s32.totalorder %s767_s15, 1  ;;  %s767_s15 = sphi %s797_s15, %s14_s15  }
   0x2   : > { %p162_p1 = scmp.lt.s32.totalorder %s767_s15, 3 }
   0x4   : > { %p163_p2 = pnand %p655_p0, %p162_p1 }
   0x5   : > { %v200_v0 = vld [vmem:[%s855_s3] sm:$0xff] (!%p163_p2)  ;;  %v201_v1 = vld [vmem:[%s855_s3 + $0x8] sm:$0xff] (!%p163_p2)  ;;  %p188_p3 = scmp.lt.s32.totalorder (!%p163_p2), %s651_s16, 1  ;;  %vm202_vm0 = vcmask (!%p163_p2), 130048   ;;  %vm284_vm1 = vcmask (!%p163_p2), 31744   ;;  %v769_v5 = vmov (!%p163_p2), 0.0|0.0   ;;  %v374_v20 = vlaneseq (!%p163_p2) }
   0x6   : > { %166 = sbr.rel (%p163_p2) target bundleno = 962 (0x3c2), region = 36  ;;  %v724_v2 = vpack.c.bf16 (!%p163_p2), %v201_v1, %v200_v0  ;;  %vm821_vm2 = vmpackc.low (!%p163_p2), %vm284_vm1, %vm284_vm1  ;;  %vm770_vm3 = vmmov (!%p163_p2), 0   ;;  %v771_v7 = vmov (!%p163_p2), 0.0   ;;  %v670_v47 = vld [vmem:[%s853_s1] ss:$0 sm:$0xff] (!%p163_p2)  ;;  %vm593_vm4 = vcmask (!%p163_p2), 125952  }
   0x7   : > { %v375_v21 = vshrl.u32 (!%p163_p2), %v374_v20, 7  ;;  %v671_v50 = vld [vmem:[%s854_s2] ss:$0 sm:$0xff] (!%p163_p2) }
   0x8   : > { %725 = vmatprep.subr.bf16.mxu1 (!%p163_p2), %v724_v2  ;;  %733 = vmatprep.subr.bf16.mxu0 (!%p163_p2), %v724_v2 }
   0x9   : > { %727 = vmatpush3.bf16.msra.mxu1 (!%p163_p2), %v724_v2  ;;  %735 = vmatpush3.bf16.msra.mxu0 (!%p163_p2), %v724_v2  ;;  %v376_v22 = vsub.s32 (!%p163_p2), 0, %v375_v21 }
   0xa   : > { %728 = vmatprep.subr.bf16.mxu1 (!%p163_p2), %v769_v5  ;;  %736 = vmatprep.subr.bf16.mxu0 (!%p163_p2), %v769_v5 }
   0xd   : > { %s860_s16 = smov (!%p188_p3, %s651_s16), 1 }
   0xe   : > { %s678_s21 = sshll.u32 %s860_s16, 4  ;;  %s679_s29 = sshll.u32 %s860_s16, 3 }
   0xf   : > { %s192_s24 = scalar_lea.vmem %s852_s0, %s678_s21  ;;  %s197_s6 = scalar_lea.vmem %s856_s4, %s679_s29 }
  0x10   : > { %v198_v3 = vld [vmem:[%s192_s24] sm:$0xff]  ;;  %v199_v4 = vld [vmem:[%s192_s24 + $0x8] sm:$0xff] }
  0x11   : > { %700 = vmatprep.mubr.msk.f32.mxu1 %vm202_vm0, %v198_v3 }
  0x12   : > { %701 = vmatmul.mubr.msk.f32.vlgmr.msra.gmra.mrb[0].mxu1 %vm202_vm0, %v199_v4 }
  0x13   : > { %731 = vmatpush3.bf16.xpose.msk.msra.mxu1 %vm821_vm2, %v724_v2  ;;  %707 = vmatprep.mubr.msk.f32.mxu1 %vm770_vm3, %v771_v7 }
  0xe5   : > { %v702_v8 = vpop.f32.mrb[0].mxu1 }
  0xe6   : > { %v286_v9 = vsel %vm284_vm1, %v702_v8, 0.0  ;;  %v275_v10 = vpop.f32.mrb[1].mxu1 }
  0xe7   : > { %v285_v11 = vsel %vm284_vm1, %v275_v10, 0.0 }
  0xe8   : > { %v287_v12 = vadd.f32 %v286_v9, %v285_v11 }
  0xea   : > { %v288_v13 = vrot.slane %v287_v12, 4 }
  0xec   : > { %v289_v14 = vadd.f32 %v288_v13, %v287_v12 }
  0xee   : > { %v290_v15 = vrot.slane %v289_v14, 2 }
  0xf0   : > { %v291_v16 = vadd.f32 %v290_v15, %v289_v14 }
  0xf2   : > { %v292_v17 = vrot.slane %v291_v16, 1 }
  0xf4   : > { %v293_v18 = vadd.f32 %v292_v17, %v291_v16 }
  0xf6   : > { %v294_v19 = vmul.f32 0.015625, %v293_v18 }
  0xf8   : > { %708 = vmatmul.mubr.msk.f32.vlgmr.msra.gmra.mrb[2].mxu1 %vm284_vm1, %v294_v19 }
 0x1cb   : > { %v370_v23 = vpop.f32.mrb[2].mxu1 }
 0x1cc   : > { %v377_v24 = vrot.slane %v370_v23, %v376_v22  ;;  %v709_v25 = vpop.f32.mrb[3].mxu1 }
 0x1ce   : > { %v378_v26 = vsub.f32 %v198_v3, %v377_v24  ;;  %v379_v27 = vsub.f32 %v199_v4, %v377_v24 }
 0x1d0   : > { %v381_v28 = vmul.f32 %v379_v27, %v379_v27  ;;  %v380_v29 = vmul.f32 %v378_v26, %v378_v26 }
 0x1d2   : > { %714 = vmatprep.mubr.msk.f32.mxu0 %vm202_vm0, %v380_v29 }
 0x1d3   : > { %715 = vmatmul.mubr.msk.f32.vlgmr.msra.gmra.mrb[0].mxu0 %vm202_vm0, %v381_v28 }
 0x1d4   : > { %739 = vmatpush3.bf16.xpose.msk.msra.mxu0 %vm821_vm2, %v724_v2  ;;  %721 = vmatprep.mubr.msk.f32.mxu0 %vm770_vm3, %v771_v7 }
 0x2a6   : > { %v716_v30 = vpop.f32.mrb[0].mxu0 }
 0x2a7   : > { %v464_v31 = vsel %vm284_vm1, %v716_v30, 0.0  ;;  %v454_v32 = vpop.f32.mrb[1].mxu0 }
 0x2a8   : > { %v463_v33 = vsel %vm284_vm1, %v454_v32, 0.0 }
 0x2a9   : > { %v465_v34 = vadd.f32 %v464_v31, %v463_v33 }
 0x2ab   : > { %v466_v35 = vrot.slane %v465_v34, 4 }
 0x2ad   : > { %v467_v36 = vadd.f32 %v466_v35, %v465_v34 }
 0x2af   : > { %v468_v37 = vrot.slane %v467_v36, 2 }
 0x2b1   : > { %v469_v38 = vadd.f32 %v468_v37, %v467_v36 }
 0x2b3   : > { %v470_v39 = vrot.slane %v469_v38, 1 }
 0x2b5   : > { %v471_v40 = vadd.f32 %v470_v39, %v469_v38 }
 0x2b7   : > { %v472_v41 = vmul.f32 0.015625, %v471_v40 }
 0x2b9   : > { %722 = vmatmul.mubr.msk.f32.vlgmr.msra.gmra.mrb[2].mxu0 %vm284_vm1, %v472_v41 }
 0x38c   : > { %v542_v42 = vpop.f32.mrb[2].mxu0 }
 0x38d   : > { %v543_v43 = vadd.f32 1e-05, %v542_v42  ;;  %v723_v44 = vpop.f32.mrb[3].mxu0 }
 0x38f   : > { %751 = vrsqrt.f32 %v543_v43 }
 0x399   : > { %v752_v45 = vpop.eup %751 }
 0x39a   : > { %v550_v46 = vrot.slane %v752_v45, %v376_v22 }
 0x39c   : > { %v551_v48 = vmul.f32 %v550_v46, %v378_v26  ;;  %v552_v49 = vmul.f32 %v550_v46, %v379_v27 }
 0x39e   : > { %v560_v51 = vmul.f32 %v670_v47, %v551_v48  ;;  %v561_v52 = vmul.f32 %v670_v47, %v552_v49 }
 0x3a0   : > { %v569_v53 = vadd.f32 %v671_v50, %v560_v51  ;;  %v570_v54 = vadd.f32 %v671_v50, %v561_v52 }
 0x3a2   : > { %v672_v55 = vmul.f32 -1.442695, %v569_v53  ;;  %v673_v56 = vmul.f32 -1.442695, %v570_v54 }
 0x3a4   : > { %753 = vpow2.f32 %v672_v55 }
 0x3a5   : > { %755 = vpow2.f32 %v673_v56 }
 0x3ae   : > { %v754_v57 = vpop.eup %753 }
 0x3af   : > { %v756_v58 = vpop.eup %755  ;;  %v577_v59 = vadd.f32 1.0, %v754_v57 }
 0x3b0   : > { %v578_v60 = vadd.f32 1.0, %v756_v58 }
 0x3b1   : > { %757 = vrcp.f32 %v577_v59 }
 0x3b2   : > { %759 = vrcp.f32 %v578_v60 }
 0x3bb   : > { %v758_v61 = vpop.eup %757 }
 0x3bc   : > { %v760_v62 = vpop.eup %759  ;;  %v583_v63 = vmul.f32 %v758_v61, %v569_v53 }
 0x3bd   : > { %v584_v0 = vmul.f32 %v760_v62, %v570_v54 }
 0x3be   : > { %v680_v1 = vpack.c.bf16 %v583_v63, %v583_v63 }
 0x3bf   : > { %v681_v2 = vpack.c.bf16 %v584_v0, %v584_v0 }
 0x3c0   : > { %594 = vst.msk [vmem:[%s197_s6] sm:$0xf] %vm593_vm4, %v680_v1 }
 0x3c1   : > { %595 = vst.msk [vmem:[%s197_s6 + $0x4] sm:$0xf] %vm593_vm4, %v681_v2 }
 0x3c2 PF: > { %s14_s15 = sadd.s32 1, %s767_s15  }
 0x3c3   : > { %p11_p4 = scmp.ge.s32.totalorder %s14_s15, 4  }
 0x3c5   :  { %13 = sbr.rel (!%p11_p4) target bundleno = 1 (0x1), region = 66 }

// kernel: _lambda_.118
= control target key start
LH: loop header
LB: loop body
LE: loop exit
PB: predicated region body
PF: predicated region fallthrough
CT: control target
= control target key end

     0   :  { %s892_s1 = inlined_call_operand.vmem [shape: bf16[256,128], index: 1, kind: input, shape index: {}]   ;;  %s893_s0 = inlined_call_operand.vmem [shape: bf16[128,256], index: 0, kind: input, shape index: {}]   ;;  %s894_s2 = inlined_call_operand.vmem [shape: f32[1,128], index: 2, kind: input, shape index: {}]   ;;  %s895_s3 = inlined_call_operand.vmem [shape: f32[128,128], index: 3, kind: input, shape index: {}]   ;;  %s896_s4 = inlined_call_operand.vmem [shape: f32[128,128], index: 4, kind: output, shape index: {}]  }
   0x1   :  { %v614_v0 = vld [vmem:[%s892_s1 + $0x40] sm:$0xff]   ;;  %v616_v2 = vld [vmem:[%s892_s1 + $0x48] sm:$0xff]   ;;  %v618_v4 = vld [vmem:[%s892_s1 + $0x50] sm:$0xff]  }
   0x2   :  { %v615_v1 = vld [vmem:[%s892_s1] sm:$0xff]   ;;  %534 = vmatprep.subr.bf16.mxu0 %v614_v0  ;;  %598 = vmatprep.subr.bf16.mxu1 %v614_v0  ;;  %v617_v3 = vld [vmem:[%s892_s1 + $0x8] sm:$0xff]   ;;  %v619_v5 = vld [vmem:[%s892_s1 + $0x10] sm:$0xff]  }
   0x3   :  { %535 = vmatpush3.bf16.msra.mxu0 %v615_v1  ;;  %606 = vmatpush3.bf16.msra.mxu1 %v615_v1  ;;  %v620_v6 = vld [vmem:[%s892_s1 + $0x58] sm:$0xff]   ;;  %v622_v8 = vld [vmem:[%s892_s1 + $0x60] sm:$0xff]   ;;  %v624_v10 = vld [vmem:[%s892_s1 + $0x68] sm:$0xff]  }
   0x4   :  { %536 = vmatprep.subr.bf16.mxu0 %v616_v2  ;;  %599 = vmatprep.subr.bf16.mxu1 %v616_v2  ;;  %v621_v7 = vld [vmem:[%s892_s1 + $0x18] sm:$0xff]   ;;  %v623_v9 = vld [vmem:[%s892_s1 + $0x20] sm:$0xff]   ;;  %v625_v13 = vld [vmem:[%s892_s1 + $0x28] sm:$0xff]  }
   0x5   :  { %v632_v11 = vld [vmem:[%s893_s0 + $0x4] ss:$8 sps:$4 sm:$0xff]   ;;  %v626_v14 = vld [vmem:[%s892_s1 + $0x70] sm:$0xff]   ;;  %v628_v16 = vld [vmem:[%s892_s1 + $0x78] sm:$0xff]  }
   0x6   :  { %v635_v12 = vld [vmem:[%s893_s0 + $0x44] ss:$8 sps:$4 sm:$0xff]   ;;  %310 = vmatprep.mubr.bf16.mxu0 %v632_v11  ;;  %v627_v15 = vld [vmem:[%s892_s1 + $0x30] sm:$0xff]   ;;  %v629_v17 = vld [vmem:[%s892_s1 + $0x38] sm:$0xff]  }
   0x7   :  { %537 = vmatpush3.bf16.msra.mxu0 %v617_v3  ;;  %607 = vmatpush3.bf16.msra.mxu1 %v617_v3  ;;  %v630_v18 = vld [vmem:[%s893_s0] ss:$8 sps:$4 sm:$0xff]   ;;  %v636_v20 = vld [vmem:[%s893_s0 + $0x14] ss:$8 sps:$4 sm:$0xff]   ;;  %v640_v22 = vld [vmem:[%s893_s0 + $0x10] ss:$8 sps:$4 sm:$0xff]  }
   0x8   :  { %538 = vmatprep.subr.bf16.mxu0 %v618_v4  ;;  %600 = vmatprep.subr.bf16.mxu1 %v618_v4  ;;  %v633_v19 = vld [vmem:[%s893_s0 + $0x40] ss:$8 sps:$4 sm:$0xff]   ;;  %v638_v21 = vld [vmem:[%s893_s0 + $0x54] ss:$8 sps:$4 sm:$0xff]   ;;  %v641_v23 = vld [vmem:[%s893_s0 + $0x50] ss:$8 sps:$4 sm:$0xff]  }
   0x9   :  { %342 = vmatprep.mubr.bf16.mxu1 %v635_v12  ;;  %v642_v24 = vld [vmem:[%s893_s0 + $0x24] ss:$8 sps:$4 sm:$0xff]   ;;  %v646_v26 = vld [vmem:[%s893_s0 + $0x20] ss:$8 sps:$4 sm:$0xff]   ;;  %v648_v28 = vld [vmem:[%s893_s0 + $0x34] ss:$8 sps:$4 sm:$0xff]  }
   0xa   :  { %v644_v25 = vld [vmem:[%s893_s0 + $0x64] ss:$8 sps:$4 sm:$0xff]   ;;  %v647_v27 = vld [vmem:[%s893_s0 + $0x60] ss:$8 sps:$4 sm:$0xff]   ;;  %v650_v29 = vld [vmem:[%s893_s0 + $0x74] ss:$8 sps:$4 sm:$0xff]  }
   0xb   :  { %539 = vmatpush3.bf16.msra.mxu0 %v619_v5  ;;  %608 = vmatpush3.bf16.msra.mxu1 %v619_v5  ;;  %v652_v30 = vld [vmem:[%s893_s0 + $0x30] ss:$8 sps:$4 sm:$0xff]   ;;  %v778_v35 = vld [vmem:[%s894_s2] ss:$0 sm:$0xff]  ;;  %v450_v49 = vld [vmem:[%s895_s3 + $0x8] sm:$0xff] }
   0xc   :  { %540 = vmatprep.subr.bf16.mxu0 %v620_v6  ;;  %601 = vmatprep.subr.bf16.mxu1 %v620_v6  ;;  %v653_v31 = vld [vmem:[%s893_s0 + $0x70] ss:$8 sps:$4 sm:$0xff]   ;;  %v449_v41 = vld [vmem:[%s895_s3] sm:$0xff]  ;;  %v458_v50 = vld [vmem:[%s895_s3 + $0x48] sm:$0xff] }
   0xd   :  { %v457_v42 = vld [vmem:[%s895_s3 + $0x40] sm:$0xff]  ;;  %v451_v1 = vld [vmem:[%s895_s3 + $0x10] sm:$0xff] }
   0xe   :  { %v459_v2 = vld [vmem:[%s895_s3 + $0x50] sm:$0xff] }
   0xf   :  { %541 = vmatpush3.bf16.msra.mxu0 %v621_v7  ;;  %609 = vmatpush3.bf16.msra.mxu1 %v621_v7 }
  0x10   :  { %542 = vmatprep.subr.bf16.mxu0 %v622_v8  ;;  %602 = vmatprep.subr.bf16.mxu1 %v622_v8 }
  0x13   :  { %543 = vmatpush3.bf16.msra.mxu0 %v623_v9  ;;  %610 = vmatpush3.bf16.msra.mxu1 %v623_v9  ;;  %v452_v9 = vld [vmem:[%s895_s3 + $0x18] sm:$0xff] }
  0x14   :  { %544 = vmatprep.subr.bf16.mxu0 %v624_v10  ;;  %603 = vmatprep.subr.bf16.mxu1 %v624_v10  ;;  %v460_v10 = vld [vmem:[%s895_s3 + $0x58] sm:$0xff] }
  0x17   :  { %545 = vmatpush3.bf16.msra.mxu0 %v625_v13  ;;  %611 = vmatpush3.bf16.msra.mxu1 %v625_v13 }
  0x18   :  { %546 = vmatprep.subr.bf16.mxu0 %v626_v14  ;;  %604 = vmatprep.subr.bf16.mxu1 %v626_v14 }
  0x1b   :  { %547 = vmatpush3.bf16.msra.mxu0 %v627_v15  ;;  %612 = vmatpush3.bf16.msra.mxu1 %v627_v15 }
  0x1c   :  { %548 = vmatprep.subr.bf16.mxu0 %v628_v16  ;;  %605 = vmatprep.subr.bf16.mxu1 %v628_v16 }
  0x1f   :  { %549 = vmatpush3.bf16.msra.mxu0 %v629_v17  ;;  %613 = vmatpush3.bf16.msra.mxu1 %v629_v17 }
  0x22   :  { %311 = vmatmul.mubr.bf16.vlgmr.msra.gmra.mrb[0].mxu0 %v630_v18  ;;  %343 = vmatmul.mubr.bf16.vlgmr.msra.gmra.mrb[0].mxu1 %v633_v19 }
  0x23   :  { %318 = vmatprep.mubr.bf16.mxu0 %v636_v20  ;;  %350 = vmatprep.mubr.bf16.mxu1 %v638_v21 }
  0x2a   :  { %319 = vmatmul.mubr.bf16.gmra.mrb[4].mxu0 %v640_v22  ;;  %351 = vmatmul.mubr.bf16.gmra.mrb[4].mxu1 %v641_v23 }
  0x2b   :  { %326 = vmatprep.mubr.bf16.mxu0 %v642_v24  ;;  %358 = vmatprep.mubr.bf16.mxu1 %v644_v25  ;;  %v453_v25 = vld [vmem:[%s895_s3 + $0x20] sm:$0xff] }
  0x32   :  { %327 = vmatmul.mubr.bf16.gmra.mrb[8].mxu0 %v646_v26  ;;  %359 = vmatmul.mubr.bf16.gmra.mrb[8].mxu1 %v647_v27  ;;  %v461_v26 = vld [vmem:[%s895_s3 + $0x60] sm:$0xff] }
  0x33   :  { %334 = vmatprep.mubr.bf16.mxu0 %v648_v28  ;;  %366 = vmatprep.mubr.bf16.mxu1 %v650_v29 }
  0x3a   :  { %335 = vmatmul.mubr.bf16.gmra.mrb[12].mxu0 %v652_v30  ;;  %367 = vmatmul.mubr.bf16.gmra.mrb[12].mxu1 %v653_v31 }
  0xf5   :  { %v550_v32 = vpop.f32.mrb[0].mxu0  ;;  %v574_v33 = vpop.f32.mrb[0].mxu1 }
  0xf6   :  { %v551_v34 = vpop.f32.mrb[1].mxu0  ;;  %v575_v36 = vpop.f32.mrb[1].mxu1 }
  0xf7   :  { %v552_v37 = vadd.f32 %v551_v34, %v550_v32  ;;  %v576_v38 = vadd.f32 %v575_v36, %v574_v33  ;;  %v553_v39 = vpop.f32.mrb[2].mxu0  ;;  %v577_v40 = vpop.f32.mrb[2].mxu1  ;;  %v454_v33 = vld [vmem:[%s895_s3 + $0x28] sm:$0xff] }
  0xf8   :  { %v554_v43 = vpop.f32.mrb[3].mxu0  ;;  %v578_v44 = vpop.f32.mrb[3].mxu1  ;;  %v462_v34 = vld [vmem:[%s895_s3 + $0x68] sm:$0xff] }
  0xf9   :  { %v433_v45 = vadd.f32 %v552_v37, %v778_v35  ;;  %v441_v46 = vadd.f32 %v576_v38, %v778_v35  ;;  %v555_v47 = vadd.f32 %v554_v43, %v553_v39  ;;  %v579_v48 = vadd.f32 %v578_v44, %v577_v40 }
  0xfb   :  { %v465_v51 = vadd.f32 %v449_v41, %v433_v45  ;;  %v473_v52 = vadd.f32 %v457_v42, %v441_v46  ;;  %v434_v53 = vadd.f32 %v555_v47, %v778_v35  ;;  %v442_v54 = vadd.f32 %v579_v48, %v778_v35 }
  0xfd   :  { %481 = vst [vmem:[%s896_s4] sm:$0xff] %v465_v51  ;;  %489 = vst [vmem:[%s896_s4 + $0x40] sm:$0xff] %v473_v52  ;;  %v466_v55 = vadd.f32 %v450_v49, %v434_v53  ;;  %v474_v56 = vadd.f32 %v458_v50, %v442_v54  ;;  %v556_v57 = vpop.f32.mrb[4].mxu0  ;;  %v580_v58 = vpop.f32.mrb[4].mxu1  ;;  %v455_v50 = vld [vmem:[%s895_s3 + $0x30] sm:$0xff] }
  0xfe   :  { %v557_v59 = vpop.f32.mrb[5].mxu0  ;;  %v581_v60 = vpop.f32.mrb[5].mxu1  ;;  %v463_v51 = vld [vmem:[%s895_s3 + $0x70] sm:$0xff] }
  0xff   :  { %482 = vst [vmem:[%s896_s4 + $0x8] sm:$0xff] %v466_v55  ;;  %490 = vst [vmem:[%s896_s4 + $0x48] sm:$0xff] %v474_v56  ;;  %v558_v61 = vadd.f32 %v557_v59, %v556_v57  ;;  %v582_v62 = vadd.f32 %v581_v60, %v580_v58  ;;  %v559_v63 = vpop.f32.mrb[6].mxu0  ;;  %v583_v0 = vpop.f32.mrb[6].mxu1  ;;  %v456_v58 = vld [vmem:[%s895_s3 + $0x38] sm:$0xff] }
 0x100   :  { %v560_v3 = vpop.f32.mrb[7].mxu0  ;;  %v584_v4 = vpop.f32.mrb[7].mxu1  ;;  %v464_v59 = vld [vmem:[%s895_s3 + $0x78] sm:$0xff] }
 0x101   :  { %v435_v5 = vadd.f32 %v558_v61, %v778_v35  ;;  %v443_v6 = vadd.f32 %v582_v62, %v778_v35  ;;  %v561_v7 = vadd.f32 %v560_v3, %v559_v63  ;;  %v585_v8 = vadd.f32 %v584_v4, %v583_v0 }
 0x103   :  { %v467_v11 = vadd.f32 %v451_v1, %v435_v5  ;;  %v475_v12 = vadd.f32 %v459_v2, %v443_v6  ;;  %v436_v13 = vadd.f32 %v561_v7, %v778_v35  ;;  %v444_v14 = vadd.f32 %v585_v8, %v778_v35 }
 0x105   :  { %483 = vst [vmem:[%s896_s4 + $0x10] sm:$0xff] %v467_v11  ;;  %491 = vst [vmem:[%s896_s4 + $0x50] sm:$0xff] %v475_v12  ;;  %v468_v15 = vadd.f32 %v452_v9, %v436_v13  ;;  %v476_v16 = vadd.f32 %v460_v10, %v444_v14  ;;  %v562_v17 = vpop.f32.mrb[8].mxu0  ;;  %v586_v18 = vpop.f32.mrb[8].mxu1 }
 0x106   :  { %v563_v19 = vpop.f32.mrb[9].mxu0  ;;  %v587_v20 = vpop.f32.mrb[9].mxu1 }
 0x107   :  { %484 = vst [vmem:[%s896_s4 + $0x18] sm:$0xff] %v468_v15  ;;  %492 = vst [vmem:[%s896_s4 + $0x58] sm:$0xff] %v476_v16  ;;  %v564_v21 = vadd.f32 %v563_v19, %v562_v17  ;;  %v588_v22 = vadd.f32 %v587_v20, %v586_v18  ;;  %v565_v23 = vpop.f32.mrb[10].mxu0  ;;  %v589_v24 = vpop.f32.mrb[10].mxu1 }
 0x108   :  { %v566_v27 = vpop.f32.mrb[11].mxu0  ;;  %v590_v28 = vpop.f32.mrb[11].mxu1 }
 0x109   :  { %v437_v29 = vadd.f32 %v564_v21, %v778_v35  ;;  %v445_v30 = vadd.f32 %v588_v22, %v778_v35  ;;  %v567_v31 = vadd.f32 %v566_v27, %v565_v23  ;;  %v591_v32 = vadd.f32 %v590_v28, %v589_v24 }
 0x10b   :  { %v469_v36 = vadd.f32 %v453_v25, %v437_v29  ;;  %v477_v37 = vadd.f32 %v461_v26, %v445_v30  ;;  %v438_v38 = vadd.f32 %v567_v31, %v778_v35  ;;  %v446_v39 = vadd.f32 %v591_v32, %v778_v35 }
 0x10d   :  { %485 = vst [vmem:[%s896_s4 + $0x20] sm:$0xff] %v469_v36  ;;  %493 = vst [vmem:[%s896_s4 + $0x60] sm:$0xff] %v477_v37  ;;  %v470_v40 = vadd.f32 %v454_v33, %v438_v38  ;;  %v478_v41 = vadd.f32 %v462_v34, %v446_v39  ;;  %v568_v42 = vpop.f32.mrb[12].mxu0  ;;  %v592_v43 = vpop.f32.mrb[12].mxu1 }
 0x10e   :  { %v569_v44 = vpop.f32.mrb[13].mxu0  ;;  %v593_v45 = vpop.f32.mrb[13].mxu1 }
 0x10f   :  { %486 = vst [vmem:[%s896_s4 + $0x28] sm:$0xff] %v470_v40  ;;  %494 = vst [vmem:[%s896_s4 + $0x68] sm:$0xff] %v478_v41  ;;  %v570_v46 = vadd.f32 %v569_v44, %v568_v42  ;;  %v594_v47 = vadd.f32 %v593_v45, %v592_v43  ;;  %v571_v48 = vpop.f32.mrb[14].mxu0  ;;  %v595_v49 = vpop.f32.mrb[14].mxu1 }
 0x110   :  { %v572_v52 = vpop.f32.mrb[15].mxu0  ;;  %v596_v53 = vpop.f32.mrb[15].mxu1 }
 0x111   :  { %v439_v54 = vadd.f32 %v570_v46, %v778_v35  ;;  %v447_v55 = vadd.f32 %v594_v47, %v778_v35  ;;  %v573_v56 = vadd.f32 %v572_v52, %v571_v48  ;;  %v597_v57 = vadd.f32 %v596_v53, %v595_v49 }
 0x113   :  { %v471_v60 = vadd.f32 %v455_v50, %v439_v54  ;;  %v479_v61 = vadd.f32 %v463_v51, %v447_v55  ;;  %v440_v62 = vadd.f32 %v573_v56, %v778_v35  ;;  %v448_v63 = vadd.f32 %v597_v57, %v778_v35 }
 0x115   :  { %487 = vst [vmem:[%s896_s4 + $0x30] sm:$0xff] %v471_v60  ;;  %495 = vst [vmem:[%s896_s4 + $0x70] sm:$0xff] %v479_v61  ;;  %v472_v0 = vadd.f32 %v456_v58, %v440_v62  ;;  %v480_v1 = vadd.f32 %v464_v59, %v448_v63 }
 0x117   :  { %488 = vst [vmem:[%s896_s4 + $0x38] sm:$0xff] %v472_v0  ;;  %496 = vst [vmem:[%s896_s4 + $0x78] sm:$0xff] %v480_v1 }

// kernel: _lambda_.129
= control target key start
LH: loop header
LB: loop body
LE: loop exit
PB: predicated region body
PF: predicated region fallthrough
CT: control target
= control target key end

     0   :  { %s804_s1 = inlined_call_operand.vmem [shape: bf16[256,128], index: 1, kind: input, shape index: {}]   ;;  %s805_s0 = inlined_call_operand.vmem [shape: bf16[128,256], index: 0, kind: input, shape index: {}]   ;;  %s806_s2 = inlined_call_operand.vmem [shape: f32[1,128], index: 2, kind: input, shape index: {}]   ;;  %s807_s3 = inlined_call_operand.vmem [shape: f32[128,128], index: 3, kind: output, shape index: {}]  }
   0x1   :  { %v579_v0 = vld [vmem:[%s804_s1 + $0x40] sm:$0xff]   ;;  %v581_v2 = vld [vmem:[%s804_s1 + $0x48] sm:$0xff]   ;;  %v583_v4 = vld [vmem:[%s804_s1 + $0x50] sm:$0xff]  }
   0x2   :  { %v580_v1 = vld [vmem:[%s804_s1] sm:$0xff]   ;;  %499 = vmatprep.subr.bf16.mxu0 %v579_v0  ;;  %563 = vmatprep.subr.bf16.mxu1 %v579_v0  ;;  %v582_v3 = vld [vmem:[%s804_s1 + $0x8] sm:$0xff]   ;;  %v584_v5 = vld [vmem:[%s804_s1 + $0x10] sm:$0xff]  }
   0x3   :  { %500 = vmatpush3.bf16.msra.mxu0 %v580_v1  ;;  %571 = vmatpush3.bf16.msra.mxu1 %v580_v1  ;;  %v585_v6 = vld [vmem:[%s804_s1 + $0x58] sm:$0xff]   ;;  %v587_v8 = vld [vmem:[%s804_s1 + $0x60] sm:$0xff]   ;;  %v589_v10 = vld [vmem:[%s804_s1 + $0x68] sm:$0xff]  }
   0x4   :  { %501 = vmatprep.subr.bf16.mxu0 %v581_v2  ;;  %564 = vmatprep.subr.bf16.mxu1 %v581_v2  ;;  %v586_v7 = vld [vmem:[%s804_s1 + $0x18] sm:$0xff]   ;;  %v588_v9 = vld [vmem:[%s804_s1 + $0x20] sm:$0xff]   ;;  %v590_v13 = vld [vmem:[%s804_s1 + $0x28] sm:$0xff]  }
   0x5   :  { %v597_v11 = vld [vmem:[%s805_s0 + $0x4] ss:$8 sps:$4 sm:$0xff]   ;;  %v591_v14 = vld [vmem:[%s804_s1 + $0x70] sm:$0xff]   ;;  %v593_v16 = vld [vmem:[%s804_s1 + $0x78] sm:$0xff]  }
   0x6   :  { %v600_v12 = vld [vmem:[%s805_s0 + $0x44] ss:$8 sps:$4 sm:$0xff]   ;;  %307 = vmatprep.mubr.bf16.mxu0 %v597_v11  ;;  %v592_v15 = vld [vmem:[%s804_s1 + $0x30] sm:$0xff]   ;;  %v594_v17 = vld [vmem:[%s804_s1 + $0x38] sm:$0xff]  }
   0x7   :  { %502 = vmatpush3.bf16.msra.mxu0 %v582_v3  ;;  %572 = vmatpush3.bf16.msra.mxu1 %v582_v3  ;;  %v595_v18 = vld [vmem:[%s805_s0] ss:$8 sps:$4 sm:$0xff]   ;;  %v601_v20 = vld [vmem:[%s805_s0 + $0x14] ss:$8 sps:$4 sm:$0xff]   ;;  %v605_v22 = vld [vmem:[%s805_s0 + $0x10] ss:$8 sps:$4 sm:$0xff]  }
   0x8   :  { %503 = vmatprep.subr.bf16.mxu0 %v583_v4  ;;  %565 = vmatprep.subr.bf16.mxu1 %v583_v4  ;;  %v598_v19 = vld [vmem:[%s805_s0 + $0x40] ss:$8 sps:$4 sm:$0xff]   ;;  %v603_v21 = vld [vmem:[%s805_s0 + $0x54] ss:$8 sps:$4 sm:$0xff]   ;;  %v606_v23 = vld [vmem:[%s805_s0 + $0x50] ss:$8 sps:$4 sm:$0xff]  }
   0x9   :  { %339 = vmatprep.mubr.bf16.mxu1 %v600_v12  ;;  %v607_v24 = vld [vmem:[%s805_s0 + $0x24] ss:$8 sps:$4 sm:$0xff]   ;;  %v611_v26 = vld [vmem:[%s805_s0 + $0x20] ss:$8 sps:$4 sm:$0xff]   ;;  %v613_v28 = vld [vmem:[%s805_s0 + $0x34] ss:$8 sps:$4 sm:$0xff]  }
   0xa   :  { %v609_v25 = vld [vmem:[%s805_s0 + $0x64] ss:$8 sps:$4 sm:$0xff]   ;;  %v612_v27 = vld [vmem:[%s805_s0 + $0x60] ss:$8 sps:$4 sm:$0xff]   ;;  %v615_v29 = vld [vmem:[%s805_s0 + $0x74] ss:$8 sps:$4 sm:$0xff]  }
   0xb   :  { %504 = vmatpush3.bf16.msra.mxu0 %v584_v5  ;;  %573 = vmatpush3.bf16.msra.mxu1 %v584_v5  ;;  %v617_v30 = vld [vmem:[%s805_s0 + $0x30] ss:$8 sps:$4 sm:$0xff]   ;;  %v738_v35 = vld [vmem:[%s806_s2] ss:$0 sm:$0xff] }
   0xc   :  { %505 = vmatprep.subr.bf16.mxu0 %v585_v6  ;;  %566 = vmatprep.subr.bf16.mxu1 %v585_v6  ;;  %v618_v31 = vld [vmem:[%s805_s0 + $0x70] ss:$8 sps:$4 sm:$0xff]  }
   0xf   :  { %506 = vmatpush3.bf16.msra.mxu0 %v586_v7  ;;  %574 = vmatpush3.bf16.msra.mxu1 %v586_v7 }
  0x10   :  { %507 = vmatprep.subr.bf16.mxu0 %v587_v8  ;;  %567 = vmatprep.subr.bf16.mxu1 %v587_v8 }
  0x13   :  { %508 = vmatpush3.bf16.msra.mxu0 %v588_v9  ;;  %575 = vmatpush3.bf16.msra.mxu1 %v588_v9 }
  0x14   :  { %509 = vmatprep.subr.bf16.mxu0 %v589_v10  ;;  %568 = vmatprep.subr.bf16.mxu1 %v589_v10 }
  0x17   :  { %510 = vmatpush3.bf16.msra.mxu0 %v590_v13  ;;  %576 = vmatpush3.bf16.msra.mxu1 %v590_v13 }
  0x18   :  { %511 = vmatprep.subr.bf16.mxu0 %v591_v14  ;;  %569 = vmatprep.subr.bf16.mxu1 %v591_v14 }
  0x1b   :  { %512 = vmatpush3.bf16.msra.mxu0 %v592_v15  ;;  %577 = vmatpush3.bf16.msra.mxu1 %v592_v15 }
  0x1c   :  { %513 = vmatprep.subr.bf16.mxu0 %v593_v16  ;;  %570 = vmatprep.subr.bf16.mxu1 %v593_v16 }
  0x1f   :  { %514 = vmatpush3.bf16.msra.mxu0 %v594_v17  ;;  %578 = vmatpush3.bf16.msra.mxu1 %v594_v17 }
  0x22   :  { %308 = vmatmul.mubr.bf16.vlgmr.msra.gmra.mrb[0].mxu0 %v595_v18  ;;  %340 = vmatmul.mubr.bf16.vlgmr.msra.gmra.mrb[0].mxu1 %v598_v19 }
  0x23   :  { %315 = vmatprep.mubr.bf16.mxu0 %v601_v20  ;;  %347 = vmatprep.mubr.bf16.mxu1 %v603_v21 }
  0x2a   :  { %316 = vmatmul.mubr.bf16.gmra.mrb[4].mxu0 %v605_v22  ;;  %348 = vmatmul.mubr.bf16.gmra.mrb[4].mxu1 %v606_v23 }
  0x2b   :  { %323 = vmatprep.mubr.bf16.mxu0 %v607_v24  ;;  %355 = vmatprep.mubr.bf16.mxu1 %v609_v25 }
  0x32   :  { %324 = vmatmul.mubr.bf16.gmra.mrb[8].mxu0 %v611_v26  ;;  %356 = vmatmul.mubr.bf16.gmra.mrb[8].mxu1 %v612_v27 }
  0x33   :  { %331 = vmatprep.mubr.bf16.mxu0 %v613_v28  ;;  %363 = vmatprep.mubr.bf16.mxu1 %v615_v29 }
  0x3a   :  { %332 = vmatmul.mubr.bf16.gmra.mrb[12].mxu0 %v617_v30  ;;  %364 = vmatmul.mubr.bf16.gmra.mrb[12].mxu1 %v618_v31 }
  0xf5   :  { %v515_v32 = vpop.f32.mrb[0].mxu0  ;;  %v539_v33 = vpop.f32.mrb[0].mxu1 }
  0xf6   :  { %v516_v34 = vpop.f32.mrb[1].mxu0  ;;  %v540_v36 = vpop.f32.mrb[1].mxu1 }
  0xf7   :  { %v517_v37 = vadd.f32 %v516_v34, %v515_v32  ;;  %v541_v38 = vadd.f32 %v540_v36, %v539_v33  ;;  %v518_v39 = vpop.f32.mrb[2].mxu0  ;;  %v542_v40 = vpop.f32.mrb[2].mxu1 }
  0xf8   :  { %v519_v41 = vpop.f32.mrb[3].mxu0  ;;  %v543_v42 = vpop.f32.mrb[3].mxu1 }
  0xf9   :  { %v430_v43 = vadd.f32 %v517_v37, %v738_v35  ;;  %v438_v44 = vadd.f32 %v541_v38, %v738_v35  ;;  %v520_v45 = vadd.f32 %v519_v41, %v518_v39  ;;  %v544_v46 = vadd.f32 %v543_v42, %v542_v40 }
  0xfb   :  { %446 = vst [vmem:[%s807_s3] sm:$0xff] %v430_v43  ;;  %454 = vst [vmem:[%s807_s3 + $0x40] sm:$0xff] %v438_v44  ;;  %v431_v47 = vadd.f32 %v520_v45, %v738_v35  ;;  %v439_v48 = vadd.f32 %v544_v46, %v738_v35 }
  0xfd   :  { %447 = vst [vmem:[%s807_s3 + $0x8] sm:$0xff] %v431_v47  ;;  %455 = vst [vmem:[%s807_s3 + $0x48] sm:$0xff] %v439_v48  ;;  %v521_v49 = vpop.f32.mrb[4].mxu0  ;;  %v545_v50 = vpop.f32.mrb[4].mxu1 }
  0xfe   :  { %v522_v51 = vpop.f32.mrb[5].mxu0  ;;  %v546_v52 = vpop.f32.mrb[5].mxu1 }
  0xff   :  { %v523_v53 = vadd.f32 %v522_v51, %v521_v49  ;;  %v547_v54 = vadd.f32 %v546_v52, %v545_v50  ;;  %v524_v55 = vpop.f32.mrb[6].mxu0  ;;  %v548_v56 = vpop.f32.mrb[6].mxu1 }
 0x100   :  { %v525_v57 = vpop.f32.mrb[7].mxu0  ;;  %v549_v58 = vpop.f32.mrb[7].mxu1 }
 0x101   :  { %v432_v59 = vadd.f32 %v523_v53, %v738_v35  ;;  %v440_v60 = vadd.f32 %v547_v54, %v738_v35  ;;  %v526_v61 = vadd.f32 %v525_v57, %v524_v55  ;;  %v550_v62 = vadd.f32 %v549_v58, %v548_v56 }
 0x103   :  { %448 = vst [vmem:[%s807_s3 + $0x10] sm:$0xff] %v432_v59  ;;  %456 = vst [vmem:[%s807_s3 + $0x50] sm:$0xff] %v440_v60  ;;  %v433_v63 = vadd.f32 %v526_v61, %v738_v35  ;;  %v441_v0 = vadd.f32 %v550_v62, %v738_v35 }
 0x105   :  { %449 = vst [vmem:[%s807_s3 + $0x18] sm:$0xff] %v433_v63  ;;  %457 = vst [vmem:[%s807_s3 + $0x58] sm:$0xff] %v441_v0  ;;  %v527_v1 = vpop.f32.mrb[8].mxu0  ;;  %v551_v2 = vpop.f32.mrb[8].mxu1 }
 0x106   :  { %v528_v3 = vpop.f32.mrb[9].mxu0  ;;  %v552_v4 = vpop.f32.mrb[9].mxu1 }
 0x107   :  { %v529_v5 = vadd.f32 %v528_v3, %v527_v1  ;;  %v553_v6 = vadd.f32 %v552_v4, %v551_v2  ;;  %v530_v7 = vpop.f32.mrb[10].mxu0  ;;  %v554_v8 = vpop.f32.mrb[10].mxu1 }
 0x108   :  { %v531_v9 = vpop.f32.mrb[11].mxu0  ;;  %v555_v10 = vpop.f32.mrb[11].mxu1 }
 0x109   :  { %v434_v11 = vadd.f32 %v529_v5, %v738_v35  ;;  %v442_v12 = vadd.f32 %v553_v6, %v738_v35  ;;  %v532_v13 = vadd.f32 %v531_v9, %v530_v7  ;;  %v556_v14 = vadd.f32 %v555_v10, %v554_v8 }
 0x10b   :  { %450 = vst [vmem:[%s807_s3 + $0x20] sm:$0xff] %v434_v11  ;;  %458 = vst [vmem:[%s807_s3 + $0x60] sm:$0xff] %v442_v12  ;;  %v435_v15 = vadd.f32 %v532_v13, %v738_v35  ;;  %v443_v16 = vadd.f32 %v556_v14, %v738_v35 }
 0x10d   :  { %451 = vst [vmem:[%s807_s3 + $0x28] sm:$0xff] %v435_v15  ;;  %459 = vst [vmem:[%s807_s3 + $0x68] sm:$0xff] %v443_v16  ;;  %v533_v17 = vpop.f32.mrb[12].mxu0  ;;  %v557_v18 = vpop.f32.mrb[12].mxu1 }
 0x10e   :  { %v534_v19 = vpop.f32.mrb[13].mxu0  ;;  %v558_v20 = vpop.f32.mrb[13].mxu1 }
 0x10f   :  { %v535_v21 = vadd.f32 %v534_v19, %v533_v17  ;;  %v559_v22 = vadd.f32 %v558_v20, %v557_v18  ;;  %v536_v23 = vpop.f32.mrb[14].mxu0  ;;  %v560_v24 = vpop.f32.mrb[14].mxu1 }
 0x110   :  { %v537_v25 = vpop.f32.mrb[15].mxu0  ;;  %v561_v26 = vpop.f32.mrb[15].mxu1 }
 0x111   :  { %v436_v27 = vadd.f32 %v535_v21, %v738_v35  ;;  %v444_v28 = vadd.f32 %v559_v22, %v738_v35  ;;  %v538_v29 = vadd.f32 %v537_v25, %v536_v23  ;;  %v562_v30 = vadd.f32 %v561_v26, %v560_v24 }
 0x113   :  { %452 = vst [vmem:[%s807_s3 + $0x30] sm:$0xff] %v436_v27  ;;  %460 = vst [vmem:[%s807_s3 + $0x70] sm:$0xff] %v444_v28  ;;  %v437_v31 = vadd.f32 %v538_v29, %v738_v35  ;;  %v445_v32 = vadd.f32 %v562_v30, %v738_v35 }
 0x115   :  { %453 = vst [vmem:[%s807_s3 + $0x38] sm:$0xff] %v437_v31  ;;  %461 = vst [vmem:[%s807_s3 + $0x78] sm:$0xff] %v445_v32 }

// kernel: _lambda_.135
= control target key start
LH: loop header
LB: loop body
LE: loop exit
PB: predicated region body
PF: predicated region fallthrough
CT: control target
= control target key end

     0   :  { %s768_s12 = smov 0   ;;  %s770_s13 = smov 0   ;;  %s837_s0 = inlined_call_operand.vmem [shape: bf16[2,16,16], index: 0, kind: input, shape index: {}]   ;;  %s838_s1 = inlined_call_operand.vmem [shape: bf16[2,16,16], index: 1, kind: input, shape index: {}]   ;;  %s839_s2 = inlined_call_operand.vmem [shape: bf16[2,16,16], index: 2, kind: input, shape index: {}]   ;;  %s840_s3 = inlined_call_operand.vmem [shape: f32[2,16,16], index: 3, kind: output, shape index: {}]  }
   0x1   :  { %s772_s14 = smov 0  }
   0x2 LB: > { %s32_s15 = sadd.s32 1, %s738_s13  ;;  %p639_p0 = scmp.ge.s32.totalorder %s742_s14, 1  ;;  %s742_s14 = sphi %s772_s14, %s13_s14   ;;  %s738_s13 = sphi %s770_s13, %s842_s13   ;;  %s734_s12 = sphi %s768_s12, %s841_s12  }
   0x3   : > { %p34_p1 = scmp.ge.s32.totalorder %s32_s15, 2  ;;  %p199_p2 = scmp.lt.s32.totalorder %s742_s14, 3 }
   0x5   : > { %s844_s15 = smov (%p34_p1, %s32_s15), 0  ;;  %p200_p3 = pnand %p639_p0, %p199_p2 }
   0x6   : > { %vm299_vm0 = vcmask (!%p200_p3), 130048   ;;  %p250_p4 = scmp.lt.s32.totalorder (!%p200_p3), %s734_s12, 1  ;;  %v744_v0 = vmov (!%p200_p3), 0.0   ;;  %vm745_vm1 = vmmov (!%p200_p3), 0   ;;  %vm294_vm2 = vcmask (!%p200_p3), 7168  }
   0x7   : > { %203 = sbr.rel (%p200_p3) target bundleno = 827 (0x33b), region = 32  ;;  %300 = vst.msk [vmem:[#allocation4] sm:$0xff] (!%p200_p3), %vm299_vm0, %v744_v0  ;;  %301 = vst.msk [vmem:[#allocation4 + $0x8] sm:$0xff] (!%p200_p3), %vm299_vm0, %v744_v0  ;;  %663 = vmatprep.subr.bf16.mxu0 (!%p200_p3), %v744_v0  ;;  %665 = vmatprep.mubr.msk.bf16.mxu0 (!%p200_p3), %vm745_vm1, %v744_v0  ;;  %v746_v4 = vmov (!%p200_p3), -1e+30   ;;  %v747_v13 = vmov (!%p200_p3), 0  }
   0x8   : > { %669 = vmatprep.subr.bf16.mxu1 (!%p200_p3), %v744_v0  ;;  %671 = vmatprep.mubr.msk.bf16.mxu1 (!%p200_p3), %vm745_vm1, %v744_v0  ;;  %295 = vst.msk [vmem:[#allocation2] sm:$0xff] (!%p200_p3), %vm294_vm2, %v746_v4  ;;  %296 = vst.msk [vmem:[#allocation2 + $0x8] sm:$0xff] (!%p200_p3), %vm294_vm2, %v746_v4 }
   0x9   : > { %297 = vst.msk [vmem:[#allocation3] sm:$0xff] (!%p200_p3), %vm294_vm2, %v744_v0  ;;  %298 = vst.msk [vmem:[#allocation3 + $0x8] sm:$0xff] (!%p200_p3), %vm294_vm2, %v744_v0  ;;  %703 = vset.pattern.permute.xlu1 (!%p200_p3), %v747_v13  ;;  %704 = vset.pattern.permute.xlu0 (!%p200_p3), %v747_v13 }
   0xe   : > { %s846_s12 = smov (!%p250_p4, %s734_s12), 1  ;;  %v413_v50 = vld [vmem:[#allocation4] sm:$0xff]  ;;  %v414_v52 = vld [vmem:[#allocation4 + $0x8] sm:$0xff] }
   0xf   : > { %s791_s16 = sshll.u32 %s846_s12, 3  ;;  %v366_v14 = vld [vmem:[#allocation2] sm:$0xff]  ;;  %v367_v17 = vld [vmem:[#allocation2 + $0x8] sm:$0xff]  ;;  %s658_s26 = sshll.u32 %s846_s12, 4 }
  0x10   : > { %s267_s19 = scalar_lea.vmem %s838_s1, %s791_s16  ;;  %s257_s22 = scalar_lea.vmem %s837_s0, %s791_s16  ;;  %v398_v38 = vld [vmem:[#allocation3] sm:$0xff]  ;;  %v399_v41 = vld [vmem:[#allocation3 + $0x8] sm:$0xff] }
  0x11   : > { %v705_v1 = vld [vmem:[%s267_s19] sm:$0xff]   ;;  %s277_s25 = scalar_lea.vmem %s839_s2, %s791_s16  ;;  %s287_s29 = scalar_lea.vmem %s840_s3, %s658_s26 }
  0x12   : > { %v321_v2 = vsel %vm299_vm0, %v705_v1, 0  ;;  %v706_v3 = vld [vmem:[%s257_s22] sm:$0xff]  }
  0x13   : > { %664 = vmatpush3.bf16.xpose.msra.mxu0 %v321_v2  ;;  %v707_v22 = vld [vmem:[%s277_s25] sm:$0xff]  }
  0x14   : > { %670 = vmatpush3.bf16.msra.mxu1 %v707_v22 }
  0x1a   : > { %666 = vmatmul.mubr.msk.bf16.vlgmr.msra.gmra.mrb[0].mxu0 %vm299_vm0, %v706_v3 }
  0xed   : > { %v357_v5 = vpop.f32.mrb[0].mxu0 }
  0xee   : > { %v364_v6 = vmul.f32 0.25, %v357_v5  ;;  %v667_v7 = vpop.f32.mrb[1].mxu0 }
  0xef   : > { %v360_v8 = vpop.f32.mrb[2].mxu0 }
  0xf0   : > { %v365_v9 = vmul.f32 0.25, %v360_v8  ;;  %v668_v10 = vpop.f32.mrb[3].mxu0  ;;  %v368_v11 = vsel %vm299_vm0, %v364_v6, -inf }
  0xf1   : > { %369 = vmax.xlane.f32.xlu0 %v368_v11 }
  0xf2   : > { %v371_v12 = vsel %vm299_vm0, %v365_v9, -inf }
  0xf5   : > { %372 = vmax.xlane.f32.xlu0 %v371_v12 }
 0x17e   : > { %v370_v15 = vpop.xlane.xlu0 %369 }
 0x17f   : > { %v374_v16 = vmax.f32 %v366_v14, %v370_v15 }
 0x181   : > { %v376_v18 = vsub.f32 %v366_v14, %v374_v16  ;;  %484 = vst.msk [vmem:[#allocation2] sm:$0xff] %vm294_vm2, %v374_v16  ;;  %384 = vperm.xlu1 %703, %v374_v16  }
 0x182   : > { %v373_v19 = vpop.xlane.xlu0 %372 }
 0x183   : > { %v375_v20 = vmax.f32 %v367_v17, %v373_v19  ;;  %v378_v35 = vmul.f32 1.442695, %v376_v18 }
 0x185   : > { %v377_v21 = vsub.f32 %v367_v17, %v375_v20  ;;  %485 = vst.msk [vmem:[#allocation2 + $0x8] sm:$0xff] %vm294_vm2, %v375_v20  ;;  %389 = vperm.xlu1 %703, %v375_v20  }
 0x187   : > { %v380_v34 = vmul.f32 1.442695, %v377_v21 }
 0x200   : > { %v385_v23 = vpop.permute.xlu1 %384 }
 0x201   : > { %v392_v24 = vsub.f32 %v364_v6, %v385_v23 }
 0x203   : > { %v394_v25 = vmul.f32 1.442695, %v392_v24 }
 0x204   : > { %v390_v26 = vpop.permute.xlu1 %389 }
 0x205   : > { %708 = vpow2.f32 %v394_v25  ;;  %v393_v27 = vsub.f32 %v365_v9, %v390_v26 }
 0x207   : > { %v396_v28 = vmul.f32 1.442695, %v393_v27 }
 0x209   : > { %710 = vpow2.f32 %v396_v28 }
 0x20a   : > { %712 = vpow2.f32 %v380_v34 }
 0x20b   : > { %714 = vpow2.f32 %v378_v35 }
 0x20f   : > { %v709_v29 = vpop.eup %708 }
 0x210   : > { %v402_v30 = vsel %vm299_vm0, %v709_v29, 0.0 }
 0x211   : > { %403 = vadd.xlane.f32.xlu0 %v402_v30 }
 0x213   : > { %v711_v31 = vpop.eup %710 }
 0x214   : > { %v405_v32 = vsel %vm299_vm0, %v711_v31, 0.0  ;;  %v427_v33 = vpack.c.bf16 %v711_v31, %v709_v29  ;;  %v713_v36 = vpop.eup %712 }
 0x215   : > { %406 = vadd.xlane.f32.xlu1 %v405_v32  ;;  %v715_v37 = vpop.eup %714  ;;  %v401_v43 = vmul.f32 %v713_v36, %v399_v41 }
 0x216   : > { %672 = vmatmul.mubr.msk.bf16.vlgmr.msra.gmra.mrb[0].mxu1 %vm299_vm0, %v427_v33  ;;  %v400_v39 = vmul.f32 %v715_v37, %v398_v38 }
 0x226   : > { %422 = vperm.xlu1 %703, %v713_v36  }
 0x227   : > { %417 = vperm.xlu0 %704, %v715_v37  }
 0x29e   : > { %v404_v40 = vpop.xlane.xlu0 %403 }
 0x29f   : > { %v408_v42 = vadd.f32 %v404_v40, %v400_v39 }
 0x2a1   : > { %411 = vst.msk [vmem:[#allocation3] sm:$0xff] %vm294_vm2, %v408_v42 }
 0x2a2   : > { %v407_v44 = vpop.xlane.xlu1 %406 }
 0x2a3   : > { %v409_v45 = vadd.f32 %v407_v44, %v401_v43 }
 0x2a5   : > { %412 = vst.msk [vmem:[#allocation3 + $0x8] sm:$0xff] %vm294_vm2, %v409_v45 }
 0x2a6   : > { %v418_v51 = vpop.permute.xlu0 %417  ;;  %v423_v53 = vpop.permute.xlu1 %422 }
 0x2a7   : > { %v425_v54 = vmul.f32 %v418_v51, %v413_v50  ;;  %v426_v56 = vmul.f32 %v423_v53, %v414_v52 }
 0x2a8   : > { %v491_v46 = vld [vmem:[#allocation3] sm:$0xff] }
 0x2a9   : > { %716 = vrcp.f32 %v491_v46 }
 0x2ac   : > { %v492_v47 = vld [vmem:[#allocation3 + $0x8] sm:$0xff] }
 0x2ad   : > { %718 = vrcp.f32 %v492_v47 }
 0x2b3   : > { %v717_v48 = vpop.eup %716 }
 0x2b4   : > { %497 = vperm.xlu0 %704, %v717_v48  }
 0x2b7   : > { %v719_v49 = vpop.eup %718 }
 0x2b8   : > { %502 = vperm.xlu0 %704, %v719_v49  }
 0x2e9   : > { %v473_v55 = vpop.f32.mrb[0].mxu1 }
 0x2ea   : > { %v480_v57 = vadd.f32 %v473_v55, %v425_v54  ;;  %v673_v58 = vpop.f32.mrb[1].mxu1 }
 0x2eb   : > { %v476_v59 = vpop.f32.mrb[2].mxu1 }
 0x2ec   : > { %482 = vst.msk [vmem:[#allocation4] sm:$0xff] %vm299_vm0, %v480_v57  ;;  %v481_v60 = vadd.f32 %v476_v59, %v426_v56  ;;  %v674_v61 = vpop.f32.mrb[3].mxu1 }
 0x2ee   : > { %483 = vst.msk [vmem:[#allocation4 + $0x8] sm:$0xff] %vm299_vm0, %v481_v60 }
 0x2f3   : > { %v489_v62 = vld [vmem:[#allocation4] sm:$0xff] }
 0x2f5   : > { %v490_v1 = vld [vmem:[#allocation4 + $0x8] sm:$0xff] }
 0x333   : > { %v498_v63 = vpop.permute.xlu0 %497 }
 0x334   : > { %v505_v0 = vmul.f32 %v498_v63, %v489_v62 }
 0x336   : > { %507 = vst.msk [vmem:[%s287_s29] sm:$0xff] %vm299_vm0, %v505_v0 }
 0x337   : > { %v503_v2 = vpop.permute.xlu0 %502 }
 0x338   : > { %v506_v3 = vmul.f32 %v503_v2, %v490_v1 }
 0x33a   : > { %508 = vst.msk [vmem:[%s287_s29 + $0x8] sm:$0xff] %vm299_vm0, %v506_v3 }
 0x33b PF: > { %s13_s14 = sadd.s32 1, %s742_s14   ;;  %s841_s12 = smov %s738_s13 }
 0x33c   : > { %p10_p5 = scmp.ge.s32.totalorder %s13_s14, 4   ;;  %s842_s13 = smov %s844_s15 }
 0x33e   :  { %12 = sbr.rel (!%p10_p5) target bundleno = 2 (0x2), region = 76 }

// kernel: _lambda_.147
= control target key start
LH: loop header
LB: loop body
LE: loop exit
PB: predicated region body
PF: predicated region fallthrough
CT: control target
= control target key end

     0   :  { %s849_s15 = smov 0   ;;  %s914_s0 = inlined_call_operand.vmem [shape: f32[2,16,32], index: 0, kind: input, shape index: {}]   ;;  %s915_s1 = inlined_call_operand.vmem [shape: f32[1,32], index: 1, kind: input, shape index: {}]   ;;  %s916_s2 = inlined_call_operand.vmem [shape: f32[1,32], index: 2, kind: input, shape index: {}]   ;;  %s917_s3 = inlined_call_operand.vmem [shape: f32[32,4], index: 3, kind: input, shape index: {}]   ;;  %s918_s4 = inlined_call_operand.vmem [shape: bf16[2,16,32], index: 4, kind: output, shape index: {}]  }
   0x1 LB: > { %s659_s16 = sadd.s32 4294967295, %s819_s15   ;;  %p663_p0 = scmp.ge.s32.totalorder %s819_s15, 1  ;;  %s819_s15 = sphi %s849_s15, %s14_s15  }
   0x2   : > { %p162_p1 = scmp.lt.s32.totalorder %s819_s15, 3 }
   0x4   : > { %p163_p2 = pnand %p663_p0, %p162_p1 }
   0x5   : > { %v200_v0 = vld [vmem:[%s917_s3] sm:$0xff] (!%p163_p2)  ;;  %v201_v1 = vld [vmem:[%s917_s3 + $0x8] sm:$0xff] (!%p163_p2)  ;;  %v202_v2 = vld [vmem:[%s917_s3 + $0x10] sm:$0xff] (!%p163_p2)  ;;  %p188_p3 = scmp.lt.s32.totalorder (!%p163_p2), %s659_s16, 1  ;;  %vm204_vm0 = vcmask (!%p163_p2), 261120   ;;  %vm286_vm1 = vcmask (!%p163_p2), 31744   ;;  %v382_v23 = vlaneseq (!%p163_p2) }
   0x6   : > { %166 = sbr.rel (%p163_p2) target bundleno = 962 (0x3c2), region = 36  ;;  %v760_v3 = vpack.c.bf16 (!%p163_p2), %v201_v1, %v200_v0  ;;  %v203_v4 = vld [vmem:[%s917_s3 + $0x18] sm:$0xff] (!%p163_p2)  ;;  %v821_v8 = vmov (!%p163_p2), 0.0|0.0   ;;  %vm879_vm2 = vmpackc.low (!%p163_p2), %vm286_vm1, %vm286_vm1  ;;  %vm822_vm3 = vmmov (!%p163_p2), 0   ;;  %v823_v10 = vmov (!%p163_p2), 0.0  }
   0x7   : > { %v764_v5 = vpack.c.bf16 (!%p163_p2), %v203_v4, %v202_v2  ;;  %v383_v24 = vshrl.u32 (!%p163_p2), %v382_v23, 7  ;;  %v682_v50 = vld [vmem:[%s915_s1] ss:$0 sm:$0xff] (!%p163_p2)  ;;  %vm601_vm4 = vcmask (!%p163_p2), 257024  }
   0x8   : > { %761 = vmatprep.subr.bf16.mxu1 (!%p163_p2), %v760_v3  ;;  %777 = vmatprep.subr.bf16.mxu0 (!%p163_p2), %v760_v3  ;;  %v683_v53 = vld [vmem:[%s916_s2] ss:$0 sm:$0xff] (!%p163_p2) }
   0x9   : > { %763 = vmatpush3.bf16.msra.mxu1 (!%p163_p2), %v760_v3  ;;  %779 = vmatpush3.bf16.msra.mxu0 (!%p163_p2), %v760_v3  ;;  %v384_v25 = vsub.s32 (!%p163_p2), 0, %v383_v24 }
   0xa   : > { %765 = vmatprep.subr.bf16.mxu1 (!%p163_p2), %v764_v5  ;;  %781 = vmatprep.subr.bf16.mxu0 (!%p163_p2), %v764_v5 }
   0xd   : > { %s922_s16 = smov (!%p188_p3, %s659_s16), 1  ;;  %767 = vmatpush3.bf16.msra.mxu1 %v764_v5  ;;  %783 = vmatpush3.bf16.msra.mxu0 %v764_v5 }
   0xe   : > { %s690_s25 = sshll.u32 %s922_s16, 4  ;;  %768 = vmatprep.subr.bf16.mxu1 %v821_v8  ;;  %784 = vmatprep.subr.bf16.mxu0 %v821_v8  ;;  %s691_s7 = sshll.u32 %s922_s16, 3 }
   0xf   : > { %s192_s28 = scalar_lea.vmem %s914_s0, %s690_s25  ;;  %s197_s10 = scalar_lea.vmem %s918_s4, %s691_s7 }
  0x10   : > { %v198_v6 = vld [vmem:[%s192_s28] sm:$0xff]  ;;  %v199_v7 = vld [vmem:[%s192_s28 + $0x8] sm:$0xff] }
  0x11   : > { %724 = vmatprep.mubr.msk.f32.mxu1 %vm204_vm0, %v198_v6 }
  0x12   : > { %725 = vmatmul.mubr.msk.f32.vlgmr.msra.gmra.mrb[0].mxu1 %vm204_vm0, %v199_v7 }
  0x13   : > { %735 = vmatprep.mubr.msk.f32.mxu1 %vm822_vm3, %v823_v10 }
  0x16   : > { %771 = vmatpush3.bf16.xpose.msk.msra.mxu1 %vm879_vm2, %v760_v3 }
  0x17   : > { %772 = vmatprep.subr.bf16.mxu1 %v821_v8 }
  0x1e   : > { %775 = vmatpush3.bf16.xpose.msk.msra.mxu1 %vm879_vm2, %v764_v5 }
  0xe5   : > { %v726_v11 = vpop.f32.mrb[0].mxu1 }
  0xe6   : > { %v288_v12 = vsel %vm286_vm1, %v726_v11, 0.0  ;;  %v277_v13 = vpop.f32.mrb[1].mxu1 }
  0xe7   : > { %v287_v14 = vsel %vm286_vm1, %v277_v13, 0.0 }
  0xe8   : > { %v289_v15 = vadd.f32 %v288_v12, %v287_v14 }
  0xea   : > { %v290_v16 = vrot.slane %v289_v15, 4 }
  0xec   : > { %v291_v17 = vadd.f32 %v290_v16, %v289_v15 }
  0xee   : > { %v292_v18 = vrot.slane %v291_v17, 2 }
  0xf0   : > { %v293_v19 = vadd.f32 %v292_v18, %v291_v17 }
  0xf2   : > { %v294_v20 = vrot.slane %v293_v19, 1 }
  0xf4   : > { %v295_v21 = vadd.f32 %v294_v20, %v293_v19 }
  0xf6   : > { %v296_v22 = vmul.f32 0.0078125, %v295_v21 }
  0xf8   : > { %736 = vmatmul.mubr.msk.f32.vlgmr.msra.gmra.mrb[2].mxu1 %vm286_vm1, %v296_v22 }
 0x1cb   : > { %v378_v26 = vpop.f32.mrb[2].mxu1 }
 0x1cc   : > { %v385_v27 = vrot.slane %v378_v26, %v384_v25  ;;  %v737_v28 = vpop.f32.mrb[3].mxu1 }
 0x1ce   : > { %v386_v29 = vsub.f32 %v198_v6, %v385_v27  ;;  %v387_v30 = vsub.f32 %v199_v7, %v385_v27 }
 0x1d0   : > { %v389_v31 = vmul.f32 %v387_v30, %v387_v30  ;;  %v388_v32 = vmul.f32 %v386_v29, %v386_v29 }
 0x1d2   : > { %746 = vmatprep.mubr.msk.f32.mxu0 %vm204_vm0, %v388_v32 }
 0x1d3   : > { %747 = vmatmul.mubr.msk.f32.vlgmr.msra.gmra.mrb[0].mxu0 %vm204_vm0, %v389_v31 }
 0x1d4   : > { %787 = vmatpush3.bf16.xpose.msk.msra.mxu0 %vm879_vm2, %v760_v3  ;;  %757 = vmatprep.mubr.msk.f32.mxu0 %vm822_vm3, %v823_v10 }
 0x1d5   : > { %788 = vmatprep.subr.bf16.mxu0 %v821_v8 }
 0x1dc   : > { %791 = vmatpush3.bf16.xpose.msk.msra.mxu0 %vm879_vm2, %v764_v5 }
 0x2a6   : > { %v748_v33 = vpop.f32.mrb[0].mxu0 }
 0x2a7   : > { %v472_v34 = vsel %vm286_vm1, %v748_v33, 0.0  ;;  %v462_v35 = vpop.f32.mrb[1].mxu0 }
 0x2a8   : > { %v471_v36 = vsel %vm286_vm1, %v462_v35, 0.0 }
 0x2a9   : > { %v473_v37 = vadd.f32 %v472_v34, %v471_v36 }
 0x2ab   : > { %v474_v38 = vrot.slane %v473_v37, 4 }
 0x2ad   : > { %v475_v39 = vadd.f32 %v474_v38, %v473_v37 }
 0x2af   : > { %v476_v40 = vrot.slane %v475_v39, 2 }
 0x2b1   : > { %v477_v41 = vadd.f32 %v476_v40, %v475_v39 }
 0x2b3   : > { %v478_v42 = vrot.slane %v477_v41, 1 }
 0x2b5   : > { %v479_v43 = vadd.f32 %v478_v42, %v477_v41 }
 0x2b7   : > { %v480_v44 = vmul.f32 0.0078125, %v479_v43 }
 0x2b9   : > { %758 = vmatmul.mubr.msk.f32.vlgmr.msra.gmra.mrb[2].mxu0 %vm286_vm1, %v480_v44 }
 0x38c   : > { %v550_v45 = vpop.f32.mrb[2].mxu0 }
 0x38d   : > { %v551_v46 = vadd.f32 1e-05, %v550_v45  ;;  %v759_v47 = vpop.f32.mrb[3].mxu0 }
 0x38f   : > { %803 = vrsqrt.f32 %v551_v46 }
 0x399   : > { %v804_v48 = vpop.eup %803 }
 0x39a   : > { %v558_v49 = vrot.slane %v804_v48, %v384_v25 }
 0x39c   : > { %v559_v51 = vmul.f32 %v558_v49, %v386_v29  ;;  %v560_v52 = vmul.f32 %v558_v49, %v387_v30 }
 0x39e   : > { %v568_v54 = vmul.f32 %v682_v50, %v559_v51  ;;  %v569_v55 = vmul.f32 %v682_v50, %v560_v52 }
 0x3a0   : > { %v577_v56 = vadd.f32 %v683_v53, %v568_v54  ;;  %v578_v57 = vadd.f32 %v683_v53, %v569_v55 }
 0x3a2   : > { %v684_v58 = vmul.f32 -1.442695, %v577_v56  ;;  %v685_v59 = vmul.f32 -1.442695, %v578_v57 }
 0x3a4   : > { %805 = vpow2.f32 %v684_v58 }
 0x3a5   : > { %807 = vpow2.f32 %v685_v59 }
 0x3ae   : > { %v806_v60 = vpop.eup %805 }
 0x3af   : > { %v808_v61 = vpop.eup %807  ;;  %v585_v62 = vadd.f32 1.0, %v806_v60 }
 0x3b0   : > { %v586_v63 = vadd.f32 1.0, %v808_v61 }
 0x3b1   : > { %809 = vrcp.f32 %v585_v62 }
 0x3b2   : > { %811 = vrcp.f32 %v586_v63 }
 0x3bb   : > { %v810_v0 = vpop.eup %809 }
 0x3bc   : > { %v812_v1 = vpop.eup %811  ;;  %v591_v2 = vmul.f32 %v810_v0, %v577_v56 }
 0x3bd   : > { %v592_v3 = vmul.f32 %v812_v1, %v578_v57 }
 0x3be   : > { %v692_v4 = vpack.c.bf16 %v591_v2, %v591_v2 }
 0x3bf   : > { %v693_v5 = vpack.c.bf16 %v592_v3, %v592_v3 }
 0x3c0   : > { %602 = vst.msk [vmem:[%s197_s10] sm:$0xf] %vm601_vm4, %v692_v4 }
 0x3c1   : > { %603 = vst.msk [vmem:[%s197_s10 + $0x4] sm:$0xf] %vm601_vm4, %v693_v5 }
 0x3c2 PF: > { %s14_s15 = sadd.s32 1, %s819_s15  }
 0x3c3   : > { %p11_p4 = scmp.ge.s32.totalorder %s14_s15, 4  }
 0x3c5   :  { %13 = sbr.rel (!%p11_p4) target bundleno = 1 (0x1), region = 66 }

// kernel: _lambda_.148
= control target key start
LH: loop header
LB: loop body
LE: loop exit
PB: predicated region body
PF: predicated region fallthrough
CT: control target
= control target key end

     0   :  { %s1181_s12 = smov 0   ;;  %s1183_s13 = smov 0   ;;  %s1353_s0 = inlined_call_operand.vmem [shape: bf16[128,512], index: 0, kind: input, shape index: {}]   ;;  %s1354_s1 = inlined_call_operand.vmem [shape: bf16[512,128], index: 1, kind: input, shape index: {}]   ;;  %s1355_s2 = inlined_call_operand.vmem [shape: f32[1,128], index: 2, kind: input, shape index: {}]   ;;  %s1356_s3 = inlined_call_operand.vmem [shape: f32[128,128], index: 3, kind: output, shape index: {}]  }
   0x1   :  { %s1185_s14 = smov 0   ;;  %s1187_s15 = smov 0  }
   0x2   :  { %s1189_s16 = smov 0  }
   0x3 LB: > { %s25_s17 = sadd.s32 1, %s1154_s15  ;;  %p48_p1 = scmp.ne.s32.totalorder %s1146_s13, %s1142_s12  ;;  %s1158_s16 = sphi %s1189_s16, %s13_s16   ;;  %s1154_s15 = sphi %s1187_s15, %s1360_s15   ;;  %s1150_s14 = sphi %s1185_s14, %s1359_s14   ;;  %s1146_s13 = sphi %s1183_s13, %s1358_s13   ;;  %s1142_s12 = sphi %s1181_s12, %s1357_s12  }
   0x4   : > { %p26_p0 = scmp.ge.s32.totalorder %s25_s17, 2  ;;  %p49_p2 = scmp.eq.s32.totalorder %s1158_s16, 0 }
   0x5   : > { %s41_s19 = sadd.s32 1, %s1146_s13  ;;  %p911_p5 = scmp.ge.s32.totalorder %s1158_s16, 2 }
   0x6   : > { %s1362_s17 = smov (%p26_p0, %s25_s17), 0  ;;  %p50_p3 = por %p49_p2, %p48_p1 }
   0x7   : > { %s37_s18 = ssub.s32 %s1154_s15, %s1362_s17  ;;  %162 = sbr.rel (%p911_p5) target bundleno = 26 (0x1a), region = 20 }
   0x8   : > { %p39_p4 = scmp.eq.s32.totalorder %s37_s18, 0 }
   0xa   : > { %s1216_s20 = scalar_select %p39_p4, %s1146_s13, %s41_s19  }
   0xe   : > { %165 = sbr.rel (!%p50_p3) target bundleno = 26 (0x1a), region = 24  ;;  %s167_s21 = sand.u32 (%p50_p3), 1, %s1146_s13  }
   0xf   : > { %s958_s22 = sshll.u32 (%p50_p3), %s1154_s15, 3  ;;  %s912_s23 = sshll.u32 (%p50_p3), %s167_s21, 7 }
  0x10   : > { %s1224_s26 = scalar_lea.vmem (%p50_p3), %s1353_s0, %s958_s22  ;;  %s169_s27 = scalar_lea.vmem (%p50_p3), [#allocation3], %s912_s23 }
  0x11   : > { %v233_v0 = vld [vmem:[%s1224_s26] sm:$0xff] (%p50_p3)  ;;  %v235_v1 = vld [vmem:[%s1224_s26 + $0x10] sm:$0xff] (%p50_p3) }
  0x12   : > { %v237_v2 = vld [vmem:[%s1224_s26 + $0x20] sm:$0xff] (%p50_p3)  ;;  %234 = vst [vmem:[%s169_s27] sm:$0xff] (%p50_p3), %v233_v0  ;;  %236 = vst [vmem:[%s169_s27 + $0x8] sm:$0xff] (%p50_p3), %v235_v1  ;;  %v239_v3 = vld [vmem:[%s1224_s26 + $0x30] sm:$0xff] (%p50_p3) }
  0x13   : > { %238 = vst [vmem:[%s169_s27 + $0x10] sm:$0xff] (%p50_p3), %v237_v2  ;;  %v241_v4 = vld [vmem:[%s1224_s26 + $0x40] sm:$0xff] (%p50_p3)  ;;  %v243_v5 = vld [vmem:[%s1224_s26 + $0x50] sm:$0xff] (%p50_p3)  ;;  %240 = vst [vmem:[%s169_s27 + $0x18] sm:$0xff] (%p50_p3), %v239_v3 }
  0x14   : > { %242 = vst [vmem:[%s169_s27 + $0x20] sm:$0xff] (%p50_p3), %v241_v4  ;;  %244 = vst [vmem:[%s169_s27 + $0x28] sm:$0xff] (%p50_p3), %v243_v5  ;;  %v245_v6 = vld [vmem:[%s1224_s26 + $0x60] sm:$0xff] (%p50_p3)  ;;  %v247_v7 = vld [vmem:[%s1224_s26 + $0x70] sm:$0xff] (%p50_p3) }
  0x15   : > { %v249_v8 = vld [vmem:[%s1224_s26 + $0x80] sm:$0xff]  ;;  %246 = vst [vmem:[%s169_s27 + $0x30] sm:$0xff] %v245_v6  ;;  %248 = vst [vmem:[%s169_s27 + $0x38] sm:$0xff] %v247_v7  ;;  %v251_v9 = vld [vmem:[%s1224_s26 + $0x90] sm:$0xff] }
  0x16   : > { %250 = vst [vmem:[%s169_s27 + $0x40] sm:$0xff] %v249_v8  ;;  %v253_v10 = vld [vmem:[%s1224_s26 + $0xa0] sm:$0xff]  ;;  %v255_v11 = vld [vmem:[%s1224_s26 + $0xb0] sm:$0xff]  ;;  %252 = vst [vmem:[%s169_s27 + $0x48] sm:$0xff] %v251_v9 }
  0x17   : > { %254 = vst [vmem:[%s169_s27 + $0x50] sm:$0xff] %v253_v10  ;;  %256 = vst [vmem:[%s169_s27 + $0x58] sm:$0xff] %v255_v11  ;;  %v257_v12 = vld [vmem:[%s1224_s26 + $0xc0] sm:$0xff]  ;;  %v259_v13 = vld [vmem:[%s1224_s26 + $0xd0] sm:$0xff] }
  0x18   : > { %v261_v14 = vld [vmem:[%s1224_s26 + $0xe0] sm:$0xff]  ;;  %258 = vst [vmem:[%s169_s27 + $0x60] sm:$0xff] %v257_v12  ;;  %260 = vst [vmem:[%s169_s27 + $0x68] sm:$0xff] %v259_v13  ;;  %v263_v15 = vld [vmem:[%s1224_s26 + $0xf0] sm:$0xff] }
  0x19   : > { %262 = vst [vmem:[%s169_s27 + $0x70] sm:$0xff] %v261_v14  ;;  %264 = vst [vmem:[%s169_s27 + $0x78] sm:$0xff] %v263_v15 }
  0x1a PF: > { %p915_p6 = scmp.ge.s32.totalorder %s1158_s16, 1  ;;  %p281_p7 = scmp.lt.s32.totalorder %s1158_s16, 3 }
  0x1c   : > { %p282_p8 = pnand %p915_p6, %p281_p7 }
  0x1d   : > { %s288_s28 = sand.u32 (!%p282_p8), 1, %s1142_s12   ;;  %s917_s29 = sshll.u32 (!%p282_p8), %s1150_s14, 5 }
  0x1e   : > { %285 = sbr.rel (%p282_p8) target bundleno = 335 (0x14f), region = 66  ;;  %s916_s30 = sshll.u32 (!%p282_p8), %s288_s28, 7 }
  0x1f   : > { %p328_p9 = scmp.lt.s32.totalorder (!%p282_p8), %s917_s29, 63  ;;  %s1251_s8 = scalar_lea.vmem (!%p282_p8), [#allocation3], %s916_s30 }
  0x20   : > { %p919_p10 = scmp.ne.s32.totalorder (!%p282_p8), %s1150_s14, 0 }
  0x25   : > { %s1364_s29 = smov (!%p328_p9, %s917_s29), 63  ;;  %352 = sbr.rel (%p919_p10) target bundleno = 47 (0x2f), region = 74 }
  0x26   : > { %s918_s4 = sshll.u32 %s1364_s29, 2  ;;  %v1160_v16 = vmov (!%p919_p10), 0.0  }
  0x27   : > { %s1249_s7 = scalar_lea.vmem %s1354_s1, %s918_s4  ;;  %353 = vst [vmem:[#allocation2] sm:$0xff] (!%p919_p10), %v1160_v16  ;;  %354 = vst [vmem:[#allocation2 + $0x8] sm:$0xff] (!%p919_p10), %v1160_v16 }
  0x28   : > { %355 = vst [vmem:[#allocation2 + $0x10] sm:$0xff] (!%p919_p10), %v1160_v16  ;;  %356 = vst [vmem:[#allocation2 + $0x18] sm:$0xff] (!%p919_p10), %v1160_v16 }
  0x29   : > { %357 = vst [vmem:[#allocation2 + $0x20] sm:$0xff] (!%p919_p10), %v1160_v16  ;;  %358 = vst [vmem:[#allocation2 + $0x28] sm:$0xff] (!%p919_p10), %v1160_v16 }
  0x2a   : > { %359 = vst [vmem:[#allocation2 + $0x30] sm:$0xff] (!%p919_p10), %v1160_v16  ;;  %360 = vst [vmem:[#allocation2 + $0x38] sm:$0xff] (!%p919_p10), %v1160_v16 }
  0x2b   : > { %361 = vst [vmem:[#allocation2 + $0x40] sm:$0xff] (!%p919_p10), %v1160_v16  ;;  %362 = vst [vmem:[#allocation2 + $0x48] sm:$0xff] (!%p919_p10), %v1160_v16 }
  0x2c   : > { %363 = vst [vmem:[#allocation2 + $0x50] sm:$0xff] %v1160_v16  ;;  %364 = vst [vmem:[#allocation2 + $0x58] sm:$0xff] %v1160_v16 }
  0x2d   : > { %365 = vst [vmem:[#allocation2 + $0x60] sm:$0xff] %v1160_v16  ;;  %366 = vst [vmem:[#allocation2 + $0x68] sm:$0xff] %v1160_v16 }
  0x2e   : > { %367 = vst [vmem:[#allocation2 + $0x70] sm:$0xff] %v1160_v16  ;;  %368 = vst [vmem:[#allocation2 + $0x78] sm:$0xff] %v1160_v16 }
  0x2f PF: > { %v1080_v17 = vld [vmem:[%s1249_s7 + $0x40] sm:$0xff]   ;;  %v1082_v19 = vld [vmem:[%s1249_s7 + $0x48] sm:$0xff]   ;;  %v1084_v21 = vld [vmem:[%s1249_s7 + $0x50] sm:$0xff]   ;;  %p952_p11 = scmp.ne.s32.totalorder %s1150_s14, 1 }
  0x30   : > { %v1081_v18 = vld [vmem:[%s1249_s7] sm:$0xff]   ;;  %959 = vmatprep.subr.bf16.mxu0 %v1080_v17  ;;  %1023 = vmatprep.subr.bf16.mxu1 %v1080_v17  ;;  %v1083_v20 = vld [vmem:[%s1249_s7 + $0x8] sm:$0xff]   ;;  %v1085_v22 = vld [vmem:[%s1249_s7 + $0x10] sm:$0xff]  }
  0x31   : > { %960 = vmatpush3.bf16.msra.mxu0 %v1081_v18  ;;  %1031 = vmatpush3.bf16.msra.mxu1 %v1081_v18  ;;  %v1086_v23 = vld [vmem:[%s1249_s7 + $0x58] sm:$0xff]   ;;  %v1088_v25 = vld [vmem:[%s1249_s7 + $0x60] sm:$0xff]   ;;  %v1090_v27 = vld [vmem:[%s1249_s7 + $0x68] sm:$0xff]  }
  0x32   : > { %961 = vmatprep.subr.bf16.mxu0 %v1082_v19  ;;  %1024 = vmatprep.subr.bf16.mxu1 %v1082_v19  ;;  %v1087_v24 = vld [vmem:[%s1249_s7 + $0x18] sm:$0xff]   ;;  %v1089_v26 = vld [vmem:[%s1249_s7 + $0x20] sm:$0xff]   ;;  %v1091_v30 = vld [vmem:[%s1249_s7 + $0x28] sm:$0xff]  }
  0x33   : > { %v1098_v28 = vld [vmem:[%s1251_s8 + $0x4] ss:$8 sps:$4 sm:$0xff]   ;;  %v1092_v31 = vld [vmem:[%s1249_s7 + $0x70] sm:$0xff]   ;;  %v1094_v33 = vld [vmem:[%s1249_s7 + $0x78] sm:$0xff]  }
  0x34   : > { %v1101_v29 = vld [vmem:[%s1251_s8 + $0x44] ss:$8 sps:$4 sm:$0xff]   ;;  %641 = vmatprep.mubr.bf16.mxu0 %v1098_v28  ;;  %v1093_v32 = vld [vmem:[%s1249_s7 + $0x30] sm:$0xff]   ;;  %v1095_v34 = vld [vmem:[%s1249_s7 + $0x38] sm:$0xff]  }
  0x35   : > { %962 = vmatpush3.bf16.msra.mxu0 %v1083_v20  ;;  %1032 = vmatpush3.bf16.msra.mxu1 %v1083_v20  ;;  %v1096_v35 = vld [vmem:[%s1251_s8] ss:$8 sps:$4 sm:$0xff]   ;;  %v1102_v37 = vld [vmem:[%s1251_s8 + $0x14] ss:$8 sps:$4 sm:$0xff]   ;;  %v1106_v39 = vld [vmem:[%s1251_s8 + $0x10] ss:$8 sps:$4 sm:$0xff]  }
  0x36   : > { %963 = vmatprep.subr.bf16.mxu0 %v1084_v21  ;;  %1025 = vmatprep.subr.bf16.mxu1 %v1084_v21  ;;  %v1099_v36 = vld [vmem:[%s1251_s8 + $0x40] ss:$8 sps:$4 sm:$0xff]   ;;  %v1104_v38 = vld [vmem:[%s1251_s8 + $0x54] ss:$8 sps:$4 sm:$0xff]   ;;  %v1107_v40 = vld [vmem:[%s1251_s8 + $0x50] ss:$8 sps:$4 sm:$0xff]  }
  0x37   : > { %673 = vmatprep.mubr.bf16.mxu1 %v1101_v29  ;;  %v1108_v41 = vld [vmem:[%s1251_s8 + $0x24] ss:$8 sps:$4 sm:$0xff]   ;;  %v1112_v43 = vld [vmem:[%s1251_s8 + $0x20] ss:$8 sps:$4 sm:$0xff]   ;;  %v1114_v45 = vld [vmem:[%s1251_s8 + $0x34] ss:$8 sps:$4 sm:$0xff]  }
  0x38   : > { %v1110_v42 = vld [vmem:[%s1251_s8 + $0x64] ss:$8 sps:$4 sm:$0xff]   ;;  %v1113_v44 = vld [vmem:[%s1251_s8 + $0x60] ss:$8 sps:$4 sm:$0xff]   ;;  %v1116_v46 = vld [vmem:[%s1251_s8 + $0x74] ss:$8 sps:$4 sm:$0xff]  }
  0x39   : > { %964 = vmatpush3.bf16.msra.mxu0 %v1085_v22  ;;  %1033 = vmatpush3.bf16.msra.mxu1 %v1085_v22  ;;  %v1118_v47 = vld [vmem:[%s1251_s8 + $0x30] ss:$8 sps:$4 sm:$0xff]   ;;  %v369_v51 = vld [vmem:[#allocation2] sm:$0xff]  ;;  %v370_v59 = vld [vmem:[#allocation2 + $0x8] sm:$0xff] }
  0x3a   : > { %965 = vmatprep.subr.bf16.mxu0 %v1086_v23  ;;  %1026 = vmatprep.subr.bf16.mxu1 %v1086_v23  ;;  %v1119_v48 = vld [vmem:[%s1251_s8 + $0x70] ss:$8 sps:$4 sm:$0xff]   ;;  %v377_v53 = vld [vmem:[#allocation2 + $0x40] sm:$0xff]  ;;  %v378_v61 = vld [vmem:[#allocation2 + $0x48] sm:$0xff] }
  0x3b   : > { %v371_v7 = vld [vmem:[#allocation2 + $0x10] sm:$0xff]  ;;  %v372_v15 = vld [vmem:[#allocation2 + $0x18] sm:$0xff]  ;;  %v381_v29 = vld [vmem:[#allocation2 + $0x60] sm:$0xff] }
  0x3c   : > { %v379_v9 = vld [vmem:[#allocation2 + $0x50] sm:$0xff]  ;;  %v380_v17 = vld [vmem:[#allocation2 + $0x58] sm:$0xff] }
  0x3d   : > { %966 = vmatpush3.bf16.msra.mxu0 %v1087_v24  ;;  %1034 = vmatpush3.bf16.msra.mxu1 %v1087_v24 }
  0x3e   : > { %967 = vmatprep.subr.bf16.mxu0 %v1088_v25  ;;  %1027 = vmatprep.subr.bf16.mxu1 %v1088_v25 }
  0x41   : > { %968 = vmatpush3.bf16.msra.mxu0 %v1089_v26  ;;  %1035 = vmatpush3.bf16.msra.mxu1 %v1089_v26 }
  0x42   : > { %969 = vmatprep.subr.bf16.mxu0 %v1090_v27  ;;  %1028 = vmatprep.subr.bf16.mxu1 %v1090_v27  ;;  %v373_v27 = vld [vmem:[#allocation2 + $0x20] sm:$0xff] }
  0x45   : > { %970 = vmatpush3.bf16.msra.mxu0 %v1091_v30  ;;  %1036 = vmatpush3.bf16.msra.mxu1 %v1091_v30 }
  0x46   : > { %971 = vmatprep.subr.bf16.mxu0 %v1092_v31  ;;  %1029 = vmatprep.subr.bf16.mxu1 %v1092_v31 }
  0x49   : > { %972 = vmatpush3.bf16.msra.mxu0 %v1093_v32  ;;  %1037 = vmatpush3.bf16.msra.mxu1 %v1093_v32 }
  0x4a   : > { %973 = vmatprep.subr.bf16.mxu0 %v1094_v33  ;;  %1030 = vmatprep.subr.bf16.mxu1 %v1094_v33 }
  0x4d   : > { %974 = vmatpush3.bf16.msra.mxu0 %v1095_v34  ;;  %1038 = vmatpush3.bf16.msra.mxu1 %v1095_v34 }
  0x50   : > { %642 = vmatmul.mubr.bf16.vlgmr.msra.gmra.mrb[0].mxu0 %v1096_v35  ;;  %674 = vmatmul.mubr.bf16.vlgmr.msra.gmra.mrb[0].mxu1 %v1099_v36  ;;  %v374_v35 = vld [vmem:[#allocation2 + $0x28] sm:$0xff] }
  0x51   : > { %649 = vmatprep.mubr.bf16.mxu0 %v1102_v37  ;;  %681 = vmatprep.mubr.bf16.mxu1 %v1104_v38  ;;  %v382_v37 = vld [vmem:[#allocation2 + $0x68] sm:$0xff] }
  0x58   : > { %650 = vmatmul.mubr.bf16.gmra.mrb[4].mxu0 %v1106_v39  ;;  %682 = vmatmul.mubr.bf16.gmra.mrb[4].mxu1 %v1107_v40 }
  0x59   : > { %657 = vmatprep.mubr.bf16.mxu0 %v1108_v41  ;;  %689 = vmatprep.mubr.bf16.mxu1 %v1110_v42 }
  0x60   : > { %658 = vmatmul.mubr.bf16.gmra.mrb[8].mxu0 %v1112_v43  ;;  %690 = vmatmul.mubr.bf16.gmra.mrb[8].mxu1 %v1113_v44 }
  0x61   : > { %665 = vmatprep.mubr.bf16.mxu0 %v1114_v45  ;;  %697 = vmatprep.mubr.bf16.mxu1 %v1116_v46 }
  0x68   : > { %666 = vmatmul.mubr.bf16.gmra.mrb[12].mxu0 %v1118_v47  ;;  %698 = vmatmul.mubr.bf16.gmra.mrb[12].mxu1 %v1119_v48  ;;  %v375_v47 = vld [vmem:[#allocation2 + $0x30] sm:$0xff] }
 0x123   : > { %v975_v49 = vpop.f32.mrb[0].mxu0  ;;  %v999_v50 = vpop.f32.mrb[0].mxu1 }
 0x124   : > { %v976_v52 = vpop.f32.mrb[1].mxu0  ;;  %v1000_v54 = vpop.f32.mrb[1].mxu1 }
 0x125   : > { %v977_v55 = vadd.f32 %v976_v52, %v975_v49  ;;  %v1001_v56 = vadd.f32 %v1000_v54, %v999_v50  ;;  %v978_v57 = vpop.f32.mrb[2].mxu0  ;;  %v1002_v58 = vpop.f32.mrb[2].mxu1  ;;  %v383_v49 = vld [vmem:[#allocation2 + $0x70] sm:$0xff] }
 0x126   : > { %v979_v60 = vpop.f32.mrb[3].mxu0  ;;  %v1003_v62 = vpop.f32.mrb[3].mxu1 }
 0x127   : > { %v706_v63 = vadd.f32 %v977_v55, %v369_v51  ;;  %v714_v0 = vadd.f32 %v1001_v56, %v377_v53  ;;  %v980_v1 = vadd.f32 %v979_v60, %v978_v57  ;;  %v1004_v2 = vadd.f32 %v1003_v62, %v1002_v58  ;;  %v376_v55 = vld [vmem:[#allocation2 + $0x38] sm:$0xff] }
 0x128   : > { %v384_v57 = vld [vmem:[#allocation2 + $0x78] sm:$0xff] }
 0x129   : > { %722 = vst [vmem:[#allocation2] sm:$0xff] %v706_v63  ;;  %730 = vst [vmem:[#allocation2 + $0x40] sm:$0xff] %v714_v0  ;;  %v707_v3 = vadd.f32 %v980_v1, %v370_v59  ;;  %v715_v4 = vadd.f32 %v1004_v2, %v378_v61  ;;  %v953_v2 = vld [vmem:[%s1355_s2] ss:$0 sm:$0xff] (!%p952_p11) }
 0x12b   : > { %723 = vst [vmem:[#allocation2 + $0x8] sm:$0xff] %v707_v3  ;;  %731 = vst [vmem:[#allocation2 + $0x48] sm:$0xff] %v715_v4  ;;  %v981_v5 = vpop.f32.mrb[4].mxu0  ;;  %v1005_v6 = vpop.f32.mrb[4].mxu1 }
 0x12c   : > { %v982_v8 = vpop.f32.mrb[5].mxu0  ;;  %v1006_v10 = vpop.f32.mrb[5].mxu1 }
 0x12d   : > { %v983_v11 = vadd.f32 %v982_v8, %v981_v5  ;;  %v1007_v12 = vadd.f32 %v1006_v10, %v1005_v6  ;;  %v984_v13 = vpop.f32.mrb[6].mxu0  ;;  %v1008_v14 = vpop.f32.mrb[6].mxu1 }
 0x12e   : > { %v985_v16 = vpop.f32.mrb[7].mxu0  ;;  %v1009_v18 = vpop.f32.mrb[7].mxu1 }
 0x12f   : > { %v708_v19 = vadd.f32 %v983_v11, %v371_v7  ;;  %v716_v20 = vadd.f32 %v1007_v12, %v379_v9  ;;  %v986_v21 = vadd.f32 %v985_v16, %v984_v13  ;;  %v1010_v22 = vadd.f32 %v1009_v18, %v1008_v14 }
 0x130   : > { %v742_v1 = vld [vmem:[#allocation2] sm:$0xff] (!%p952_p11) }
 0x131   : > { %724 = vst [vmem:[#allocation2 + $0x10] sm:$0xff] %v708_v19  ;;  %732 = vst [vmem:[#allocation2 + $0x50] sm:$0xff] %v716_v20  ;;  %v709_v23 = vadd.f32 %v986_v21, %v372_v15  ;;  %v717_v24 = vadd.f32 %v1010_v22, %v380_v17  ;;  %v765_v4 = vadd.f32 (!%p952_p11), %v953_v2, %v742_v1  ;;  %v750_v18 = vld [vmem:[#allocation2 + $0x40] sm:$0xff] (!%p952_p11) }
 0x132   : > { %v743_v3 = vld [vmem:[#allocation2 + $0x8] sm:$0xff] (!%p952_p11)  ;;  %v773_v21 = vadd.f32 (!%p952_p11), %v953_v2, %v750_v18 }
 0x133   : > { %725 = vst [vmem:[#allocation2 + $0x18] sm:$0xff] %v709_v23  ;;  %733 = vst [vmem:[#allocation2 + $0x58] sm:$0xff] %v717_v24  ;;  %v987_v25 = vpop.f32.mrb[8].mxu0  ;;  %v1011_v26 = vpop.f32.mrb[8].mxu1  ;;  %v766_v5 = vadd.f32 (!%p952_p11), %v953_v2, %v743_v3  ;;  %v751_v19 = vld [vmem:[#allocation2 + $0x48] sm:$0xff] (!%p952_p11) }
 0x134   : > { %v988_v28 = vpop.f32.mrb[9].mxu0  ;;  %v1012_v30 = vpop.f32.mrb[9].mxu1  ;;  %781 = vst [vmem:[%s1356_s3] sm:$0xff] (!%p952_p11), %v765_v4  ;;  %v774_v22 = vadd.f32 (!%p952_p11), %v953_v2, %v751_v19  ;;  %789 = vst [vmem:[%s1356_s3 + $0x40] sm:$0xff] (!%p952_p11), %v773_v21 }
 0x135   : > { %v989_v31 = vadd.f32 %v988_v28, %v987_v25  ;;  %v1013_v32 = vadd.f32 %v1012_v30, %v1011_v26  ;;  %v990_v33 = vpop.f32.mrb[10].mxu0  ;;  %v1014_v34 = vpop.f32.mrb[10].mxu1  ;;  %782 = vst [vmem:[%s1356_s3 + $0x8] sm:$0xff] (!%p952_p11), %v766_v5 }
 0x136   : > { %v991_v36 = vpop.f32.mrb[11].mxu0  ;;  %v1015_v38 = vpop.f32.mrb[11].mxu1  ;;  %790 = vst [vmem:[%s1356_s3 + $0x48] sm:$0xff] (!%p952_p11), %v774_v22 }
 0x137   : > { %v710_v39 = vadd.f32 %v989_v31, %v373_v27  ;;  %v718_v40 = vadd.f32 %v1013_v32, %v381_v29  ;;  %v992_v41 = vadd.f32 %v991_v36, %v990_v33  ;;  %v1016_v42 = vadd.f32 %v1015_v38, %v1014_v34 }
 0x138   : > { %v744_v6 = vld [vmem:[#allocation2 + $0x10] sm:$0xff] (!%p952_p11) }
 0x139   : > { %726 = vst [vmem:[#allocation2 + $0x20] sm:$0xff] %v710_v39  ;;  %734 = vst [vmem:[#allocation2 + $0x60] sm:$0xff] %v718_v40  ;;  %v711_v43 = vadd.f32 %v992_v41, %v374_v35  ;;  %v719_v44 = vadd.f32 %v1016_v42, %v382_v37  ;;  %v767_v9 = vadd.f32 (!%p952_p11), %v953_v2, %v744_v6  ;;  %v752_v20 = vld [vmem:[#allocation2 + $0x50] sm:$0xff] (!%p952_p11) }
 0x13a   : > { %v745_v7 = vld [vmem:[#allocation2 + $0x18] sm:$0xff] (!%p952_p11)  ;;  %v775_v23 = vadd.f32 (!%p952_p11), %v953_v2, %v752_v20 }
 0x13b   : > { %727 = vst [vmem:[#allocation2 + $0x28] sm:$0xff] %v711_v43  ;;  %735 = vst [vmem:[#allocation2 + $0x68] sm:$0xff] %v719_v44  ;;  %v993_v45 = vpop.f32.mrb[12].mxu0  ;;  %v1017_v46 = vpop.f32.mrb[12].mxu1  ;;  %v768_v10 = vadd.f32 (!%p952_p11), %v953_v2, %v745_v7  ;;  %v753_v24 = vld [vmem:[#allocation2 + $0x58] sm:$0xff] (!%p952_p11) }
 0x13c   : > { %v994_v48 = vpop.f32.mrb[13].mxu0  ;;  %v1018_v50 = vpop.f32.mrb[13].mxu1  ;;  %783 = vst [vmem:[%s1356_s3 + $0x10] sm:$0xff] (!%p952_p11), %v767_v9  ;;  %v776_v27 = vadd.f32 (!%p952_p11), %v953_v2, %v753_v24  ;;  %791 = vst [vmem:[%s1356_s3 + $0x50] sm:$0xff] (!%p952_p11), %v775_v23 }
 0x13d   : > { %v995_v51 = vadd.f32 %v994_v48, %v993_v45  ;;  %v1019_v52 = vadd.f32 %v1018_v50, %v1017_v46  ;;  %v996_v53 = vpop.f32.mrb[14].mxu0  ;;  %v1020_v54 = vpop.f32.mrb[14].mxu1  ;;  %741 = sbr.rel (%p952_p11) target bundleno = 335 (0x14f), region = 78  ;;  %784 = vst [vmem:[%s1356_s3 + $0x18] sm:$0xff] (!%p952_p11), %v768_v10 }
 0x13e   : > { %v997_v56 = vpop.f32.mrb[15].mxu0  ;;  %v1021_v58 = vpop.f32.mrb[15].mxu1  ;;  %792 = vst [vmem:[%s1356_s3 + $0x58] sm:$0xff] (!%p952_p11), %v776_v27 }
 0x13f   : > { %v712_v59 = vadd.f32 %v995_v51, %v375_v47  ;;  %v720_v60 = vadd.f32 %v1019_v52, %v383_v49  ;;  %v998_v61 = vadd.f32 %v997_v56, %v996_v53  ;;  %v1022_v62 = vadd.f32 %v1021_v58, %v1020_v54 }
 0x140   : > { %v746_v8 = vld [vmem:[#allocation2 + $0x20] sm:$0xff] (!%p952_p11) }
 0x141   : > { %728 = vst [vmem:[#allocation2 + $0x30] sm:$0xff] %v712_v59  ;;  %736 = vst [vmem:[#allocation2 + $0x70] sm:$0xff] %v720_v60  ;;  %v713_v63 = vadd.f32 %v998_v61, %v376_v55  ;;  %v721_v0 = vadd.f32 %v1022_v62, %v384_v57  ;;  %v769_v11 = vadd.f32 (!%p952_p11), %v953_v2, %v746_v8  ;;  %v754_v25 = vld [vmem:[#allocation2 + $0x60] sm:$0xff] (!%p952_p11) }
 0x142   : > { %v747_v12 = vld [vmem:[#allocation2 + $0x28] sm:$0xff] (!%p952_p11)  ;;  %v777_v28 = vadd.f32 (!%p952_p11), %v953_v2, %v754_v25 }
 0x143   : > { %729 = vst [vmem:[#allocation2 + $0x38] sm:$0xff] %v713_v63  ;;  %737 = vst [vmem:[#allocation2 + $0x78] sm:$0xff] %v721_v0  ;;  %v770_v15 = vadd.f32 (!%p952_p11), %v953_v2, %v747_v12  ;;  %v755_v26 = vld [vmem:[#allocation2 + $0x68] sm:$0xff] (!%p952_p11) }
 0x144   : > { %785 = vst [vmem:[%s1356_s3 + $0x20] sm:$0xff] %v769_v11  ;;  %v778_v29 = vadd.f32 %v953_v2, %v755_v26  ;;  %793 = vst [vmem:[%s1356_s3 + $0x60] sm:$0xff] %v777_v28 }
 0x145   : > { %786 = vst [vmem:[%s1356_s3 + $0x28] sm:$0xff] %v770_v15 }
 0x146   : > { %794 = vst [vmem:[%s1356_s3 + $0x68] sm:$0xff] %v778_v29 }
 0x148   : > { %v748_v13 = vld [vmem:[#allocation2 + $0x30] sm:$0xff] }
 0x149   : > { %v771_v16 = vadd.f32 %v953_v2, %v748_v13  ;;  %v756_v30 = vld [vmem:[#allocation2 + $0x70] sm:$0xff] }
 0x14a   : > { %v749_v14 = vld [vmem:[#allocation2 + $0x38] sm:$0xff]  ;;  %v779_v32 = vadd.f32 %v953_v2, %v756_v30 }
 0x14b   : > { %v772_v17 = vadd.f32 %v953_v2, %v749_v14  ;;  %787 = vst [vmem:[%s1356_s3 + $0x30] sm:$0xff] %v771_v16  ;;  %v757_v31 = vld [vmem:[#allocation2 + $0x78] sm:$0xff] }
 0x14c   : > { %v780_v33 = vadd.f32 %v953_v2, %v757_v31  ;;  %795 = vst [vmem:[%s1356_s3 + $0x70] sm:$0xff] %v779_v32 }
 0x14d   : > { %788 = vst [vmem:[%s1356_s3 + $0x38] sm:$0xff] %v772_v17 }
 0x14e   : > { %796 = vst [vmem:[%s1356_s3 + $0x78] sm:$0xff] %v780_v33 }
 0x14f PF: > { %s13_s16 = sadd.s32 1, %s1158_s16   ;;  %s1357_s12 = smov %s1146_s13 }
 0x150   : > { %p10_p12 = scmp.ge.s32.totalorder %s13_s16, 4   ;;  %s1358_s13 = smov %s1216_s20 }
 0x151   : > { %s1359_s14 = smov %s1154_s15  ;;  %s1360_s15 = smov %s1362_s17 }
 0x152   :  { %12 = sbr.rel (!%p10_p12) target bundleno = 3 (0x3), region = 119 }

// kernel: _lambda_.153
= control target key start
LH: loop header
LB: loop body
LE: loop exit
PB: predicated region body
PF: predicated region fallthrough
CT: control target
= control target key end

     0   :  { %s815_s15 = smov 0   ;;  %s875_s0 = inlined_call_operand.vmem [shape: f32[2,16,24], index: 0, kind: input, shape index: {}]   ;;  %s876_s1 = inlined_call_operand.vmem [shape: f32[1,24], index: 1, kind: input, shape index: {}]   ;;  %s877_s2 = inlined_call_operand.vmem [shape: f32[1,24], index: 2, kind: input, shape index: {}]   ;;  %s878_s3 = inlined_call_operand.vmem [shape: f32[24,4], index: 3, kind: input, shape index: {}]   ;;  %s879_s4 = inlined_call_operand.vmem [shape: bf16[2,16,24], index: 4, kind: output, shape index: {}]  }
   0x1 LB: > { %s655_s16 = sadd.s32 4294967295, %s785_s15   ;;  %p659_p0 = scmp.ge.s32.totalorder %s785_s15, 1  ;;  %s785_s15 = sphi %s815_s15, %s14_s15  }
   0x2   : > { %p162_p1 = scmp.lt.s32.totalorder %s785_s15, 3 }
   0x4   : > { %p163_p2 = pnand %p659_p0, %p162_p1 }
   0x5   : > { %v200_v0 = vld [vmem:[%s878_s3] sm:$0xff] (!%p163_p2)  ;;  %v201_v1 = vld [vmem:[%s878_s3 + $0x8] sm:$0xff] (!%p163_p2)  ;;  %p188_p3 = scmp.lt.s32.totalorder (!%p163_p2), %s655_s16, 1  ;;  %v202_v3 = vld [vmem:[%s878_s3 + $0x10] sm:$0xff] (!%p163_p2)  ;;  %vm203_vm0 = vcmask (!%p163_p2), 195584   ;;  %vm285_vm1 = vcmask (!%p163_p2), 31744   ;;  %v378_v21 = vlaneseq (!%p163_p2) }
   0x6   : > { %166 = sbr.rel (%p163_p2) target bundleno = 962 (0x3c2), region = 36  ;;  %v742_v2 = vpack.c.bf16 (!%p163_p2), %v201_v1, %v200_v0  ;;  %v787_v6 = vmov (!%p163_p2), 0.0|0.0   ;;  %vm842_vm2 = vmpackc.low (!%p163_p2), %vm285_vm1, %vm285_vm1  ;;  %v788_v8 = vmov (!%p163_p2), 0.0   ;;  %vm789_vm3 = vmmov (!%p163_p2), 0   ;;  %v676_v48 = vld [vmem:[%s876_s1] ss:$0 sm:$0xff] (!%p163_p2) }
   0x7   : > { %v379_v22 = vshrl.u32 (!%p163_p2), %v378_v21, 7  ;;  %v677_v51 = vld [vmem:[%s877_s2] ss:$0 sm:$0xff] (!%p163_p2)  ;;  %vm597_vm4 = vcmask (!%p163_p2), 191488  }
   0x8   : > { %743 = vmatprep.subr.bf16.mxu1 (!%p163_p2), %v742_v2  ;;  %751 = vmatprep.subr.bf16.mxu0 (!%p163_p2), %v742_v2 }
   0x9   : > { %745 = vmatpush3.bf16.msra.mxu1 (!%p163_p2), %v742_v2  ;;  %753 = vmatpush3.bf16.msra.mxu0 (!%p163_p2), %v742_v2  ;;  %v380_v23 = vsub.s32 (!%p163_p2), 0, %v379_v22 }
   0xa   : > { %710 = vmatprep.subr.mxu1 (!%p163_p2), %v202_v3  ;;  %728 = vmatprep.subr.mxu0 (!%p163_p2), %v202_v3 }
   0xd   : > { %s883_s16 = smov (!%p188_p3, %s655_s16), 1  ;;  %711 = vmatpush3.msra.mxu1 %v202_v3  ;;  %729 = vmatpush3.msra.mxu0 %v202_v3 }
   0xe   : > { %s684_s23 = sshll.u32 %s883_s16, 4  ;;  %746 = vmatprep.subr.bf16.mxu1 %v787_v6  ;;  %754 = vmatprep.subr.bf16.mxu0 %v787_v6  ;;  %s685_s5 = sshll.u32 %s883_s16, 3 }
   0xf   : > { %s192_s26 = scalar_lea.vmem %s875_s0, %s684_s23  ;;  %s197_s8 = scalar_lea.vmem %s879_s4, %s685_s5 }
  0x10   : > { %v198_v4 = vld [vmem:[%s192_s26] sm:$0xff]  ;;  %v199_v5 = vld [vmem:[%s192_s26 + $0x8] sm:$0xff] }
  0x11   : > { %712 = vmatprep.mubr.msk.f32.mxu1 %vm203_vm0, %v198_v4 }
  0x12   : > { %713 = vmatmul.mubr.msk.f32.vlgmr.msra.gmra.mrb[0].mxu1 %vm203_vm0, %v199_v5 }
  0x13   : > { %721 = vmatprep.mubr.msk.f32.mxu1 %vm789_vm3, %v788_v8 }
  0x14   : > { %749 = vmatpush3.bf16.xpose.msk.msra.mxu1 %vm842_vm2, %v742_v2 }
  0x15   : > { %719 = vmatprep.subr.mxu1 %v788_v8 }
  0x1c   : > { %720 = vmatpush3.xpose.msk.msra.mxu1 %vm285_vm1, %v202_v3 }
  0xe5   : > { %v714_v9 = vpop.f32.mrb[0].mxu1 }
  0xe6   : > { %v287_v10 = vsel %vm285_vm1, %v714_v9, 0.0  ;;  %v276_v11 = vpop.f32.mrb[1].mxu1 }
  0xe7   : > { %v286_v12 = vsel %vm285_vm1, %v276_v11, 0.0 }
  0xe8   : > { %v288_v13 = vadd.f32 %v287_v10, %v286_v12 }
  0xea   : > { %v289_v14 = vrot.slane %v288_v13, 4 }
  0xec   : > { %v290_v15 = vadd.f32 %v289_v14, %v288_v13 }
  0xee   : > { %v291_v16 = vrot.slane %v290_v15, 2 }
  0xf0   : > { %v292_v17 = vadd.f32 %v291_v16, %v290_v15 }
  0xf2   : > { %v293_v18 = vrot.slane %v292_v17, 1 }
  0xf4   : > { %v294_v19 = vadd.f32 %v293_v18, %v292_v17 }
  0xf6   : > { %v295_v20 = vmul.f32 0.010416667, %v294_v19 }
  0xf8   : > { %722 = vmatmul.mubr.msk.f32.vlgmr.msra.gmra.mrb[2].mxu1 %vm285_vm1, %v295_v20 }
 0x1cb   : > { %v374_v24 = vpop.f32.mrb[2].mxu1 }
 0x1cc   : > { %v381_v25 = vrot.slane %v374_v24, %v380_v23  ;;  %v723_v26 = vpop.f32.mrb[3].mxu1 }
 0x1ce   : > { %v382_v27 = vsub.f32 %v198_v4, %v381_v25  ;;  %v383_v28 = vsub.f32 %v199_v5, %v381_v25 }
 0x1d0   : > { %v385_v29 = vmul.f32 %v383_v28, %v383_v28  ;;  %v384_v30 = vmul.f32 %v382_v27, %v382_v27 }
 0x1d2   : > { %730 = vmatprep.mubr.msk.f32.mxu0 %vm203_vm0, %v384_v30 }
 0x1d3   : > { %731 = vmatmul.mubr.msk.f32.vlgmr.msra.gmra.mrb[0].mxu0 %vm203_vm0, %v385_v29 }
 0x1d4   : > { %757 = vmatpush3.bf16.xpose.msk.msra.mxu0 %vm842_vm2, %v742_v2  ;;  %739 = vmatprep.mubr.msk.f32.mxu0 %vm789_vm3, %v788_v8 }
 0x1d5   : > { %737 = vmatprep.subr.mxu0 %v788_v8 }
 0x1dc   : > { %738 = vmatpush3.xpose.msk.msra.mxu0 %vm285_vm1, %v202_v3 }
 0x2a6   : > { %v732_v31 = vpop.f32.mrb[0].mxu0 }
 0x2a7   : > { %v468_v32 = vsel %vm285_vm1, %v732_v31, 0.0  ;;  %v458_v33 = vpop.f32.mrb[1].mxu0 }
 0x2a8   : > { %v467_v34 = vsel %vm285_vm1, %v458_v33, 0.0 }
 0x2a9   : > { %v469_v35 = vadd.f32 %v468_v32, %v467_v34 }
 0x2ab   : > { %v470_v36 = vrot.slane %v469_v35, 4 }
 0x2ad   : > { %v471_v37 = vadd.f32 %v470_v36, %v469_v35 }
 0x2af   : > { %v472_v38 = vrot.slane %v471_v37, 2 }
 0x2b1   : > { %v473_v39 = vadd.f32 %v472_v38, %v471_v37 }
 0x2b3   : > { %v474_v40 = vrot.slane %v473_v39, 1 }
 0x2b5   : > { %v475_v41 = vadd.f32 %v474_v40, %v473_v39 }
 0x2b7   : > { %v476_v42 = vmul.f32 0.010416667, %v475_v41 }
 0x2b9   : > { %740 = vmatmul.mubr.msk.f32.vlgmr.msra.gmra.mrb[2].mxu0 %vm285_vm1, %v476_v42 }
 0x38c   : > { %v546_v43 = vpop.f32.mrb[2].mxu0 }
 0x38d   : > { %v547_v44 = vadd.f32 1e-05, %v546_v43  ;;  %v741_v45 = vpop.f32.mrb[3].mxu0 }
 0x38f   : > { %769 = vrsqrt.f32 %v547_v44 }
 0x399   : > { %v770_v46 = vpop.eup %769 }
 0x39a   : > { %v554_v47 = vrot.slane %v770_v46, %v380_v23 }
 0x39c   : > { %v555_v49 = vmul.f32 %v554_v47, %v382_v27  ;;  %v556_v50 = vmul.f32 %v554_v47, %v383_v28 }
 0x39e   : > { %v564_v52 = vmul.f32 %v676_v48, %v555_v49  ;;  %v565_v53 = vmul.f32 %v676_v48, %v556_v50 }
 0x3a0   : > { %v573_v54 = vadd.f32 %v677_v51, %v564_v52  ;;  %v574_v55 = vadd.f32 %v677_v51, %v565_v53 }
 0x3a2   : > { %v678_v56 = vmul.f32 -1.442695, %v573_v54  ;;  %v679_v57 = vmul.f32 -1.442695, %v574_v55 }
 0x3a4   : > { %771 = vpow2.f32 %v678_v56 }
 0x3a5   : > { %773 = vpow2.f32 %v679_v57 }
 0x3ae   : > { %v772_v58 = vpop.eup %771 }
 0x3af   : > { %v774_v59 = vpop.eup %773  ;;  %v581_v60 = vadd.f32 1.0, %v772_v58 }
 0x3b0   : > { %v582_v61 = vadd.f32 1.0, %v774_v59 }
 0x3b1   : > { %775 = vrcp.f32 %v581_v60 }
 0x3b2   : > { %777 = vrcp.f32 %v582_v61 }
 0x3bb   : > { %v776_v62 = vpop.eup %775 }
 0x3bc   : > { %v778_v63 = vpop.eup %777  ;;  %v587_v0 = vmul.f32 %v776_v62, %v573_v54 }
 0x3bd   : > { %v588_v1 = vmul.f32 %v778_v63, %v574_v55 }
 0x3be   : > { %v686_v2 = vpack.c.bf16 %v587_v0, %v587_v0 }
 0x3bf   : > { %v687_v3 = vpack.c.bf16 %v588_v1, %v588_v1 }
 0x3c0   : > { %598 = vst.msk [vmem:[%s197_s8] sm:$0xf] %vm597_vm4, %v686_v2 }
 0x3c1   : > { %599 = vst.msk [vmem:[%s197_s8 + $0x4] sm:$0xf] %vm597_vm4, %v687_v3 }
 0x3c2 PF: > { %s14_s15 = sadd.s32 1, %s785_s15  }
 0x3c3   : > { %p11_p4 = scmp.ge.s32.totalorder %s14_s15, 4  }
 0x3c5   :  { %13 = sbr.rel (!%p11_p4) target bundleno = 1 (0x1), region = 66 }

// kernel: _lambda_.160
= control target key start
LH: loop header
LB: loop body
LE: loop exit
PB: predicated region body
PF: predicated region fallthrough
CT: control target
= control target key end

     0   :  { %s1127_s15 = smov 0   ;;  %s1272_s0 = inlined_call_operand.vmem [shape: f32[2,64,24], index: 0, kind: input, shape index: {}]   ;;  %s1273_s1 = inlined_call_operand.vmem [shape: f32[1,24], index: 1, kind: input, shape index: {}]   ;;  %s1274_s2 = inlined_call_operand.vmem [shape: f32[1,24], index: 2, kind: input, shape index: {}]   ;;  %s1275_s3 = inlined_call_operand.vmem [shape: f32[24,4], index: 3, kind: input, shape index: {}]   ;;  %s1276_s4 = inlined_call_operand.vmem [shape: bf16[2,64,24], index: 4, kind: output, shape index: {}]  }
   0x1 LB: > { %s883_s16 = sadd.s32 4294967295, %s1097_s15   ;;  %p887_p0 = scmp.ge.s32.totalorder %s1097_s15, 1  ;;  %s1097_s15 = sphi %s1127_s15, %s14_s15  }
   0x2   : > { %p162_p1 = scmp.lt.s32.totalorder %s1097_s15, 3 }
   0x4   : > { %p163_p2 = pnand %p887_p0, %p162_p1 }
   0x5   : > { %v206_v0 = vld [vmem:[%s1275_s3] sm:$0xff] (!%p163_p2)  ;;  %v207_v1 = vld [vmem:[%s1275_s3 + $0x8] sm:$0xff] (!%p163_p2)  ;;  %p188_p3 = scmp.lt.s32.totalorder (!%p163_p2), %s883_s16, 1  ;;  %v1146_v3 = vld [vmem:[%s1275_s3 + $0x10] sm:$0xff] (!%p163_p2)  ;;  %vm209_vm0 = vcmask (!%p163_p2), 195584   ;;  %vm339_vm1 = vcmask (!%p163_p2), 31744   ;;  %v444_v44 = vlaneseq (!%p163_p2) }
   0x6   : > { %166 = sbr.rel (%p163_p2) target bundleno = 996 (0x3e4), region = 36  ;;  %v1141_v2 = vpack.c.bf16 (!%p163_p2), %v207_v1, %v206_v0  ;;  %v1099_v12 = vmov (!%p163_p2), 0.0|0.0   ;;  %vm1036_vm2 = vmpackc.low (!%p163_p2), %vm339_vm1, %vm339_vm1  ;;  %v1100_v13 = vmov (!%p163_p2), 0.0   ;;  %vm1101_vm3 = vmmov (!%p163_p2), 0  }
   0x7   : > { %1034 = vmatprep.subr.bf16.mxu1 (!%p163_p2), %v1099_v12  ;;  %1000 = vmatprep.mubr.msk.f32.mxu1 (!%p163_p2), %vm1101_vm3, %v1100_v13  ;;  %v1211_v45 = vshrl.u32 (!%p163_p2), %v444_v44, 7  ;;  %vm819_vm4 = vcmask (!%p163_p2), 191488  }
   0x8   : > { %1031 = vmatprep.subr.bf16.mxu0 (!%p163_p2), %v1141_v2  ;;  %1037 = vmatpush3.bf16.xpose.msk.msra.mxu1 (!%p163_p2), %vm1036_vm2, %v1141_v2 }
   0x9   : > { %1033 = vmatpush3.bf16.msra.mxu0 (!%p163_p2), %v1141_v2  ;;  %998 = vmatprep.subr.mxu1 (!%p163_p2), %v1100_v13  ;;  %v446_v46 = vsub.s32 (!%p163_p2), 0, %v1211_v45 }
   0xa   : > { %980 = vmatprep.subr.mxu0 (!%p163_p2), %v1146_v3 }
   0xd   : > { %s1278_s16 = smov (!%p188_p3, %s883_s16), 1  ;;  %981 = vmatpush3.msra.mxu0 %v1146_v3 }
   0xe   : > { %s936_s23 = sshll.u32 %s1278_s16, 6  ;;  %1042 = vmatprep.subr.bf16.mxu0 %v1099_v12  ;;  %s937_s5 = sshll.u32 %s1278_s16, 5 }
   0xf   : > { %s192_s26 = scalar_lea.vmem %s1272_s0, %s936_s23  ;;  %s197_s8 = scalar_lea.vmem %s1276_s4, %s937_s5 }
  0x10   : > { %v1157_v4 = vld [vmem:[%s192_s26] sm:$0xff]  ;;  %v1159_v5 = vld [vmem:[%s192_s26 + $0x8] sm:$0xff]  ;;  %v1163_v6 = vld [vmem:[%s192_s26 + $0x10] sm:$0xff]  ;;  %999 = vmatpush3.xpose.msk.msra.mxu1 %vm339_vm1, %v1146_v3 }
  0x11   : > { %982 = vmatprep.mubr.msk.f32.mxu0 %vm209_vm0, %v1157_v4  ;;  %v1170_v7 = vld [vmem:[%s192_s26 + $0x18] sm:$0xff]  ;;  %v1172_v8 = vld [vmem:[%s192_s26 + $0x20] sm:$0xff]  ;;  %v1178_v9 = vld [vmem:[%s192_s26 + $0x28] sm:$0xff]  ;;  %1039 = vmatprep.subr.bf16.mxu1 %v1141_v2 }
  0x12   : > { %983 = vmatmul.mubr.msk.f32.vlgmr.msra.gmra.mrb[0].mxu0 %vm209_vm0, %v1159_v5  ;;  %v1180_v10 = vld [vmem:[%s192_s26 + $0x30] sm:$0xff]  ;;  %v1186_v11 = vld [vmem:[%s192_s26 + $0x38] sm:$0xff] }
  0x13   : > { %985 = vmatprep.mubr.msk.f32.mxu0 %vm209_vm0, %v1163_v6 }
  0x14   : > { %1045 = vmatpush3.bf16.xpose.msk.msra.mxu0 %vm1036_vm2, %v1141_v2 }
  0x15   : > { %1025 = vmatprep.subr.mxu0 %v1100_v13 }
  0x16   : > { %986 = vmatmul.mubr.msk.f32.gmra.mrb[2].mxu0 %vm209_vm0, %v1170_v7 }
  0x17   : > { %988 = vmatprep.mubr.msk.f32.mxu0 %vm209_vm0, %v1172_v8 }
  0x1a   : > { %989 = vmatmul.mubr.msk.f32.gmra.mrb[4].mxu0 %vm209_vm0, %v1178_v9 }
  0x1b   : > { %991 = vmatprep.mubr.msk.f32.mxu0 %vm209_vm0, %v1180_v10 }
  0x1c   : > { %1026 = vmatpush3.xpose.msk.msra.mxu0 %vm339_vm1, %v1146_v3 }
  0x1e   : > { %992 = vmatmul.mubr.msk.f32.gmra.mrb[6].mxu0 %vm209_vm0, %v1186_v11 }
  0x1f   : > { %1027 = vmatprep.mubr.msk.f32.mxu0 %vm1101_vm3, %v1100_v13 }
  0xe5   : > { %v984_v14 = vpop.f32.mrb[0].mxu0 }
  0xe6   : > { %v341_v15 = vsel %vm339_vm1, %v984_v14, 0.0  ;;  %v300_v16 = vpop.f32.mrb[1].mxu0 }
  0xe7   : > { %v340_v17 = vsel %vm339_vm1, %v300_v16, 0.0 }
  0xe8   : > { %v342_v18 = vadd.f32 %v341_v15, %v340_v17 }
  0xe9   : > { %v987_v19 = vpop.f32.mrb[2].mxu0 }
  0xea   : > { %v310_v20 = vpop.f32.mrb[3].mxu0  ;;  %v345_v23 = vsel %vm339_vm1, %v987_v19, 0.0 }
  0xeb   : > { %v343_v21 = vsel %vm339_vm1, %v310_v20, 0.0 }
  0xec   : > { %v344_v22 = vadd.f32 %v343_v21, %v342_v18 }
  0xed   : > { %v990_v24 = vpop.f32.mrb[4].mxu0 }
  0xee   : > { %v320_v25 = vpop.f32.mrb[5].mxu0  ;;  %v346_v26 = vadd.f32 %v345_v23, %v344_v22  ;;  %v349_v29 = vsel %vm339_vm1, %v990_v24, 0.0 }
  0xef   : > { %v347_v27 = vsel %vm339_vm1, %v320_v25, 0.0 }
  0xf0   : > { %v348_v28 = vadd.f32 %v347_v27, %v346_v26 }
  0xf1   : > { %v993_v30 = vpop.f32.mrb[6].mxu0 }
  0xf2   : > { %v330_v31 = vpop.f32.mrb[7].mxu0  ;;  %v350_v32 = vadd.f32 %v349_v29, %v348_v28  ;;  %v353_v35 = vsel %vm339_vm1, %v993_v30, 0.0 }
  0xf3   : > { %v351_v33 = vsel %vm339_vm1, %v330_v31, 0.0 }
  0xf4   : > { %v352_v34 = vadd.f32 %v351_v33, %v350_v32 }
  0xf6   : > { %v354_v36 = vadd.f32 %v353_v35, %v352_v34 }
  0xf8   : > { %v355_v37 = vrot.slane %v354_v36, 4 }
  0xfa   : > { %v356_v38 = vadd.f32 %v355_v37, %v354_v36  ;;  %v916_v37 = vld [vmem:[%s1273_s1] ss:$0 sm:$0xff] }
  0xfc   : > { %v357_v39 = vrot.slane %v356_v38, 2 }
  0xfe   : > { %v358_v40 = vadd.f32 %v357_v39, %v356_v38 }
 0x100   : > { %v359_v41 = vrot.slane %v358_v40, 1 }
 0x102   : > { %v360_v42 = vadd.f32 %v359_v41, %v358_v40 }
 0x104   : > { %v361_v43 = vmul.f32 0.0026041667, %v360_v42 }
 0x106   : > { %1001 = vmatmul.mubr.msk.f32.vlgmr.msra.gmra.mrb[0].mxu1 %vm339_vm1, %v361_v43 }
 0x107   : > { %1041 = vmatpush3.bf16.msra.mxu1 %v1141_v2 }
 0x108   : > { %1007 = vmatprep.subr.mxu1 %v1146_v3 }
 0x10b   : > { %1008 = vmatpush3.msra.mxu1 %v1146_v3 }
 0x1d9   : > { %v440_v47 = vpop.f32.mrb[0].mxu1 }
 0x1da   : > { %v447_v48 = vrot.slane %v440_v47, %v446_v46  ;;  %v1002_v49 = vpop.f32.mrb[1].mxu1 }
 0x1dc   : > { %v448_v50 = vsub.f32 %v1157_v4, %v447_v48  ;;  %v449_v51 = vsub.f32 %v1159_v5, %v447_v48  ;;  %v450_v52 = vsub.f32 %v1163_v6, %v447_v48  ;;  %v451_v55 = vsub.f32 %v1170_v7, %v447_v48 }
 0x1dd   : > { %v452_v57 = vsub.f32 %v1172_v8, %v447_v48  ;;  %v453_v59 = vsub.f32 %v1178_v9, %v447_v48  ;;  %v454_v61 = vsub.f32 %v1180_v10, %v447_v48  ;;  %v455_v63 = vsub.f32 %v1186_v11, %v447_v48  ;;  %v917_v48 = vld [vmem:[%s1274_s2] ss:$0 sm:$0xff] }
 0x1de   : > { %v456_v53 = vmul.f32 %v448_v50, %v448_v50  ;;  %v457_v54 = vmul.f32 %v449_v51, %v449_v51  ;;  %v458_v56 = vmul.f32 %v450_v52, %v450_v52  ;;  %v459_v58 = vmul.f32 %v451_v55, %v451_v55 }
 0x1df   : > { %v460_v60 = vmul.f32 %v452_v57, %v452_v57  ;;  %v461_v62 = vmul.f32 %v453_v59, %v453_v59  ;;  %v462_v0 = vmul.f32 %v454_v61, %v454_v61  ;;  %v463_v1 = vmul.f32 %v455_v63, %v455_v63 }
 0x1e0   : > { %1009 = vmatprep.mubr.msk.f32.mxu1 %vm209_vm0, %v456_v53 }
 0x1e1   : > { %1010 = vmatmul.mubr.msk.f32.vlgmr.msra.gmra.mrb[2].mxu1 %vm209_vm0, %v457_v54 }
 0x1e2   : > { %1012 = vmatprep.mubr.msk.f32.mxu1 %vm209_vm0, %v458_v56 }
 0x1e5   : > { %1013 = vmatmul.mubr.msk.f32.gmra.mrb[4].mxu1 %vm209_vm0, %v459_v58 }
 0x1e6   : > { %1015 = vmatprep.mubr.msk.f32.mxu1 %vm209_vm0, %v460_v60 }
 0x1e9   : > { %1016 = vmatmul.mubr.msk.f32.gmra.mrb[6].mxu1 %vm209_vm0, %v461_v62 }
 0x1ea   : > { %1018 = vmatprep.mubr.msk.f32.mxu1 %vm209_vm0, %v462_v0 }
 0x1ed   : > { %1019 = vmatmul.mubr.msk.f32.gmra.mrb[8].mxu1 %vm209_vm0, %v463_v1 }
 0x2b4   : > { %v1011_v2 = vpop.f32.mrb[2].mxu1 }
 0x2b5   : > { %v594_v3 = vsel %vm339_vm1, %v1011_v2, 0.0  ;;  %v554_v4 = vpop.f32.mrb[3].mxu1 }
 0x2b6   : > { %v593_v5 = vsel %vm339_vm1, %v554_v4, 0.0 }
 0x2b7   : > { %v595_v6 = vadd.f32 %v594_v3, %v593_v5 }
 0x2b8   : > { %v1014_v7 = vpop.f32.mrb[4].mxu1 }
 0x2b9   : > { %v564_v8 = vpop.f32.mrb[5].mxu1  ;;  %v598_v11 = vsel %vm339_vm1, %v1014_v7, 0.0 }
 0x2ba   : > { %v596_v9 = vsel %vm339_vm1, %v564_v8, 0.0 }
 0x2bb   : > { %v597_v10 = vadd.f32 %v596_v9, %v595_v6 }
 0x2bc   : > { %v1017_v12 = vpop.f32.mrb[6].mxu1 }
 0x2bd   : > { %v574_v13 = vpop.f32.mrb[7].mxu1  ;;  %v599_v14 = vadd.f32 %v598_v11, %v597_v10  ;;  %v602_v17 = vsel %vm339_vm1, %v1017_v12, 0.0 }
 0x2be   : > { %v600_v15 = vsel %vm339_vm1, %v574_v13, 0.0 }
 0x2bf   : > { %v601_v16 = vadd.f32 %v600_v15, %v599_v14 }
 0x2c0   : > { %v1020_v18 = vpop.f32.mrb[8].mxu1 }
 0x2c1   : > { %v584_v19 = vpop.f32.mrb[9].mxu1  ;;  %v603_v20 = vadd.f32 %v602_v17, %v601_v16  ;;  %v606_v23 = vsel %vm339_vm1, %v1020_v18, 0.0 }
 0x2c2   : > { %v604_v21 = vsel %vm339_vm1, %v584_v19, 0.0 }
 0x2c3   : > { %v605_v22 = vadd.f32 %v604_v21, %v603_v20 }
 0x2c5   : > { %v607_v24 = vadd.f32 %v606_v23, %v605_v22 }
 0x2c7   : > { %v608_v25 = vrot.slane %v607_v24, 4 }
 0x2c9   : > { %v609_v26 = vadd.f32 %v608_v25, %v607_v24 }
 0x2cb   : > { %v610_v27 = vrot.slane %v609_v26, 2 }
 0x2cd   : > { %v611_v28 = vadd.f32 %v610_v27, %v609_v26 }
 0x2cf   : > { %v612_v29 = vrot.slane %v611_v28, 1 }
 0x2d1   : > { %v613_v30 = vadd.f32 %v612_v29, %v611_v28 }
 0x2d3   : > { %v614_v31 = vmul.f32 0.0026041667, %v613_v30 }
 0x2d5   : > { %1028 = vmatmul.mubr.msk.f32.vlgmr.msra.gmra.mrb[8].mxu0 %vm339_vm1, %v614_v31 }
 0x3a8   : > { %v684_v32 = vpop.f32.mrb[8].mxu0 }
 0x3a9   : > { %v685_v33 = vadd.f32 1e-05, %v684_v32  ;;  %v1029_v34 = vpop.f32.mrb[9].mxu0 }
 0x3ab   : > { %1057 = vrsqrt.f32 %v685_v33 }
 0x3b5   : > { %v1058_v35 = vpop.eup %1057 }
 0x3b6   : > { %v692_v36 = vrot.slane %v1058_v35, %v446_v46 }
 0x3b8   : > { %v693_v38 = vmul.f32 %v692_v36, %v448_v50  ;;  %v694_v39 = vmul.f32 %v692_v36, %v449_v51  ;;  %v695_v40 = vmul.f32 %v692_v36, %v450_v52  ;;  %v696_v41 = vmul.f32 %v692_v36, %v451_v55 }
 0x3b9   : > { %v697_v42 = vmul.f32 %v692_v36, %v452_v57  ;;  %v698_v43 = vmul.f32 %v692_v36, %v453_v59  ;;  %v699_v44 = vmul.f32 %v692_v36, %v454_v61  ;;  %v700_v47 = vmul.f32 %v692_v36, %v455_v63 }
 0x3ba   : > { %v708_v49 = vmul.f32 %v916_v37, %v693_v38  ;;  %v709_v53 = vmul.f32 %v916_v37, %v694_v39  ;;  %v710_v45 = vmul.f32 %v916_v37, %v695_v40  ;;  %v711_v46 = vmul.f32 %v916_v37, %v696_v41 }
 0x3bb   : > { %v712_v54 = vmul.f32 %v916_v37, %v697_v42  ;;  %v713_v56 = vmul.f32 %v916_v37, %v698_v43  ;;  %v714_v58 = vmul.f32 %v916_v37, %v699_v44  ;;  %v715_v60 = vmul.f32 %v916_v37, %v700_v47 }
 0x3bc   : > { %v723_v50 = vadd.f32 %v917_v48, %v708_v49  ;;  %v724_v51 = vadd.f32 %v917_v48, %v709_v53  ;;  %v725_v52 = vadd.f32 %v917_v48, %v710_v45  ;;  %v726_v55 = vadd.f32 %v917_v48, %v711_v46 }
 0x3bd   : > { %v727_v57 = vadd.f32 %v917_v48, %v712_v54  ;;  %v728_v59 = vadd.f32 %v917_v48, %v713_v56  ;;  %v1249_v61 = vadd.f32 %v917_v48, %v714_v58  ;;  %v1251_v1 = vadd.f32 %v917_v48, %v715_v60 }
 0x3be   : > { %v918_v62 = vmul.f32 -1.442695, %v723_v50  ;;  %v919_v63 = vmul.f32 -1.442695, %v724_v51  ;;  %v920_v0 = vmul.f32 -1.442695, %v725_v52 }
 0x3bf   : > { %v921_v2 = vmul.f32 -1.442695, %v726_v55  ;;  %v922_v3 = vmul.f32 -1.442695, %v727_v57  ;;  %v923_v4 = vmul.f32 -1.442695, %v728_v59 }
 0x3c0   : > { %1059 = vpow2.f32 %v918_v62  ;;  %v924_v5 = vmul.f32 -1.442695, %v1249_v61  ;;  %v925_v6 = vmul.f32 -1.442695, %v1251_v1 }
 0x3c1   : > { %1061 = vpow2.f32 %v919_v63 }
 0x3c2   : > { %1063 = vpow2.f32 %v920_v0 }
 0x3c3   : > { %1065 = vpow2.f32 %v921_v2 }
 0x3c4   : > { %1067 = vpow2.f32 %v922_v3 }
 0x3c5   : > { %1069 = vpow2.f32 %v923_v4 }
 0x3c6   : > { %1071 = vpow2.f32 %v924_v5 }
 0x3c7   : > { %1073 = vpow2.f32 %v925_v6 }
 0x3ca   : > { %v1060_v7 = vpop.eup %1059 }
 0x3cb   : > { %v1062_v8 = vpop.eup %1061  ;;  %v755_v9 = vadd.f32 1.0, %v1060_v7 }
 0x3cc   : > { %v1064_v10 = vpop.eup %1063  ;;  %v756_v11 = vadd.f32 1.0, %v1062_v8 }
 0x3cd   : > { %v1066_v12 = vpop.eup %1065  ;;  %v757_v13 = vadd.f32 1.0, %v1064_v10  ;;  %1075 = vrcp.f32 %v755_v9 }
 0x3ce   : > { %v1068_v14 = vpop.eup %1067  ;;  %v758_v15 = vadd.f32 1.0, %v1066_v12  ;;  %1077 = vrcp.f32 %v756_v11 }
 0x3cf   : > { %v1070_v16 = vpop.eup %1069  ;;  %v759_v17 = vadd.f32 1.0, %v1068_v14  ;;  %1079 = vrcp.f32 %v757_v13 }
 0x3d0   : > { %v1072_v18 = vpop.eup %1071  ;;  %v760_v19 = vadd.f32 1.0, %v1070_v16  ;;  %1081 = vrcp.f32 %v758_v15 }
 0x3d1   : > { %v1074_v20 = vpop.eup %1073  ;;  %v761_v21 = vadd.f32 1.0, %v1072_v18  ;;  %1083 = vrcp.f32 %v759_v17 }
 0x3d2   : > { %v762_v22 = vadd.f32 1.0, %v1074_v20  ;;  %1085 = vrcp.f32 %v760_v19 }
 0x3d3   : > { %1087 = vrcp.f32 %v761_v21 }
 0x3d4   : > { %1089 = vrcp.f32 %v762_v22 }
 0x3d7   : > { %v1076_v23 = vpop.eup %1075 }
 0x3d8   : > { %v1078_v24 = vpop.eup %1077  ;;  %v779_v25 = vmul.f32 %v1076_v23, %v723_v50 }
 0x3d9   : > { %v1080_v26 = vpop.eup %1079  ;;  %v780_v27 = vmul.f32 %v1078_v24, %v724_v51 }
 0x3da   : > { %v1082_v28 = vpop.eup %1081  ;;  %v781_v29 = vmul.f32 %v1080_v26, %v725_v52  ;;  %v938_v30 = vpack.c.bf16 %v779_v25, %v779_v25 }
 0x3db   : > { %v1084_v31 = vpop.eup %1083  ;;  %v782_v32 = vmul.f32 %v1082_v28, %v726_v55  ;;  %v939_v33 = vpack.c.bf16 %v780_v27, %v780_v27 }
 0x3dc   : > { %v1086_v34 = vpop.eup %1085  ;;  %v783_v35 = vmul.f32 %v1084_v31, %v727_v57  ;;  %v940_v36 = vpack.c.bf16 %v781_v29, %v781_v29  ;;  %820 = vst.msk [vmem:[%s197_s8] sm:$0xf] %vm819_vm4, %v938_v30 }
 0x3dd   : > { %v1088_v37 = vpop.eup %1087  ;;  %v784_v38 = vmul.f32 %v1086_v34, %v728_v59  ;;  %v941_v39 = vpack.c.bf16 %v782_v32, %v782_v32  ;;  %821 = vst.msk [vmem:[%s197_s8 + $0x4] sm:$0xf] %vm819_vm4, %v939_v33 }
 0x3de   : > { %v1090_v40 = vpop.eup %1089  ;;  %v785_v41 = vmul.f32 %v1088_v37, %v1249_v61  ;;  %v942_v42 = vpack.c.bf16 %v783_v35, %v783_v35  ;;  %822 = vst.msk [vmem:[%s197_s8 + $0x8] sm:$0xf] %vm819_vm4, %v940_v36 }
 0x3df   : > { %v786_v43 = vmul.f32 %v1090_v40, %v1251_v1  ;;  %v943_v44 = vpack.c.bf16 %v784_v38, %v784_v38  ;;  %823 = vst.msk [vmem:[%s197_s8 + $0xc] sm:$0xf] %vm819_vm4, %v941_v39 }
 0x3e0   : > { %v944_v47 = vpack.c.bf16 %v785_v41, %v785_v41  ;;  %824 = vst.msk [vmem:[%s197_s8 + $0x10] sm:$0xf] %vm819_vm4, %v942_v42 }
 0x3e1   : > { %v945_v48 = vpack.c.bf16 %v786_v43, %v786_v43  ;;  %825 = vst.msk [vmem:[%s197_s8 + $0x14] sm:$0xf] %vm819_vm4, %v943_v44 }
 0x3e2   : > { %826 = vst.msk [vmem:[%s197_s8 + $0x18] sm:$0xf] %vm819_vm4, %v944_v47 }
 0x3e3   : > { %827 = vst.msk [vmem:[%s197_s8 + $0x1c] sm:$0xf] %vm819_vm4, %v945_v48 }
 0x3e4 PF: > { %s14_s15 = sadd.s32 1, %s1097_s15  }
 0x3e5   : > { %p11_p4 = scmp.ge.s32.totalorder %s14_s15, 4  }
 0x3e7   :  { %13 = sbr.rel (!%p11_p4) target bundleno = 1 (0x1), region = 66 }

// kernel: _lambda_.166
= control target key start
LH: loop header
LB: loop body
LE: loop exit
PB: predicated region body
PF: predicated region fallthrough
CT: control target
= control target key end

     0   :  { %s1109_s15 = smov 0   ;;  %s1241_s0 = inlined_call_operand.vmem [shape: f32[2,64,16], index: 0, kind: input, shape index: {}]   ;;  %s1242_s1 = inlined_call_operand.vmem [shape: f32[1,16], index: 1, kind: input, shape index: {}]   ;;  %s1243_s2 = inlined_call_operand.vmem [shape: f32[1,16], index: 2, kind: input, shape index: {}]   ;;  %s1244_s3 = inlined_call_operand.vmem [shape: f32[16,4], index: 3, kind: input, shape index: {}]   ;;  %s1245_s4 = inlined_call_operand.vmem [shape: bf16[2,64,16], index: 4, kind: output, shape index: {}]  }
   0x1 LB: > { %s879_s16 = sadd.s32 4294967295, %s1079_s15   ;;  %p883_p0 = scmp.ge.s32.totalorder %s1079_s15, 1  ;;  %s1079_s15 = sphi %s1109_s15, %s14_s15  }
   0x2   : > { %p162_p1 = scmp.lt.s32.totalorder %s1079_s15, 3 }
   0x4   : > { %p163_p2 = pnand %p883_p0, %p162_p1 }
   0x5   : > { %v206_v0 = vld [vmem:[%s1244_s3] sm:$0xff] (!%p163_p2)  ;;  %v207_v1 = vld [vmem:[%s1244_s3 + $0x8] sm:$0xff] (!%p163_p2)  ;;  %p188_p3 = scmp.lt.s32.totalorder (!%p163_p2), %s879_s16, 1  ;;  %vm208_vm0 = vcmask (!%p163_p2), 130048   ;;  %vm338_vm1 = vcmask (!%p163_p2), 31744   ;;  %v1081_v11 = vmov (!%p163_p2), 0.0|0.0   ;;  %v440_v43 = vlaneseq (!%p163_p2) }
   0x6   : > { %166 = sbr.rel (%p163_p2) target bundleno = 996 (0x3e4), region = 36  ;;  %v1123_v2 = vpack.c.bf16 (!%p163_p2), %v207_v1, %v206_v0  ;;  %1016 = vmatprep.subr.bf16.mxu1 (!%p163_p2), %v1081_v11  ;;  %vm1018_vm2 = vmpackc.low (!%p163_p2), %vm338_vm1, %vm338_vm1  ;;  %vm1082_vm3 = vmmov (!%p163_p2), 0   ;;  %v1083_v12 = vmov (!%p163_p2), 0.0   ;;  %vm815_vm4 = vcmask (!%p163_p2), 125952  }
   0x7   : > { %986 = vmatprep.mubr.msk.f32.mxu1 (!%p163_p2), %vm1082_vm3, %v1083_v12  ;;  %v1180_v44 = vshrl.u32 (!%p163_p2), %v440_v43, 7 }
   0x8   : > { %1013 = vmatprep.subr.bf16.mxu0 (!%p163_p2), %v1123_v2  ;;  %1019 = vmatpush3.bf16.xpose.msk.msra.mxu1 (!%p163_p2), %vm1018_vm2, %v1123_v2 }
   0x9   : > { %1015 = vmatpush3.bf16.msra.mxu0 (!%p163_p2), %v1123_v2  ;;  %1021 = vmatprep.subr.bf16.mxu1 (!%p163_p2), %v1123_v2  ;;  %v442_v45 = vsub.s32 (!%p163_p2), 0, %v1180_v44 }
   0xa   : > { %1024 = vmatprep.subr.bf16.mxu0 (!%p163_p2), %v1081_v11 }
   0xd   : > { %s1247_s16 = smov (!%p188_p3, %s879_s16), 1 }
   0xe   : > { %s930_s21 = sshll.u32 %s1247_s16, 6  ;;  %s931_s29 = sshll.u32 %s1247_s16, 5 }
   0xf   : > { %s192_s24 = scalar_lea.vmem %s1241_s0, %s930_s21  ;;  %s197_s6 = scalar_lea.vmem %s1245_s4, %s931_s29 }
  0x10   : > { %v1133_v3 = vld [vmem:[%s192_s24] sm:$0xff]  ;;  %v1135_v4 = vld [vmem:[%s192_s24 + $0x8] sm:$0xff]  ;;  %v1137_v5 = vld [vmem:[%s192_s24 + $0x10] sm:$0xff] }
  0x11   : > { %970 = vmatprep.mubr.msk.f32.mxu0 %vm208_vm0, %v1133_v3  ;;  %v1145_v6 = vld [vmem:[%s192_s24 + $0x18] sm:$0xff]  ;;  %v1147_v7 = vld [vmem:[%s192_s24 + $0x20] sm:$0xff]  ;;  %v1153_v8 = vld [vmem:[%s192_s24 + $0x28] sm:$0xff] }
  0x12   : > { %971 = vmatmul.mubr.msk.f32.vlgmr.msra.gmra.mrb[0].mxu0 %vm208_vm0, %v1135_v4  ;;  %v1155_v9 = vld [vmem:[%s192_s24 + $0x30] sm:$0xff]  ;;  %v1161_v10 = vld [vmem:[%s192_s24 + $0x38] sm:$0xff] }
  0x13   : > { %973 = vmatprep.mubr.msk.f32.mxu0 %vm208_vm0, %v1137_v5  ;;  %1027 = vmatpush3.bf16.xpose.msk.msra.mxu0 %vm1018_vm2, %v1123_v2 }
  0x16   : > { %974 = vmatmul.mubr.msk.f32.gmra.mrb[2].mxu0 %vm208_vm0, %v1145_v6 }
  0x17   : > { %976 = vmatprep.mubr.msk.f32.mxu0 %vm208_vm0, %v1147_v7 }
  0x1a   : > { %977 = vmatmul.mubr.msk.f32.gmra.mrb[4].mxu0 %vm208_vm0, %v1153_v8 }
  0x1b   : > { %979 = vmatprep.mubr.msk.f32.mxu0 %vm208_vm0, %v1155_v9 }
  0x1e   : > { %980 = vmatmul.mubr.msk.f32.gmra.mrb[6].mxu0 %vm208_vm0, %v1161_v10 }
  0x1f   : > { %1009 = vmatprep.mubr.msk.f32.mxu0 %vm1082_vm3, %v1083_v12 }
  0xe5   : > { %v972_v13 = vpop.f32.mrb[0].mxu0 }
  0xe6   : > { %v340_v14 = vsel %vm338_vm1, %v972_v13, 0.0  ;;  %v299_v15 = vpop.f32.mrb[1].mxu0 }
  0xe7   : > { %v339_v16 = vsel %vm338_vm1, %v299_v15, 0.0 }
  0xe8   : > { %v341_v17 = vadd.f32 %v340_v14, %v339_v16 }
  0xe9   : > { %v975_v18 = vpop.f32.mrb[2].mxu0 }
  0xea   : > { %v309_v19 = vpop.f32.mrb[3].mxu0  ;;  %v344_v22 = vsel %vm338_vm1, %v975_v18, 0.0 }
  0xeb   : > { %v342_v20 = vsel %vm338_vm1, %v309_v19, 0.0 }
  0xec   : > { %v343_v21 = vadd.f32 %v342_v20, %v341_v17 }
  0xed   : > { %v978_v23 = vpop.f32.mrb[4].mxu0 }
  0xee   : > { %v319_v24 = vpop.f32.mrb[5].mxu0  ;;  %v345_v25 = vadd.f32 %v344_v22, %v343_v21  ;;  %v348_v28 = vsel %vm338_vm1, %v978_v23, 0.0 }
  0xef   : > { %v346_v26 = vsel %vm338_vm1, %v319_v24, 0.0 }
  0xf0   : > { %v347_v27 = vadd.f32 %v346_v26, %v345_v25 }
  0xf1   : > { %v981_v29 = vpop.f32.mrb[6].mxu0 }
  0xf2   : > { %v329_v30 = vpop.f32.mrb[7].mxu0  ;;  %v349_v31 = vadd.f32 %v348_v28, %v347_v27  ;;  %v352_v34 = vsel %vm338_vm1, %v981_v29, 0.0 }
  0xf3   : > { %v350_v32 = vsel %vm338_vm1, %v329_v30, 0.0 }
  0xf4   : > { %v351_v33 = vadd.f32 %v350_v32, %v349_v31 }
  0xf6   : > { %v353_v35 = vadd.f32 %v352_v34, %v351_v33 }
  0xf8   : > { %v354_v36 = vrot.slane %v353_v35, 4 }
  0xfa   : > { %v355_v37 = vadd.f32 %v354_v36, %v353_v35  ;;  %v910_v36 = vld [vmem:[%s1242_s1] ss:$0 sm:$0xff] }
  0xfc   : > { %v356_v38 = vrot.slane %v355_v37, 2 }
  0xfe   : > { %v357_v39 = vadd.f32 %v356_v38, %v355_v37 }
 0x100   : > { %v358_v40 = vrot.slane %v357_v39, 1 }
 0x102   : > { %v359_v41 = vadd.f32 %v358_v40, %v357_v39 }
 0x104   : > { %v360_v42 = vmul.f32 0.00390625, %v359_v41 }
 0x106   : > { %987 = vmatmul.mubr.msk.f32.vlgmr.msra.gmra.mrb[0].mxu1 %vm338_vm1, %v360_v42 }
 0x107   : > { %1023 = vmatpush3.bf16.msra.mxu1 %v1123_v2 }
 0x1d9   : > { %v436_v46 = vpop.f32.mrb[0].mxu1 }
 0x1da   : > { %v443_v47 = vrot.slane %v436_v46, %v442_v45  ;;  %v988_v48 = vpop.f32.mrb[1].mxu1 }
 0x1dc   : > { %v444_v49 = vsub.f32 %v1133_v3, %v443_v47  ;;  %v445_v50 = vsub.f32 %v1135_v4, %v443_v47  ;;  %v446_v51 = vsub.f32 %v1137_v5, %v443_v47  ;;  %v447_v54 = vsub.f32 %v1145_v6, %v443_v47 }
 0x1dd   : > { %v448_v56 = vsub.f32 %v1147_v7, %v443_v47  ;;  %v449_v58 = vsub.f32 %v1153_v8, %v443_v47  ;;  %v450_v60 = vsub.f32 %v1155_v9, %v443_v47  ;;  %v451_v62 = vsub.f32 %v1161_v10, %v443_v47  ;;  %v911_v47 = vld [vmem:[%s1243_s2] ss:$0 sm:$0xff] }
 0x1de   : > { %v452_v52 = vmul.f32 %v444_v49, %v444_v49  ;;  %v453_v53 = vmul.f32 %v445_v50, %v445_v50  ;;  %v454_v55 = vmul.f32 %v446_v51, %v446_v51  ;;  %v455_v57 = vmul.f32 %v447_v54, %v447_v54 }
 0x1df   : > { %v456_v59 = vmul.f32 %v448_v56, %v448_v56  ;;  %v457_v61 = vmul.f32 %v449_v58, %v449_v58  ;;  %v458_v63 = vmul.f32 %v450_v60, %v450_v60  ;;  %v459_v0 = vmul.f32 %v451_v62, %v451_v62 }
 0x1e0   : > { %993 = vmatprep.mubr.msk.f32.mxu1 %vm208_vm0, %v452_v52 }
 0x1e1   : > { %994 = vmatmul.mubr.msk.f32.vlgmr.msra.gmra.mrb[2].mxu1 %vm208_vm0, %v453_v53 }
 0x1e2   : > { %996 = vmatprep.mubr.msk.f32.mxu1 %vm208_vm0, %v454_v55 }
 0x1e5   : > { %997 = vmatmul.mubr.msk.f32.gmra.mrb[4].mxu1 %vm208_vm0, %v455_v57 }
 0x1e6   : > { %999 = vmatprep.mubr.msk.f32.mxu1 %vm208_vm0, %v456_v59 }
 0x1e9   : > { %1000 = vmatmul.mubr.msk.f32.gmra.mrb[6].mxu1 %vm208_vm0, %v457_v61 }
 0x1ea   : > { %1002 = vmatprep.mubr.msk.f32.mxu1 %vm208_vm0, %v458_v63 }
 0x1ed   : > { %1003 = vmatmul.mubr.msk.f32.gmra.mrb[8].mxu1 %vm208_vm0, %v459_v0 }
 0x2b4   : > { %v995_v1 = vpop.f32.mrb[2].mxu1 }
 0x2b5   : > { %v590_v2 = vsel %vm338_vm1, %v995_v1, 0.0  ;;  %v550_v3 = vpop.f32.mrb[3].mxu1 }
 0x2b6   : > { %v589_v4 = vsel %vm338_vm1, %v550_v3, 0.0 }
 0x2b7   : > { %v591_v5 = vadd.f32 %v590_v2, %v589_v4 }
 0x2b8   : > { %v998_v6 = vpop.f32.mrb[4].mxu1 }
 0x2b9   : > { %v560_v7 = vpop.f32.mrb[5].mxu1  ;;  %v594_v10 = vsel %vm338_vm1, %v998_v6, 0.0 }
 0x2ba   : > { %v592_v8 = vsel %vm338_vm1, %v560_v7, 0.0 }
 0x2bb   : > { %v593_v9 = vadd.f32 %v592_v8, %v591_v5 }
 0x2bc   : > { %v1001_v11 = vpop.f32.mrb[6].mxu1 }
 0x2bd   : > { %v570_v12 = vpop.f32.mrb[7].mxu1  ;;  %v595_v13 = vadd.f32 %v594_v10, %v593_v9  ;;  %v598_v16 = vsel %vm338_vm1, %v1001_v11, 0.0 }
 0x2be   : > { %v596_v14 = vsel %vm338_vm1, %v570_v12, 0.0 }
 0x2bf   : > { %v597_v15 = vadd.f32 %v596_v14, %v595_v13 }
 0x2c0   : > { %v1004_v17 = vpop.f32.mrb[8].mxu1 }
 0x2c1   : > { %v580_v18 = vpop.f32.mrb[9].mxu1  ;;  %v599_v19 = vadd.f32 %v598_v16, %v597_v15  ;;  %v602_v22 = vsel %vm338_vm1, %v1004_v17, 0.0 }
 0x2c2   : > { %v600_v20 = vsel %vm338_vm1, %v580_v18, 0.0 }
 0x2c3   : > { %v601_v21 = vadd.f32 %v600_v20, %v599_v19 }
 0x2c5   : > { %v603_v23 = vadd.f32 %v602_v22, %v601_v21 }
 0x2c7   : > { %v604_v24 = vrot.slane %v603_v23, 4 }
 0x2c9   : > { %v605_v25 = vadd.f32 %v604_v24, %v603_v23 }
 0x2cb   : > { %v606_v26 = vrot.slane %v605_v25, 2 }
 0x2cd   : > { %v607_v27 = vadd.f32 %v606_v26, %v605_v25 }
 0x2cf   : > { %v608_v28 = vrot.slane %v607_v27, 1 }
 0x2d1   : > { %v609_v29 = vadd.f32 %v608_v28, %v607_v27 }
 0x2d3   : > { %v610_v30 = vmul.f32 0.00390625, %v609_v29 }
 0x2d5   : > { %1010 = vmatmul.mubr.msk.f32.vlgmr.msra.gmra.mrb[8].mxu0 %vm338_vm1, %v610_v30 }
 0x3a8   : > { %v680_v31 = vpop.f32.mrb[8].mxu0 }
 0x3a9   : > { %v681_v32 = vadd.f32 1e-05, %v680_v31  ;;  %v1011_v33 = vpop.f32.mrb[9].mxu0 }
 0x3ab   : > { %1039 = vrsqrt.f32 %v681_v32 }
 0x3b5   : > { %v1040_v34 = vpop.eup %1039 }
 0x3b6   : > { %v688_v35 = vrot.slane %v1040_v34, %v442_v45 }
 0x3b8   : > { %v689_v37 = vmul.f32 %v688_v35, %v444_v49  ;;  %v690_v38 = vmul.f32 %v688_v35, %v445_v50  ;;  %v691_v39 = vmul.f32 %v688_v35, %v446_v51  ;;  %v692_v40 = vmul.f32 %v688_v35, %v447_v54 }
 0x3b9   : > { %v693_v41 = vmul.f32 %v688_v35, %v448_v56  ;;  %v694_v42 = vmul.f32 %v688_v35, %v449_v58  ;;  %v695_v43 = vmul.f32 %v688_v35, %v450_v60  ;;  %v696_v46 = vmul.f32 %v688_v35, %v451_v62 }
 0x3ba   : > { %v704_v48 = vmul.f32 %v910_v36, %v689_v37  ;;  %v705_v52 = vmul.f32 %v910_v36, %v690_v38  ;;  %v706_v44 = vmul.f32 %v910_v36, %v691_v39  ;;  %v707_v45 = vmul.f32 %v910_v36, %v692_v40 }
 0x3bb   : > { %v708_v53 = vmul.f32 %v910_v36, %v693_v41  ;;  %v709_v55 = vmul.f32 %v910_v36, %v694_v42  ;;  %v710_v57 = vmul.f32 %v910_v36, %v695_v43  ;;  %v711_v59 = vmul.f32 %v910_v36, %v696_v46 }
 0x3bc   : > { %v719_v49 = vadd.f32 %v911_v47, %v704_v48  ;;  %v720_v50 = vadd.f32 %v911_v47, %v705_v52  ;;  %v721_v51 = vadd.f32 %v911_v47, %v706_v44  ;;  %v722_v54 = vadd.f32 %v911_v47, %v707_v45 }
 0x3bd   : > { %v723_v56 = vadd.f32 %v911_v47, %v708_v53  ;;  %v724_v58 = vadd.f32 %v911_v47, %v709_v55  ;;  %v1218_v60 = vadd.f32 %v911_v47, %v710_v57  ;;  %v1220_v0 = vadd.f32 %v911_v47, %v711_v59 }
 0x3be   : > { %v912_v61 = vmul.f32 -1.442695, %v719_v49  ;;  %v913_v62 = vmul.f32 -1.442695, %v720_v50  ;;  %v914_v63 = vmul.f32 -1.442695, %v721_v51 }
 0x3bf   : > { %v915_v1 = vmul.f32 -1.442695, %v722_v54  ;;  %v916_v2 = vmul.f32 -1.442695, %v723_v56  ;;  %v917_v3 = vmul.f32 -1.442695, %v724_v58 }
 0x3c0   : > { %1041 = vpow2.f32 %v912_v61  ;;  %v918_v4 = vmul.f32 -1.442695, %v1218_v60  ;;  %v919_v5 = vmul.f32 -1.442695, %v1220_v0 }
 0x3c1   : > { %1043 = vpow2.f32 %v913_v62 }
 0x3c2   : > { %1045 = vpow2.f32 %v914_v63 }
 0x3c3   : > { %1047 = vpow2.f32 %v915_v1 }
 0x3c4   : > { %1049 = vpow2.f32 %v916_v2 }
 0x3c5   : > { %1051 = vpow2.f32 %v917_v3 }
 0x3c6   : > { %1053 = vpow2.f32 %v918_v4 }
 0x3c7   : > { %1055 = vpow2.f32 %v919_v5 }
 0x3ca   : > { %v1042_v6 = vpop.eup %1041 }
 0x3cb   : > { %v1044_v7 = vpop.eup %1043  ;;  %v751_v8 = vadd.f32 1.0, %v1042_v6 }
 0x3cc   : > { %v1046_v9 = vpop.eup %1045  ;;  %v752_v10 = vadd.f32 1.0, %v1044_v7 }
 0x3cd   : > { %v1048_v11 = vpop.eup %1047  ;;  %v753_v12 = vadd.f32 1.0, %v1046_v9  ;;  %1057 = vrcp.f32 %v751_v8 }
 0x3ce   : > { %v1050_v13 = vpop.eup %1049  ;;  %v754_v14 = vadd.f32 1.0, %v1048_v11  ;;  %1059 = vrcp.f32 %v752_v10 }
 0x3cf   : > { %v1052_v15 = vpop.eup %1051  ;;  %v755_v16 = vadd.f32 1.0, %v1050_v13  ;;  %1061 = vrcp.f32 %v753_v12 }
 0x3d0   : > { %v1054_v17 = vpop.eup %1053  ;;  %v756_v18 = vadd.f32 1.0, %v1052_v15  ;;  %1063 = vrcp.f32 %v754_v14 }
 0x3d1   : > { %v1056_v19 = vpop.eup %1055  ;;  %v757_v20 = vadd.f32 1.0, %v1054_v17  ;;  %1065 = vrcp.f32 %v755_v16 }
 0x3d2   : > { %v758_v21 = vadd.f32 1.0, %v1056_v19  ;;  %1067 = vrcp.f32 %v756_v18 }
 0x3d3   : > { %1069 = vrcp.f32 %v757_v20 }
 0x3d4   : > { %1071 = vrcp.f32 %v758_v21 }
 0x3d7   : > { %v1058_v22 = vpop.eup %1057 }
 0x3d8   : > { %v1060_v23 = vpop.eup %1059  ;;  %v775_v24 = vmul.f32 %v1058_v22, %v719_v49 }
 0x3d9   : > { %v1062_v25 = vpop.eup %1061  ;;  %v776_v26 = vmul.f32 %v1060_v23, %v720_v50 }
 0x3da   : > { %v1064_v27 = vpop.eup %1063  ;;  %v777_v28 = vmul.f32 %v1062_v25, %v721_v51  ;;  %v932_v29 = vpack.c.bf16 %v775_v24, %v775_v24 }
 0x3db   : > { %v1066_v30 = vpop.eup %1065  ;;  %v778_v31 = vmul.f32 %v1064_v27, %v722_v54  ;;  %v933_v32 = vpack.c.bf16 %v776_v26, %v776_v26 }
 0x3dc   : > { %v1068_v33 = vpop.eup %1067  ;;  %v779_v34 = vmul.f32 %v1066_v30, %v723_v56  ;;  %v934_v35 = vpack.c.bf16 %v777_v28, %v777_v28  ;;  %816 = vst.msk [vmem:[%s197_s6] sm:$0xf] %vm815_vm4, %v932_v29 }
 0x3dd   : > { %v1070_v36 = vpop.eup %1069  ;;  %v780_v37 = vmul.f32 %v1068_v33, %v724_v58  ;;  %v935_v38 = vpack.c.bf16 %v778_v31, %v778_v31  ;;  %817 = vst.msk [vmem:[%s197_s6 + $0x4] sm:$0xf] %vm815_vm4, %v933_v32 }
 0x3de   : > { %v1072_v39 = vpop.eup %1071  ;;  %v781_v40 = vmul.f32 %v1070_v36, %v1218_v60  ;;  %v936_v41 = vpack.c.bf16 %v779_v34, %v779_v34  ;;  %818 = vst.msk [vmem:[%s197_s6 + $0x8] sm:$0xf] %vm815_vm4, %v934_v35 }
 0x3df   : > { %v782_v42 = vmul.f32 %v1072_v39, %v1220_v0  ;;  %v937_v43 = vpack.c.bf16 %v780_v37, %v780_v37  ;;  %819 = vst.msk [vmem:[%s197_s6 + $0xc] sm:$0xf] %vm815_vm4, %v935_v38 }
 0x3e0   : > { %v938_v46 = vpack.c.bf16 %v781_v40, %v781_v40  ;;  %820 = vst.msk [vmem:[%s197_s6 + $0x10] sm:$0xf] %vm815_vm4, %v936_v41 }
 0x3e1   : > { %v939_v47 = vpack.c.bf16 %v782_v42, %v782_v42  ;;  %821 = vst.msk [vmem:[%s197_s6 + $0x14] sm:$0xf] %vm815_vm4, %v937_v43 }
 0x3e2   : > { %822 = vst.msk [vmem:[%s197_s6 + $0x18] sm:$0xf] %vm815_vm4, %v938_v46 }
 0x3e3   : > { %823 = vst.msk [vmem:[%s197_s6 + $0x1c] sm:$0xf] %vm815_vm4, %v939_v47 }
 0x3e4 PF: > { %s14_s15 = sadd.s32 1, %s1079_s15  }
 0x3e5   : > { %p11_p4 = scmp.ge.s32.totalorder %s14_s15, 4  }
 0x3e7   :  { %13 = sbr.rel (!%p11_p4) target bundleno = 1 (0x1), region = 66 }

</bundles_post_ra>
